<compile_context>
chip_gen: v5e
topology: v5e:2x2
jax: 0.10.0
libtpu: 0.0.40
codegen_flags: <defaults>
</compile_context>

<pallas_src>
import functools

import jax
import jax.numpy as jnp
from jax import lax
from jax.experimental import pallas as pl
from jax.experimental.pallas import tpu as pltpu


_COMPILER_PARAMS = pltpu.CompilerParams(
    dimension_semantics=("parallel",),
    vmem_limit_bytes=32 * 1024 * 1024,
)


# ----------------------------------------------------------------------------
# Pallas kernels
# ----------------------------------------------------------------------------
def _mm_bias_act_kernel(x_ref, w_ref, b_ref, o_ref, *, act):
    # bf16 x bf16 -> f32 accumulation on the MXU; epilogue in f32.
    y = jnp.dot(x_ref[...].astype(jnp.bfloat16), w_ref[...],
                preferred_element_type=jnp.float32)
    y = y + b_ref[...]
    if act == "relu":
        y = jnp.maximum(y, 0.0)
    elif act == "tanh":
        y = jnp.tanh(y)
    o_ref[...] = y.astype(o_ref.dtype)


def matmul_bias_act(x, w, b, act="none", out_dtype=jnp.bfloat16, tm=256):
    """y = act(x @ w + b). x:(M,K), w:(K,N) bf16, b:(1,N) f32.

    K and N are multiples of 128 by construction (weights padded at prep
    time) so every load/store is lane-dense. Tiled over M with a parallel
    grid dimension for DMA/compute pipelining (and dual-TC sharding on v7x).
    """
    M, K = x.shape
    Kw, N = w.shape
    assert K == Kw and N % 128 == 0
    bm = M if M <= tm else tm
    grid = (pl.cdiv(M, bm),)
    return pl.pallas_call(
        functools.partial(_mm_bias_act_kernel, act=act),
        out_shape=jax.ShapeDtypeStruct((M, N), out_dtype),
        grid=grid,
        in_specs=[
            pl.BlockSpec((bm, K), lambda i: (i, 0)),
            pl.BlockSpec((K, N), lambda i: (0, 0)),
            pl.BlockSpec((1, N), lambda i: (0, 0)),
        ],
        out_specs=pl.BlockSpec((bm, N), lambda i: (i, 0)),
        compiler_params=_COMPILER_PARAMS,
    )(x, w, b)


def _fc_reparam_kernel(h_ref, w_ref, b_ref, eps_ref, mu_ref, lv_ref, z_ref):
    # Fused [fc_mu | fc_logvar] matmul (N=256) + reparameterization epilogue.
    y = jnp.dot(h_ref[...].astype(jnp.bfloat16), w_ref[...],
                preferred_element_type=jnp.float32)
    y = y + b_ref[...]
    L = mu_ref.shape[1]
    mu = y[:, :L]
    lv = y[:, L:]
    mu_ref[...] = mu
    lv_ref[...] = lv
    z_ref[...] = mu + eps_ref[...] * jnp.exp(0.5 * lv)


def fc_reparam(h, w, b, eps):
    """mu, logvar, z = split(h @ [W_mu | W_logvar] + b); z = mu + eps*exp(.5*lv)."""
    B, K = h.shape
    _, N = w.shape
    L = N // 2
    out_shape = tuple(jax.ShapeDtypeStruct((B, L), jnp.float32) for _ in range(3))
    return pl.pallas_call(
        _fc_reparam_kernel,
        out_shape=out_shape,
        grid=(1,),
        in_specs=[
            pl.BlockSpec((B, K), lambda i: (0, 0)),
            pl.BlockSpec((K, N), lambda i: (0, 0)),
            pl.BlockSpec((1, N), lambda i: (0, 0)),
            pl.BlockSpec((B, L), lambda i: (0, 0)),
        ],
        out_specs=tuple(pl.BlockSpec((B, L), lambda i: (0, 0)) for _ in range(3)),
        compiler_params=_COMPILER_PARAMS,
    )(h, w, b, eps)


# ----------------------------------------------------------------------------
# JAX glue: NHWC patch extraction and layer wrappers
# ----------------------------------------------------------------------------
def extract_patches_nhwc(x, kh, kw, stride, pad):
    """x: (B, H, W, C) -> (B*OH*OW, kh*kw*C) with (ky, kx, c) K-ordering."""
    B, H, W, C = x.shape
    xp = jnp.pad(x, ((0, 0), (pad, pad), (pad, pad), (0, 0)))
    OH = (H + 2 * pad - kh) // stride + 1
    OW = (W + 2 * pad - kw) // stride + 1
    cols = []
    for i in range(kh):
        for j in range(kw):
            cols.append(xp[:, i:i + stride * (OH - 1) + 1:stride,
                           j:j + stride * (OW - 1) + 1:stride, :])
    p = jnp.stack(cols, axis=3)                       # (B, OH, OW, kh*kw, C)
    return p.reshape(B * OH * OW, kh * kw * C), OH, OW


def conv2d_nhwc(x, w_mat, b, cout, act):
    """k=4, stride=2, pad=1 conv. x NHWC; w_mat is the ((ky,kx,c), Npad) matrix."""
    B = x.shape[0]
    patches, OH, OW = extract_patches_nhwc(x, 4, 4, 2, 1)
    y = matmul_bias_act(patches, w_mat, b, act=act, out_dtype=jnp.bfloat16)
    return y.reshape(B, OH, OW, -1)[..., :cout]


def conv_transpose2d_nhwc(x, w_mat, b, cout, act, out_dtype=jnp.bfloat16):
    """k=4, stride=2, pad=1 ConvTranspose2d via sub-pixel (4-phase) matmul.

    One lane-dense matmul over all 2x2 stride-1 patches of the (un-dilated,
    pad-1) input produces all four output parities at once; the phases are
    then interleaved into the 2x-upsampled NHWC output with cheap slices.
    """
    B, H, _, _ = x.shape
    patches, OHp, _ = extract_patches_nhwc(x, 2, 2, 1, 1)      # OHp = H + 1
    y = matmul_bias_act(patches, w_mat, b, act=act, out_dtype=out_dtype)
    R = y.reshape(B, OHp, OHp, -1)[..., :4 * cout]
    R = R.reshape(B, OHp, OHp, 2, 2, cout)                     # phase dims (py, px)
    rows = []
    for py in range(2):
        cols = [R[:, py:py + H, px:px + H, py, px, :] for px in range(2)]
        rows.append(jnp.stack(cols, axis=3))                   # (B, H, H, 2, cout)
    out = jnp.stack(rows, axis=2)                              # (B, H, 2, H, 2, cout)
    return out.reshape(B, 2 * H, 2 * H, cout)


# ----------------------------------------------------------------------------
# Parameters: raw (PyTorch layouts) + one-time MXU-ready preparation
# ----------------------------------------------------------------------------
def init_params(key, latent_dim=128):
    ks = jax.random.split(key, 18)
    s = 0.05

    def w(k, shape):
        return (s * jax.random.normal(k, shape)).astype(jnp.float32)

    return {
        "enc1_w": w(ks[0], (32, 3, 4, 4)),    "enc1_b": w(ks[1], (32,)),
        "enc2_w": w(ks[2], (64, 32, 4, 4)),   "enc2_b": w(ks[3], (64,)),
        "enc3_w": w(ks[4], (128, 64, 4, 4)),  "enc3_b": w(ks[5], (128,)),
        "fc_mu_w": w(ks[6], (latent_dim, 2048)),     "fc_mu_b": w(ks[7], (latent_dim,)),
        "fc_logvar_w": w(ks[8], (latent_dim, 2048)), "fc_logvar_b": w(ks[9], (latent_dim,)),
        "dec_in_w": w(ks[10], (2048, latent_dim)),   "dec_in_b": w(ks[11], (2048,)),
        "dect1_w": w(ks[12], (128, 64, 4, 4)), "dect1_b": w(ks[13], (64,)),
        "dect2_w": w(ks[14], (64, 32, 4, 4)),  "dect2_b": w(ks[15], (32,)),
        "dect3_w": w(ks[16], (32, 3, 4, 4)),   "dect3_b": w(ks[17], (3,)),
    }


def prepare_params(raw, latent_dim=128):
    """One-time conversion of PyTorch-layout weights to MXU-ready matrices:
    pre-transposed, (ky,kx,c)-flattened, channel/N zero-padded to multiples of
    128, transposed convs rewritten as 4-phase (sub-pixel) matrices, bf16."""
    bf16, f32 = jnp.bfloat16, jnp.float32

    def conv_w(w, cin_pad=None, n_pad=None):
        O, C, kh, kw = w.shape
        if cin_pad is not None and cin_pad > C:
            w = jnp.pad(w, ((0, 0), (0, cin_pad - C), (0, 0), (0, 0)))
            C = cin_pad
        m = w.transpose(2, 3, 1, 0).reshape(kh * kw * C, O)   # ((ky,kx,c), o)
        if n_pad is not None and n_pad > O:
            m = jnp.pad(m, ((0, 0), (0, n_pad - O)))
        return m.astype(bf16)

    def vec(b, n_pad=None):
        if n_pad is not None and n_pad > b.shape[0]:
            b = jnp.pad(b, (0, n_pad - b.shape[0]))
        return b.reshape(1, -1).astype(f32)

    # sub-pixel tap map: output parity p at patch offset a uses kernel tap
    # t[p, a]   (derived from oy = 2*iy - 1 + ky for k=4, stride=2, pad=1).
    t = jnp.array([[3, 1], [2, 0]])

    def convT_w(w, n_pad=None):
        Cin, Cout, _, _ = w.shape                 # PyTorch (Cin, Cout, 4, 4)
        ws = w[:, :, t, :]                        # (c, o, py, a, kx)
        ws = ws[:, :, :, :, t]                    # (c, o, py, a, px, b)
        ws = ws.transpose(3, 5, 0, 2, 4, 1)       # (a, b, c, py, px, o)
        m = ws.reshape(4 * Cin, 4 * Cout)         # K=(a,b,c), N=(py,px,o)
        if n_pad is not None and n_pad > 4 * Cout:
            m = jnp.pad(m, ((0, 0), (0, n_pad - 4 * Cout)))
        return m.astype(bf16)

    def convT_b(b, n_pad=None):
        return vec(jnp.tile(b, 4), n_pad)         # (py,px,o) flat, o fastest

    # fc_mu / fc_logvar fused; K reordered from NCHW-flatten to NHWC-flatten.
    fc_w = jnp.concatenate([raw["fc_mu_w"], raw["fc_logvar_w"]], axis=0)
    fc_w = fc_w.reshape(2 * latent_dim, 128, 4, 4).transpose(0, 2, 3, 1)
    fc_w = fc_w.reshape(2 * latent_dim, 2048).T.astype(bf16)            # (2048, 256)
    fc_b = jnp.concatenate([raw["fc_mu_b"], raw["fc_logvar_b"]]).reshape(1, -1).astype(f32)

    # decoder_input; N reordered from NCHW-unflatten to NHWC.
    dw = raw["dec_in_w"].reshape(128, 4, 4, latent_dim).transpose(1, 2, 0, 3)
    dec_w = dw.reshape(2048, latent_dim).T.astype(bf16)                 # (128, 2048)
    dec_b = raw["dec_in_b"].reshape(128, 4, 4).transpose(1, 2, 0).reshape(1, 2048).astype(f32)

    return {
        "enc1_w": conv_w(raw["enc1_w"], cin_pad=8, n_pad=128),
        "enc1_b": vec(raw["enc1_b"], n_pad=128),
        "enc2_w": conv_w(raw["enc2_w"], n_pad=128),
        "enc2_b": vec(raw["enc2_b"], n_pad=128),
        "enc3_w": conv_w(raw["enc3_w"]),
        "enc3_b": vec(raw["enc3_b"]),
        "fc_w": fc_w, "fc_b": fc_b,
        "dec_w": dec_w, "dec_b": dec_b,
        "dect1_w": convT_w(raw["dect1_w"]), "dect1_b": convT_b(raw["dect1_b"]),
        "dect2_w": convT_w(raw["dect2_w"]), "dect2_b": convT_b(raw["dect2_b"]),
        "dect3_w": convT_w(raw["dect3_w"], n_pad=128),
        "dect3_b": convT_b(raw["dect3_b"], n_pad=128),
    }


# ----------------------------------------------------------------------------
# VAE forward (Pallas) and a pure-JAX f32 reference for validation
# ----------------------------------------------------------------------------
@jax.jit
def vae_forward(params, x_nchw, eps):
    B = x_nchw.shape[0]
    # external NCHW -> internal NHWC (lane-contiguous channels), pad 3 -> 8 ch.
    x = x_nchw.transpose(0, 2, 3, 1).astype(jnp.bfloat16)
    x = jnp.pad(x, ((0, 0), (0, 0), (0, 0), (0, 8 - x.shape[-1])))

    # encoder: 32x32 -> 16x16 -> 8x8 -> 4x4
    h = conv2d_nhwc(x, params["enc1_w"], params["enc1_b"], 32, "relu")
    h = conv2d_nhwc(h, params["enc2_w"], params["enc2_b"], 64, "relu")
    h = conv2d_nhwc(h, params["enc3_w"], params["enc3_b"], 128, "relu")
    hf = h.reshape(B, 4 * 4 * 128)   # NHWC flatten (fc weights reordered to match)

    # fused [fc_mu | fc_logvar] + reparameterize
    mu, logvar, z = fc_reparam(hf, params["fc_w"], params["fc_b"], eps)

    # decoder_input fc -> (B, 4, 4, 128) NHWC (weights reordered to match)
    d = matmul_bias_act(z, params["dec_w"], params["dec_b"], act="none",
                        out_dtype=jnp.bfloat16)
    d = d.reshape(B, 4, 4, 128)

    # decoder: 4x4 -> 8x8 -> 16x16 -> 32x32 (sub-pixel transposed convs)
    d = conv_transpose2d_nhwc(d, params["dect1_w"], params["dect1_b"], 64, "relu")
    d = conv_transpose2d_nhwc(d, params["dect2_w"], params["dect2_b"], 32, "relu")
    d = conv_transpose2d_nhwc(d, params["dect3_w"], params["dect3_b"], 3, "tanh",
                              out_dtype=jnp.float32)

    recon = d.transpose(0, 3, 1, 2)  # back to external NCHW, f32
    return recon, mu, logvar


@jax.jit
def reference_forward(raw, x, eps):
    """Pure-JAX f32 (HIGHEST precision) reference matching the PyTorch module."""
    hi = lax.Precision.HIGHEST

    def conv(a, w, b, stride, pad):
        y = lax.conv_general_dilated(a, w, (stride, stride),
                                     ((pad, pad), (pad, pad)),
                                     dimension_numbers=("NCHW", "OIHW", "NCHW"),
                                     precision=hi)
        return y + b.reshape(1, -1, 1, 1)

    def convT(a, w_t, b, stride, pad):
        k = w_t.shape[2]
        w_eff = jnp.flip(w_t, (2, 3)).transpose(1, 0, 2, 3)
        y = lax.conv_general_dilated(a, w_eff, (1, 1),
                                     ((k - 1 - pad, k - 1 - pad),) * 2,
                                     lhs_dilation=(stride, stride),
                                     dimension_numbers=("NCHW", "OIHW", "NCHW"),
                                     precision=hi)
        return y + b.reshape(1, -1, 1, 1)

    h = jax.nn.relu(conv(x, raw["enc1_w"], raw["enc1_b"], 2, 1))
    h = jax.nn.relu(conv(h, raw["enc2_w"], raw["enc2_b"], 2, 1))
    h = jax.nn.relu(conv(h, raw["enc3_w"], raw["enc3_b"], 2, 1))
    h = h.reshape(x.shape[0], -1)
    mu = jnp.dot(h, raw["fc_mu_w"].T, precision=hi) + raw["fc_mu_b"]
    logvar = jnp.dot(h, raw["fc_logvar_w"].T, precision=hi) + raw["fc_logvar_b"]
    z = mu + eps * jnp.exp(0.5 * logvar)
    d = jnp.dot(z, raw["dec_in_w"].T, precision=hi) + raw["dec_in_b"]
    d = d.reshape(-1, 128, 4, 4)
    d = jax.nn.relu(convT(d, raw["dect1_w"], raw["dect1_b"], 2, 1))
    d = jax.nn.relu(convT(d, raw["dect2_w"], raw["dect2_b"], 2, 1))
    d = jnp.tanh(convT(d, raw["dect3_w"], raw["dect3_b"], 2, 1))
    return d, mu, logvar


# ----------------------------------------------------------------------------
if __name__ == "__main__":
    latent_dim = 128
    key = jax.random.PRNGKey(0)
    k_x, k_eps, k_par = jax.random.split(key, 3)

    # encoder flatten == 2048 = 128*4*4  =>  input spatial is 32x32
    x = jax.random.normal(k_x, (2, 3, 32, 32), dtype=jnp.float32)
    # eps plays the role of torch.randn_like(std) in reparameterize()
    eps = jax.random.normal(k_eps, (2, latent_dim), dtype=jnp.float32)

    raw = init_params(k_par, latent_dim)
    params = prepare_params(raw, latent_dim)   # one-time weight preparation

    recon, mu, logvar = vae_forward(params, x, eps)
    jax.block_until_ready((recon, mu, logvar))

    assert recon.shape == (2, 3, 32, 32)
    assert mu.shape == (2, latent_dim)
    assert logvar.shape == (2, latent_dim)
    assert bool(jnp.all(jnp.isfinite(recon)))
    assert bool(jnp.all(jnp.abs(recon) <= 1.0))  # tanh-bounded output

    # numerical check against a pure-JAX f32 reference (bf16 MXU inputs =>
    # loose tolerance; a layout/phase bug would show O(1) differences).
    r_recon, r_mu, r_logvar = reference_forward(raw, x, eps)
    assert float(jnp.max(jnp.abs(mu - r_mu))) < 0.15
    assert float(jnp.max(jnp.abs(logvar - r_logvar))) < 0.15
    assert float(jnp.max(jnp.abs(recon - r_recon))) < 0.2

    print("KERNEL_OK")
</pallas_src>

<mosaic_0001>
module attributes {stable_mosaic.version = 11 : i64} {
  func.func @_mm_bias_act_kernel(%arg0: i32, %arg1: memref<256x128xbf16, #tpu.memory_space<vmem>>, %arg2: memref<128x128xbf16, #tpu.memory_space<vmem>>, %arg3: memref<1x128xf32, #tpu.memory_space<vmem>>, %arg4: memref<256x128xbf16, #tpu.memory_space<vmem>>) attributes {dimension_semantics = [#tpu.dimension_semantics<parallel>], iteration_bounds = array<i64: 2>, scalar_prefetch = 0 : i64, scratch_operands = 0 : i64, tpu.core_type = #tpu.core_type<tc>, window_params = [{transform_indices = @transform_0, window_bounds = array<i64: 256, 128>}, {pipeline_mode = #tpu.pipeline_mode<synchronous>, transform_indices = @transform_1, window_bounds = array<i64: 128, 128>}, {pipeline_mode = #tpu.pipeline_mode<synchronous>, transform_indices = @transform_2, window_bounds = array<i64: 1, 128>}, {transform_indices = @transform_3, window_bounds = array<i64: 256, 128>}]} {
    %c0 = arith.constant 0 : index
    %c0_0 = arith.constant 0 : index
    %0 = vector.load %arg1[%c0, %c0_0] : memref<256x128xbf16, #tpu.memory_space<vmem>>, vector<256x128xbf16>
    %c0_1 = arith.constant 0 : index
    %c0_2 = arith.constant 0 : index
    %1 = vector.load %arg2[%c0_1, %c0_2] : memref<128x128xbf16, #tpu.memory_space<vmem>>, vector<128x128xbf16>
    %cst = arith.constant dense<0.000000e+00> : vector<256x128xf32>
    %2 = tpu.matmul %0, %1, %cst {dimension_numbers = #tpu.dot_dimension_numbers<[1], [0], [0], [1], [0, 0, 1, 1], [], []>} : vector<256x128xbf16>, vector<128x128xbf16>, vector<256x128xf32> -> vector<256x128xf32>
    %c0_3 = arith.constant 0 : index
    %c0_4 = arith.constant 0 : index
    %3 = vector.load %arg3[%c0_3, %c0_4] : memref<1x128xf32, #tpu.memory_space<vmem>>, vector<1x128xf32>
    %4 = vector.broadcast %3 : vector<1x128xf32> to vector<256x128xf32>
    %5 = arith.addf %2, %4 : vector<256x128xf32>
    %cst_5 = arith.constant 0.000000e+00 : f32
    %6 = vector.broadcast %cst_5 : f32 to vector<256x128xf32>
    %7 = arith.maximumf %5, %6 : vector<256x128xf32>
    %8 = arith.truncf %7 : vector<256x128xf32> to vector<256x128xbf16>
    %c0_6 = arith.constant 0 : index
    %c0_7 = arith.constant 0 : index
    %9 = vector.load %arg4[%c0_6, %c0_7] : memref<256x128xbf16, #tpu.memory_space<vmem>>, vector<256x128xbf16>
    tpu.vector_store %arg4[%c0_6, %c0_7], %8 {strides = array<i32>} : memref<256x128xbf16, #tpu.memory_space<vmem>>, vector<256x128xbf16>,
    return
  }
  func.func @transform_0(%arg0: i32) -> (i32, i32) {
    %c0_i32 = arith.constant 0 : i32
    %c0_i32_0 = arith.constant 0 : i32
    return %arg0, %c0_i32 : i32, i32
  }
  func.func @transform_1(%arg0: i32) -> (i32, i32) {
    %c0_i32 = arith.constant 0 : i32
    %c0_i32_0 = arith.constant 0 : i32
    %c0_i32_1 = arith.constant 0 : i32
    return %c0_i32, %c0_i32_0 : i32, i32
  }
  func.func @transform_2(%arg0: i32) -> (i32, i32) {
    %c0_i32 = arith.constant 0 : i32
    %c0_i32_0 = arith.constant 0 : i32
    %c0_i32_1 = arith.constant 0 : i32
    return %c0_i32, %c0_i32_0 : i32, i32
  }
  func.func @transform_3(%arg0: i32) -> (i32, i32) {
    %c0_i32 = arith.constant 0 : i32
    %c0_i32_0 = arith.constant 0 : i32
    return %arg0, %c0_i32 : i32, i32
  }
}

module attributes {stable_mosaic.version = 11 : i64} {
  func.func @_mm_bias_act_kernel(%arg0: i32, %arg1: memref<128x512xbf16, #tpu.memory_space<vmem>>, %arg2: memref<512x128xbf16, #tpu.memory_space<vmem>>, %arg3: memref<1x128xf32, #tpu.memory_space<vmem>>, %arg4: memref<128x128xbf16, #tpu.memory_space<vmem>>) attributes {dimension_semantics = [#tpu.dimension_semantics<parallel>], iteration_bounds = array<i64: 1>, scalar_prefetch = 0 : i64, scratch_operands = 0 : i64, tpu.core_type = #tpu.core_type<tc>, window_params = [{transform_indices = @transform_0, window_bounds = array<i64: 128, 512>}, {pipeline_mode = #tpu.pipeline_mode<synchronous>, transform_indices = @transform_1, window_bounds = array<i64: 512, 128>}, {pipeline_mode = #tpu.pipeline_mode<synchronous>, transform_indices = @transform_2, window_bounds = array<i64: 1, 128>}, {transform_indices = @transform_3, window_bounds = array<i64: 128, 128>}]} {
    %c0 = arith.constant 0 : index
    %c0_0 = arith.constant 0 : index
    %0 = vector.load %arg1[%c0, %c0_0] : memref<128x512xbf16, #tpu.memory_space<vmem>>, vector<128x512xbf16>
    %c0_1 = arith.constant 0 : index
    %c0_2 = arith.constant 0 : index
    %1 = vector.load %arg2[%c0_1, %c0_2] : memref<512x128xbf16, #tpu.memory_space<vmem>>, vector<512x128xbf16>
    %cst = arith.constant dense<0.000000e+00> : vector<128x128xf32>
    %2 = tpu.matmul %0, %1, %cst {dimension_numbers = #tpu.dot_dimension_numbers<[1], [0], [0], [1], [0, 0, 1, 1], [], []>} : vector<128x512xbf16>, vector<512x128xbf16>, vector<128x128xf32> -> vector<128x128xf32>
    %c0_3 = arith.constant 0 : index
    %c0_4 = arith.constant 0 : index
    %3 = vector.load %arg3[%c0_3, %c0_4] : memref<1x128xf32, #tpu.memory_space<vmem>>, vector<1x128xf32>
    %4 = vector.broadcast %3 : vector<1x128xf32> to vector<128x128xf32>
    %5 = arith.addf %2, %4 : vector<128x128xf32>
    %cst_5 = arith.constant 0.000000e+00 : f32
    %6 = vector.broadcast %cst_5 : f32 to vector<128x128xf32>
    %7 = arith.maximumf %5, %6 : vector<128x128xf32>
    %8 = arith.truncf %7 : vector<128x128xf32> to vector<128x128xbf16>
    %c0_6 = arith.constant 0 : index
    %c0_7 = arith.constant 0 : index
    %9 = vector.load %arg4[%c0_6, %c0_7] : memref<128x128xbf16, #tpu.memory_space<vmem>>, vector<128x128xbf16>
    tpu.vector_store %arg4[%c0_6, %c0_7], %8 {strides = array<i32>} : memref<128x128xbf16, #tpu.memory_space<vmem>>, vector<128x128xbf16>,
    return
  }
  func.func @transform_0(%arg0: i32) -> (i32, i32) {
    %c0_i32 = arith.constant 0 : i32
    %c0_i32_0 = arith.constant 0 : i32
    return %arg0, %c0_i32 : i32, i32
  }
  func.func @transform_1(%arg0: i32) -> (i32, i32) {
    %c0_i32 = arith.constant 0 : i32
    %c0_i32_0 = arith.constant 0 : i32
    %c0_i32_1 = arith.constant 0 : i32
    return %c0_i32, %c0_i32_0 : i32, i32
  }
  func.func @transform_2(%arg0: i32) -> (i32, i32) {
    %c0_i32 = arith.constant 0 : i32
    %c0_i32_0 = arith.constant 0 : i32
    %c0_i32_1 = arith.constant 0 : i32
    return %c0_i32, %c0_i32_0 : i32, i32
  }
  func.func @transform_3(%arg0: i32) -> (i32, i32) {
    %c0_i32 = arith.constant 0 : i32
    %c0_i32_0 = arith.constant 0 : i32
    return %arg0, %c0_i32 : i32, i32
  }
}

module attributes {stable_mosaic.version = 11 : i64} {
  func.func @_fc_reparam_kernel(%arg0: i32, %arg1: memref<2x2048xbf16, #tpu.memory_space<vmem>>, %arg2: memref<2048x256xbf16, #tpu.memory_space<vmem>>, %arg3: memref<1x256xf32, #tpu.memory_space<vmem>>, %arg4: memref<2x128xf32, #tpu.memory_space<vmem>>, %arg5: memref<2x128xf32, #tpu.memory_space<vmem>>, %arg6: memref<2x128xf32, #tpu.memory_space<vmem>>, %arg7: memref<2x128xf32, #tpu.memory_space<vmem>>) attributes {dimension_semantics = [#tpu.dimension_semantics<parallel>], iteration_bounds = array<i64: 1>, scalar_prefetch = 0 : i64, scratch_operands = 0 : i64, tpu.core_type = #tpu.core_type<tc>, window_params = [{pipeline_mode = #tpu.pipeline_mode<synchronous>, transform_indices = @transform_0, window_bounds = array<i64: 2, 2048>}, {pipeline_mode = #tpu.pipeline_mode<synchronous>, transform_indices = @transform_1, window_bounds = array<i64: 2048, 256>}, {pipeline_mode = #tpu.pipeline_mode<synchronous>, transform_indices = @transform_2, window_bounds = array<i64: 1, 256>}, {pipeline_mode = #tpu.pipeline_mode<synchronous>, transform_indices = @transform_3, window_bounds = array<i64: 2, 128>}, {pipeline_mode = #tpu.pipeline_mode<synchronous>, transform_indices = @transform_4, window_bounds = array<i64: 2, 128>}, {pipeline_mode = #tpu.pipeline_mode<synchronous>, transform_indices = @transform_5, window_bounds = array<i64: 2, 128>}, {pipeline_mode = #tpu.pipeline_mode<synchronous>, transform_indices = @transform_6, window_bounds = array<i64: 2, 128>}]} {
    %c0 = arith.constant 0 : index
    %c0_0 = arith.constant 0 : index
    %0 = vector.load %arg1[%c0, %c0_0] : memref<2x2048xbf16, #tpu.memory_space<vmem>>, vector<2x2048xbf16>
    %c0_1 = arith.constant 0 : index
    %c0_2 = arith.constant 0 : index
    %1 = vector.load %arg2[%c0_1, %c0_2] : memref<2048x256xbf16, #tpu.memory_space<vmem>>, vector<2048x256xbf16>
    %cst = arith.constant dense<0.000000e+00> : vector<2x256xf32>
    %2 = tpu.matmul %0, %1, %cst {dimension_numbers = #tpu.dot_dimension_numbers<[1], [0], [0], [1], [0, 0, 1, 1], [], []>} : vector<2x2048xbf16>, vector<2048x256xbf16>, vector<2x256xf32> -> vector<2x256xf32>
    %c0_3 = arith.constant 0 : index
    %c0_4 = arith.constant 0 : index
    %3 = vector.load %arg3[%c0_3, %c0_4] : memref<1x256xf32, #tpu.memory_space<vmem>>, vector<1x256xf32>
    %4 = vector.broadcast %3 : vector<1x256xf32> to vector<2x256xf32>
    %5 = arith.addf %2, %4 : vector<2x256xf32>
    %6 = vector.extract_strided_slice %5 {offsets = [0, 0], sizes = [2, 128], strides = [1, 1]} : vector<2x256xf32> to vector<2x128xf32>
    %7 = vector.extract_strided_slice %5 {offsets = [0, 128], sizes = [2, 128], strides = [1, 1]} : vector<2x256xf32> to vector<2x128xf32>
    %c0_5 = arith.constant 0 : index
    %c0_6 = arith.constant 0 : index
    %8 = vector.load %arg5[%c0_5, %c0_6] : memref<2x128xf32, #tpu.memory_space<vmem>>, vector<2x128xf32>
    tpu.vector_store %arg5[%c0_5, %c0_6], %6 {strides = array<i32>} : memref<2x128xf32, #tpu.memory_space<vmem>>, vector<2x128xf32>,
    %c0_7 = arith.constant 0 : index
    %c0_8 = arith.constant 0 : index
    %9 = vector.load %arg6[%c0_7, %c0_8] : memref<2x128xf32, #tpu.memory_space<vmem>>, vector<2x128xf32>
    tpu.vector_store %arg6[%c0_7, %c0_8], %7 {strides = array<i32>} : memref<2x128xf32, #tpu.memory_space<vmem>>, vector<2x128xf32>,
    %c0_9 = arith.constant 0 : index
    %c0_10 = arith.constant 0 : index
    %10 = vector.load %arg4[%c0_9, %c0_10] : memref<2x128xf32, #tpu.memory_space<vmem>>, vector<2x128xf32>
    %cst_11 = arith.constant 5.000000e-01 : f32
    %11 = vector.broadcast %cst_11 : f32 to vector<2x128xf32>
    %12 = arith.mulf %11, %7 : vector<2x128xf32>
    %13 = math.exp %12 : vector<2x128xf32>
    %14 = arith.mulf %10, %13 : vector<2x128xf32>
    %15 = arith.addf %6, %14 : vector<2x128xf32>
    %c0_12 = arith.constant 0 : index
    %c0_13 = arith.constant 0 : index
    %16 = vector.load %arg7[%c0_12, %c0_13] : memref<2x128xf32, #tpu.memory_space<vmem>>, vector<2x128xf32>
    tpu.vector_store %arg7[%c0_12, %c0_13], %15 {strides = array<i32>} : memref<2x128xf32, #tpu.memory_space<vmem>>, vector<2x128xf32>,
    return
  }
  func.func @transform_0(%arg0: i32) -> (i32, i32) {
    %c0_i32 = arith.constant 0 : i32
    %c0_i32_0 = arith.constant 0 : i32
    %c0_i32_1 = arith.constant 0 : i32
    return %c0_i32, %c0_i32_0 : i32, i32
  }
  func.func @transform_1(%arg0: i32) -> (i32, i32) {
    %c0_i32 = arith.constant 0 : i32
    %c0_i32_0 = arith.constant 0 : i32
    %c0_i32_1 = arith.constant 0 : i32
    return %c0_i32, %c0_i32_0 : i32, i32
  }
  func.func @transform_2(%arg0: i32) -> (i32, i32) {
    %c0_i32 = arith.constant 0 : i32
    %c0_i32_0 = arith.constant 0 : i32
    %c0_i32_1 = arith.constant 0 : i32
    return %c0_i32, %c0_i32_0 : i32, i32
  }
  func.func @transform_3(%arg0: i32) -> (i32, i32) {
    %c0_i32 = arith.constant 0 : i32
    %c0_i32_0 = arith.constant 0 : i32
    %c0_i32_1 = arith.constant 0 : i32
    return %c0_i32, %c0_i32_0 : i32, i32
  }
  func.func @transform_4(%arg0: i32) -> (i32, i32) {
    %c0_i32 = arith.constant 0 : i32
    %c0_i32_0 = arith.constant 0 : i32
    %c0_i32_1 = arith.constant 0 : i32
    return %c0_i32, %c0_i32_0 : i32, i32
  }
  func.func @transform_5(%arg0: i32) -> (i32, i32) {
    %c0_i32 = arith.constant 0 : i32
    %c0_i32_0 = arith.constant 0 : i32
    %c0_i32_1 = arith.constant 0 : i32
    return %c0_i32, %c0_i32_0 : i32, i32
  }
  func.func @transform_6(%arg0: i32) -> (i32, i32) {
    %c0_i32 = arith.constant 0 : i32
    %c0_i32_0 = arith.constant 0 : i32
    %c0_i32_1 = arith.constant 0 : i32
    return %c0_i32, %c0_i32_0 : i32, i32
  }
}

module attributes {stable_mosaic.version = 11 : i64} {
  func.func @_mm_bias_act_kernel(%arg0: i32, %arg1: memref<32x1024xbf16, #tpu.memory_space<vmem>>, %arg2: memref<1024x128xbf16, #tpu.memory_space<vmem>>, %arg3: memref<1x128xf32, #tpu.memory_space<vmem>>, %arg4: memref<32x128xbf16, #tpu.memory_space<vmem>>) attributes {dimension_semantics = [#tpu.dimension_semantics<parallel>], iteration_bounds = array<i64: 1>, scalar_prefetch = 0 : i64, scratch_operands = 0 : i64, tpu.core_type = #tpu.core_type<tc>, window_params = [{transform_indices = @transform_0, window_bounds = array<i64: 32, 1024>}, {pipeline_mode = #tpu.pipeline_mode<synchronous>, transform_indices = @transform_1, window_bounds = array<i64: 1024, 128>}, {pipeline_mode = #tpu.pipeline_mode<synchronous>, transform_indices = @transform_2, window_bounds = array<i64: 1, 128>}, {transform_indices = @transform_3, window_bounds = array<i64: 32, 128>}]} {
    %c0 = arith.constant 0 : index
    %c0_0 = arith.constant 0 : index
    %0 = vector.load %arg1[%c0, %c0_0] : memref<32x1024xbf16, #tpu.memory_space<vmem>>, vector<32x1024xbf16>
    %c0_1 = arith.constant 0 : index
    %c0_2 = arith.constant 0 : index
    %1 = vector.load %arg2[%c0_1, %c0_2] : memref<1024x128xbf16, #tpu.memory_space<vmem>>, vector<1024x128xbf16>
    %cst = arith.constant dense<0.000000e+00> : vector<32x128xf32>
    %2 = tpu.matmul %0, %1, %cst {dimension_numbers = #tpu.dot_dimension_numbers<[1], [0], [0], [1], [0, 0, 1, 1], [], []>} : vector<32x1024xbf16>, vector<1024x128xbf16>, vector<32x128xf32> -> vector<32x128xf32>
    %c0_3 = arith.constant 0 : index
    %c0_4 = arith.constant 0 : index
    %3 = vector.load %arg3[%c0_3, %c0_4] : memref<1x128xf32, #tpu.memory_space<vmem>>, vector<1x128xf32>
    %4 = vector.broadcast %3 : vector<1x128xf32> to vector<32x128xf32>
    %5 = arith.addf %2, %4 : vector<32x128xf32>
    %cst_5 = arith.constant 0.000000e+00 : f32
    %6 = vector.broadcast %cst_5 : f32 to vector<32x128xf32>
    %7 = arith.maximumf %5, %6 : vector<32x128xf32>
    %8 = arith.truncf %7 : vector<32x128xf32> to vector<32x128xbf16>
    %c0_6 = arith.constant 0 : index
    %c0_7 = arith.constant 0 : index
    %9 = vector.load %arg4[%c0_6, %c0_7] : memref<32x128xbf16, #tpu.memory_space<vmem>>, vector<32x128xbf16>
    tpu.vector_store %arg4[%c0_6, %c0_7], %8 {strides = array<i32>} : memref<32x128xbf16, #tpu.memory_space<vmem>>, vector<32x128xbf16>,
    return
  }
  func.func @transform_0(%arg0: i32) -> (i32, i32) {
    %c0_i32 = arith.constant 0 : i32
    %c0_i32_0 = arith.constant 0 : i32
    return %arg0, %c0_i32 : i32, i32
  }
  func.func @transform_1(%arg0: i32) -> (i32, i32) {
    %c0_i32 = arith.constant 0 : i32
    %c0_i32_0 = arith.constant 0 : i32
    %c0_i32_1 = arith.constant 0 : i32
    return %c0_i32, %c0_i32_0 : i32, i32
  }
  func.func @transform_2(%arg0: i32) -> (i32, i32) {
    %c0_i32 = arith.constant 0 : i32
    %c0_i32_0 = arith.constant 0 : i32
    %c0_i32_1 = arith.constant 0 : i32
    return %c0_i32, %c0_i32_0 : i32, i32
  }
  func.func @transform_3(%arg0: i32) -> (i32, i32) {
    %c0_i32 = arith.constant 0 : i32
    %c0_i32_0 = arith.constant 0 : i32
    return %arg0, %c0_i32 : i32, i32
  }
}

module attributes {stable_mosaic.version = 11 : i64} {
  func.func @_mm_bias_act_kernel(%arg0: i32, %arg1: memref<2x128xf32, #tpu.memory_space<vmem>>, %arg2: memref<128x2048xbf16, #tpu.memory_space<vmem>>, %arg3: memref<1x2048xf32, #tpu.memory_space<vmem>>, %arg4: memref<2x2048xbf16, #tpu.memory_space<vmem>>) attributes {dimension_semantics = [#tpu.dimension_semantics<parallel>], iteration_bounds = array<i64: 1>, scalar_prefetch = 0 : i64, scratch_operands = 0 : i64, tpu.core_type = #tpu.core_type<tc>, window_params = [{transform_indices = @transform_0, window_bounds = array<i64: 2, 128>}, {pipeline_mode = #tpu.pipeline_mode<synchronous>, transform_indices = @transform_1, window_bounds = array<i64: 128, 2048>}, {pipeline_mode = #tpu.pipeline_mode<synchronous>, transform_indices = @transform_2, window_bounds = array<i64: 1, 2048>}, {transform_indices = @transform_3, window_bounds = array<i64: 2, 2048>}]} {
    %c0 = arith.constant 0 : index
    %c0_0 = arith.constant 0 : index
    %0 = vector.load %arg1[%c0, %c0_0] : memref<2x128xf32, #tpu.memory_space<vmem>>, vector<2x128xf32>
    %1 = arith.truncf %0 : vector<2x128xf32> to vector<2x128xbf16>
    %c0_1 = arith.constant 0 : index
    %c0_2 = arith.constant 0 : index
    %2 = vector.load %arg2[%c0_1, %c0_2] : memref<128x2048xbf16, #tpu.memory_space<vmem>>, vector<128x2048xbf16>
    %cst = arith.constant dense<0.000000e+00> : vector<2x2048xf32>
    %3 = tpu.matmul %1, %2, %cst {dimension_numbers = #tpu.dot_dimension_numbers<[1], [0], [0], [1], [0, 0, 1, 1], [], []>} : vector<2x128xbf16>, vector<128x2048xbf16>, vector<2x2048xf32> -> vector<2x2048xf32>
    %c0_3 = arith.constant 0 : index
    %c0_4 = arith.constant 0 : index
    %4 = vector.load %arg3[%c0_3, %c0_4] : memref<1x2048xf32, #tpu.memory_space<vmem>>, vector<1x2048xf32>
    %5 = vector.broadcast %4 : vector<1x2048xf32> to vector<2x2048xf32>
    %6 = arith.addf %3, %5 : vector<2x2048xf32>
    %7 = arith.truncf %6 : vector<2x2048xf32> to vector<2x2048xbf16>
    %c0_5 = arith.constant 0 : index
    %c0_6 = arith.constant 0 : index
    %8 = vector.load %arg4[%c0_5, %c0_6] : memref<2x2048xbf16, #tpu.memory_space<vmem>>, vector<2x2048xbf16>
    tpu.vector_store %arg4[%c0_5, %c0_6], %7 {strides = array<i32>} : memref<2x2048xbf16, #tpu.memory_space<vmem>>, vector<2x2048xbf16>,
    return
  }
  func.func @transform_0(%arg0: i32) -> (i32, i32) {
    %c0_i32 = arith.constant 0 : i32
    %c0_i32_0 = arith.constant 0 : i32
    return %arg0, %c0_i32 : i32, i32
  }
  func.func @transform_1(%arg0: i32) -> (i32, i32) {
    %c0_i32 = arith.constant 0 : i32
    %c0_i32_0 = arith.constant 0 : i32
    %c0_i32_1 = arith.constant 0 : i32
    return %c0_i32, %c0_i32_0 : i32, i32
  }
  func.func @transform_2(%arg0: i32) -> (i32, i32) {
    %c0_i32 = arith.constant 0 : i32
    %c0_i32_0 = arith.constant 0 : i32
    %c0_i32_1 = arith.constant 0 : i32
    return %c0_i32, %c0_i32_0 : i32, i32
  }
  func.func @transform_3(%arg0: i32) -> (i32, i32) {
    %c0_i32 = arith.constant 0 : i32
    %c0_i32_0 = arith.constant 0 : i32
    return %arg0, %c0_i32 : i32, i32
  }
}

module attributes {stable_mosaic.version = 11 : i64} {
  func.func @_mm_bias_act_kernel(%arg0: i32, %arg1: memref<50x512xbf16, #tpu.memory_space<vmem>>, %arg2: memref<512x256xbf16, #tpu.memory_space<vmem>>, %arg3: memref<1x256xf32, #tpu.memory_space<vmem>>, %arg4: memref<50x256xbf16, #tpu.memory_space<vmem>>) attributes {dimension_semantics = [#tpu.dimension_semantics<parallel>], iteration_bounds = array<i64: 1>, scalar_prefetch = 0 : i64, scratch_operands = 0 : i64, tpu.core_type = #tpu.core_type<tc>, window_params = [{transform_indices = @transform_0, window_bounds = array<i64: 50, 512>}, {pipeline_mode = #tpu.pipeline_mode<synchronous>, transform_indices = @transform_1, window_bounds = array<i64: 512, 256>}, {pipeline_mode = #tpu.pipeline_mode<synchronous>, transform_indices = @transform_2, window_bounds = array<i64: 1, 256>}, {transform_indices = @transform_3, window_bounds = array<i64: 50, 256>}]} {
    %c0 = arith.constant 0 : index
    %c0_0 = arith.constant 0 : index
    %0 = vector.load %arg1[%c0, %c0_0] : memref<50x512xbf16, #tpu.memory_space<vmem>>, vector<50x512xbf16>
    %c0_1 = arith.constant 0 : index
    %c0_2 = arith.constant 0 : index
    %1 = vector.load %arg2[%c0_1, %c0_2] : memref<512x256xbf16, #tpu.memory_space<vmem>>, vector<512x256xbf16>
    %cst = arith.constant dense<0.000000e+00> : vector<50x256xf32>
    %2 = tpu.matmul %0, %1, %cst {dimension_numbers = #tpu.dot_dimension_numbers<[1], [0], [0], [1], [0, 0, 1, 1], [], []>} : vector<50x512xbf16>, vector<512x256xbf16>, vector<50x256xf32> -> vector<50x256xf32>
    %c0_3 = arith.constant 0 : index
    %c0_4 = arith.constant 0 : index
    %3 = vector.load %arg3[%c0_3, %c0_4] : memref<1x256xf32, #tpu.memory_space<vmem>>, vector<1x256xf32>
    %4 = vector.broadcast %3 : vector<1x256xf32> to vector<50x256xf32>
    %5 = arith.addf %2, %4 : vector<50x256xf32>
    %cst_5 = arith.constant 0.000000e+00 : f32
    %6 = vector.broadcast %cst_5 : f32 to vector<50x256xf32>
    %7 = arith.maximumf %5, %6 : vector<50x256xf32>
    %8 = arith.truncf %7 : vector<50x256xf32> to vector<50x256xbf16>
    %c0_6 = arith.constant 0 : index
    %c0_7 = arith.constant 0 : index
    %9 = vector.load %arg4[%c0_6, %c0_7] : memref<50x256xbf16, #tpu.memory_space<vmem>>, vector<50x256xbf16>
    tpu.vector_store %arg4[%c0_6, %c0_7], %8 {strides = array<i32>} : memref<50x256xbf16, #tpu.memory_space<vmem>>, vector<50x256xbf16>,
    return
  }
  func.func @transform_0(%arg0: i32) -> (i32, i32) {
    %c0_i32 = arith.constant 0 : i32
    %c0_i32_0 = arith.constant 0 : i32
    return %arg0, %c0_i32 : i32, i32
  }
  func.func @transform_1(%arg0: i32) -> (i32, i32) {
    %c0_i32 = arith.constant 0 : i32
    %c0_i32_0 = arith.constant 0 : i32
    %c0_i32_1 = arith.constant 0 : i32
    return %c0_i32, %c0_i32_0 : i32, i32
  }
  func.func @transform_2(%arg0: i32) -> (i32, i32) {
    %c0_i32 = arith.constant 0 : i32
    %c0_i32_0 = arith.constant 0 : i32
    %c0_i32_1 = arith.constant 0 : i32
    return %c0_i32, %c0_i32_0 : i32, i32
  }
  func.func @transform_3(%arg0: i32) -> (i32, i32) {
    %c0_i32 = arith.constant 0 : i32
    %c0_i32_0 = arith.constant 0 : i32
    return %arg0, %c0_i32 : i32, i32
  }
}

module attributes {stable_mosaic.version = 11 : i64} {
  func.func @_mm_bias_act_kernel(%arg0: i32, %arg1: memref<162x256xbf16, #tpu.memory_space<vmem>>, %arg2: memref<256x128xbf16, #tpu.memory_space<vmem>>, %arg3: memref<1x128xf32, #tpu.memory_space<vmem>>, %arg4: memref<162x128xbf16, #tpu.memory_space<vmem>>) attributes {dimension_semantics = [#tpu.dimension_semantics<parallel>], iteration_bounds = array<i64: 1>, scalar_prefetch = 0 : i64, scratch_operands = 0 : i64, tpu.core_type = #tpu.core_type<tc>, window_params = [{transform_indices = @transform_0, window_bounds = array<i64: 162, 256>}, {pipeline_mode = #tpu.pipeline_mode<synchronous>, transform_indices = @transform_1, window_bounds = array<i64: 256, 128>}, {pipeline_mode = #tpu.pipeline_mode<synchronous>, transform_indices = @transform_2, window_bounds = array<i64: 1, 128>}, {transform_indices = @transform_3, window_bounds = array<i64: 162, 128>}]} {
    %c0 = arith.constant 0 : index
    %c0_0 = arith.constant 0 : index
    %0 = vector.load %arg1[%c0, %c0_0] : memref<162x256xbf16, #tpu.memory_space<vmem>>, vector<162x256xbf16>
    %c0_1 = arith.constant 0 : index
    %c0_2 = arith.constant 0 : index
    %1 = vector.load %arg2[%c0_1, %c0_2] : memref<256x128xbf16, #tpu.memory_space<vmem>>, vector<256x128xbf16>
    %cst = arith.constant dense<0.000000e+00> : vector<162x128xf32>
    %2 = tpu.matmul %0, %1, %cst {dimension_numbers = #tpu.dot_dimension_numbers<[1], [0], [0], [1], [0, 0, 1, 1], [], []>} : vector<162x256xbf16>, vector<256x128xbf16>, vector<162x128xf32> -> vector<162x128xf32>
    %c0_3 = arith.constant 0 : index
    %c0_4 = arith.constant 0 : index
    %3 = vector.load %arg3[%c0_3, %c0_4] : memref<1x128xf32, #tpu.memory_space<vmem>>, vector<1x128xf32>
    %4 = vector.broadcast %3 : vector<1x128xf32> to vector<162x128xf32>
    %5 = arith.addf %2, %4 : vector<162x128xf32>
    %cst_5 = arith.constant 0.000000e+00 : f32
    %6 = vector.broadcast %cst_5 : f32 to vector<162x128xf32>
    %7 = arith.maximumf %5, %6 : vector<162x128xf32>
    %8 = arith.truncf %7 : vector<162x128xf32> to vector<162x128xbf16>
    %c0_6 = arith.constant 0 : index
    %c0_7 = arith.constant 0 : index
    %9 = vector.load %arg4[%c0_6, %c0_7] : memref<162x128xbf16, #tpu.memory_space<vmem>>, vector<162x128xbf16>
    tpu.vector_store %arg4[%c0_6, %c0_7], %8 {strides = array<i32>} : memref<162x128xbf16, #tpu.memory_space<vmem>>, vector<162x128xbf16>,
    return
  }
  func.func @transform_0(%arg0: i32) -> (i32, i32) {
    %c0_i32 = arith.constant 0 : i32
    %c0_i32_0 = arith.constant 0 : i32
    return %arg0, %c0_i32 : i32, i32
  }
  func.func @transform_1(%arg0: i32) -> (i32, i32) {
    %c0_i32 = arith.constant 0 : i32
    %c0_i32_0 = arith.constant 0 : i32
    %c0_i32_1 = arith.constant 0 : i32
    return %c0_i32, %c0_i32_0 : i32, i32
  }
  func.func @transform_2(%arg0: i32) -> (i32, i32) {
    %c0_i32 = arith.constant 0 : i32
    %c0_i32_0 = arith.constant 0 : i32
    %c0_i32_1 = arith.constant 0 : i32
    return %c0_i32, %c0_i32_0 : i32, i32
  }
  func.func @transform_3(%arg0: i32) -> (i32, i32) {
    %c0_i32 = arith.constant 0 : i32
    %c0_i32_0 = arith.constant 0 : i32
    return %arg0, %c0_i32 : i32, i32
  }
}

module attributes {stable_mosaic.version = 11 : i64} {
  func.func @_mm_bias_act_kernel(%arg0: i32, %arg1: memref<256x128xbf16, #tpu.memory_space<vmem>>, %arg2: memref<128x128xbf16, #tpu.memory_space<vmem>>, %arg3: memref<1x128xf32, #tpu.memory_space<vmem>>, %arg4: memref<256x128xf32, #tpu.memory_space<vmem>>) attributes {dimension_semantics = [#tpu.dimension_semantics<parallel>], iteration_bounds = array<i64: 3>, scalar_prefetch = 0 : i64, scratch_operands = 0 : i64, tpu.core_type = #tpu.core_type<tc>, window_params = [{transform_indices = @transform_0, window_bounds = array<i64: 256, 128>}, {pipeline_mode = #tpu.pipeline_mode<synchronous>, transform_indices = @transform_1, window_bounds = array<i64: 128, 128>}, {pipeline_mode = #tpu.pipeline_mode<synchronous>, transform_indices = @transform_2, window_bounds = array<i64: 1, 128>}, {transform_indices = @transform_3, window_bounds = array<i64: 256, 128>}]} {
    %c0 = arith.constant 0 : index
    %c0_0 = arith.constant 0 : index
    %0 = vector.load %arg1[%c0, %c0_0] : memref<256x128xbf16, #tpu.memory_space<vmem>>, vector<256x128xbf16>
    %c0_1 = arith.constant 0 : index
    %c0_2 = arith.constant 0 : index
    %1 = vector.load %arg2[%c0_1, %c0_2] : memref<128x128xbf16, #tpu.memory_space<vmem>>, vector<128x128xbf16>
    %cst = arith.constant dense<0.000000e+00> : vector<256x128xf32>
    %2 = tpu.matmul %0, %1, %cst {dimension_numbers = #tpu.dot_dimension_numbers<[1], [0], [0], [1], [0, 0, 1, 1], [], []>} : vector<256x128xbf16>, vector<128x128xbf16>, vector<256x128xf32> -> vector<256x128xf32>
    %c0_3 = arith.constant 0 : index
    %c0_4 = arith.constant 0 : index
    %3 = vector.load %arg3[%c0_3, %c0_4] : memref<1x128xf32, #tpu.memory_space<vmem>>, vector<1x128xf32>
    %4 = vector.broadcast %3 : vector<1x128xf32> to vector<256x128xf32>
    %5 = arith.addf %2, %4 : vector<256x128xf32>
    %6 = math.tanh %5 : vector<256x128xf32>
    %c0_5 = arith.constant 0 : index
    %c0_6 = arith.constant 0 : index
    %7 = vector.load %arg4[%c0_5, %c0_6] : memref<256x128xf32, #tpu.memory_space<vmem>>, vector<256x128xf32>
    tpu.vector_store %arg4[%c0_5, %c0_6], %6 {strides = array<i32>} : memref<256x128xf32, #tpu.memory_space<vmem>>, vector<256x128xf32>,
    return
  }
  func.func @transform_0(%arg0: i32) -> (i32, i32) {
    %c0_i32 = arith.constant 0 : i32
    %c0_i32_0 = arith.constant 0 : i32
    return %arg0, %c0_i32 : i32, i32
  }
  func.func @transform_1(%arg0: i32) -> (i32, i32) {
    %c0_i32 = arith.constant 0 : i32
    %c0_i32_0 = arith.constant 0 : i32
    %c0_i32_1 = arith.constant 0 : i32
    return %c0_i32, %c0_i32_0 : i32, i32
  }
  func.func @transform_2(%arg0: i32) -> (i32, i32) {
    %c0_i32 = arith.constant 0 : i32
    %c0_i32_0 = arith.constant 0 : i32
    %c0_i32_1 = arith.constant 0 : i32
    return %c0_i32, %c0_i32_0 : i32, i32
  }
  func.func @transform_3(%arg0: i32) -> (i32, i32) {
    %c0_i32 = arith.constant 0 : i32
    %c0_i32_0 = arith.constant 0 : i32
    return %arg0, %c0_i32 : i32, i32
  }
}

</mosaic_0001>

<bundles_post_ra>
// kernel: vae_forward.8
= control target key start
LH: loop header
LB: loop body
LE: loop exit
PB: predicated region body
PF: predicated region fallthrough
CT: control target
= control target key end

     0   :  { %s898_s12 = smov 0   ;;  %s1019_s0 = inlined_call_operand.vmem [shape: bf16[512,128], index: 0, kind: input, shape index: {}]   ;;  %s1020_s1 = inlined_call_operand.vmem [shape: bf16[128,128], index: 1, kind: input, shape index: {}]   ;;  %s1021_s2 = inlined_call_operand.vmem [shape: f32[1,128], index: 2, kind: input, shape index: {}]   ;;  %s1022_s3 = inlined_call_operand.vmem [shape: bf16[512,128], index: 3, kind: output, shape index: {}]  }
   0x1 LB: > { %s611_s13 = sadd.s32 4294967295, %s876_s12   ;;  %p615_p0 = scmp.ge.s32.totalorder %s876_s12, 1  ;;  %s876_s12 = sphi %s898_s12, %s13_s12  }
   0x2   : > { %p138_p1 = scmp.lt.s32.totalorder %s876_s12, 3 }
   0x4   : > { %p139_p2 = pnand %p615_p0, %p138_p1 }
   0x5   : > { %s616_s22 = sshll.u32 (!%p139_p2), %s611_s13, 5 }
   0x6   : > { %142 = sbr.rel (%p139_p2) target bundleno = 240 (0xf0), region = 32  ;;  %p163_p3 = scmp.lt.s32.totalorder (!%p139_p2), %s616_s22, 63 }
   0xb   : > { %v741_v0 = vld [vmem:[%s1020_s1 + $0x38] sm:$0xff]  ;;  %v740_v1 = vld [vmem:[%s1020_s1 + $0x30] sm:$0xff]  ;;  %v739_v2 = vld [vmem:[%s1020_s1 + $0x28] sm:$0xff]  ;;  %s1024_s22 = smov (!%p163_p3, %s616_s22), 63 }
   0xc   : > { %370 = vmatpush.bf16.msra.mxu0 %v741_v0  ;;  %837 = vmatpush.bf16.msra.mxu1 %v741_v0  ;;  %v738_v3 = vld [vmem:[%s1020_s1 + $0x20] sm:$0xff]  ;;  %v737_v4 = vld [vmem:[%s1020_s1 + $0x18] sm:$0xff]  ;;  %v736_v5 = vld [vmem:[%s1020_s1 + $0x10] sm:$0xff]  ;;  %s617_s29 = sshll.u32 %s1024_s22, 2 }
   0xd   : > { %838 = vmatpush.bf16.msra.mxu2 %v741_v0  ;;  %839 = vmatpush.bf16.msra.mxu3 %v741_v0  ;;  %v735_v6 = vld [vmem:[%s1020_s1 + $0x8] sm:$0xff]  ;;  %v734_v7 = vld [vmem:[%s1020_s1] sm:$0xff]  ;;  %s938_s7 = scalar_lea.vmem %s1019_s0, %s617_s29  ;;  %s970_s13 = scalar_lea.vmem %s1022_s3, %s617_s29 }
   0xe   : > { %v718_v8 = vld [vmem:[%s938_s7] sm:$0xff]  ;;  %v719_v12 = vld [vmem:[%s938_s7 + $0x8] sm:$0xff]  ;;  %v720_v16 = vld [vmem:[%s938_s7 + $0x10] sm:$0xff] }
   0xf   : > { %v722_v9 = vld [vmem:[%s938_s7 + $0x20] sm:$0xff]  ;;  %v723_v13 = vld [vmem:[%s938_s7 + $0x28] sm:$0xff]  ;;  %v724_v17 = vld [vmem:[%s938_s7 + $0x30] sm:$0xff] }
  0x10   : > { %371 = vmatpush.bf16.msra.mxu0 %v740_v1  ;;  %840 = vmatpush.bf16.msra.mxu1 %v740_v1  ;;  %v726_v10 = vld [vmem:[%s938_s7 + $0x40] sm:$0xff]  ;;  %v727_v14 = vld [vmem:[%s938_s7 + $0x48] sm:$0xff]  ;;  %v728_v18 = vld [vmem:[%s938_s7 + $0x50] sm:$0xff] }
  0x11   : > { %841 = vmatpush.bf16.msra.mxu2 %v740_v1  ;;  %842 = vmatpush.bf16.msra.mxu3 %v740_v1  ;;  %v730_v11 = vld [vmem:[%s938_s7 + $0x60] sm:$0xff]  ;;  %v731_v15 = vld [vmem:[%s938_s7 + $0x68] sm:$0xff]  ;;  %v732_v19 = vld [vmem:[%s938_s7 + $0x70] sm:$0xff] }
  0x12   : > { %v721_v20 = vld [vmem:[%s938_s7 + $0x18] sm:$0xff]  ;;  %v959_v26 = vld [vmem:[%s1021_s2] ss:$0 sm:$0xff] }
  0x13   : > { %v725_v21 = vld [vmem:[%s938_s7 + $0x38] sm:$0xff] }
  0x14   : > { %372 = vmatpush.bf16.msra.mxu0 %v739_v2  ;;  %843 = vmatpush.bf16.msra.mxu1 %v739_v2  ;;  %v729_v22 = vld [vmem:[%s938_s7 + $0x58] sm:$0xff] }
  0x15   : > { %844 = vmatpush.bf16.msra.mxu2 %v739_v2  ;;  %845 = vmatpush.bf16.msra.mxu3 %v739_v2  ;;  %v733_v23 = vld [vmem:[%s938_s7 + $0x78] sm:$0xff] }
  0x18   : > { %373 = vmatpush.bf16.msra.mxu0 %v738_v3  ;;  %846 = vmatpush.bf16.msra.mxu1 %v738_v3 }
  0x19   : > { %847 = vmatpush.bf16.msra.mxu2 %v738_v3  ;;  %848 = vmatpush.bf16.msra.mxu3 %v738_v3 }
  0x1c   : > { %374 = vmatpush.bf16.msra.mxu0 %v737_v4  ;;  %849 = vmatpush.bf16.msra.mxu1 %v737_v4 }
  0x1d   : > { %850 = vmatpush.bf16.msra.mxu2 %v737_v4  ;;  %851 = vmatpush.bf16.msra.mxu3 %v737_v4 }
  0x20   : > { %375 = vmatpush.bf16.msra.mxu0 %v736_v5  ;;  %852 = vmatpush.bf16.msra.mxu1 %v736_v5 }
  0x21   : > { %853 = vmatpush.bf16.msra.mxu2 %v736_v5  ;;  %854 = vmatpush.bf16.msra.mxu3 %v736_v5 }
  0x24   : > { %376 = vmatpush.bf16.msra.mxu0 %v735_v6  ;;  %855 = vmatpush.bf16.msra.mxu1 %v735_v6 }
  0x25   : > { %856 = vmatpush.bf16.msra.mxu2 %v735_v6  ;;  %857 = vmatpush.bf16.msra.mxu3 %v735_v6 }
  0x28   : > { %377 = vmatpush.bf16.msra.mxu0 %v734_v7  ;;  %858 = vmatpush.bf16.msra.mxu1 %v734_v7 }
  0x29   : > { %859 = vmatpush.bf16.msra.mxu2 %v734_v7  ;;  %860 = vmatpush.bf16.msra.mxu3 %v734_v7 }
  0x2b   : > { %378 = vmatmul.bf16.vlgmr.msra.gmra.mxu0 %v718_v8  ;;  %398 = vmatmul.bf16.vlgmr.msra.gmra.mxu1 %v722_v9 }
  0x2c   : > { %418 = vmatmul.bf16.vlgmr.msra.gmra.mxu2 %v726_v10  ;;  %438 = vmatmul.bf16.vlgmr.msra.gmra.mxu3 %v730_v11 }
  0x3b   : > { %383 = vmatmul.bf16.gmra.mxu0 %v719_v12  ;;  %403 = vmatmul.bf16.gmra.mxu1 %v723_v13 }
  0x3c   : > { %423 = vmatmul.bf16.gmra.mxu2 %v727_v14  ;;  %443 = vmatmul.bf16.gmra.mxu3 %v731_v15 }
  0x4b   : > { %388 = vmatmul.bf16.gmra.mxu0 %v720_v16  ;;  %408 = vmatmul.bf16.gmra.mxu1 %v724_v17 }
  0x4c   : > { %428 = vmatmul.bf16.gmra.mxu2 %v728_v18  ;;  %448 = vmatmul.bf16.gmra.mxu3 %v732_v19 }
  0x5b   : > { %393 = vmatmul.bf16.gmra.mxu0 %v721_v20  ;;  %413 = vmatmul.bf16.gmra.mxu1 %v725_v21 }
  0x5c   : > { %433 = vmatmul.bf16.gmra.mxu2 %v729_v22  ;;  %453 = vmatmul.bf16.gmra.mxu3 %v733_v23 }
  0xa8   : > { %v379_v24 = vpop.f32.mrf.mxu0  ;;  %v399_v25 = vpop.f32.mrf.mxu1 }
  0xa9   : > { %v380_v27 = vadd.f32 %v959_v26, %v379_v24  ;;  %v400_v28 = vadd.f32 %v959_v26, %v399_v25 }
  0xab   : > { %v459_v35 = vmax.f32 %v380_v27, 0.0  ;;  %v467_v36 = vmax.f32 %v400_v28, 0.0 }
  0xaf   : > { %v419_v29 = vpop.f32.mrf.mxu2  ;;  %v439_v30 = vpop.f32.mrf.mxu3 }
  0xb0   : > { %v381_v31 = vpop.f32.mrf.mxu0  ;;  %v401_v32 = vpop.f32.mrf.mxu1  ;;  %v420_v41 = vadd.f32 %v959_v26, %v419_v29  ;;  %v440_v42 = vadd.f32 %v959_v26, %v439_v30 }
  0xb1   : > { %v382_v33 = vadd.f32 %v959_v26, %v381_v31  ;;  %v402_v34 = vadd.f32 %v959_v26, %v401_v32 }
  0xb2   : > { %v475_v49 = vmax.f32 %v420_v41, 0.0  ;;  %v483_v50 = vmax.f32 %v440_v42, 0.0 }
  0xb3   : > { %v460_v37 = vmax.f32 %v382_v33, 0.0  ;;  %v468_v38 = vmax.f32 %v402_v34, 0.0 }
  0xb5   : > { %v745_v39 = vpack.c.bf16 %v460_v37, %v459_v35  ;;  %v765_v40 = vpack.c.bf16 %v468_v38, %v467_v36 }
  0xb7   : > { %746 = vst [vmem:[%s970_s13] sm:$0xff] %v745_v39   ;;  %v421_v43 = vpop.f32.mrf.mxu2  ;;  %v441_v44 = vpop.f32.mrf.mxu3 }
  0xb8   : > { %825 = vst [vmem:[%s970_s13 + $0x20] sm:$0xff] %v765_v40   ;;  %v422_v45 = vadd.f32 %v959_v26, %v421_v43  ;;  %v442_v46 = vadd.f32 %v959_v26, %v441_v44  ;;  %v384_v47 = vpop.f32.mrf.mxu0  ;;  %v404_v48 = vpop.f32.mrf.mxu1 }
  0xb9   : > { %v385_v55 = vadd.f32 %v959_v26, %v384_v47  ;;  %v405_v56 = vadd.f32 %v959_v26, %v404_v48 }
  0xba   : > { %v476_v51 = vmax.f32 %v422_v45, 0.0  ;;  %v484_v52 = vmax.f32 %v442_v46, 0.0 }
  0xbb   : > { %v461_v63 = vmax.f32 %v385_v55, 0.0  ;;  %v469_v0 = vmax.f32 %v405_v56, 0.0 }
  0xbc   : > { %v785_v53 = vpack.c.bf16 %v476_v51, %v475_v49  ;;  %v805_v54 = vpack.c.bf16 %v484_v52, %v483_v50 }
  0xbe   : > { %829 = vst [vmem:[%s970_s13 + $0x40] sm:$0xff] %v785_v53  }
  0xbf   : > { %833 = vst [vmem:[%s970_s13 + $0x60] sm:$0xff] %v805_v54   ;;  %v424_v57 = vpop.f32.mrf.mxu2  ;;  %v444_v58 = vpop.f32.mrf.mxu3 }
  0xc0   : > { %v386_v59 = vpop.f32.mrf.mxu0  ;;  %v406_v60 = vpop.f32.mrf.mxu1  ;;  %v425_v5 = vadd.f32 %v959_v26, %v424_v57  ;;  %v445_v6 = vadd.f32 %v959_v26, %v444_v58 }
  0xc1   : > { %v387_v61 = vadd.f32 %v959_v26, %v386_v59  ;;  %v407_v62 = vadd.f32 %v959_v26, %v406_v60 }
  0xc2   : > { %v477_v13 = vmax.f32 %v425_v5, 0.0  ;;  %v485_v14 = vmax.f32 %v445_v6, 0.0 }
  0xc3   : > { %v462_v1 = vmax.f32 %v387_v61, 0.0  ;;  %v470_v2 = vmax.f32 %v407_v62, 0.0 }
  0xc5   : > { %v750_v3 = vpack.c.bf16 %v462_v1, %v461_v63  ;;  %v770_v4 = vpack.c.bf16 %v470_v2, %v469_v0 }
  0xc7   : > { %822 = vst [vmem:[%s970_s13 + $0x8] sm:$0xff] %v750_v3   ;;  %v426_v7 = vpop.f32.mrf.mxu2  ;;  %v446_v8 = vpop.f32.mrf.mxu3 }
  0xc8   : > { %826 = vst [vmem:[%s970_s13 + $0x28] sm:$0xff] %v770_v4   ;;  %v427_v9 = vadd.f32 %v959_v26, %v426_v7  ;;  %v447_v10 = vadd.f32 %v959_v26, %v446_v8  ;;  %v389_v11 = vpop.f32.mrf.mxu0  ;;  %v409_v12 = vpop.f32.mrf.mxu1 }
  0xc9   : > { %v390_v19 = vadd.f32 %v959_v26, %v389_v11  ;;  %v410_v20 = vadd.f32 %v959_v26, %v409_v12 }
  0xca   : > { %v478_v15 = vmax.f32 %v427_v9, 0.0  ;;  %v486_v16 = vmax.f32 %v447_v10, 0.0 }
  0xcb   : > { %v463_v28 = vmax.f32 %v390_v19, 0.0  ;;  %v471_v29 = vmax.f32 %v410_v20, 0.0 }
  0xcc   : > { %v790_v17 = vpack.c.bf16 %v478_v15, %v477_v13  ;;  %v810_v18 = vpack.c.bf16 %v486_v16, %v485_v14 }
  0xce   : > { %830 = vst [vmem:[%s970_s13 + $0x48] sm:$0xff] %v790_v17  }
  0xcf   : > { %834 = vst [vmem:[%s970_s13 + $0x68] sm:$0xff] %v810_v18   ;;  %v429_v21 = vpop.f32.mrf.mxu2  ;;  %v449_v22 = vpop.f32.mrf.mxu3 }
  0xd0   : > { %v391_v23 = vpop.f32.mrf.mxu0  ;;  %v411_v24 = vpop.f32.mrf.mxu1  ;;  %v430_v34 = vadd.f32 %v959_v26, %v429_v21  ;;  %v450_v35 = vadd.f32 %v959_v26, %v449_v22 }
  0xd1   : > { %v392_v25 = vadd.f32 %v959_v26, %v391_v23  ;;  %v412_v27 = vadd.f32 %v959_v26, %v411_v24 }
  0xd2   : > { %v479_v42 = vmax.f32 %v430_v34, 0.0  ;;  %v487_v43 = vmax.f32 %v450_v35, 0.0 }
  0xd3   : > { %v464_v30 = vmax.f32 %v392_v25, 0.0  ;;  %v472_v31 = vmax.f32 %v412_v27, 0.0 }
  0xd5   : > { %v755_v32 = vpack.c.bf16 %v464_v30, %v463_v28  ;;  %v775_v33 = vpack.c.bf16 %v472_v31, %v471_v29 }
  0xd7   : > { %823 = vst [vmem:[%s970_s13 + $0x10] sm:$0xff] %v755_v32   ;;  %v431_v36 = vpop.f32.mrf.mxu2  ;;  %v451_v37 = vpop.f32.mrf.mxu3 }
  0xd8   : > { %827 = vst [vmem:[%s970_s13 + $0x30] sm:$0xff] %v775_v33   ;;  %v432_v38 = vadd.f32 %v959_v26, %v431_v36  ;;  %v452_v39 = vadd.f32 %v959_v26, %v451_v37  ;;  %v394_v40 = vpop.f32.mrf.mxu0  ;;  %v414_v41 = vpop.f32.mrf.mxu1 }
  0xd9   : > { %v395_v48 = vadd.f32 %v959_v26, %v394_v40  ;;  %v415_v49 = vadd.f32 %v959_v26, %v414_v41 }
  0xda   : > { %v480_v44 = vmax.f32 %v432_v38, 0.0  ;;  %v488_v45 = vmax.f32 %v452_v39, 0.0 }
  0xdb   : > { %v465_v56 = vmax.f32 %v395_v48, 0.0  ;;  %v473_v57 = vmax.f32 %v415_v49, 0.0 }
  0xdc   : > { %v795_v46 = vpack.c.bf16 %v480_v44, %v479_v42  ;;  %v815_v47 = vpack.c.bf16 %v488_v45, %v487_v43 }
  0xde   : > { %831 = vst [vmem:[%s970_s13 + $0x50] sm:$0xff] %v795_v46  }
  0xdf   : > { %835 = vst [vmem:[%s970_s13 + $0x70] sm:$0xff] %v815_v47   ;;  %v434_v50 = vpop.f32.mrf.mxu2  ;;  %v454_v51 = vpop.f32.mrf.mxu3 }
  0xe0   : > { %v396_v52 = vpop.f32.mrf.mxu0  ;;  %v416_v53 = vpop.f32.mrf.mxu1  ;;  %v435_v62 = vadd.f32 %v959_v26, %v434_v50  ;;  %v455_v63 = vadd.f32 %v959_v26, %v454_v51 }
  0xe1   : > { %v397_v54 = vadd.f32 %v959_v26, %v396_v52  ;;  %v417_v55 = vadd.f32 %v959_v26, %v416_v53 }
  0xe2   : > { %v481_v4 = vmax.f32 %v435_v62, 0.0  ;;  %v489_v5 = vmax.f32 %v455_v63, 0.0 }
  0xe3   : > { %v466_v58 = vmax.f32 %v397_v54, 0.0  ;;  %v474_v59 = vmax.f32 %v417_v55, 0.0 }
  0xe5   : > { %v760_v60 = vpack.c.bf16 %v466_v58, %v465_v56  ;;  %v780_v61 = vpack.c.bf16 %v474_v59, %v473_v57 }
  0xe7   : > { %824 = vst [vmem:[%s970_s13 + $0x18] sm:$0xff] %v760_v60   ;;  %v436_v0 = vpop.f32.mrf.mxu2  ;;  %v456_v1 = vpop.f32.mrf.mxu3 }
  0xe8   : > { %828 = vst [vmem:[%s970_s13 + $0x38] sm:$0xff] %v780_v61   ;;  %v437_v2 = vadd.f32 %v959_v26, %v436_v0  ;;  %v457_v3 = vadd.f32 %v959_v26, %v456_v1 }
  0xea   : > { %v482_v6 = vmax.f32 %v437_v2, 0.0  ;;  %v490_v7 = vmax.f32 %v457_v3, 0.0 }
  0xec   : > { %v800_v8 = vpack.c.bf16 %v482_v6, %v481_v4  ;;  %v820_v9 = vpack.c.bf16 %v490_v7, %v489_v5 }
  0xee   : > { %832 = vst [vmem:[%s970_s13 + $0x58] sm:$0xff] %v800_v8  }
  0xef   : > { %836 = vst [vmem:[%s970_s13 + $0x78] sm:$0xff] %v820_v9  }
  0xf0 PF: > { %s13_s12 = sadd.s32 1, %s876_s12  }
  0xf1   : > { %p10_p4 = scmp.ge.s32.totalorder %s13_s12, 4  }
  0xf3   :  { %12 = sbr.rel (!%p10_p4) target bundleno = 1 (0x1), region = 62 }

// kernel: vae_forward.9
= control target key start
LH: loop header
LB: loop body
LE: loop exit
PB: predicated region body
PF: predicated region fallthrough
CT: control target
= control target key end

     0   :  { %s1435_s1 = inlined_call_operand.vmem [shape: bf16[512,128], index: 1, kind: input, shape index: {}]   ;;  %s1436_s2 = inlined_call_operand.vmem [shape: f32[1,128], index: 2, kind: input, shape index: {}]   ;;  %s1437_s0 = inlined_call_operand.vmem [shape: bf16[128,512], index: 0, kind: input, shape index: {}]   ;;  %s1438_s3 = inlined_call_operand.vmem [shape: bf16[128,128], index: 3, kind: output, shape index: {}]  }
   0x1   :  { %v1009_v0 = vld [vmem:[%s1435_s1 + $0x38] sm:$0xff]  ;;  %v1008_v4 = vld [vmem:[%s1435_s1 + $0x30] sm:$0xff]  ;;  %v1007_v8 = vld [vmem:[%s1435_s1 + $0x28] sm:$0xff] }
   0x2   :  { %v1017_v1 = vld [vmem:[%s1435_s1 + $0x78] sm:$0xff]  ;;  %466 = vmatpush.bf16.msra.mxu0 %v1009_v0  ;;  %v1016_v5 = vld [vmem:[%s1435_s1 + $0x70] sm:$0xff]  ;;  %v1015_v9 = vld [vmem:[%s1435_s1 + $0x68] sm:$0xff] }
   0x3   :  { %v1025_v2 = vld [vmem:[%s1435_s1 + $0xb8] sm:$0xff]  ;;  %515 = vmatpush.bf16.msra.mxu1 %v1017_v1  ;;  %v1024_v6 = vld [vmem:[%s1435_s1 + $0xb0] sm:$0xff]  ;;  %v1023_v10 = vld [vmem:[%s1435_s1 + $0xa8] sm:$0xff] }
   0x4   :  { %v1033_v3 = vld [vmem:[%s1435_s1 + $0xf8] sm:$0xff]  ;;  %564 = vmatpush.bf16.msra.mxu2 %v1025_v2  ;;  %v1032_v7 = vld [vmem:[%s1435_s1 + $0xf0] sm:$0xff]  ;;  %v1031_v11 = vld [vmem:[%s1435_s1 + $0xe8] sm:$0xff] }
   0x5   :  { %613 = vmatpush.bf16.msra.mxu3 %v1033_v3  ;;  %v1006_v12 = vld [vmem:[%s1435_s1 + $0x20] sm:$0xff]  ;;  %v1005_v16 = vld [vmem:[%s1435_s1 + $0x18] sm:$0xff]  ;;  %v1004_v20 = vld [vmem:[%s1435_s1 + $0x10] sm:$0xff] }
   0x6   :  { %467 = vmatpush.bf16.msra.mxu0 %v1008_v4  ;;  %v1014_v13 = vld [vmem:[%s1435_s1 + $0x60] sm:$0xff]  ;;  %v1013_v17 = vld [vmem:[%s1435_s1 + $0x58] sm:$0xff]  ;;  %v1012_v21 = vld [vmem:[%s1435_s1 + $0x50] sm:$0xff] }
   0x7   :  { %516 = vmatpush.bf16.msra.mxu1 %v1016_v5  ;;  %v1022_v14 = vld [vmem:[%s1435_s1 + $0xa0] sm:$0xff]  ;;  %v1021_v18 = vld [vmem:[%s1435_s1 + $0x98] sm:$0xff]  ;;  %v1020_v22 = vld [vmem:[%s1435_s1 + $0x90] sm:$0xff] }
   0x8   :  { %565 = vmatpush.bf16.msra.mxu2 %v1024_v6  ;;  %v1030_v15 = vld [vmem:[%s1435_s1 + $0xe0] sm:$0xff]  ;;  %v1029_v19 = vld [vmem:[%s1435_s1 + $0xd8] sm:$0xff]  ;;  %v1028_v23 = vld [vmem:[%s1435_s1 + $0xd0] sm:$0xff] }
   0x9   :  { %614 = vmatpush.bf16.msra.mxu3 %v1032_v7  ;;  %v1003_v24 = vld [vmem:[%s1435_s1 + $0x8] sm:$0xff]  ;;  %v1002_v28 = vld [vmem:[%s1435_s1] sm:$0xff]  ;;  %v972_v33 = vld [vmem:[%s1437_s0 + $0xc] sm:$0xf0] }
   0xa   :  { %468 = vmatpush.bf16.msra.mxu0 %v1007_v8  ;;  %v1011_v25 = vld [vmem:[%s1435_s1 + $0x48] sm:$0xff]  ;;  %v1010_v29 = vld [vmem:[%s1435_s1 + $0x40] sm:$0xff]  ;;  %v718_v35 = vld [vmem:[%s1437_s0 + $0x10] sm:$0xf0] }
   0xb   :  { %517 = vmatpush.bf16.msra.mxu1 %v1015_v9  ;;  %v1019_v26 = vld [vmem:[%s1435_s1 + $0x88] sm:$0xff]  ;;  %v1018_v30 = vld [vmem:[%s1435_s1 + $0x80] sm:$0xff]  ;;  %v973_v37 = vld [vmem:[%s1437_s0 + $0x14] sm:$0xf0] }
   0xc   :  { %566 = vmatpush.bf16.msra.mxu2 %v1023_v10  ;;  %v1027_v27 = vld [vmem:[%s1435_s1 + $0xc8] sm:$0xff]  ;;  %v1026_v31 = vld [vmem:[%s1435_s1 + $0xc0] sm:$0xff]  ;;  %v726_v39 = vld [vmem:[%s1437_s0 + $0x18] sm:$0xf0] }
   0xd   :  { %615 = vmatpush.bf16.msra.mxu3 %v1031_v11  ;;  %v716_v32 = vld [vmem:[%s1437_s0] sm:$0xf]  ;;  %v970_v34 = vld [vmem:[%s1437_s0 + $0x4] sm:$0xf]  ;;  %v724_v36 = vld [vmem:[%s1437_s0 + $0x8] sm:$0xf] }
   0xe   :  { %469 = vmatpush.bf16.msra.mxu0 %v1006_v12  ;;  %v971_v38 = vld [vmem:[%s1437_s0 + $0xc] sm:$0xf]  ;;  %v717_v40 = vor.u32 %v972_v33, %v716_v32  ;;  %v721_v41 = vor.u32 %v970_v34, %v718_v35  ;;  %v725_v42 = vor.u32 %v973_v37, %v724_v36  ;;  %v732_v44 = vld [vmem:[%s1437_s0 + $0x20] sm:$0xf]  ;;  %v976_v45 = vld [vmem:[%s1437_s0 + $0x2c] sm:$0xf0] }
   0xf   :  { %518 = vmatpush.bf16.msra.mxu1 %v1014_v13  ;;  %v729_v43 = vor.u32 %v971_v38, %v726_v39  ;;  %v974_v46 = vld [vmem:[%s1437_s0 + $0x24] sm:$0xf]  ;;  %v734_v47 = vld [vmem:[%s1437_s0 + $0x30] sm:$0xf0]  ;;  %v740_v48 = vld [vmem:[%s1437_s0 + $0x28] sm:$0xf]  ;;  %v733_v52 = vor.u32 %v976_v45, %v732_v44 }
  0x10   :  { %567 = vmatpush.bf16.msra.mxu2 %v1022_v14  ;;  %v977_v49 = vld [vmem:[%s1437_s0 + $0x34] sm:$0xf0]  ;;  %v975_v50 = vld [vmem:[%s1437_s0 + $0x2c] sm:$0xf]  ;;  %v742_v51 = vld [vmem:[%s1437_s0 + $0x38] sm:$0xf0]  ;;  %v737_v53 = vor.u32 %v974_v46, %v734_v47 }
  0x11   :  { %616 = vmatpush.bf16.msra.mxu3 %v1030_v15  ;;  %v741_v54 = vor.u32 %v977_v49, %v740_v48  ;;  %v745_v55 = vor.u32 %v975_v50, %v742_v51  ;;  %v748_v56 = vld [vmem:[%s1437_s0 + $0x40] sm:$0xf]  ;;  %v980_v57 = vld [vmem:[%s1437_s0 + $0x4c] sm:$0xf0]  ;;  %v978_v58 = vld [vmem:[%s1437_s0 + $0x44] sm:$0xf] }
  0x12   :  { %470 = vmatpush.bf16.msra.mxu0 %v1005_v16  ;;  %v750_v59 = vld [vmem:[%s1437_s0 + $0x50] sm:$0xf0]  ;;  %v756_v60 = vld [vmem:[%s1437_s0 + $0x48] sm:$0xf]  ;;  %v981_v61 = vld [vmem:[%s1437_s0 + $0x54] sm:$0xf0]  ;;  %v749_v0 = vor.u32 %v980_v57, %v748_v56 }
  0x13   :  { %519 = vmatpush.bf16.msra.mxu1 %v1013_v17  ;;  %v979_v62 = vld [vmem:[%s1437_s0 + $0x4c] sm:$0xf]  ;;  %v758_v63 = vld [vmem:[%s1437_s0 + $0x58] sm:$0xf0]  ;;  %v753_v1 = vor.u32 %v978_v58, %v750_v59  ;;  %v757_v2 = vor.u32 %v981_v61, %v756_v60  ;;  %v764_v4 = vld [vmem:[%s1437_s0 + $0x60] sm:$0xf] }
  0x14   :  { %568 = vmatpush.bf16.msra.mxu2 %v1021_v18  ;;  %v761_v3 = vor.u32 %v979_v62, %v758_v63  ;;  %v984_v5 = vld [vmem:[%s1437_s0 + $0x6c] sm:$0xf0]  ;;  %v982_v6 = vld [vmem:[%s1437_s0 + $0x64] sm:$0xf]  ;;  %v766_v7 = vld [vmem:[%s1437_s0 + $0x70] sm:$0xf0] }
  0x15   :  { %617 = vmatpush.bf16.msra.mxu3 %v1029_v19  ;;  %v772_v8 = vld [vmem:[%s1437_s0 + $0x68] sm:$0xf]  ;;  %v985_v9 = vld [vmem:[%s1437_s0 + $0x74] sm:$0xf0]  ;;  %v983_v10 = vld [vmem:[%s1437_s0 + $0x6c] sm:$0xf]  ;;  %v765_v12 = vor.u32 %v984_v5, %v764_v4  ;;  %v769_v13 = vor.u32 %v982_v6, %v766_v7 }
  0x16   :  { %471 = vmatpush.bf16.msra.mxu0 %v1004_v20  ;;  %v774_v11 = vld [vmem:[%s1437_s0 + $0x78] sm:$0xf0]  ;;  %v773_v14 = vor.u32 %v985_v9, %v772_v8  ;;  %v780_v16 = vld [vmem:[%s1437_s0 + $0x80] sm:$0xf]  ;;  %v988_v17 = vld [vmem:[%s1437_s0 + $0x8c] sm:$0xf0] }
  0x17   :  { %520 = vmatpush.bf16.msra.mxu1 %v1012_v21  ;;  %v777_v15 = vor.u32 %v983_v10, %v774_v11  ;;  %v986_v18 = vld [vmem:[%s1437_s0 + $0x84] sm:$0xf]  ;;  %v782_v19 = vld [vmem:[%s1437_s0 + $0x90] sm:$0xf0]  ;;  %v788_v20 = vld [vmem:[%s1437_s0 + $0x88] sm:$0xf] }
  0x18   :  { %569 = vmatpush.bf16.msra.mxu2 %v1020_v22  ;;  %v989_v21 = vld [vmem:[%s1437_s0 + $0x94] sm:$0xf0]  ;;  %v987_v22 = vld [vmem:[%s1437_s0 + $0x8c] sm:$0xf]  ;;  %v804_v32 = vld [vmem:[%s1437_s0 + $0xa8] sm:$0xf] }
  0x19   :  { %618 = vmatpush.bf16.msra.mxu3 %v1028_v23  ;;  %v790_v23 = vld [vmem:[%s1437_s0 + $0x98] sm:$0xf0]  ;;  %v993_v33 = vld [vmem:[%s1437_s0 + $0xb4] sm:$0xf0]  ;;  %v991_v34 = vld [vmem:[%s1437_s0 + $0xac] sm:$0xf] }
  0x1a   :  { %472 = vmatpush.bf16.msra.mxu0 %v1003_v24  ;;  %v781_v24 = vor.u32 %v988_v17, %v780_v16  ;;  %v806_v35 = vld [vmem:[%s1437_s0 + $0xb8] sm:$0xf0]  ;;  %v805_v38 = vor.u32 %v993_v33, %v804_v32  ;;  %v820_v44 = vld [vmem:[%s1437_s0 + $0xc8] sm:$0xf]  ;;  %v997_v45 = vld [vmem:[%s1437_s0 + $0xd4] sm:$0xf0] }
  0x1b   :  { %521 = vmatpush.bf16.msra.mxu1 %v1011_v25  ;;  %v785_v25 = vor.u32 %v986_v18, %v782_v19  ;;  %v809_v39 = vor.u32 %v991_v34, %v806_v35  ;;  %v995_v46 = vld [vmem:[%s1437_s0 + $0xcc] sm:$0xf]  ;;  %v822_v47 = vld [vmem:[%s1437_s0 + $0xd8] sm:$0xf0]  ;;  %v821_v50 = vor.u32 %v997_v45, %v820_v44  ;;  %v836_v56 = vld [vmem:[%s1437_s0 + $0xe8] sm:$0xf] }
  0x1c   :  { %570 = vmatpush.bf16.msra.mxu2 %v1019_v26  ;;  %v789_v26 = vor.u32 %v989_v21, %v788_v20  ;;  %v825_v51 = vor.u32 %v995_v46, %v822_v47  ;;  %v1001_v57 = vld [vmem:[%s1437_s0 + $0xf4] sm:$0xf0]  ;;  %v999_v58 = vld [vmem:[%s1437_s0 + $0xec] sm:$0xf]  ;;  %v838_v59 = vld [vmem:[%s1437_s0 + $0xf8] sm:$0xf0] }
  0x1d   :  { %619 = vmatpush.bf16.msra.mxu3 %v1027_v27  ;;  %v793_v27 = vor.u32 %v987_v22, %v790_v23  ;;  %v837_v62 = vor.u32 %v1001_v57, %v836_v56  ;;  %v841_v63 = vor.u32 %v999_v58, %v838_v59 }
  0x1e   :  { %473 = vmatpush.bf16.msra.mxu0 %v1002_v28  ;;  %v796_v28 = vld [vmem:[%s1437_s0 + $0xa0] sm:$0xf] }
  0x1f   :  { %522 = vmatpush.bf16.msra.mxu1 %v1010_v29  ;;  %v992_v29 = vld [vmem:[%s1437_s0 + $0xac] sm:$0xf0] }
  0x20   :  { %571 = vmatpush.bf16.msra.mxu2 %v1018_v30  ;;  %v990_v30 = vld [vmem:[%s1437_s0 + $0xa4] sm:$0xf]  ;;  %v797_v36 = vor.u32 %v992_v29, %v796_v28 }
  0x21   :  { %620 = vmatpush.bf16.msra.mxu3 %v1026_v31  ;;  %474 = vmatmul.bf16.vlgmr.msra.gmra.mxu0 %v717_v40  ;;  %v798_v31 = vld [vmem:[%s1437_s0 + $0xb0] sm:$0xf0]  ;;  %v812_v40 = vld [vmem:[%s1437_s0 + $0xc0] sm:$0xf] }
  0x22   :  { %523 = vmatmul.bf16.vlgmr.msra.gmra.mxu1 %v721_v41  ;;  %v801_v37 = vor.u32 %v990_v30, %v798_v31  ;;  %v996_v41 = vld [vmem:[%s1437_s0 + $0xcc] sm:$0xf0] }
  0x23   :  { %572 = vmatmul.bf16.vlgmr.msra.gmra.mxu2 %v725_v42  ;;  %v994_v42 = vld [vmem:[%s1437_s0 + $0xc4] sm:$0xf]  ;;  %v813_v48 = vor.u32 %v996_v41, %v812_v40 }
  0x24   :  { %621 = vmatmul.bf16.vlgmr.msra.gmra.mxu3 %v729_v43  ;;  %v814_v43 = vld [vmem:[%s1437_s0 + $0xd0] sm:$0xf0] }
  0x25   :  { %v817_v49 = vor.u32 %v994_v42, %v814_v43 }
  0x31   :  { %479 = vmatmul.bf16.gmra.mxu0 %v733_v52  ;;  %v828_v52 = vld [vmem:[%s1437_s0 + $0xe0] sm:$0xf] }
  0x32   :  { %528 = vmatmul.bf16.gmra.mxu1 %v737_v53  ;;  %v1000_v53 = vld [vmem:[%s1437_s0 + $0xec] sm:$0xf0] }
  0x33   :  { %577 = vmatmul.bf16.gmra.mxu2 %v741_v54  ;;  %v998_v54 = vld [vmem:[%s1437_s0 + $0xe4] sm:$0xf]  ;;  %v829_v60 = vor.u32 %v1000_v53, %v828_v52 }
  0x34   :  { %626 = vmatmul.bf16.gmra.mxu3 %v745_v55  ;;  %v830_v55 = vld [vmem:[%s1437_s0 + $0xf0] sm:$0xf0] }
  0x35   :  { %v833_v61 = vor.u32 %v998_v54, %v830_v55 }
  0x41   :  { %484 = vmatmul.bf16.gmra.mxu0 %v749_v0  ;;  %v1393_v0 = vld [vmem:[%s1436_s2] ss:$0 sm:$0xff] }
  0x42   :  { %533 = vmatmul.bf16.gmra.mxu1 %v753_v1 }
  0x43   :  { %582 = vmatmul.bf16.gmra.mxu2 %v757_v2 }
  0x44   :  { %631 = vmatmul.bf16.gmra.mxu3 %v761_v3 }
  0x51   :  { %489 = vmatmul.bf16.gmra.mxu0 %v765_v12 }
  0x52   :  { %538 = vmatmul.bf16.gmra.mxu1 %v769_v13 }
  0x53   :  { %587 = vmatmul.bf16.gmra.mxu2 %v773_v14 }
  0x54   :  { %636 = vmatmul.bf16.gmra.mxu3 %v777_v15 }
  0x61   :  { %494 = vmatmul.bf16.gmra.mxu0 %v781_v24 }
  0x62   :  { %543 = vmatmul.bf16.gmra.mxu1 %v785_v25 }
  0x63   :  { %592 = vmatmul.bf16.gmra.mxu2 %v789_v26 }
  0x64   :  { %641 = vmatmul.bf16.gmra.mxu3 %v793_v27 }
  0x71   :  { %499 = vmatmul.bf16.gmra.mxu0 %v797_v36 }
  0x72   :  { %548 = vmatmul.bf16.gmra.mxu1 %v801_v37 }
  0x73   :  { %597 = vmatmul.bf16.gmra.mxu2 %v805_v38 }
  0x74   :  { %646 = vmatmul.bf16.gmra.mxu3 %v809_v39 }
  0x81   :  { %504 = vmatmul.bf16.gmra.mxu0 %v813_v48 }
  0x82   :  { %553 = vmatmul.bf16.gmra.mxu1 %v817_v49 }
  0x83   :  { %602 = vmatmul.bf16.gmra.mxu2 %v821_v50 }
  0x84   :  { %651 = vmatmul.bf16.gmra.mxu3 %v825_v51 }
  0x91   :  { %509 = vmatmul.bf16.gmra.mxu0 %v829_v60 }
  0x92   :  { %558 = vmatmul.bf16.gmra.mxu1 %v833_v61 }
  0x93   :  { %607 = vmatmul.bf16.gmra.mxu2 %v837_v62 }
  0x94   :  { %656 = vmatmul.bf16.gmra.mxu3 %v841_v63 }
  0x9e   :  { %v475_v1 = vpop.f32.mrf.mxu0 }
  0x9f   :  { %v524_v2 = vpop.f32.mrf.mxu1  ;;  %v476_v3 = vadd.f32 %v1393_v0, %v475_v1 }
  0xa1   :  { %v525_v6 = vadd.f32 %v524_v2, %v476_v3 }
  0xa6   :  { %v573_v4 = vpop.f32.mrf.mxu2  ;;  %v477_v7 = vpop.f32.mrf.mxu0 }
  0xa7   :  { %v622_v5 = vpop.f32.mrf.mxu3  ;;  %v526_v8 = vpop.f32.mrf.mxu1  ;;  %v478_v9 = vadd.f32 %v1393_v0, %v477_v7  ;;  %v574_v10 = vadd.f32 %v573_v4, %v525_v6 }
  0xa9   :  { %v527_v11 = vadd.f32 %v526_v8, %v478_v9  ;;  %v623_v14 = vadd.f32 %v622_v5, %v574_v10 }
  0xab   :  { %v662_v19 = vmax.f32 %v623_v14, 0.0 }
  0xae   :  { %v575_v12 = vpop.f32.mrf.mxu2  ;;  %v480_v16 = vpop.f32.mrf.mxu0 }
  0xaf   :  { %v624_v13 = vpop.f32.mrf.mxu3  ;;  %v576_v15 = vadd.f32 %v575_v12, %v527_v11  ;;  %v529_v17 = vpop.f32.mrf.mxu1  ;;  %v481_v21 = vadd.f32 %v1393_v0, %v480_v16 }
  0xb1   :  { %v625_v18 = vadd.f32 %v624_v13, %v576_v15  ;;  %v530_v25 = vadd.f32 %v529_v17, %v481_v21 }
  0xb3   :  { %v663_v20 = vmax.f32 %v625_v18, 0.0 }
  0xb5   :  { %v1037_v22 = vpack.c.bf16 %v663_v20, %v662_v19 }
  0xb6   :  { %v578_v23 = vpop.f32.mrf.mxu2  ;;  %v482_v26 = vpop.f32.mrf.mxu0 }
  0xb7   :  { %v627_v24 = vpop.f32.mrf.mxu3  ;;  %1038 = vst [vmem:[%s1438_s3] sm:$0xff] %v1037_v22   ;;  %v531_v27 = vpop.f32.mrf.mxu1  ;;  %v483_v28 = vadd.f32 %v1393_v0, %v482_v26  ;;  %v579_v29 = vadd.f32 %v578_v23, %v530_v25 }
  0xb9   :  { %v532_v30 = vadd.f32 %v531_v27, %v483_v28  ;;  %v628_v33 = vadd.f32 %v627_v24, %v579_v29 }
  0xbb   :  { %v664_v38 = vmax.f32 %v628_v33, 0.0 }
  0xbe   :  { %v580_v31 = vpop.f32.mrf.mxu2  ;;  %v485_v35 = vpop.f32.mrf.mxu0 }
  0xbf   :  { %v629_v32 = vpop.f32.mrf.mxu3  ;;  %v581_v34 = vadd.f32 %v580_v31, %v532_v30  ;;  %v534_v36 = vpop.f32.mrf.mxu1  ;;  %v486_v40 = vadd.f32 %v1393_v0, %v485_v35 }
  0xc1   :  { %v630_v37 = vadd.f32 %v629_v32, %v581_v34  ;;  %v535_v44 = vadd.f32 %v534_v36, %v486_v40 }
  0xc3   :  { %v665_v39 = vmax.f32 %v630_v37, 0.0 }
  0xc5   :  { %v1042_v41 = vpack.c.bf16 %v665_v39, %v664_v38 }
  0xc6   :  { %v583_v42 = vpop.f32.mrf.mxu2  ;;  %v487_v45 = vpop.f32.mrf.mxu0 }
  0xc7   :  { %v632_v43 = vpop.f32.mrf.mxu3  ;;  %1074 = vst [vmem:[%s1438_s3 + $0x8] sm:$0xff] %v1042_v41   ;;  %v536_v46 = vpop.f32.mrf.mxu1  ;;  %v488_v47 = vadd.f32 %v1393_v0, %v487_v45  ;;  %v584_v48 = vadd.f32 %v583_v42, %v535_v44 }
  0xc9   :  { %v537_v49 = vadd.f32 %v536_v46, %v488_v47  ;;  %v633_v52 = vadd.f32 %v632_v43, %v584_v48 }
  0xcb   :  { %v666_v57 = vmax.f32 %v633_v52, 0.0 }
  0xce   :  { %v585_v50 = vpop.f32.mrf.mxu2  ;;  %v490_v54 = vpop.f32.mrf.mxu0 }
  0xcf   :  { %v634_v51 = vpop.f32.mrf.mxu3  ;;  %v586_v53 = vadd.f32 %v585_v50, %v537_v49  ;;  %v539_v55 = vpop.f32.mrf.mxu1  ;;  %v491_v59 = vadd.f32 %v1393_v0, %v490_v54 }
  0xd1   :  { %v635_v56 = vadd.f32 %v634_v51, %v586_v53  ;;  %v540_v63 = vadd.f32 %v539_v55, %v491_v59 }
  0xd3   :  { %v667_v58 = vmax.f32 %v635_v56, 0.0 }
  0xd5   :  { %v1047_v60 = vpack.c.bf16 %v667_v58, %v666_v57 }
  0xd6   :  { %v588_v61 = vpop.f32.mrf.mxu2  ;;  %v492_v1 = vpop.f32.mrf.mxu0 }
  0xd7   :  { %v637_v62 = vpop.f32.mrf.mxu3  ;;  %1075 = vst [vmem:[%s1438_s3 + $0x10] sm:$0xff] %v1047_v60   ;;  %v541_v2 = vpop.f32.mrf.mxu1  ;;  %v493_v3 = vadd.f32 %v1393_v0, %v492_v1  ;;  %v589_v4 = vadd.f32 %v588_v61, %v540_v63 }
  0xd9   :  { %v542_v5 = vadd.f32 %v541_v2, %v493_v3  ;;  %v638_v8 = vadd.f32 %v637_v62, %v589_v4 }
  0xdb   :  { %v668_v13 = vmax.f32 %v638_v8, 0.0 }
  0xde   :  { %v590_v6 = vpop.f32.mrf.mxu2  ;;  %v495_v10 = vpop.f32.mrf.mxu0 }
  0xdf   :  { %v639_v7 = vpop.f32.mrf.mxu3  ;;  %v591_v9 = vadd.f32 %v590_v6, %v542_v5  ;;  %v544_v11 = vpop.f32.mrf.mxu1  ;;  %v496_v15 = vadd.f32 %v1393_v0, %v495_v10 }
  0xe1   :  { %v640_v12 = vadd.f32 %v639_v7, %v591_v9  ;;  %v545_v19 = vadd.f32 %v544_v11, %v496_v15 }
  0xe3   :  { %v669_v14 = vmax.f32 %v640_v12, 0.0 }
  0xe5   :  { %v1052_v16 = vpack.c.bf16 %v669_v14, %v668_v13 }
  0xe6   :  { %v593_v17 = vpop.f32.mrf.mxu2  ;;  %v497_v20 = vpop.f32.mrf.mxu0 }
  0xe7   :  { %v642_v18 = vpop.f32.mrf.mxu3  ;;  %1076 = vst [vmem:[%s1438_s3 + $0x18] sm:$0xff] %v1052_v16   ;;  %v546_v21 = vpop.f32.mrf.mxu1  ;;  %v498_v22 = vadd.f32 %v1393_v0, %v497_v20  ;;  %v594_v23 = vadd.f32 %v593_v17, %v545_v19 }
  0xe9   :  { %v547_v24 = vadd.f32 %v546_v21, %v498_v22  ;;  %v643_v27 = vadd.f32 %v642_v18, %v594_v23 }
  0xeb   :  { %v670_v32 = vmax.f32 %v643_v27, 0.0 }
  0xee   :  { %v595_v25 = vpop.f32.mrf.mxu2  ;;  %v500_v29 = vpop.f32.mrf.mxu0 }
  0xef   :  { %v644_v26 = vpop.f32.mrf.mxu3  ;;  %v596_v28 = vadd.f32 %v595_v25, %v547_v24  ;;  %v549_v30 = vpop.f32.mrf.mxu1  ;;  %v501_v34 = vadd.f32 %v1393_v0, %v500_v29 }
  0xf1   :  { %v645_v31 = vadd.f32 %v644_v26, %v596_v28  ;;  %v550_v38 = vadd.f32 %v549_v30, %v501_v34 }
  0xf3   :  { %v671_v33 = vmax.f32 %v645_v31, 0.0 }
  0xf5   :  { %v1057_v35 = vpack.c.bf16 %v671_v33, %v670_v32 }
  0xf6   :  { %v598_v36 = vpop.f32.mrf.mxu2  ;;  %v502_v39 = vpop.f32.mrf.mxu0 }
  0xf7   :  { %v647_v37 = vpop.f32.mrf.mxu3  ;;  %1077 = vst [vmem:[%s1438_s3 + $0x20] sm:$0xff] %v1057_v35   ;;  %v551_v40 = vpop.f32.mrf.mxu1  ;;  %v503_v41 = vadd.f32 %v1393_v0, %v502_v39  ;;  %v599_v42 = vadd.f32 %v598_v36, %v550_v38 }
  0xf9   :  { %v552_v43 = vadd.f32 %v551_v40, %v503_v41  ;;  %v648_v46 = vadd.f32 %v647_v37, %v599_v42 }
  0xfb   :  { %v672_v51 = vmax.f32 %v648_v46, 0.0 }
  0xfe   :  { %v600_v44 = vpop.f32.mrf.mxu2  ;;  %v505_v48 = vpop.f32.mrf.mxu0 }
  0xff   :  { %v649_v45 = vpop.f32.mrf.mxu3  ;;  %v601_v47 = vadd.f32 %v600_v44, %v552_v43  ;;  %v554_v49 = vpop.f32.mrf.mxu1  ;;  %v506_v53 = vadd.f32 %v1393_v0, %v505_v48 }
 0x101   :  { %v650_v50 = vadd.f32 %v649_v45, %v601_v47  ;;  %v555_v57 = vadd.f32 %v554_v49, %v506_v53 }
 0x103   :  { %v673_v52 = vmax.f32 %v650_v50, 0.0 }
 0x105   :  { %v1062_v54 = vpack.c.bf16 %v673_v52, %v672_v51 }
 0x106   :  { %v603_v55 = vpop.f32.mrf.mxu2  ;;  %v507_v58 = vpop.f32.mrf.mxu0 }
 0x107   :  { %v652_v56 = vpop.f32.mrf.mxu3  ;;  %1078 = vst [vmem:[%s1438_s3 + $0x28] sm:$0xff] %v1062_v54   ;;  %v556_v59 = vpop.f32.mrf.mxu1  ;;  %v508_v60 = vadd.f32 %v1393_v0, %v507_v58  ;;  %v604_v61 = vadd.f32 %v603_v55, %v555_v57 }
 0x109   :  { %v557_v62 = vadd.f32 %v556_v59, %v508_v60  ;;  %v653_v2 = vadd.f32 %v652_v56, %v604_v61 }
 0x10b   :  { %v674_v7 = vmax.f32 %v653_v2, 0.0 }
 0x10e   :  { %v605_v63 = vpop.f32.mrf.mxu2  ;;  %v510_v4 = vpop.f32.mrf.mxu0 }
 0x10f   :  { %v654_v1 = vpop.f32.mrf.mxu3  ;;  %v606_v3 = vadd.f32 %v605_v63, %v557_v62  ;;  %v559_v6 = vpop.f32.mrf.mxu1  ;;  %v511_v9 = vadd.f32 %v1393_v0, %v510_v4 }
 0x111   :  { %v655_v5 = vadd.f32 %v654_v1, %v606_v3  ;;  %v560_v13 = vadd.f32 %v559_v6, %v511_v9 }
 0x113   :  { %v675_v8 = vmax.f32 %v655_v5, 0.0 }
 0x115   :  { %v1067_v10 = vpack.c.bf16 %v675_v8, %v674_v7 }
 0x116   :  { %v608_v11 = vpop.f32.mrf.mxu2  ;;  %v512_v14 = vpop.f32.mrf.mxu0 }
 0x117   :  { %v657_v12 = vpop.f32.mrf.mxu3  ;;  %1079 = vst [vmem:[%s1438_s3 + $0x30] sm:$0xff] %v1067_v10   ;;  %v513_v15 = vadd.f32 %v1393_v0, %v512_v14  ;;  %v609_v16 = vadd.f32 %v608_v11, %v560_v13  ;;  %v561_v17 = vpop.f32.mrf.mxu1 }
 0x119   :  { %v562_v18 = vadd.f32 %v561_v17, %v513_v15  ;;  %v658_v20 = vadd.f32 %v657_v12, %v609_v16 }
 0x11b   :  { %v676_v24 = vmax.f32 %v658_v20, 0.0 }
 0x11e   :  { %v610_v19 = vpop.f32.mrf.mxu2 }
 0x11f   :  { %v611_v21 = vadd.f32 %v610_v19, %v562_v18  ;;  %v659_v22 = vpop.f32.mrf.mxu3 }
 0x121   :  { %v660_v23 = vadd.f32 %v659_v22, %v611_v21 }
 0x123   :  { %v677_v25 = vmax.f32 %v660_v23, 0.0 }
 0x125   :  { %v1072_v26 = vpack.c.bf16 %v677_v25, %v676_v24 }
 0x127   :  { %1080 = vst [vmem:[%s1438_s3 + $0x38] sm:$0xff] %v1072_v26  }

// kernel: vae_forward.11
= control target key start
LH: loop header
LB: loop body
LE: loop exit
PB: predicated region body
PF: predicated region fallthrough
CT: control target
= control target key end

     0   :  { %12 = vsyncpa [#allocation3], 0  ;;  %s5077_s0 = inlined_call_operand.vmem [shape: bf16[2,2048], index: 0, kind: input, shape index: {}]   ;;  %s5078_s1 = inlined_call_operand.vmem [shape: bf16[2048,256], index: 1, kind: input, shape index: {}]   ;;  %s5079_s2 = inlined_call_operand.vmem [shape: f32[1,256], index: 2, kind: input, shape index: {}]   ;;  %s5080_s3 = inlined_call_operand.vmem [shape: f32[2,128], index: 3, kind: input, shape index: {}]   ;;  %s5081_s4 = inlined_call_operand.hbm [shape: f32[2,128], index: 4, kind: output, shape index: {0}]   ;;  %s5082_s5 = inlined_call_operand.hbm [shape: f32[2,128], index: 5, kind: output, shape index: {1}]   ;;  %s5083_s6 = inlined_call_operand.vmem [shape: f32[2,128], index: 6, kind: output, shape index: {2}]  }
   0x1   :  { %v2121_v0 = vld [vmem:[%s5078_s1 + $0x70] sm:$0xf]  ;;  %v3102_v1 = vld [vmem:[%s5078_s1 + $0x74] sm:$0xf0]  ;;  %v2113_v11 = vld [vmem:[%s5078_s1 + $0x60] sm:$0xf] }
   0x2   :  { %v2185_v2 = vld [vmem:[%s5078_s1 + $0xf0] sm:$0xf]  ;;  %v2122_v3 = vor.u32 %v3102_v1, %v2121_v0  ;;  %v3118_v4 = vld [vmem:[%s5078_s1 + $0xf4] sm:$0xf0]  ;;  %v3100_v13 = vld [vmem:[%s5078_s1 + $0x64] sm:$0xf0] }
   0x3   :  { %v2249_v5 = vld [vmem:[%s5078_s1 + $0x170] sm:$0xf]  ;;  %v3134_v6 = vld [vmem:[%s5078_s1 + $0x174] sm:$0xf0]  ;;  %v2186_v7 = vor.u32 %v3118_v4, %v2185_v2  ;;  %v2177_v14 = vld [vmem:[%s5078_s1 + $0xe0] sm:$0xf]  ;;  %v2114_v16 = vor.u32 %v3100_v13, %v2113_v11 }
   0x4   :  { %v2250_v8 = vor.u32 %v3134_v6, %v2249_v5  ;;  %v2313_v9 = vld [vmem:[%s5078_s1 + $0x1f0] sm:$0xf]  ;;  %v3150_v10 = vld [vmem:[%s5078_s1 + $0x1f4] sm:$0xf0]  ;;  %1602 = vmatpush.bf16.msra.mxu0 %v2122_v3  ;;  %v3116_v15 = vld [vmem:[%s5078_s1 + $0xe4] sm:$0xf0] }
   0x5   :  { %v2314_v12 = vor.u32 %v3150_v10, %v2313_v9  ;;  %1615 = vmatpush.bf16.msra.mxu1 %v2186_v7  ;;  %v2178_v17 = vor.u32 %v3116_v15, %v2177_v14  ;;  %v2241_v18 = vld [vmem:[%s5078_s1 + $0x160] sm:$0xf]  ;;  %v3132_v19 = vld [vmem:[%s5078_s1 + $0x164] sm:$0xf0]  ;;  %v2105_v23 = vld [vmem:[%s5078_s1 + $0x50] sm:$0xf] }
   0x6   :  { %1628 = vmatpush.bf16.msra.mxu2 %v2250_v8  ;;  %v2305_v20 = vld [vmem:[%s5078_s1 + $0x1e0] sm:$0xf]  ;;  %v2242_v21 = vor.u32 %v3132_v19, %v2241_v18  ;;  %v3148_v22 = vld [vmem:[%s5078_s1 + $0x1e4] sm:$0xf0]  ;;  %v3098_v24 = vld [vmem:[%s5078_s1 + $0x54] sm:$0xf0] }
   0x7   :  { %1641 = vmatpush.bf16.msra.mxu3 %v2314_v12  ;;  %v2306_v25 = vor.u32 %v3148_v22, %v2305_v20  ;;  %v2169_v26 = vld [vmem:[%s5078_s1 + $0xd0] sm:$0xf]  ;;  %v3114_v27 = vld [vmem:[%s5078_s1 + $0xd4] sm:$0xf0]  ;;  %v2106_v29 = vor.u32 %v3098_v24, %v2105_v23  ;;  %v2097_v35 = vld [vmem:[%s5078_s1 + $0x40] sm:$0xf] }
   0x8   :  { %v2233_v28 = vld [vmem:[%s5078_s1 + $0x150] sm:$0xf]  ;;  %1603 = vmatpush.bf16.msra.mxu0 %v2114_v16  ;;  %v3130_v30 = vld [vmem:[%s5078_s1 + $0x154] sm:$0xf0]  ;;  %v2170_v33 = vor.u32 %v3114_v27, %v2169_v26  ;;  %v3096_v36 = vld [vmem:[%s5078_s1 + $0x44] sm:$0xf0] }
   0x9   :  { %v2297_v31 = vld [vmem:[%s5078_s1 + $0x1d0] sm:$0xf]  ;;  %v3146_v32 = vld [vmem:[%s5078_s1 + $0x1d4] sm:$0xf0]  ;;  %1616 = vmatpush.bf16.msra.mxu1 %v2178_v17  ;;  %v2234_v34 = vor.u32 %v3130_v30, %v2233_v28  ;;  %v2161_v37 = vld [vmem:[%s5078_s1 + $0xc0] sm:$0xf]  ;;  %v2098_v44 = vor.u32 %v3096_v36, %v2097_v35 }
   0xa   :  { %1629 = vmatpush.bf16.msra.mxu2 %v2242_v21  ;;  %v2298_v38 = vor.u32 %v3146_v32, %v2297_v31  ;;  %v3112_v39 = vld [vmem:[%s5078_s1 + $0xc4] sm:$0xf0]  ;;  %v2225_v40 = vld [vmem:[%s5078_s1 + $0x140] sm:$0xf]  ;;  %v2089_v47 = vld [vmem:[%s5078_s1 + $0x30] sm:$0xf] }
   0xb   :  { %1642 = vmatpush.bf16.msra.mxu3 %v2306_v25  ;;  %v3128_v41 = vld [vmem:[%s5078_s1 + $0x144] sm:$0xf0]  ;;  %v2289_v42 = vld [vmem:[%s5078_s1 + $0x1c0] sm:$0xf]  ;;  %v2162_v45 = vor.u32 %v3112_v39, %v2161_v37  ;;  %v3094_v48 = vld [vmem:[%s5078_s1 + $0x34] sm:$0xf0] }
   0xc   :  { %v3144_v43 = vld [vmem:[%s5078_s1 + $0x1c4] sm:$0xf0]  ;;  %1604 = vmatpush.bf16.msra.mxu0 %v2106_v29  ;;  %v2226_v46 = vor.u32 %v3128_v41, %v2225_v40  ;;  %v2153_v49 = vld [vmem:[%s5078_s1 + $0xb0] sm:$0xf]  ;;  %v3110_v51 = vld [vmem:[%s5078_s1 + $0xb4] sm:$0xf0]  ;;  %v2090_v56 = vor.u32 %v3094_v48, %v2089_v47 }
   0xd   :  { %1617 = vmatpush.bf16.msra.mxu1 %v2170_v33  ;;  %v2290_v50 = vor.u32 %v3144_v43, %v2289_v42  ;;  %v2217_v52 = vld [vmem:[%s5078_s1 + $0x130] sm:$0xf]  ;;  %v3126_v53 = vld [vmem:[%s5078_s1 + $0x134] sm:$0xf0]  ;;  %v2154_v57 = vor.u32 %v3110_v51, %v2153_v49  ;;  %v2081_v59 = vld [vmem:[%s5078_s1 + $0x20] sm:$0xf] }
   0xe   :  { %1630 = vmatpush.bf16.msra.mxu2 %v2234_v34  ;;  %v2281_v54 = vld [vmem:[%s5078_s1 + $0x1b0] sm:$0xf]  ;;  %v3142_v55 = vld [vmem:[%s5078_s1 + $0x1b4] sm:$0xf0]  ;;  %v2218_v58 = vor.u32 %v3126_v53, %v2217_v52  ;;  %v3092_v60 = vld [vmem:[%s5078_s1 + $0x24] sm:$0xf0] }
   0xf   :  { %1643 = vmatpush.bf16.msra.mxu3 %v2298_v38  ;;  %v2145_v61 = vld [vmem:[%s5078_s1 + $0xa0] sm:$0xf]  ;;  %v2282_v62 = vor.u32 %v3142_v55, %v2281_v54  ;;  %v3108_v63 = vld [vmem:[%s5078_s1 + $0xa4] sm:$0xf0]  ;;  %v2082_v4 = vor.u32 %v3092_v60, %v2081_v59  ;;  %v2073_v7 = vld [vmem:[%s5078_s1 + $0x10] sm:$0xf] }
  0x10   :  { %1605 = vmatpush.bf16.msra.mxu0 %v2098_v44  ;;  %v2209_v0 = vld [vmem:[%s5078_s1 + $0x120] sm:$0xf]  ;;  %v3124_v1 = vld [vmem:[%s5078_s1 + $0x124] sm:$0xf0]  ;;  %v2146_v5 = vor.u32 %v3108_v63, %v2145_v61  ;;  %v3090_v8 = vld [vmem:[%s5078_s1 + $0x14] sm:$0xf0] }
  0x11   :  { %1618 = vmatpush.bf16.msra.mxu1 %v2162_v45  ;;  %v2273_v2 = vld [vmem:[%s5078_s1 + $0x1a0] sm:$0xf]  ;;  %v3140_v3 = vld [vmem:[%s5078_s1 + $0x1a4] sm:$0xf0]  ;;  %v2210_v6 = vor.u32 %v3124_v1, %v2209_v0  ;;  %v2137_v9 = vld [vmem:[%s5078_s1 + $0x90] sm:$0xf]  ;;  %v2074_v16 = vor.u32 %v3090_v8, %v2073_v7 }
  0x12   :  { %1631 = vmatpush.bf16.msra.mxu2 %v2226_v46  ;;  %v2274_v10 = vor.u32 %v3140_v3, %v2273_v2  ;;  %v3106_v11 = vld [vmem:[%s5078_s1 + $0x94] sm:$0xf0]  ;;  %v2201_v12 = vld [vmem:[%s5078_s1 + $0x110] sm:$0xf]  ;;  %v2065_v17 = vld [vmem:[%s5078_s1] sm:$0xf] }
  0x13   :  { %1644 = vmatpush.bf16.msra.mxu3 %v2290_v50  ;;  %v3122_v13 = vld [vmem:[%s5078_s1 + $0x114] sm:$0xf0]  ;;  %v2265_v14 = vld [vmem:[%s5078_s1 + $0x190] sm:$0xf]  ;;  %v3088_v18 = vld [vmem:[%s5078_s1 + $0x4] sm:$0xf0]  ;;  %v2138_v19 = vor.u32 %v3106_v11, %v2137_v9 }
  0x14   :  { %1606 = vmatpush.bf16.msra.mxu0 %v2090_v56  ;;  %v3138_v15 = vld [vmem:[%s5078_s1 + $0x194] sm:$0xf0]  ;;  %v2202_v20 = vor.u32 %v3122_v13, %v2201_v12  ;;  %v2129_v21 = vld [vmem:[%s5078_s1 + $0x80] sm:$0xf]  ;;  %v3104_v22 = vld [vmem:[%s5078_s1 + $0x84] sm:$0xf0]  ;;  %v2066_v31 = vor.u32 %v3088_v18, %v2065_v17 }
  0x15   :  { %1619 = vmatpush.bf16.msra.mxu1 %v2154_v57  ;;  %v2193_v23 = vld [vmem:[%s5078_s1 + $0x100] sm:$0xf]  ;;  %v2266_v24 = vor.u32 %v3138_v15, %v2265_v14  ;;  %v3120_v25 = vld [vmem:[%s5078_s1 + $0x104] sm:$0xf0]  ;;  %v2377_v28 = vld [vmem:[%s5078_s1 + $0x270] sm:$0xf]  ;;  %v2130_v35 = vor.u32 %v3104_v22, %v2129_v21 }
  0x16   :  { %1632 = vmatpush.bf16.msra.mxu2 %v2218_v58  ;;  %v2257_v26 = vld [vmem:[%s5078_s1 + $0x180] sm:$0xf]  ;;  %v3136_v27 = vld [vmem:[%s5078_s1 + $0x184] sm:$0xf0]  ;;  %v3166_v29 = vld [vmem:[%s5078_s1 + $0x274] sm:$0xf0]  ;;  %v2194_v36 = vor.u32 %v3120_v25, %v2193_v23 }
  0x17   :  { %1645 = vmatpush.bf16.msra.mxu3 %v2282_v62  ;;  %v2441_v30 = vld [vmem:[%s5078_s1 + $0x2f0] sm:$0xf]  ;;  %v3182_v32 = vld [vmem:[%s5078_s1 + $0x2f4] sm:$0xf0]  ;;  %v2258_v39 = vor.u32 %v3136_v27, %v2257_v26  ;;  %v2378_v40 = vor.u32 %v3166_v29, %v2377_v28  ;;  %v2369_v43 = vld [vmem:[%s5078_s1 + $0x260] sm:$0xf] }
  0x18   :  { %1607 = vmatpush.bf16.msra.mxu0 %v2082_v4  ;;  %v2505_v33 = vld [vmem:[%s5078_s1 + $0x370] sm:$0xf]  ;;  %v3198_v34 = vld [vmem:[%s5078_s1 + $0x374] sm:$0xf0]  ;;  %v2442_v41 = vor.u32 %v3182_v32, %v2441_v30  ;;  %v3164_v44 = vld [vmem:[%s5078_s1 + $0x264] sm:$0xf0] }
  0x19   :  { %1620 = vmatpush.bf16.msra.mxu1 %v2146_v5  ;;  %v2569_v37 = vld [vmem:[%s5078_s1 + $0x3f0] sm:$0xf]  ;;  %v3214_v38 = vld [vmem:[%s5078_s1 + $0x3f4] sm:$0xf0]  ;;  %v2506_v42 = vor.u32 %v3198_v34, %v2505_v33  ;;  %v2433_v45 = vld [vmem:[%s5078_s1 + $0x2e0] sm:$0xf]  ;;  %v2370_v52 = vor.u32 %v3164_v44, %v2369_v43 }
  0x1a   :  { %1633 = vmatpush.bf16.msra.mxu2 %v2210_v6  ;;  %v2570_v46 = vor.u32 %v3214_v38, %v2569_v37  ;;  %v3180_v47 = vld [vmem:[%s5078_s1 + $0x2e4] sm:$0xf0]  ;;  %v2497_v48 = vld [vmem:[%s5078_s1 + $0x360] sm:$0xf]  ;;  %v2361_v55 = vld [vmem:[%s5078_s1 + $0x250] sm:$0xf] }
  0x1b   :  { %1646 = vmatpush.bf16.msra.mxu3 %v2274_v10  ;;  %v3196_v49 = vld [vmem:[%s5078_s1 + $0x364] sm:$0xf0]  ;;  %v2561_v50 = vld [vmem:[%s5078_s1 + $0x3e0] sm:$0xf]  ;;  %v2434_v53 = vor.u32 %v3180_v47, %v2433_v45  ;;  %v3162_v56 = vld [vmem:[%s5078_s1 + $0x254] sm:$0xf0] }
  0x1c   :  { %1608 = vmatpush.bf16.msra.mxu0 %v2074_v16  ;;  %v3212_v51 = vld [vmem:[%s5078_s1 + $0x3e4] sm:$0xf0]  ;;  %v2498_v54 = vor.u32 %v3196_v49, %v2497_v48  ;;  %v2425_v57 = vld [vmem:[%s5078_s1 + $0x2d0] sm:$0xf]  ;;  %v3178_v59 = vld [vmem:[%s5078_s1 + $0x2d4] sm:$0xf0]  ;;  %v2362_v0 = vor.u32 %v3162_v56, %v2361_v55 }
  0x1d   :  { %1621 = vmatpush.bf16.msra.mxu1 %v2138_v19  ;;  %v2562_v58 = vor.u32 %v3212_v51, %v2561_v50  ;;  %v2489_v60 = vld [vmem:[%s5078_s1 + $0x350] sm:$0xf]  ;;  %v3194_v61 = vld [vmem:[%s5078_s1 + $0x354] sm:$0xf0]  ;;  %v2353_v1 = vld [vmem:[%s5078_s1 + $0x240] sm:$0xf]  ;;  %v2426_v3 = vor.u32 %v3178_v59, %v2425_v57 }
  0x1e   :  { %1634 = vmatpush.bf16.msra.mxu2 %v2202_v20  ;;  %v2553_v62 = vld [vmem:[%s5078_s1 + $0x3d0] sm:$0xf]  ;;  %v3210_v63 = vld [vmem:[%s5078_s1 + $0x3d4] sm:$0xf0]  ;;  %v22_v2 = vld [vmem:[%s5077_s0] sm:$0xff]  ;;  %v2490_v4 = vor.u32 %v3194_v61, %v2489_v60 }
  0x1f   :  { %1647 = vmatpush.bf16.msra.mxu3 %v2266_v24  ;;  %v3160_v5 = vld [vmem:[%s5078_s1 + $0x244] sm:$0xf0]  ;;  %v2417_v6 = vld [vmem:[%s5078_s1 + $0x2c0] sm:$0xf]  ;;  %287 = vst [vmem:[#allocation1] ss:$9 sm:$0xff] %v22_v2  ;;  %v2554_v7 = vor.u32 %v3210_v63, %v2553_v62 }
  0x20   :  { %1609 = vmatpush.bf16.msra.mxu0 %v2066_v31  ;;  %v3176_v8 = vld [vmem:[%s5078_s1 + $0x2c4] sm:$0xf0]  ;;  %v2481_v9 = vld [vmem:[%s5078_s1 + $0x340] sm:$0xf]  ;;  %v2354_v13 = vor.u32 %v3160_v5, %v2353_v1  ;;  %v2345_v16 = vld [vmem:[%s5078_s1 + $0x230] sm:$0xf] }
  0x21   :  { %1622 = vmatpush.bf16.msra.mxu1 %v2130_v35  ;;  %v3192_v10 = vld [vmem:[%s5078_s1 + $0x344] sm:$0xf0]  ;;  %v2545_v11 = vld [vmem:[%s5078_s1 + $0x3c0] sm:$0xf]  ;;  %v2418_v14 = vor.u32 %v3176_v8, %v2417_v6  ;;  %v3158_v17 = vld [vmem:[%s5078_s1 + $0x234] sm:$0xf0] }
  0x22   :  { %1635 = vmatpush.bf16.msra.mxu2 %v2194_v36  ;;  %v3208_v12 = vld [vmem:[%s5078_s1 + $0x3c4] sm:$0xf0]  ;;  %v2482_v15 = vor.u32 %v3192_v10, %v2481_v9  ;;  %v2409_v18 = vld [vmem:[%s5078_s1 + $0x2b0] sm:$0xf]  ;;  %v3174_v20 = vld [vmem:[%s5078_s1 + $0x2b4] sm:$0xf0]  ;;  %v2346_v26 = vor.u32 %v3158_v17, %v2345_v16 }
  0x23   :  { %1648 = vmatpush.bf16.msra.mxu3 %v2258_v39  ;;  %v2546_v19 = vor.u32 %v3208_v12, %v2545_v11  ;;  %v2473_v21 = vld [vmem:[%s5078_s1 + $0x330] sm:$0xf]  ;;  %v3190_v22 = vld [vmem:[%s5078_s1 + $0x334] sm:$0xf0]  ;;  %v2337_v25 = vld [vmem:[%s5078_s1 + $0x220] sm:$0xf]  ;;  %v2410_v30 = vor.u32 %v3174_v20, %v2409_v18 }
  0x24   :  { %1654 = vmatpush.bf16.msrb.mxu0 %v2378_v40  ;;  %v2537_v23 = vld [vmem:[%s5078_s1 + $0x3b0] sm:$0xf]  ;;  %v3206_v24 = vld [vmem:[%s5078_s1 + $0x3b4] sm:$0xf0]  ;;  %v2474_v31 = vor.u32 %v3190_v22, %v2473_v21  ;;  %v3156_v32 = vld [vmem:[%s5078_s1 + $0x224] sm:$0xf0] }
  0x25   :  { %1667 = vmatpush.bf16.msrb.mxu1 %v2442_v41  ;;  %v2401_v33 = vld [vmem:[%s5078_s1 + $0x2a0] sm:$0xf]  ;;  %v2538_v35 = vor.u32 %v3206_v24, %v2537_v23  ;;  %v3172_v36 = vld [vmem:[%s5078_s1 + $0x2a4] sm:$0xf0]  ;;  %v2338_v41 = vor.u32 %v3156_v32, %v2337_v25  ;;  %v3154_v45 = vld [vmem:[%s5078_s1 + $0x214] sm:$0xf0] }
  0x26   :  { %1680 = vmatpush.bf16.msrb.mxu2 %v2506_v42  ;;  %v3762_v27 = vld [vmem:[#allocation1 + $0x12] sm:$0xff]  ;;  %v3764_v28 = vld [vmem:[#allocation1] sm:$0xff]  ;;  %v3774_v34 = vld [vmem:[#allocation1 + $0x9] sm:$0xff]  ;;  %v2402_v43 = vor.u32 %v3172_v36, %v2401_v33 }
  0x27   :  { %1693 = vmatpush.bf16.msrb.mxu3 %v2570_v46  ;;  %v3766_v29 = vld [vmem:[#allocation1 + $0x1b] sm:$0xff]  ;;  %v3188_v38 = vld [vmem:[%s5078_s1 + $0x324] sm:$0xf0]  ;;  %1636 = vmatmul.bf16.vlgmr.msra.gmra.mxu2 %v3762_v27  ;;  %v2329_v42 = vld [vmem:[%s5078_s1 + $0x210] sm:$0xf] }
  0x28   :  { %1655 = vmatpush.bf16.msrb.mxu0 %v2370_v52  ;;  %v2465_v37 = vld [vmem:[%s5078_s1 + $0x320] sm:$0xf]  ;;  %v3204_v40 = vld [vmem:[%s5078_s1 + $0x3a4] sm:$0xf0]  ;;  %1649 = vmatmul.bf16.vlgmr.msra.gmra.mxu3 %v3766_v29  ;;  %v2393_v46 = vld [vmem:[%s5078_s1 + $0x290] sm:$0xf]  ;;  %v2330_v55 = vor.u32 %v3154_v45, %v2329_v42 }
  0x29   :  { %1668 = vmatpush.bf16.msrb.mxu1 %v2434_v53  ;;  %v2529_v39 = vld [vmem:[%s5078_s1 + $0x3a0] sm:$0xf]  ;;  %1610 = vmatmul.bf16.vlgmr.msra.gmra.mxu0 %v3764_v28  ;;  %v2466_v44 = vor.u32 %v3188_v38, %v2465_v37  ;;  %v3170_v47 = vld [vmem:[%s5078_s1 + $0x294] sm:$0xf0]  ;;  %v2457_v49 = vld [vmem:[%s5078_s1 + $0x310] sm:$0xf] }
  0x2a   :  { %1681 = vmatpush.bf16.msrb.mxu2 %v2498_v54  ;;  %1623 = vmatmul.bf16.vlgmr.msra.gmra.mxu1 %v3774_v34  ;;  %v2530_v48 = vor.u32 %v3204_v40, %v2529_v39  ;;  %v3186_v50 = vld [vmem:[%s5078_s1 + $0x314] sm:$0xf0]  ;;  %v2521_v51 = vld [vmem:[%s5078_s1 + $0x390] sm:$0xf]  ;;  %v2321_v53 = vld [vmem:[%s5078_s1 + $0x200] sm:$0xf]  ;;  %v2394_v62 = vor.u32 %v3170_v47, %v2393_v46 }
  0x2b   :  { %1694 = vmatpush.bf16.msrb.mxu3 %v2562_v58  ;;  %v3202_v52 = vld [vmem:[%s5078_s1 + $0x394] sm:$0xf0]  ;;  %v3152_v54 = vld [vmem:[%s5078_s1 + $0x204] sm:$0xf0]  ;;  %v2385_v56 = vld [vmem:[%s5078_s1 + $0x280] sm:$0xf]  ;;  %v2458_v63 = vor.u32 %v3186_v50, %v2457_v49 }
  0x2c   :  { %1656 = vmatpush.bf16.msrb.mxu0 %v2362_v0  ;;  %v3168_v57 = vld [vmem:[%s5078_s1 + $0x284] sm:$0xf0]  ;;  %v2449_v58 = vld [vmem:[%s5078_s1 + $0x300] sm:$0xf]  ;;  %v3837_v60 = vld [vmem:[#allocation1 + $0x36] sm:$0xff]  ;;  %v2322_v9 = vor.u32 %v3152_v54, %v2321_v53 }
  0x2d   :  { %1669 = vmatpush.bf16.msrb.mxu1 %v2426_v3  ;;  %v3184_v59 = vld [vmem:[%s5078_s1 + $0x304] sm:$0xf0]  ;;  %v3844_v1 = vld [vmem:[#allocation1 + $0x3f] sm:$0xff]  ;;  %v3846_v2 = vld [vmem:[#allocation1 + $0x2d] sm:$0xff]  ;;  %v2522_v3 = vor.u32 %v3202_v52, %v2521_v51 }
  0x2e   :  { %1682 = vmatpush.bf16.msrb.mxu2 %v2490_v4  ;;  %v23_v61 = vld [vmem:[%s5077_s0 + $0x8] sm:$0xff]  ;;  %v2513_v4 = vld [vmem:[%s5078_s1 + $0x380] sm:$0xf]  ;;  %v2633_v6 = vld [vmem:[%s5078_s1 + $0x470] sm:$0xf] }
  0x2f   :  { %1695 = vmatpush.bf16.msrb.mxu3 %v2554_v7  ;;  %v3842_v0 = vld [vmem:[#allocation1 + $0x24] sm:$0xff]  ;;  %v3230_v7 = vld [vmem:[%s5078_s1 + $0x474] sm:$0xf0]  ;;  %v2697_v8 = vld [vmem:[%s5078_s1 + $0x4f0] sm:$0xf] }
  0x30   :  { %1657 = vmatpush.bf16.msrb.mxu0 %v2354_v13  ;;  %v3200_v5 = vld [vmem:[%s5078_s1 + $0x384] sm:$0xf0]  ;;  %297 = vst [vmem:[#allocation1] ss:$9 sm:$0xff] %v23_v61  ;;  %v3246_v10 = vld [vmem:[%s5078_s1 + $0x4f4] sm:$0xf0]  ;;  %v2386_v13 = vor.u32 %v3168_v57, %v2385_v56  ;;  %v2634_v18 = vor.u32 %v3230_v7, %v2633_v6 }
  0x31   :  { %1670 = vmatpush.bf16.msrb.mxu1 %v2418_v14  ;;  %v2761_v11 = vld [vmem:[%s5078_s1 + $0x570] sm:$0xf]  ;;  %v3262_v12 = vld [vmem:[%s5078_s1 + $0x574] sm:$0xf0]  ;;  %v2450_v14 = vor.u32 %v3184_v59, %v2449_v58  ;;  %v2514_v17 = vor.u32 %v3200_v5, %v2513_v4  ;;  %v2625_v21 = vld [vmem:[%s5078_s1 + $0x460] sm:$0xf] }
  0x32   :  { %1683 = vmatpush.bf16.msrb.mxu2 %v2482_v15  ;;  %v2825_v15 = vld [vmem:[%s5078_s1 + $0x5f0] sm:$0xf]  ;;  %v3278_v16 = vld [vmem:[%s5078_s1 + $0x5f4] sm:$0xf0]  ;;  %v2762_v20 = vor.u32 %v3262_v12, %v2761_v11  ;;  %v3228_v22 = vld [vmem:[%s5078_s1 + $0x464] sm:$0xf0] }
  0x33   :  { %1696 = vmatpush.bf16.msrb.mxu3 %v2546_v19  ;;  %v2698_v19 = vor.u32 %v3246_v10, %v2697_v8  ;;  %v2689_v23 = vld [vmem:[%s5078_s1 + $0x4e0] sm:$0xf]  ;;  %v2826_v24 = vor.u32 %v3278_v16, %v2825_v15  ;;  %v3244_v25 = vld [vmem:[%s5078_s1 + $0x4e4] sm:$0xf0]  ;;  %v2626_v33 = vor.u32 %v3228_v22, %v2625_v21  ;;  %v2617_v37 = vld [vmem:[%s5078_s1 + $0x450] sm:$0xf] }
  0x34   :  { %1658 = vmatpush.bf16.msrb.mxu0 %v2346_v26  ;;  %v2753_v26 = vld [vmem:[%s5078_s1 + $0x560] sm:$0xf]  ;;  %v3276_v32 = vld [vmem:[%s5078_s1 + $0x5e4] sm:$0xf0]  ;;  %v3226_v38 = vld [vmem:[%s5078_s1 + $0x454] sm:$0xf0] }
  0x35   :  { %1671 = vmatpush.bf16.msrb.mxu1 %v2410_v30  ;;  %v3260_v30 = vld [vmem:[%s5078_s1 + $0x564] sm:$0xf0]  ;;  %v2681_v39 = vld [vmem:[%s5078_s1 + $0x4d0] sm:$0xf]  ;;  %v3274_v45 = vld [vmem:[%s5078_s1 + $0x5d4] sm:$0xf0]  ;;  %v2618_v46 = vor.u32 %v3226_v38, %v2617_v37 }
  0x36   :  { %1684 = vmatpush.bf16.msrb.mxu2 %v2474_v31  ;;  %v2817_v31 = vld [vmem:[%s5078_s1 + $0x5e0] sm:$0xf]  ;;  %v2754_v36 = vor.u32 %v3260_v30, %v2753_v26  ;;  %v2745_v42 = vld [vmem:[%s5078_s1 + $0x550] sm:$0xf]  ;;  %v3224_v50 = vld [vmem:[%s5078_s1 + $0x444] sm:$0xf0] }
  0x37   :  { %1697 = vmatpush.bf16.msrb.mxu3 %v2538_v35  ;;  %v2690_v35 = vor.u32 %v3244_v25, %v2689_v23  ;;  %v2818_v40 = vor.u32 %v3276_v32, %v2817_v31  ;;  %v2609_v49 = vld [vmem:[%s5078_s1 + $0x440] sm:$0xf]  ;;  %v3240_v53 = vld [vmem:[%s5078_s1 + $0x4c4] sm:$0xf0]  ;;  %v3238_v5 = vld [vmem:[%s5078_s1 + $0x4b4] sm:$0xf0] }
  0x38   :  { %1659 = vmatpush.bf16.msrb.mxu0 %v2338_v41  ;;  %v3242_v41 = vld [vmem:[%s5078_s1 + $0x4d4] sm:$0xf0]  ;;  %v2673_v51 = vld [vmem:[%s5078_s1 + $0x4c0] sm:$0xf]  ;;  %v3272_v57 = vld [vmem:[%s5078_s1 + $0x5c4] sm:$0xf0]  ;;  %v2610_v58 = vor.u32 %v3224_v50, %v2609_v49 }
  0x39   :  { %1672 = vmatpush.bf16.msrb.mxu1 %v2402_v43  ;;  %v3258_v43 = vld [vmem:[%s5078_s1 + $0x554] sm:$0xf0]  ;;  %v2682_v47 = vor.u32 %v3242_v41, %v2681_v39  ;;  %v2737_v54 = vld [vmem:[%s5078_s1 + $0x540] sm:$0xf]  ;;  %v2674_v59 = vor.u32 %v3240_v53, %v2673_v51  ;;  %v2729_v6 = vld [vmem:[%s5078_s1 + $0x530] sm:$0xf] }
  0x3a   :  { %1685 = vmatpush.bf16.msrb.mxu2 %v2466_v44  ;;  %v2809_v44 = vld [vmem:[%s5078_s1 + $0x5d0] sm:$0xf]  ;;  %v2801_v56 = vld [vmem:[%s5078_s1 + $0x5c0] sm:$0xf]  ;;  %v3254_v7 = vld [vmem:[%s5078_s1 + $0x534] sm:$0xf0] }
  0x3b   :  { %1698 = vmatpush.bf16.msrb.mxu3 %v2530_v48  ;;  %v2746_v48 = vor.u32 %v3258_v43, %v2745_v42  ;;  %v2810_v52 = vor.u32 %v3274_v45, %v2809_v44  ;;  %v2802_v4 = vor.u32 %v3272_v57, %v2801_v56  ;;  %v2793_v8 = vld [vmem:[%s5078_s1 + $0x5b0] sm:$0xf]  ;;  %v2730_v12 = vor.u32 %v3254_v7, %v2729_v6  ;;  %v2657_v15 = vld [vmem:[%s5078_s1 + $0x4a0] sm:$0xf]  ;;  %v3268_v21 = vld [vmem:[%s5078_s1 + $0x5a4] sm:$0xf0] }
  0x3c   :  { %1660 = vmatpush.bf16.msrb.mxu0 %v2330_v55  ;;  %v3256_v55 = vld [vmem:[%s5078_s1 + $0x544] sm:$0xf0]  ;;  %v2585_v25 = vld [vmem:[%s5078_s1 + $0x410] sm:$0xf]  ;;  %v3218_v26 = vld [vmem:[%s5078_s1 + $0x414] sm:$0xf0] }
  0x3d   :  { %1673 = vmatpush.bf16.msrb.mxu1 %v2394_v62  ;;  %v2738_v61 = vor.u32 %v3256_v55, %v2737_v54  ;;  %v2601_v62 = vld [vmem:[%s5078_s1 + $0x430] sm:$0xf]  ;;  %v3234_v32 = vld [vmem:[%s5078_s1 + $0x494] sm:$0xf0]  ;;  %v2586_v38 = vor.u32 %v3218_v26, %v2585_v25  ;;  %v2577_v39 = vld [vmem:[%s5078_s1 + $0x400] sm:$0xf] }
  0x3e   :  { %1686 = vmatpush.bf16.msrb.mxu2 %v2458_v63  ;;  %v3222_v63 = vld [vmem:[%s5078_s1 + $0x434] sm:$0xf0]  ;;  %v2649_v30 = vld [vmem:[%s5078_s1 + $0x490] sm:$0xf]  ;;  %v2641_v43 = vld [vmem:[%s5078_s1 + $0x480] sm:$0xf] }
  0x3f   :  { %1699 = vmatpush.bf16.msrb.mxu3 %v2522_v3  ;;  %v2665_v3 = vld [vmem:[%s5078_s1 + $0x4b0] sm:$0xf]  ;;  %v2602_v10 = vor.u32 %v3222_v63, %v2601_v62  ;;  %v3266_v37 = vld [vmem:[%s5078_s1 + $0x594] sm:$0xf0]  ;;  %v2650_v41 = vor.u32 %v3234_v32, %v2649_v30  ;;  %v3232_v44 = vld [vmem:[%s5078_s1 + $0x484] sm:$0xf0] }
  0x40   :  { %1661 = vmatpush.bf16.msrb.mxu0 %v2322_v9  ;;  %v3270_v9 = vld [vmem:[%s5078_s1 + $0x5b4] sm:$0xf0]  ;;  %v2666_v11 = vor.u32 %v3238_v5, %v2665_v3  ;;  %v2705_v45 = vld [vmem:[%s5078_s1 + $0x500] sm:$0xf]  ;;  %v3264_v49 = vld [vmem:[%s5078_s1 + $0x584] sm:$0xf0]  ;;  %v2642_v57 = vor.u32 %v3232_v44, %v2641_v43 }
  0x41   :  { %1674 = vmatpush.bf16.msrb.mxu1 %v2386_v13  ;;  %v2593_v13 = vld [vmem:[%s5078_s1 + $0x420] sm:$0xf]  ;;  %v2794_v16 = vor.u32 %v3270_v9, %v2793_v8  ;;  %v2889_v50 = vld [vmem:[%s5078_s1 + $0x670] sm:$0xf]  ;;  %v3294_v51 = vld [vmem:[%s5078_s1 + $0x674] sm:$0xf0] }
  0x42   :  { %1687 = vmatpush.bf16.msrb.mxu2 %v2450_v14  ;;  %v3220_v14 = vld [vmem:[%s5078_s1 + $0x424] sm:$0xf0]  ;;  %v3310_v54 = vld [vmem:[%s5078_s1 + $0x6f4] sm:$0xf0]  ;;  %v3017_v55 = vld [vmem:[%s5078_s1 + $0x770] sm:$0xf]  ;;  %v2890_v63 = vor.u32 %v3294_v51, %v2889_v50 }
  0x43   :  { %1700 = vmatpush.bf16.msrb.mxu3 %v2514_v17  ;;  %1662 = vmatmul.bf16.vlgmr.msrb.gmra.mxu0 %v3842_v0  ;;  %v3236_v17 = vld [vmem:[%s5078_s1 + $0x4a4] sm:$0xf0]  ;;  %v2594_v22 = vor.u32 %v3220_v14, %v2593_v13  ;;  %v3326_v56 = vld [vmem:[%s5078_s1 + $0x774] sm:$0xf0]  ;;  %v2881_v5 = vld [vmem:[%s5078_s1 + $0x660] sm:$0xf] }
  0x44   :  { %1706 = vmatpush.bf16.msra.mxu0 %v2634_v18  ;;  %1675 = vmatmul.bf16.vlgmr.msrb.gmra.mxu1 %v3846_v2  ;;  %v2721_v18 = vld [vmem:[%s5078_s1 + $0x520] sm:$0xf]  ;;  %v2658_v23 = vor.u32 %v3236_v17, %v2657_v15  ;;  %v3292_v6 = vld [vmem:[%s5078_s1 + $0x664] sm:$0xf0]  ;;  %v300_v15 = vld [vmem:[#allocation1 + $0x12] sm:$0xff] }
  0x45   :  { %1719 = vmatpush.bf16.msra.mxu1 %v2698_v19  ;;  %1688 = vmatmul.bf16.vlgmr.msrb.gmra.mxu2 %v3837_v60  ;;  %v3252_v19 = vld [vmem:[%s5078_s1 + $0x524] sm:$0xf0]  ;;  %v2945_v7 = vld [vmem:[%s5078_s1 + $0x6e0] sm:$0xf]  ;;  %v3306_v25 = vld [vmem:[%s5078_s1 + $0x6d4] sm:$0xf0] }
  0x46   :  { %1732 = vmatpush.bf16.msra.mxu2 %v2762_v20  ;;  %1701 = vmatmul.bf16.vlgmr.msrb.gmra.mxu3 %v3844_v1  ;;  %v2785_v20 = vld [vmem:[%s5078_s1 + $0x5a0] sm:$0xf]  ;;  %v3308_v9 = vld [vmem:[%s5078_s1 + $0x6e4] sm:$0xf0]  ;;  %v3001_v26 = vld [vmem:[%s5078_s1 + $0x750] sm:$0xf] }
  0x47   :  { %1745 = vmatpush.bf16.msra.mxu3 %v2826_v24  ;;  %v2722_v24 = vor.u32 %v3252_v19, %v2721_v18  ;;  %v2786_v31 = vor.u32 %v3268_v21, %v2785_v20  ;;  %v3073_v13 = vld [vmem:[%s5078_s1 + $0x7e0] sm:$0xf]  ;;  %v3340_v14 = vld [vmem:[%s5078_s1 + $0x7e4] sm:$0xf0]  ;;  %v2882_v18 = vor.u32 %v3292_v6, %v2881_v5  ;;  %v2946_v19 = vor.u32 %v3308_v9, %v2945_v7  ;;  %v2873_v21 = vld [vmem:[%s5078_s1 + $0x650] sm:$0xf] }
  0x48   :  { %1707 = vmatpush.bf16.msra.mxu0 %v2626_v33  ;;  %v2713_v33 = vld [vmem:[%s5078_s1 + $0x510] sm:$0xf]  ;;  %v301_v17 = vld [vmem:[#allocation1 + $0x1b] sm:$0xff]  ;;  %v3320_v43 = vld [vmem:[%s5078_s1 + $0x744] sm:$0xf0] }
  0x49   :  { %1720 = vmatpush.bf16.msra.mxu1 %v2690_v35  ;;  %v3250_v35 = vld [vmem:[%s5078_s1 + $0x514] sm:$0xf0]  ;;  %v3057_v44 = vld [vmem:[%s5078_s1 + $0x7c0] sm:$0xf] }
  0x4a   :  { %1733 = vmatpush.bf16.msra.mxu2 %v2754_v36  ;;  %v2777_v36 = vld [vmem:[%s5078_s1 + $0x590] sm:$0xf]  ;;  %v2714_v42 = vor.u32 %v3250_v35, %v2713_v33  ;;  %v3322_v30 = vld [vmem:[%s5078_s1 + $0x754] sm:$0xf0] }
  0x4b   :  { %1746 = vmatpush.bf16.msra.mxu3 %v2818_v40  ;;  %v3216_v40 = vld [vmem:[%s5078_s1 + $0x404] sm:$0xf0]  ;;  %v3338_v32 = vld [vmem:[%s5078_s1 + $0x7d4] sm:$0xf0] }
  0x4c   :  { %1708 = vmatpush.bf16.msra.mxu0 %v2618_v46  ;;  %v2778_v46 = vor.u32 %v3266_v37, %v2777_v36  ;;  %v2578_v53 = vor.u32 %v3216_v40, %v2577_v39  ;;  %v3002_v36 = vor.u32 %v3322_v30, %v3001_v26  ;;  %v2865_v37 = vld [vmem:[%s5078_s1 + $0x640] sm:$0xf] }
  0x4d   :  { %1721 = vmatpush.bf16.msra.mxu1 %v2682_v47  ;;  %v3248_v47 = vld [vmem:[%s5078_s1 + $0x504] sm:$0xf0]  ;;  %v2929_v39 = vld [vmem:[%s5078_s1 + $0x6c0] sm:$0xf] }
  0x4e   :  { %1734 = vmatpush.bf16.msra.mxu2 %v2746_v48  ;;  %v2769_v48 = vld [vmem:[%s5078_s1 + $0x580] sm:$0xf] }
  0x4f   :  { %1747 = vmatpush.bf16.msra.mxu3 %v2810_v52  ;;  %v2953_v52 = vld [vmem:[%s5078_s1 + $0x6f0] sm:$0xf]  ;;  %v2770_v62 = vor.u32 %v3264_v49, %v2769_v48 }
  0x50   :  { %1709 = vmatpush.bf16.msra.mxu0 %v2610_v58  ;;  %v2706_v58 = vor.u32 %v3248_v47, %v2705_v45  ;;  %v2954_v3 = vor.u32 %v3310_v54, %v2953_v52  ;;  %v3336_v45 = vld [vmem:[%s5078_s1 + $0x7c4] sm:$0xf0] }
  0x51   :  { %1722 = vmatpush.bf16.msra.mxu1 %v2674_v59  ;;  %v3081_v59 = vld [vmem:[%s5078_s1 + $0x7f0] sm:$0xf] }
  0x52   :  { %1735 = vmatpush.bf16.msra.mxu2 %v2738_v61  ;;  %v3342_v61 = vld [vmem:[%s5078_s1 + $0x7f4] sm:$0xf0] }
  0x53   :  { %1748 = vmatpush.bf16.msra.mxu3 %v2802_v4  ;;  %v3018_v4 = vor.u32 %v3326_v56, %v3017_v55  ;;  %v3082_v8 = vor.u32 %v3342_v61, %v3081_v59 }
  0x54   :  { %1710 = vmatpush.bf16.msra.mxu0 %v2602_v10  ;;  %v3009_v10 = vld [vmem:[%s5078_s1 + $0x760] sm:$0xf] }
  0x55   :  { %1723 = vmatpush.bf16.msra.mxu1 %v2666_v11  ;;  %v3324_v11 = vld [vmem:[%s5078_s1 + $0x764] sm:$0xf0] }
  0x56   :  { %1736 = vmatpush.bf16.msra.mxu2 %v2730_v12  ;;  %v298_v12 = vld [vmem:[#allocation1] sm:$0xff]  ;;  %v3010_v20 = vor.u32 %v3324_v11, %v3009_v10 }
  0x57   :  { %1749 = vmatpush.bf16.msra.mxu3 %v2794_v16  ;;  %v299_v16 = vld [vmem:[#allocation1 + $0x9] sm:$0xff] }
  0x58   :  { %1711 = vmatpush.bf16.msra.mxu0 %v2594_v22  ;;  %v3290_v22 = vld [vmem:[%s5078_s1 + $0x654] sm:$0xf0] }
  0x59   :  { %1724 = vmatpush.bf16.msra.mxu1 %v2658_v23  ;;  %v2937_v23 = vld [vmem:[%s5078_s1 + $0x6d0] sm:$0xf]  ;;  %v2874_v33 = vor.u32 %v3290_v22, %v2873_v21 }
  0x5a   :  { %1737 = vmatpush.bf16.msra.mxu2 %v2722_v24  ;;  %v3074_v24 = vor.u32 %v3340_v14, %v3073_v13  ;;  %v2938_v35 = vor.u32 %v3306_v25, %v2937_v23 }
  0x5b   :  { %1750 = vmatpush.bf16.msra.mxu3 %v2786_v31  ;;  %v3065_v31 = vld [vmem:[%s5078_s1 + $0x7d0] sm:$0xf] }
  0x5c   :  { %1712 = vmatpush.bf16.msra.mxu0 %v2586_v38  ;;  %v3288_v38 = vld [vmem:[%s5078_s1 + $0x644] sm:$0xf0]  ;;  %v3066_v40 = vor.u32 %v3338_v32, %v3065_v31 }
  0x5d   :  { %1725 = vmatpush.bf16.msra.mxu1 %v2650_v41  ;;  %v3304_v41 = vld [vmem:[%s5078_s1 + $0x6c4] sm:$0xf0] }
  0x5e   :  { %1738 = vmatpush.bf16.msra.mxu2 %v2714_v42  ;;  %v2993_v42 = vld [vmem:[%s5078_s1 + $0x740] sm:$0xf] }
  0x5f   :  { %1751 = vmatpush.bf16.msra.mxu3 %v2778_v46 }
  0x60   :  { %1713 = vmatpush.bf16.msra.mxu0 %v2578_v53 }
  0x61   :  { %1726 = vmatpush.bf16.msra.mxu1 %v2642_v57 }
  0x62   :  { %1739 = vmatpush.bf16.msra.mxu2 %v2706_v58 }
  0x63   :  { %1752 = vmatpush.bf16.msra.mxu3 %v2770_v62  ;;  %1714 = vmatmul.bf16.vlgmr.msra.gmra.mxu0 %v298_v12 }
  0x64   :  { %1758 = vmatpush.bf16.msrb.mxu0 %v2890_v63  ;;  %1727 = vmatmul.bf16.vlgmr.msra.gmra.mxu1 %v299_v16 }
  0x65   :  { %1771 = vmatpush.bf16.msrb.mxu1 %v2954_v3  ;;  %1740 = vmatmul.bf16.vlgmr.msra.gmra.mxu2 %v300_v15 }
  0x66   :  { %1784 = vmatpush.bf16.msrb.mxu2 %v3018_v4  ;;  %1753 = vmatmul.bf16.vlgmr.msra.gmra.mxu3 %v301_v17 }
  0x67   :  { %1797 = vmatpush.bf16.msrb.mxu3 %v3082_v8 }
  0x68   :  { %1759 = vmatpush.bf16.msrb.mxu0 %v2882_v18 }
  0x69   :  { %1772 = vmatpush.bf16.msrb.mxu1 %v2946_v19 }
  0x6a   :  { %1785 = vmatpush.bf16.msrb.mxu2 %v3010_v20 }
  0x6b   :  { %1798 = vmatpush.bf16.msrb.mxu3 %v3074_v24 }
  0x6c   :  { %13 = vsyncpa [#allocation5], 0  ;;  %1760 = vmatpush.bf16.msrb.mxu0 %v2874_v33  ;;  %v2866_v46 = vor.u32 %v3288_v38, %v2865_v37  ;;  %v2930_v47 = vor.u32 %v3304_v41, %v2929_v39  ;;  %v2994_v48 = vor.u32 %v3320_v43, %v2993_v42  ;;  %v2857_v49 = vld [vmem:[%s5078_s1 + $0x630] sm:$0xf]  ;;  %v3286_v50 = vld [vmem:[%s5078_s1 + $0x634] sm:$0xf0]  ;;  %v3058_v52 = vor.u32 %v3336_v45, %v3057_v44 }
  0x6d   :  { %1773 = vmatpush.bf16.msrb.mxu1 %v2938_v35  ;;  %v2921_v51 = vld [vmem:[%s5078_s1 + $0x6b0] sm:$0xf]  ;;  %v3302_v53 = vld [vmem:[%s5078_s1 + $0x6b4] sm:$0xf0]  ;;  %v2858_v58 = vor.u32 %v3286_v50, %v2857_v49  ;;  %v2849_v62 = vld [vmem:[%s5078_s1 + $0x620] sm:$0xf] }
  0x6e   :  { %1786 = vmatpush.bf16.msrb.mxu2 %v3002_v36  ;;  %v2985_v54 = vld [vmem:[%s5078_s1 + $0x730] sm:$0xf]  ;;  %v3318_v55 = vld [vmem:[%s5078_s1 + $0x734] sm:$0xf0]  ;;  %v2922_v59 = vor.u32 %v3302_v53, %v2921_v51  ;;  %v3284_v63 = vld [vmem:[%s5078_s1 + $0x624] sm:$0xf0] }
  0x6f   :  { %1799 = vmatpush.bf16.msrb.mxu3 %v3066_v40  ;;  %v3049_v56 = vld [vmem:[%s5078_s1 + $0x7b0] sm:$0xf]  ;;  %v3334_v57 = vld [vmem:[%s5078_s1 + $0x7b4] sm:$0xf0]  ;;  %v2986_v61 = vor.u32 %v3318_v55, %v2985_v54  ;;  %v2913_v3 = vld [vmem:[%s5078_s1 + $0x6a0] sm:$0xf]  ;;  %v2850_v10 = vor.u32 %v3284_v63, %v2849_v62 }
  0x70   :  { %1761 = vmatpush.bf16.msrb.mxu0 %v2866_v46  ;;  %v3050_v4 = vor.u32 %v3334_v57, %v3049_v56  ;;  %v3300_v5 = vld [vmem:[%s5078_s1 + $0x6a4] sm:$0xf0]  ;;  %v2977_v6 = vld [vmem:[%s5078_s1 + $0x720] sm:$0xf]  ;;  %v2841_v13 = vld [vmem:[%s5078_s1 + $0x610] sm:$0xf] }
  0x71   :  { %1774 = vmatpush.bf16.msrb.mxu1 %v2930_v47  ;;  %v3316_v7 = vld [vmem:[%s5078_s1 + $0x724] sm:$0xf0]  ;;  %v3041_v8 = vld [vmem:[%s5078_s1 + $0x7a0] sm:$0xf]  ;;  %v2914_v11 = vor.u32 %v3300_v5, %v2913_v3  ;;  %v3282_v14 = vld [vmem:[%s5078_s1 + $0x614] sm:$0xf0] }
  0x72   :  { %1787 = vmatpush.bf16.msrb.mxu2 %v2994_v48  ;;  %v3332_v9 = vld [vmem:[%s5078_s1 + $0x7a4] sm:$0xf0]  ;;  %v2978_v12 = vor.u32 %v3316_v7, %v2977_v6  ;;  %v2905_v15 = vld [vmem:[%s5078_s1 + $0x690] sm:$0xf]  ;;  %v3298_v17 = vld [vmem:[%s5078_s1 + $0x694] sm:$0xf0]  ;;  %v2842_v22 = vor.u32 %v3282_v14, %v2841_v13 }
  0x73   :  { %1800 = vmatpush.bf16.msrb.mxu3 %v3058_v52  ;;  %v3042_v16 = vor.u32 %v3332_v9, %v3041_v8  ;;  %v2969_v18 = vld [vmem:[%s5078_s1 + $0x710] sm:$0xf]  ;;  %v3314_v19 = vld [vmem:[%s5078_s1 + $0x714] sm:$0xf0]  ;;  %v2833_v23 = vld [vmem:[%s5078_s1 + $0x600] sm:$0xf]  ;;  %v2906_v25 = vor.u32 %v3298_v17, %v2905_v15 }
  0x74   :  { %1762 = vmatpush.bf16.msrb.mxu0 %v2858_v58  ;;  %v3033_v20 = vld [vmem:[%s5078_s1 + $0x790] sm:$0xf]  ;;  %v3330_v21 = vld [vmem:[%s5078_s1 + $0x794] sm:$0xf0]  ;;  %v3280_v24 = vld [vmem:[%s5078_s1 + $0x604] sm:$0xf0]  ;;  %v2970_v26 = vor.u32 %v3314_v19, %v2969_v18 }
  0x75   :  { %1775 = vmatpush.bf16.msrb.mxu1 %v2922_v59  ;;  %v2897_v30 = vld [vmem:[%s5078_s1 + $0x680] sm:$0xf]  ;;  %v3296_v31 = vld [vmem:[%s5078_s1 + $0x684] sm:$0xf0]  ;;  %v3034_v33 = vor.u32 %v3330_v21, %v3033_v20  ;;  %v3101_v38 = vld [vmem:[%s5078_s1 + $0x74] sm:$0xf]  ;;  %v2834_v41 = vor.u32 %v3280_v24, %v2833_v23 }
  0x76   :  { %1788 = vmatpush.bf16.msrb.mxu2 %v2986_v61  ;;  %v2961_v32 = vld [vmem:[%s5078_s1 + $0x700] sm:$0xf]  ;;  %v3312_v35 = vld [vmem:[%s5078_s1 + $0x704] sm:$0xf0]  ;;  %v2123_v39 = vld [vmem:[%s5078_s1 + $0x78] sm:$0xf0]  ;;  %v2898_v45 = vor.u32 %v3296_v31, %v2897_v30 }
  0x77   :  { %1801 = vmatpush.bf16.msrb.mxu3 %v3050_v4  ;;  %v3025_v36 = vld [vmem:[%s5078_s1 + $0x780] sm:$0xf]  ;;  %v3328_v37 = vld [vmem:[%s5078_s1 + $0x784] sm:$0xf0]  ;;  %v3117_v40 = vld [vmem:[%s5078_s1 + $0xf4] sm:$0xf]  ;;  %v2962_v46 = vor.u32 %v3312_v35, %v2961_v32  ;;  %v2126_v50 = vor.u32 %v3101_v38, %v2123_v39 }
  0x78   :  { %1763 = vmatpush.bf16.msrb.mxu0 %v2850_v10  ;;  %v2187_v42 = vld [vmem:[%s5078_s1 + $0xf8] sm:$0xf0]  ;;  %v3133_v43 = vld [vmem:[%s5078_s1 + $0x174] sm:$0xf]  ;;  %v3026_v49 = vor.u32 %v3328_v37, %v3025_v36  ;;  %v3099_v53 = vld [vmem:[%s5078_s1 + $0x64] sm:$0xf] }
  0x79   :  { %1776 = vmatpush.bf16.msrb.mxu1 %v2914_v11  ;;  %v2251_v44 = vld [vmem:[%s5078_s1 + $0x178] sm:$0xf0]  ;;  %v3149_v47 = vld [vmem:[%s5078_s1 + $0x1f4] sm:$0xf]  ;;  %v2190_v51 = vor.u32 %v3117_v40, %v2187_v42  ;;  %v2115_v54 = vld [vmem:[%s5078_s1 + $0x68] sm:$0xf0] }
  0x7a   :  { %1789 = vmatpush.bf16.msrb.mxu2 %v2978_v12  ;;  %v2315_v48 = vld [vmem:[%s5078_s1 + $0x1f8] sm:$0xf0]  ;;  %v2254_v52 = vor.u32 %v3133_v43, %v2251_v44  ;;  %v3115_v55 = vld [vmem:[%s5078_s1 + $0xe4] sm:$0xf]  ;;  %v2179_v57 = vld [vmem:[%s5078_s1 + $0xe8] sm:$0xf0]  ;;  %v2118_v6 = vor.u32 %v3099_v53, %v2115_v54 }
  0x7b   :  { %1802 = vmatpush.bf16.msrb.mxu3 %v3042_v16  ;;  %v2318_v56 = vor.u32 %v3149_v47, %v2315_v48  ;;  %v3131_v58 = vld [vmem:[%s5078_s1 + $0x164] sm:$0xf]  ;;  %v2243_v59 = vld [vmem:[%s5078_s1 + $0x168] sm:$0xf0]  ;;  %v304_v3 = vld [vmem:[#allocation1 + $0x36] sm:$0xff]  ;;  %v2182_v7 = vor.u32 %v3115_v55, %v2179_v57  ;;  %s2034_s8 = sshll.u32 %s5081_s4, 4  ;;  %s2035_s8 = int_to_ptr.hbm [resolvable:$true] %s2034_s8 }
  0x7c   :  { %1764 = vmatpush.bf16.msrb.mxu0 %v2842_v22  ;;  %v302_v61 = vld [vmem:[#allocation1 + $0x24] sm:$0xff]  ;;  %v2307_v63 = vld [vmem:[%s5078_s1 + $0x1e8] sm:$0xf0]  ;;  %v2246_v8 = vor.u32 %v3131_v58, %v2243_v59  ;;  %v3097_v9 = vld [vmem:[%s5078_s1 + $0x54] sm:$0xf]  ;;  %s3408_s4 = smov [#allocation4]  }
  0x7d   :  { %1777 = vmatpush.bf16.msrb.mxu1 %v2906_v25  ;;  %v3147_v62 = vld [vmem:[%s5078_s1 + $0x1e4] sm:$0xf]  ;;  %v303_v4 = vld [vmem:[#allocation1 + $0x2d] sm:$0xff]  ;;  %v2107_v10 = vld [vmem:[%s5078_s1 + $0x58] sm:$0xf0]  ;;  %s2043_s9 = sshll.u32 %s3408_s4, 4  ;;  %s2044_s9 = int_to_ptr.vmem [resolvable:$true] %s2043_s9 }
  0x7e   :  { %1790 = vmatpush.bf16.msrb.mxu2 %v2970_v26  ;;  %v305_v5 = vld [vmem:[#allocation1 + $0x3f] sm:$0xff]  ;;  %v3113_v11 = vld [vmem:[%s5078_s1 + $0xd4] sm:$0xf]  ;;  %v2310_v12 = vor.u32 %v3147_v62, %v2307_v63  ;;  %v2110_v18 = vor.u32 %v3097_v9, %v2107_v10  ;;  %v2099_v22 = vld [vmem:[%s5078_s1 + $0x48] sm:$0xf0]  ;;  %s2045_s12 = sshll.u32 %s5082_s5, 4  ;;  %s2046_s12 = int_to_ptr.hbm [resolvable:$true] %s2045_s12 }
  0x7f   :  { %1803 = vmatpush.bf16.msrb.mxu3 %v3034_v33  ;;  %v2171_v13 = vld [vmem:[%s5078_s1 + $0xd8] sm:$0xf0]  ;;  %v3129_v14 = vld [vmem:[%s5078_s1 + $0x154] sm:$0xf]  ;;  %v3095_v21 = vld [vmem:[%s5078_s1 + $0x44] sm:$0xf] }
  0x80   :  { %1765 = vmatpush.bf16.msrb.mxu0 %v2834_v41  ;;  %v2235_v15 = vld [vmem:[%s5078_s1 + $0x158] sm:$0xf0]  ;;  %v3145_v16 = vld [vmem:[%s5078_s1 + $0x1d4] sm:$0xf]  ;;  %v2174_v19 = vor.u32 %v3113_v11, %v2171_v13  ;;  %v3111_v23 = vld [vmem:[%s5078_s1 + $0xc4] sm:$0xf]  ;;  %v2102_v33 = vor.u32 %v3095_v21, %v2099_v22 }
  0x81   :  { %1778 = vmatpush.bf16.msrb.mxu1 %v2898_v45  ;;  %v2299_v17 = vld [vmem:[%s5078_s1 + $0x1d8] sm:$0xf0]  ;;  %v2238_v20 = vor.u32 %v3129_v14, %v2235_v15  ;;  %v2163_v25 = vld [vmem:[%s5078_s1 + $0xc8] sm:$0xf0]  ;;  %v3127_v26 = vld [vmem:[%s5078_s1 + $0x144] sm:$0xf] }
  0x82   :  { %1791 = vmatpush.bf16.msrb.mxu2 %v2962_v46  ;;  %v2302_v24 = vor.u32 %v3145_v16, %v2299_v17  ;;  %v2227_v30 = vld [vmem:[%s5078_s1 + $0x148] sm:$0xf0]  ;;  %v3143_v31 = vld [vmem:[%s5078_s1 + $0x1c4] sm:$0xf]  ;;  %v2166_v35 = vor.u32 %v3111_v23, %v2163_v25  ;;  %v3093_v37 = vld [vmem:[%s5078_s1 + $0x34] sm:$0xf] }
  0x83   :  { %1804 = vmatpush.bf16.msrb.mxu3 %v3026_v49  ;;  %1766 = vmatmul.bf16.vlgmr.msrb.gmra.mxu0 %v302_v61  ;;  %v2291_v32 = vld [vmem:[%s5078_s1 + $0x1c8] sm:$0xf0]  ;;  %v2230_v36 = vor.u32 %v3127_v26, %v2227_v30  ;;  %v2091_v38 = vld [vmem:[%s5078_s1 + $0x38] sm:$0xf0]  ;;  %v3109_v39 = vld [vmem:[%s5078_s1 + $0xb4] sm:$0xf] }
  0x84   :  { %1810 = vmatpush.bf16.msra.mxu0 %v2126_v50  ;;  %1779 = vmatmul.bf16.vlgmr.msrb.gmra.mxu1 %v303_v4  ;;  %v2294_v40 = vor.u32 %v3143_v31, %v2291_v32  ;;  %v2155_v41 = vld [vmem:[%s5078_s1 + $0xb8] sm:$0xf0]  ;;  %v3125_v42 = vld [vmem:[%s5078_s1 + $0x134] sm:$0xf]  ;;  %v2094_v46 = vor.u32 %v3093_v37, %v2091_v38  ;;  %v3091_v49 = vld [vmem:[%s5078_s1 + $0x24] sm:$0xf] }
  0x85   :  { %1823 = vmatpush.bf16.msra.mxu1 %v2190_v51  ;;  %1792 = vmatmul.bf16.vlgmr.msrb.gmra.mxu2 %v304_v3  ;;  %v2219_v43 = vld [vmem:[%s5078_s1 + $0x138] sm:$0xf0]  ;;  %v3141_v44 = vld [vmem:[%s5078_s1 + $0x1b4] sm:$0xf]  ;;  %v2158_v47 = vor.u32 %v3109_v39, %v2155_v41  ;;  %v2083_v50 = vld [vmem:[%s5078_s1 + $0x28] sm:$0xf0] }
  0x86   :  { %1836 = vmatpush.bf16.msra.mxu2 %v2254_v52  ;;  %1805 = vmatmul.bf16.vlgmr.msrb.gmra.mxu3 %v305_v5  ;;  %v2283_v45 = vld [vmem:[%s5078_s1 + $0x1b8] sm:$0xf0]  ;;  %v2222_v48 = vor.u32 %v3125_v42, %v2219_v43  ;;  %v3107_v51 = vld [vmem:[%s5078_s1 + $0xa4] sm:$0xf]  ;;  %v2147_v53 = vld [vmem:[%s5078_s1 + $0xa8] sm:$0xf0]  ;;  %v2086_v58 = vor.u32 %v3091_v49, %v2083_v50 }
  0x87   :  { %1849 = vmatpush.bf16.msra.mxu3 %v2318_v56  ;;  %v2286_v52 = vor.u32 %v3141_v44, %v2283_v45  ;;  %v3123_v54 = vld [vmem:[%s5078_s1 + $0x124] sm:$0xf]  ;;  %v2211_v55 = vld [vmem:[%s5078_s1 + $0x128] sm:$0xf0]  ;;  %v2150_v59 = vor.u32 %v3107_v51, %v2147_v53  ;;  %v3089_v62 = vld [vmem:[%s5078_s1 + $0x14] sm:$0xf] }
  0x88   :  { %1811 = vmatpush.bf16.msra.mxu0 %v2118_v6  ;;  %v3139_v56 = vld [vmem:[%s5078_s1 + $0x1a4] sm:$0xf]  ;;  %v2275_v57 = vld [vmem:[%s5078_s1 + $0x1a8] sm:$0xf0]  ;;  %v2214_v61 = vor.u32 %v3123_v54, %v2211_v55  ;;  %v2075_v63 = vld [vmem:[%s5078_s1 + $0x18] sm:$0xf0] }
  0x89   :  { %1824 = vmatpush.bf16.msra.mxu1 %v2182_v7  ;;  %v3105_v3 = vld [vmem:[%s5078_s1 + $0x94] sm:$0xf]  ;;  %v2278_v4 = vor.u32 %v3139_v56, %v2275_v57  ;;  %v2139_v5 = vld [vmem:[%s5078_s1 + $0x98] sm:$0xf0]  ;;  %v2078_v10 = vor.u32 %v3089_v62, %v2075_v63  ;;  %v3087_v11 = vld [vmem:[%s5078_s1 + $0x4] sm:$0xf] }
  0x8a   :  { %1837 = vmatpush.bf16.msra.mxu2 %v2246_v8  ;;  %v3121_v6 = vld [vmem:[%s5078_s1 + $0x114] sm:$0xf]  ;;  %v2203_v7 = vld [vmem:[%s5078_s1 + $0x118] sm:$0xf0]  ;;  %v2142_v13 = vor.u32 %v3105_v3, %v2139_v5  ;;  %v3103_v15 = vld [vmem:[%s5078_s1 + $0x84] sm:$0xf] }
  0x8b   :  { %1850 = vmatpush.bf16.msra.mxu3 %v2310_v12  ;;  %v3137_v8 = vld [vmem:[%s5078_s1 + $0x194] sm:$0xf]  ;;  %v2267_v9 = vld [vmem:[%s5078_s1 + $0x198] sm:$0xf0]  ;;  %v2067_v12 = vld [vmem:[%s5078_s1 + $0x8] sm:$0xf0]  ;;  %v2206_v14 = vor.u32 %v3121_v6, %v2203_v7 }
  0x8c   :  { %1812 = vmatpush.bf16.msra.mxu0 %v2110_v18  ;;  %v2131_v16 = vld [vmem:[%s5078_s1 + $0x88] sm:$0xf0]  ;;  %v3119_v17 = vld [vmem:[%s5078_s1 + $0x104] sm:$0xf]  ;;  %v2270_v18 = vor.u32 %v3137_v8, %v2267_v9  ;;  %v3165_v22 = vld [vmem:[%s5078_s1 + $0x274] sm:$0xf]  ;;  %v2070_v25 = vor.u32 %v3087_v11, %v2067_v12 }
  0x8d   :  { %1825 = vmatpush.bf16.msra.mxu1 %v2174_v19  ;;  %v2195_v19 = vld [vmem:[%s5078_s1 + $0x108] sm:$0xf0]  ;;  %v2379_v23 = vld [vmem:[%s5078_s1 + $0x278] sm:$0xf0]  ;;  %v3197_v30 = vld [vmem:[%s5078_s1 + $0x374] sm:$0xf]  ;;  %v2134_v32 = vor.u32 %v3103_v15, %v2131_v16 }
  0x8e   :  { %1838 = vmatpush.bf16.msra.mxu2 %v2238_v20  ;;  %v3135_v20 = vld [vmem:[%s5078_s1 + $0x184] sm:$0xf]  ;;  %v2259_v21 = vld [vmem:[%s5078_s1 + $0x188] sm:$0xf0]  ;;  %v2443_v26 = vld [vmem:[%s5078_s1 + $0x2f8] sm:$0xf0]  ;;  %v2382_v38 = vor.u32 %v3165_v22, %v2379_v23 }
  0x8f   :  { %1851 = vmatpush.bf16.msra.mxu3 %v2302_v24  ;;  %v3181_v24 = vld [vmem:[%s5078_s1 + $0x2f4] sm:$0xf]  ;;  %v2507_v31 = vld [vmem:[%s5078_s1 + $0x378] sm:$0xf0]  ;;  %v2262_v37 = vor.u32 %v3135_v20, %v2259_v21  ;;  %v3163_v41 = vld [vmem:[%s5078_s1 + $0x264] sm:$0xf] }
  0x90   :  { %1813 = vmatpush.bf16.msra.mxu0 %v2102_v33  ;;  %v2198_v33 = vor.u32 %v3119_v17, %v2195_v19  ;;  %v2446_v39 = vor.u32 %v3181_v24, %v2443_v26  ;;  %v2371_v42 = vld [vmem:[%s5078_s1 + $0x268] sm:$0xf0]  ;;  %v3179_v43 = vld [vmem:[%s5078_s1 + $0x2e4] sm:$0xf]  ;;  %v3161_v53 = vld [vmem:[%s5078_s1 + $0x254] sm:$0xf] }
  0x91   :  { %1826 = vmatpush.bf16.msra.mxu1 %v2166_v35  ;;  %v3213_v35 = vld [vmem:[%s5078_s1 + $0x3f4] sm:$0xf]  ;;  %v2435_v45 = vld [vmem:[%s5078_s1 + $0x2e8] sm:$0xf0]  ;;  %v2374_v50 = vor.u32 %v3163_v41, %v2371_v42  ;;  %v2363_v54 = vld [vmem:[%s5078_s1 + $0x258] sm:$0xf0] }
  0x92   :  { %1839 = vmatpush.bf16.msra.mxu2 %v2230_v36  ;;  %v2571_v36 = vld [vmem:[%s5078_s1 + $0x3f8] sm:$0xf0]  ;;  %v2563_v49 = vld [vmem:[%s5078_s1 + $0x3e8] sm:$0xf0]  ;;  %v2438_v51 = vor.u32 %v3179_v43, %v2435_v45  ;;  %v3177_v55 = vld [vmem:[%s5078_s1 + $0x2d4] sm:$0xf]  ;;  %v2366_v63 = vor.u32 %v3161_v53, %v2363_v54 }
  0x93   :  { %1852 = vmatpush.bf16.msra.mxu3 %v2294_v40  ;;  %v2510_v40 = vor.u32 %v3197_v30, %v2507_v31  ;;  %v2574_v44 = vor.u32 %v3213_v35, %v2571_v36  ;;  %v2427_v57 = vld [vmem:[%s5078_s1 + $0x2d8] sm:$0xf0]  ;;  %v2355_v5 = vld [vmem:[%s5078_s1 + $0x248] sm:$0xf0]  ;;  %v3191_v6 = vld [vmem:[%s5078_s1 + $0x344] sm:$0xf] }
  0x94   :  { %1814 = vmatpush.bf16.msra.mxu0 %v2094_v46  ;;  %v3195_v46 = vld [vmem:[%s5078_s1 + $0x364] sm:$0xf]  ;;  %v2555_v62 = vld [vmem:[%s5078_s1 + $0x3d8] sm:$0xf0]  ;;  %v2430_v3 = vor.u32 %v3177_v55, %v2427_v57  ;;  %v2483_v7 = vld [vmem:[%s5078_s1 + $0x348] sm:$0xf0] }
  0x95   :  { %1827 = vmatpush.bf16.msra.mxu1 %v2158_v47  ;;  %v2499_v47 = vld [vmem:[%s5078_s1 + $0x368] sm:$0xf0]  ;;  %v3207_v8 = vld [vmem:[%s5078_s1 + $0x3c4] sm:$0xf]  ;;  %v2486_v12 = vor.u32 %v3191_v6, %v2483_v7  ;;  %v3173_v15 = vld [vmem:[%s5078_s1 + $0x2b4] sm:$0xf] }
  0x96   :  { %1840 = vmatpush.bf16.msra.mxu2 %v2222_v48  ;;  %v3211_v48 = vld [vmem:[%s5078_s1 + $0x3e4] sm:$0xf]  ;;  %v2547_v9 = vld [vmem:[%s5078_s1 + $0x3c8] sm:$0xf0]  ;;  %v2411_v17 = vld [vmem:[%s5078_s1 + $0x2b8] sm:$0xf0] }
  0x97   :  { %1853 = vmatpush.bf16.msra.mxu3 %v2286_v52  ;;  %v2502_v52 = vor.u32 %v3195_v46, %v2499_v47  ;;  %v2566_v56 = vor.u32 %v3211_v48, %v2563_v49  ;;  %v2550_v16 = vor.u32 %v3207_v8, %v2547_v9  ;;  %v2475_v19 = vld [vmem:[%s5078_s1 + $0x338] sm:$0xf0]  ;;  %v3205_v20 = vld [vmem:[%s5078_s1 + $0x3b4] sm:$0xf]  ;;  %v2414_v23 = vor.u32 %v3173_v15, %v2411_v17  ;;  %v2339_v26 = vld [vmem:[%s5078_s1 + $0x228] sm:$0xf0] }
  0x98   :  { %1815 = vmatpush.bf16.msra.mxu0 %v2086_v58  ;;  %v3193_v58 = vld [vmem:[%s5078_s1 + $0x354] sm:$0xf]  ;;  %v2539_v21 = vld [vmem:[%s5078_s1 + $0x3b8] sm:$0xf0]  ;;  %v3171_v30 = vld [vmem:[%s5078_s1 + $0x2a4] sm:$0xf] }
  0x99   :  { %1828 = vmatpush.bf16.msra.mxu1 %v2150_v59  ;;  %v2491_v59 = vld [vmem:[%s5078_s1 + $0x358] sm:$0xf0]  ;;  %v2542_v31 = vor.u32 %v3205_v20, %v2539_v21  ;;  %v2467_v35 = vld [vmem:[%s5078_s1 + $0x328] sm:$0xf0]  ;;  %v3203_v36 = vld [vmem:[%s5078_s1 + $0x3a4] sm:$0xf] }
  0x9a   :  { %1841 = vmatpush.bf16.msra.mxu2 %v2214_v61  ;;  %v3209_v61 = vld [vmem:[%s5078_s1 + $0x3d4] sm:$0xf]  ;;  %v2331_v42 = vld [vmem:[%s5078_s1 + $0x218] sm:$0xf0]  ;;  %v2387_v57 = vld [vmem:[%s5078_s1 + $0x288] sm:$0xf0] }
  0x9b   :  { %1854 = vmatpush.bf16.msra.mxu3 %v2278_v4  ;;  %v3159_v4 = vld [vmem:[%s5078_s1 + $0x244] sm:$0xf]  ;;  %v3153_v41 = vld [vmem:[%s5078_s1 + $0x214] sm:$0xf]  ;;  %v2395_v45 = vld [vmem:[%s5078_s1 + $0x298] sm:$0xf0] }
  0x9c   :  { %1816 = vmatpush.bf16.msra.mxu0 %v2078_v10  ;;  %v2358_v10 = vor.u32 %v3159_v4, %v2355_v5  ;;  %v3169_v43 = vld [vmem:[%s5078_s1 + $0x294] sm:$0xf]  ;;  %v2459_v47 = vld [vmem:[%s5078_s1 + $0x318] sm:$0xf0]  ;;  %v3227_v17 = vld [vmem:[%s5078_s1 + $0x464] sm:$0xf] }
  0x9d   :  { %1829 = vmatpush.bf16.msra.mxu1 %v2142_v13  ;;  %v3157_v13 = vld [vmem:[%s5078_s1 + $0x234] sm:$0xf]  ;;  %v2523_v49 = vld [vmem:[%s5078_s1 + $0x398] sm:$0xf0]  ;;  %v2398_v54 = vor.u32 %v3169_v43, %v2395_v45  ;;  %v2691_v21 = vld [vmem:[%s5078_s1 + $0x4e8] sm:$0xf0] }
  0x9e   :  { %1842 = vmatpush.bf16.msra.mxu2 %v2206_v14  ;;  %v2347_v14 = vld [vmem:[%s5078_s1 + $0x238] sm:$0xf0]  ;;  %v3185_v46 = vld [vmem:[%s5078_s1 + $0x314] sm:$0xf] }
  0x9f   :  { %1855 = vmatpush.bf16.msra.mxu3 %v2270_v18  ;;  %v3189_v18 = vld [vmem:[%s5078_s1 + $0x334] sm:$0xf]  ;;  %v2350_v22 = vor.u32 %v3157_v13, %v2347_v14  ;;  %v2462_v55 = vor.u32 %v3185_v46, %v2459_v47  ;;  %v2635_v4 = vld [vmem:[%s5078_s1 + $0x478] sm:$0xf0] }
  0xa0   :  { %1817 = vmatpush.bf16.msra.mxu0 %v2070_v25  ;;  %v2478_v24 = vor.u32 %v3189_v18, %v2475_v19  ;;  %v3155_v25 = vld [vmem:[%s5078_s1 + $0x224] sm:$0xf]  ;;  %v3201_v48 = vld [vmem:[%s5078_s1 + $0x394] sm:$0xf]  ;;  %v2763_v6 = vld [vmem:[%s5078_s1 + $0x578] sm:$0xf0] }
  0xa1   :  { %1830 = vmatpush.bf16.msra.mxu1 %v2134_v32  ;;  %v2403_v32 = vld [vmem:[%s5078_s1 + $0x2a8] sm:$0xf0]  ;;  %v3245_v5 = vld [vmem:[%s5078_s1 + $0x4f4] sm:$0xf]  ;;  %v3243_v19 = vld [vmem:[%s5078_s1 + $0x4e4] sm:$0xf] }
  0xa2   :  { %1843 = vmatpush.bf16.msra.mxu2 %v2198_v33  ;;  %v3187_v33 = vld [vmem:[%s5078_s1 + $0x324] sm:$0xf]  ;;  %v3277_v9 = vld [vmem:[%s5078_s1 + $0x5f4] sm:$0xf]  ;;  %v2627_v18 = vld [vmem:[%s5078_s1 + $0x468] sm:$0xf0] }
  0xa3   :  { %1856 = vmatpush.bf16.msra.mxu3 %v2262_v37  ;;  %1818 = vmatmul.bf16.vlgmr.msra.gmra.mxu0 %v3764_v28  ;;  %v3175_v28 = vld [vmem:[%s5078_s1 + $0x2c4] sm:$0xf]  ;;  %v2531_v37 = vld [vmem:[%s5078_s1 + $0x3a8] sm:$0xf0] }
  0xa4   :  { %1862 = vmatpush.bf16.msrb.mxu0 %v2382_v38  ;;  %1831 = vmatmul.bf16.vlgmr.msra.gmra.mxu1 %v3774_v34  ;;  %v2419_v34 = vld [vmem:[%s5078_s1 + $0x2c8] sm:$0xf0]  ;;  %v2342_v38 = vor.u32 %v3155_v25, %v2339_v26  ;;  %v3275_v25 = vld [vmem:[%s5078_s1 + $0x5e4] sm:$0xf] }
  0xa5   :  { %1875 = vmatpush.bf16.msrb.mxu1 %v2446_v39  ;;  %1844 = vmatmul.bf16.vlgmr.msra.gmra.mxu2 %v3762_v27  ;;  %v2494_v27 = vor.u32 %v3193_v58, %v2491_v59  ;;  %v2422_v11 = vor.u32 %v3175_v28, %v2419_v34  ;;  %v2406_v39 = vor.u32 %v3171_v30, %v2403_v32  ;;  %v3183_v58 = vld [vmem:[%s5078_s1 + $0x304] sm:$0xf]  ;;  %v3261_v34 = vld [vmem:[%s5078_s1 + $0x574] sm:$0xf]  ;;  %v2819_v26 = vld [vmem:[%s5078_s1 + $0x5e8] sm:$0xf0] }
  0xa6   :  { %1888 = vmatpush.bf16.msrb.mxu2 %v2510_v40  ;;  %1857 = vmatmul.bf16.vlgmr.msra.gmra.mxu3 %v3766_v29  ;;  %v2558_v29 = vor.u32 %v3209_v61, %v2555_v62  ;;  %v2470_v40 = vor.u32 %v3187_v33, %v2467_v35  ;;  %v4612_v53 = vpop.f32.mrf.mxu0  ;;  %v2526_v61 = vor.u32 %v3201_v48, %v2523_v49  ;;  %v2451_v62 = vld [vmem:[%s5078_s1 + $0x308] sm:$0xf0]  ;;  %v3225_v35 = vld [vmem:[%s5078_s1 + $0x454] sm:$0xf]  ;;  %v3223_v48 = vld [vmem:[%s5078_s1 + $0x444] sm:$0xf] }
  0xa7   :  { %1901 = vmatpush.bf16.msrb.mxu3 %v2574_v44  ;;  %v2534_v44 = vor.u32 %v3203_v36, %v2531_v37  ;;  %v4623_v59 = vpop.f32.mrf.mxu1  ;;  %v2454_v8 = vor.u32 %v3183_v58, %v2451_v62  ;;  %v2694_v32 = vor.u32 %v3243_v19, %v2691_v21  ;;  %v2619_v36 = vld [vmem:[%s5078_s1 + $0x458] sm:$0xf0]  ;;  %v3241_v37 = vld [vmem:[%s5078_s1 + $0x4d4] sm:$0xf]  ;;  %v2787_v21 = vld [vmem:[%s5078_s1 + $0x5a8] sm:$0xf0] }
  0xa8   :  { %1863 = vmatpush.bf16.msrb.mxu0 %v2374_v50  ;;  %v2334_v50 = vor.u32 %v3153_v41, %v2331_v42  ;;  %v2747_v41 = vld [vmem:[%s5078_s1 + $0x558] sm:$0xf0]  ;;  %v3273_v42 = vld [vmem:[%s5078_s1 + $0x5d4] sm:$0xf] }
  0xa9   :  { %1876 = vmatpush.bf16.msrb.mxu1 %v2438_v51  ;;  %v3151_v51 = vld [vmem:[%s5078_s1 + $0x204] sm:$0xf]  ;;  %v2603_v62 = vld [vmem:[%s5078_s1 + $0x438] sm:$0xf0] }
  0xaa   :  { %1889 = vmatpush.bf16.msrb.mxu2 %v2502_v52  ;;  %v2323_v52 = vld [vmem:[%s5078_s1 + $0x208] sm:$0xf0] }
  0xab   :  { %1902 = vmatpush.bf16.msrb.mxu3 %v2566_v56  ;;  %v3167_v56 = vld [vmem:[%s5078_s1 + $0x284] sm:$0xf]  ;;  %v2326_v28 = vor.u32 %v3151_v51, %v2323_v52  ;;  %v4660_v14 = vpop.f32.mrf.mxu3  ;;  %v2739_v51 = vld [vmem:[%s5078_s1 + $0x548] sm:$0xf0] }
  0xac   :  { %1864 = vmatpush.bf16.msrb.mxu0 %v2366_v63  ;;  %v3199_v63 = vld [vmem:[%s5078_s1 + $0x384] sm:$0xf]  ;;  %v2390_v7 = vor.u32 %v3167_v56, %v2387_v57 }
  0xad   :  { %1877 = vmatpush.bf16.msrb.mxu1 %v2430_v3  ;;  %v2515_v3 = vld [vmem:[%s5078_s1 + $0x388] sm:$0xf0]  ;;  %v3271_v52 = vld [vmem:[%s5078_s1 + $0x5c4] sm:$0xf] }
  0xae   :  { %1890 = vmatpush.bf16.msrb.mxu2 %v2494_v27  ;;  %v3229_v27 = vld [vmem:[%s5078_s1 + $0x474] sm:$0xf] }
  0xaf   :  { %1903 = vmatpush.bf16.msrb.mxu3 %v2558_v29  ;;  %v2699_v29 = vld [vmem:[%s5078_s1 + $0x4f8] sm:$0xf0]  ;;  %v2638_v13 = vor.u32 %v3229_v27, %v2635_v4  ;;  %v1626_v30 = vpop.f32.mrf.mxu1 }
  0xb0   :  { %1865 = vmatpush.bf16.msrb.mxu0 %v2358_v10  ;;  %v2827_v10 = vld [vmem:[%s5078_s1 + $0x5f8] sm:$0xf0]  ;;  %v2702_v15 = vor.u32 %v3245_v5, %v2699_v29  ;;  %v3253_v5 = vld [vmem:[%s5078_s1 + $0x534] sm:$0xf] }
  0xb1   :  { %1878 = vmatpush.bf16.msrb.mxu1 %v2422_v11  ;;  %v4658_v11 = vpop.f32.mrf.mxu2  ;;  %v2830_v20 = vor.u32 %v3277_v9, %v2827_v10  ;;  %v2667_v4 = vld [vmem:[%s5078_s1 + $0x4b8] sm:$0xf0]  ;;  %v3269_v29 = vld [vmem:[%s5078_s1 + $0x5b4] sm:$0xf]  ;;  %v3219_v9 = vld [vmem:[%s5078_s1 + $0x424] sm:$0xf] }
  0xb2   :  { %1891 = vmatpush.bf16.msrb.mxu2 %v2486_v12  ;;  %v2518_v12 = vor.u32 %v3199_v63, %v2515_v3  ;;  %v3237_v63 = vld [vmem:[%s5078_s1 + $0x4b4] sm:$0xf]  ;;  %v2595_v10 = vld [vmem:[%s5078_s1 + $0x428] sm:$0xf0] }
  0xb3   :  { %1904 = vmatpush.bf16.msrb.mxu3 %v2550_v16  ;;  %v2766_v16 = vor.u32 %v3261_v34, %v2763_v6  ;;  %v1652_v45 = vpop.f32.mrf.mxu3  ;;  %v2795_v34 = vld [vmem:[%s5078_s1 + $0x5b8] sm:$0xf0]  ;;  %v3217_v30 = vld [vmem:[%s5078_s1 + $0x414] sm:$0xf] }
  0xb4   :  { %1866 = vmatpush.bf16.msrb.mxu0 %v2350_v22  ;;  %v3259_v22 = vld [vmem:[%s5078_s1 + $0x564] sm:$0xf] }
  0xb5   :  { %1879 = vmatpush.bf16.msrb.mxu1 %v2414_v23  ;;  %v2755_v23 = vld [vmem:[%s5078_s1 + $0x568] sm:$0xf0] }
  0xb6   :  { %1892 = vmatpush.bf16.msrb.mxu2 %v2478_v24  ;;  %v1613_v24 = vpop.f32.mrf.mxu0  ;;  %v2758_v33 = vor.u32 %v3259_v22, %v2755_v23  ;;  %v4797_v22 = vld [vmem:[%s5079_s2] sm:$0x3]  ;;  %v2598_v23 = vor.u32 %v3219_v9, %v2595_v10  ;;  %v2883_v9 = vld [vmem:[%s5078_s1 + $0x668] sm:$0xf0]  ;;  %v3307_v10 = vld [vmem:[%s5078_s1 + $0x6e4] sm:$0xf] }
  0xb7   :  { %1905 = vmatpush.bf16.msrb.mxu3 %v2542_v31  ;;  %v2630_v31 = vor.u32 %v3227_v17, %v2627_v18  ;;  %v3251_v17 = vld [vmem:[%s5078_s1 + $0x524] sm:$0xf]  ;;  %v2723_v18 = vld [vmem:[%s5078_s1 + $0x528] sm:$0xf0] }
  0xb8   :  { %1867 = vmatpush.bf16.msrb.mxu0 %v2342_v38  ;;  %v2822_v38 = vor.u32 %v3275_v25, %v2819_v26  ;;  %v2726_v26 = vor.u32 %v3251_v17, %v2723_v18  ;;  %v3339_v17 = vld [vmem:[%s5078_s1 + $0x7e4] sm:$0xf]  ;;  %v3075_v18 = vld [vmem:[%s5078_s1 + $0x7e8] sm:$0xf0] }
  0xb9   :  { %1880 = vmatpush.bf16.msrb.mxu1 %v2406_v39  ;;  %v2683_v39 = vld [vmem:[%s5078_s1 + $0x4d8] sm:$0xf0]  ;;  %v1639_v43 = vpop.f32.mrf.mxu2 }
  0xba   :  { %1893 = vmatpush.bf16.msrb.mxu2 %v2470_v40  ;;  %v3257_v40 = vld [vmem:[%s5078_s1 + $0x554] sm:$0xf]  ;;  %v2686_v46 = vor.u32 %v3241_v37, %v2683_v39  ;;  %v2579_v43 = vld [vmem:[%s5078_s1 + $0x408] sm:$0xf0] }
  0xbb   :  { %1906 = vmatpush.bf16.msrb.mxu3 %v2534_v44  ;;  %v2622_v44 = vor.u32 %v3225_v35, %v2619_v36  ;;  %v2750_v47 = vor.u32 %v3257_v40, %v2747_v41  ;;  %v2651_v36 = vld [vmem:[%s5078_s1 + $0x498] sm:$0xf0]  ;;  %v3249_v37 = vld [vmem:[%s5078_s1 + $0x514] sm:$0xf]  ;;  %v282_v41 = vperm.slane %v4797_v22, 0 }
  0xbc   :  { %1868 = vmatpush.bf16.msrb.mxu0 %v2334_v50  ;;  %v3255_v50 = vld [vmem:[%s5078_s1 + $0x544] sm:$0xf]  ;;  %v3265_v39 = vld [vmem:[%s5078_s1 + $0x594] sm:$0xf]  ;;  %v2779_v40 = vld [vmem:[%s5078_s1 + $0x598] sm:$0xf0] }
  0xbd   :  { %1881 = vmatpush.bf16.msrb.mxu1 %v2398_v54  ;;  %v2803_v54 = vld [vmem:[%s5078_s1 + $0x5c8] sm:$0xf0]  ;;  %v2742_v58 = vor.u32 %v3255_v50, %v2739_v51 }
  0xbe   :  { %1894 = vmatpush.bf16.msrb.mxu2 %v2462_v55  ;;  %v2806_v27 = vor.u32 %v3271_v52, %v2803_v54  ;;  %v2771_v50 = vld [vmem:[%s5078_s1 + $0x588] sm:$0xf0]  ;;  %v3293_v52 = vld [vmem:[%s5078_s1 + $0x674] sm:$0xf]  ;;  %v2891_v54 = vld [vmem:[%s5078_s1 + $0x678] sm:$0xf0] }
  0xbf   :  { %1907 = vmatpush.bf16.msrb.mxu3 %v2526_v61  ;;  %v3221_v61 = vld [vmem:[%s5078_s1 + $0x434] sm:$0xf] }
  0xc0   :  { %1869 = vmatpush.bf16.msrb.mxu0 %v2326_v28  ;;  %v4738_v56 = vpop.f32.mrf.mxu0  ;;  %v2731_v28 = vld [vmem:[%s5078_s1 + $0x538] sm:$0xf0]  ;;  %v2606_v6 = vor.u32 %v3221_v61, %v2603_v62  ;;  %v3325_v61 = vld [vmem:[%s5078_s1 + $0x774] sm:$0xf] }
  0xc1   :  { %1882 = vmatpush.bf16.msrb.mxu1 %v2390_v7  ;;  %v4749_v3 = vpop.f32.mrf.mxu1  ;;  %v2670_v7 = vor.u32 %v3237_v63, %v2667_v4  ;;  %v3019_v62 = vld [vmem:[%s5078_s1 + $0x778] sm:$0xf0]  ;;  %v3341_v4 = vld [vmem:[%s5078_s1 + $0x7f4] sm:$0xf] }
  0xc2   :  { %1895 = vmatpush.bf16.msrb.mxu2 %v2454_v8  ;;  %v2734_v8 = vor.u32 %v3253_v5, %v2731_v28  ;;  %v3083_v5 = vld [vmem:[%s5078_s1 + $0x7f8] sm:$0xf0] }
  0xc3   :  { %1908 = vmatpush.bf16.msrb.mxu3 %v2518_v12  ;;  %1870 = vmatmul.bf16.vlgmr.msrb.gmra.mxu0 %v3842_v0  ;;  %v2611_v0 = vld [vmem:[%s5078_s1 + $0x448] sm:$0xf0]  ;;  %v3235_v12 = vld [vmem:[%s5078_s1 + $0x4a4] sm:$0xf] }
  0xc4   :  { %1914 = vmatpush.bf16.msra.mxu0 %v2638_v13  ;;  %1883 = vmatmul.bf16.vlgmr.msrb.gmra.mxu1 %v3846_v2  ;;  %v2675_v2 = vld [vmem:[%s5078_s1 + $0x4c8] sm:$0xf0]  ;;  %v2614_v55 = vor.u32 %v3223_v48, %v2611_v0  ;;  %v3247_v48 = vld [vmem:[%s5078_s1 + $0x504] sm:$0xf] }
  0xc5   :  { %1927 = vmatpush.bf16.msra.mxu1 %v2702_v15  ;;  %1896 = vmatmul.bf16.vlgmr.msrb.gmra.mxu2 %v3837_v60  ;;  %v2811_v60 = vld [vmem:[%s5078_s1 + $0x5d8] sm:$0xf0]  ;;  %v2798_v15 = vor.u32 %v3269_v29, %v2795_v34  ;;  %v2894_v29 = vor.u32 %v3293_v52, %v2891_v54  ;;  %v1612_v34 = vadd.f32 %v4612_v53, %v282_v41  ;;  %v2947_v53 = vld [vmem:[%s5078_s1 + $0x6e8] sm:$0xf0] }
  0xc6   :  { %1940 = vmatpush.bf16.msra.mxu2 %v2766_v16  ;;  %1909 = vmatmul.bf16.vlgmr.msrb.gmra.mxu3 %v3844_v1  ;;  %v3239_v1 = vld [vmem:[%s5078_s1 + $0x4c4] sm:$0xf]  ;;  %v2814_v49 = vor.u32 %v3273_v42, %v2811_v60  ;;  %v2659_v16 = vld [vmem:[%s5078_s1 + $0x4a8] sm:$0xf0] }
  0xc7   :  { %1953 = vmatpush.bf16.msra.mxu3 %v2830_v20  ;;  %v2678_v57 = vor.u32 %v3239_v1, %v2675_v2  ;;  %v3267_v20 = vld [vmem:[%s5078_s1 + $0x5a4] sm:$0xf]  ;;  %v2662_v25 = vor.u32 %v3235_v12, %v2659_v16  ;;  %v2782_v1 = vor.u32 %v3265_v39, %v2779_v40  ;;  %v3086_v12 = vor.u32 %v3341_v4, %v3083_v5  ;;  %v3011_v16 = vld [vmem:[%s5078_s1 + $0x768] sm:$0xf0]  ;;  %v3067_v39 = vld [vmem:[%s5078_s1 + $0x7d8] sm:$0xf0] }
  0xc8   :  { %1915 = vmatpush.bf16.msra.mxu0 %v2630_v31  ;;  %v4775_v13 = vpop.f32.mrf.mxu2  ;;  %v1665_v24 = vpop.f32.mrf.mxu0  ;;  %v2587_v31 = vld [vmem:[%s5078_s1 + $0x418] sm:$0xf0]  ;;  %v2790_v35 = vor.u32 %v3267_v20, %v2787_v21  ;;  %v3215_v60 = vld [vmem:[%s5078_s1 + $0x404] sm:$0xf]  ;;  %v1625_v21 = vadd.f32 %v4623_v59, %v1612_v34  ;;  %v3078_v59 = vor.u32 %v3339_v17, %v3075_v18  ;;  %v3333_v4 = vld [vmem:[%s5078_s1 + $0x7b4] sm:$0xf] }
  0xc9   :  { %1928 = vmatpush.bf16.msra.mxu1 %v2694_v32  ;;  %v4786_v19 = vpop.f32.mrf.mxu3  ;;  %v3233_v32 = vld [vmem:[%s5078_s1 + $0x494] sm:$0xf]  ;;  %v2590_v42 = vor.u32 %v3217_v30, %v2587_v31  ;;  %v3263_v2 = vld [vmem:[%s5078_s1 + $0x584] sm:$0xf]  ;;  %v3350_v40 = vld [vmem:[#allocation1 + $0x1b] sm:$0xff] }
  0xca   :  { %1941 = vmatpush.bf16.msra.mxu2 %v2758_v33  ;;  %v1678_v33 = vpop.f32.mrf.mxu1  ;;  %v2774_v28 = vor.u32 %v3263_v2, %v2771_v50  ;;  %v3305_v30 = vld [vmem:[%s5078_s1 + $0x6d4] sm:$0xf]  ;;  %v3347_v31 = vld [vmem:[#allocation1] sm:$0xff]  ;;  %v3059_v2 = vld [vmem:[%s5078_s1 + $0x7c8] sm:$0xf0] }
  0xcb   :  { %1954 = vmatpush.bf16.msra.mxu3 %v2822_v38  ;;  %v2715_v38 = vld [vmem:[%s5078_s1 + $0x518] sm:$0xf0]  ;;  %v3321_v33 = vld [vmem:[%s5078_s1 + $0x754] sm:$0xf]  ;;  %v3331_v17 = vld [vmem:[%s5078_s1 + $0x7a4] sm:$0xf] }
  0xcc   :  { %1916 = vmatpush.bf16.msra.mxu0 %v2622_v44  ;;  %v2654_v44 = vor.u32 %v3233_v32, %v2651_v36  ;;  %v2718_v45 = vor.u32 %v3249_v37, %v2715_v38  ;;  %v2939_v32 = vld [vmem:[%s5078_s1 + $0x6d8] sm:$0xf0]  ;;  %v3348_v36 = vld [vmem:[#allocation1 + $0x12] sm:$0xff]  ;;  %v3349_v37 = vld [vmem:[#allocation1 + $0x9] sm:$0xff] }
  0xcd   :  { %1929 = vmatpush.bf16.msra.mxu1 %v2686_v46  ;;  %v3231_v46 = vld [vmem:[%s5078_s1 + $0x484] sm:$0xf]  ;;  %v3337_v38 = vld [vmem:[%s5078_s1 + $0x7d4] sm:$0xf]  ;;  %v3051_v5 = vld [vmem:[%s5078_s1 + $0x7b8] sm:$0xf0] }
  0xce   :  { %1942 = vmatpush.bf16.msra.mxu2 %v2750_v47  ;;  %v2643_v47 = vld [vmem:[%s5078_s1 + $0x488] sm:$0xf0] }
  0xcf   :  { %1955 = vmatpush.bf16.msra.mxu3 %v2814_v49  ;;  %v2707_v49 = vld [vmem:[%s5078_s1 + $0x508] sm:$0xf0]  ;;  %v2646_v63 = vor.u32 %v3231_v46, %v2643_v47  ;;  %v3303_v46 = vld [vmem:[%s5078_s1 + $0x6c4] sm:$0xf]  ;;  %v3070_v47 = vor.u32 %v3337_v38, %v3067_v39 }
  0xd0   :  { %1917 = vmatpush.bf16.msra.mxu0 %v2614_v55  ;;  %v1691_v0 = vpop.f32.mrf.mxu2  ;;  %v3309_v55 = vld [vmem:[%s5078_s1 + $0x6f4] sm:$0xf]  ;;  %v3043_v18 = vld [vmem:[%s5078_s1 + $0x7a8] sm:$0xf0] }
  0xd1   :  { %1930 = vmatpush.bf16.msra.mxu1 %v2678_v57  ;;  %v1704_v51 = vpop.f32.mrf.mxu3  ;;  %v2582_v57 = vor.u32 %v3215_v60, %v2579_v43  ;;  %v2942_v60 = vor.u32 %v3305_v30, %v2939_v32  ;;  %v2995_v0 = vld [vmem:[%s5078_s1 + $0x748] sm:$0xf0]  ;;  %v3281_v30 = vld [vmem:[%s5078_s1 + $0x614] sm:$0xf]  ;;  %v3046_v32 = vor.u32 %v3331_v17, %v3043_v18 }
  0xd2   :  { %1943 = vmatpush.bf16.msra.mxu2 %v2742_v58  ;;  %v2955_v58 = vld [vmem:[%s5078_s1 + $0x6f8] sm:$0xf0] }
  0xd3   :  { %1956 = vmatpush.bf16.msra.mxu3 %v2806_v27  ;;  %v2710_v27 = vor.u32 %v3247_v48, %v2707_v49  ;;  %v3319_v48 = vld [vmem:[%s5078_s1 + $0x744] sm:$0xf] }
  0xd4   :  { %1918 = vmatpush.bf16.msra.mxu0 %v2606_v6  ;;  %v2958_v6 = vor.u32 %v3309_v55, %v2955_v58  ;;  %v3335_v49 = vld [vmem:[%s5078_s1 + $0x7c4] sm:$0xf]  ;;  %v2998_v55 = vor.u32 %v3319_v48, %v2995_v0  ;;  %v2859_v58 = vld [vmem:[%s5078_s1 + $0x638] sm:$0xf0]  ;;  %v3027_v48 = vld [vmem:[%s5078_s1 + $0x788] sm:$0xf0] }
  0xd5   :  { %1931 = vmatpush.bf16.msra.mxu1 %v2670_v7  ;;  %v3022_v7 = vor.u32 %v3325_v61, %v3019_v62  ;;  %v3301_v61 = vld [vmem:[%s5078_s1 + $0x6b4] sm:$0xf]  ;;  %v3062_v62 = vor.u32 %v3335_v49, %v3059_v2 }
  0xd6   :  { %1944 = vmatpush.bf16.msra.mxu2 %v2734_v8  ;;  %v3291_v8 = vld [vmem:[%s5078_s1 + $0x664] sm:$0xf] }
  0xd7   :  { %1957 = vmatpush.bf16.msra.mxu3 %v2798_v15  ;;  %v3323_v15 = vld [vmem:[%s5078_s1 + $0x764] sm:$0xf]  ;;  %v2886_v20 = vor.u32 %v3291_v8, %v2883_v9  ;;  %v2851_v8 = vld [vmem:[%s5078_s1 + $0x628] sm:$0xf0] }
  0xd8   :  { %1919 = vmatpush.bf16.msra.mxu0 %v2598_v23  ;;  %v2950_v23 = vor.u32 %v3307_v10, %v2947_v53  ;;  %v3014_v24 = vor.u32 %v3323_v15, %v3011_v16  ;;  %v3299_v9 = vld [vmem:[%s5078_s1 + $0x6a4] sm:$0xf]  ;;  %v3054_v10 = vor.u32 %v3333_v4, %v3051_v5  ;;  %v2979_v15 = vld [vmem:[%s5078_s1 + $0x728] sm:$0xf0] }
  0xd9   :  { %1932 = vmatpush.bf16.msra.mxu1 %v2662_v25  ;;  %v3289_v25 = vld [vmem:[%s5078_s1 + $0x654] sm:$0xf]  ;;  %v3315_v53 = vld [vmem:[%s5078_s1 + $0x724] sm:$0xf] }
  0xda   :  { %1945 = vmatpush.bf16.msra.mxu2 %v2726_v26  ;;  %v2875_v26 = vld [vmem:[%s5078_s1 + $0x658] sm:$0xf0] }
  0xdb   :  { %1958 = vmatpush.bf16.msra.mxu3 %v2790_v35  ;;  %v3003_v35 = vld [vmem:[%s5078_s1 + $0x758] sm:$0xf0]  ;;  %v2878_v41 = vor.u32 %v3289_v25, %v2875_v26  ;;  %v2982_v26 = vor.u32 %v3315_v53, %v2979_v15 }
  0xdc   :  { %1920 = vmatpush.bf16.msra.mxu0 %v2590_v42  ;;  %v1638_v42 = vadd.f32 %v4658_v11, %v1625_v21  ;;  %v3006_v43 = vor.u32 %v3321_v33, %v3003_v35  ;;  %v2931_v11 = vld [vmem:[%s5078_s1 + $0x6c8] sm:$0xf0]  ;;  %v3313_v33 = vld [vmem:[%s5078_s1 + $0x714] sm:$0xf]  ;;  %v2971_v35 = vld [vmem:[%s5078_s1 + $0x718] sm:$0xf0] }
  0xdd   :  { %1933 = vmatpush.bf16.msra.mxu1 %v2654_v44  ;;  %v3287_v44 = vld [vmem:[%s5078_s1 + $0x644] sm:$0xf]  ;;  %v2934_v54 = vor.u32 %v3303_v46, %v2931_v11  ;;  %v2963_v46 = vld [vmem:[%s5078_s1 + $0x708] sm:$0xf0] }
  0xde   :  { %1946 = vmatpush.bf16.msra.mxu2 %v2718_v45  ;;  %v2867_v45 = vld [vmem:[%s5078_s1 + $0x648] sm:$0xf0]  ;;  %v1651_v52 = vadd.f32 %v4660_v14, %v1638_v42  ;;  %v2923_v14 = vld [vmem:[%s5078_s1 + $0x6b8] sm:$0xf0]  ;;  %v3279_v42 = vld [vmem:[%s5078_s1 + $0x604] sm:$0xf] }
  0xdf   :  { %1959 = vmatpush.bf16.msra.mxu3 %v2782_v1  ;;  %v2870_v50 = vor.u32 %v3287_v44, %v2867_v45  ;;  %v2926_v34 = vor.u32 %v3301_v61, %v2923_v14  ;;  %v3311_v45 = vld [vmem:[%s5078_s1 + $0x704] sm:$0xf]  ;;  %v3352_v61 = vld [vmem:[#allocation1 + $0x2d] sm:$0xff] }
  0xe0   :  { %1921 = vmatpush.bf16.msra.mxu0 %v2582_v57  ;;  %v4941_v1 = vpop.f32.mrf.mxu0  ;;  %v3285_v57 = vld [vmem:[%s5078_s1 + $0x634] sm:$0xf]  ;;  %v3327_v11 = vld [vmem:[%s5078_s1 + $0x784] sm:$0xf] }
  0xe1   :  { %1934 = vmatpush.bf16.msra.mxu1 %v2646_v63  ;;  %v4949_v51 = vpop.f32.mrf.mxu1  ;;  %v3317_v63 = vld [vmem:[%s5078_s1 + $0x734] sm:$0xf]  ;;  %v3354_v14 = vld [vmem:[#allocation1 + $0x3f] sm:$0xff] }
  0xe2   :  { %1947 = vmatpush.bf16.msra.mxu2 %v2710_v27  ;;  %v2987_v27 = vld [vmem:[%s5078_s1 + $0x738] sm:$0xf0] }
  0xe3   :  { %1960 = vmatpush.bf16.msra.mxu3 %v2774_v28  ;;  %1922 = vmatmul.bf16.vlgmr.msra.gmra.mxu0 %v3347_v31  ;;  %v2862_v28 = vor.u32 %v3285_v57, %v2859_v58  ;;  %v2843_v31 = vld [vmem:[%s5078_s1 + $0x618] sm:$0xf0]  ;;  %v3351_v58 = vld [vmem:[#allocation1 + $0x24] sm:$0xff] }
  0xe4   :  { %1966 = vmatpush.bf16.msrb.mxu0 %v2894_v29  ;;  %1935 = vmatmul.bf16.vlgmr.msra.gmra.mxu1 %v3349_v37  ;;  %v1664_v29 = vadd.f32 %v4738_v56, %v1651_v52  ;;  %v2915_v56 = vld [vmem:[%s5078_s1 + $0x6a8] sm:$0xf0]  ;;  %v3035_v37 = vld [vmem:[%s5078_s1 + $0x798] sm:$0xf0]  ;;  %v2846_v38 = vor.u32 %v3281_v30, %v2843_v31  ;;  %v2966_v52 = vor.u32 %v3311_v45, %v2963_v46 }
  0xe5   :  { %1979 = vmatpush.bf16.msrb.mxu1 %v2958_v6  ;;  %1948 = vmatmul.bf16.vlgmr.msra.gmra.mxu2 %v3348_v36  ;;  %v2990_v6 = vor.u32 %v3317_v63, %v2987_v27  ;;  %v2918_v25 = vor.u32 %v3299_v9, %v2915_v56  ;;  %v3329_v36 = vld [vmem:[%s5078_s1 + $0x794] sm:$0xf] }
  0xe6   :  { %1992 = vmatpush.bf16.msrb.mxu2 %v3022_v7  ;;  %1961 = vmatmul.bf16.vlgmr.msra.gmra.mxu3 %v3350_v40  ;;  %v3283_v7 = vld [vmem:[%s5078_s1 + $0x624] sm:$0xf]  ;;  %v3038_v44 = vor.u32 %v3329_v36, %v3035_v37 }
  0xe7   :  { %2005 = vmatpush.bf16.msrb.mxu3 %v3086_v12  ;;  %v2854_v21 = vor.u32 %v3283_v7, %v2851_v8 }
  0xe8   :  { %1967 = vmatpush.bf16.msrb.mxu0 %v2886_v20  ;;  %v4986_v12 = vpop.f32.mrf.mxu2  ;;  %v1717_v20 = vpop.f32.mrf.mxu0 }
  0xe9   :  { %1980 = vmatpush.bf16.msrb.mxu1 %v2950_v23  ;;  %v4997_v16 = vpop.f32.mrf.mxu3  ;;  %v1730_v23 = vpop.f32.mrf.mxu1 }
  0xea   :  { %1993 = vmatpush.bf16.msrb.mxu2 %v3014_v24  ;;  %v1677_v24 = vadd.f32 %v4749_v3, %v1664_v29  ;;  %v2907_v3 = vld [vmem:[%s5078_s1 + $0x698] sm:$0xf0] }
  0xeb   :  { %2006 = vmatpush.bf16.msrb.mxu3 %v3078_v59  ;;  %v3297_v59 = vld [vmem:[%s5078_s1 + $0x694] sm:$0xf] }
  0xec   :  { %1968 = vmatpush.bf16.msrb.mxu0 %v2878_v41  ;;  %v1690_v39 = vadd.f32 %v4775_v13, %v1677_v24  ;;  %v2910_v40 = vor.u32 %v3297_v59, %v2907_v3  ;;  %v2974_v41 = vor.u32 %v3313_v33, %v2971_v35  ;;  %v2899_v13 = vld [vmem:[%s5078_s1 + $0x688] sm:$0xf0] }
  0xed   :  { %1981 = vmatpush.bf16.msrb.mxu1 %v2942_v60  ;;  %v2835_v60 = vld [vmem:[%s5078_s1 + $0x608] sm:$0xf0] }
  0xee   :  { %1994 = vmatpush.bf16.msrb.mxu2 %v3006_v43  ;;  %v3295_v43 = vld [vmem:[%s5078_s1 + $0x684] sm:$0xf]  ;;  %v2838_v49 = vor.u32 %v3279_v42, %v2835_v60  ;;  %v1703_v2 = vadd.f32 %v4786_v19, %v1690_v39  ;;  %s3407_s1 = smov [#allocation2]  }
  0xef   :  { %2007 = vmatpush.bf16.msrb.mxu3 %v3070_v47  ;;  %s2032_s30 = sshll.u32 %s3407_s1, 4  ;;  %s2033_s30 = int_to_ptr.vmem [resolvable:$true] %s2032_s30 }
  0xf0   :  { %1969 = vmatpush.bf16.msrb.mxu0 %v2870_v50  ;;  %v1743_v47 = vpop.f32.mrf.mxu2  ;;  %v2902_v50 = vor.u32 %v3295_v43, %v2899_v13 }
  0xf1   :  { %1982 = vmatpush.bf16.msrb.mxu1 %v2934_v54  ;;  %v1756_v0 = vpop.f32.mrf.mxu3  ;;  %v3030_v54 = vor.u32 %v3327_v11, %v3027_v48 }
  0xf2   :  { %1995 = vmatpush.bf16.msrb.mxu2 %v2998_v55  ;;  %v1716_v55 = vadd.f32 %v4941_v1, %v1703_v2 }
  0xf3   :  { %2008 = vmatpush.bf16.msrb.mxu3 %v3062_v62  ;;  %v3353_v62 = vld [vmem:[#allocation1 + $0x36] sm:$0xff] }
  0xf4   :  { %1970 = vmatpush.bf16.msrb.mxu0 %v2862_v28  ;;  %v1729_v57 = vadd.f32 %v4949_v51, %v1716_v55 }
  0xf5   :  { %1983 = vmatpush.bf16.msrb.mxu1 %v2926_v34 }
  0xf6   :  { %1996 = vmatpush.bf16.msrb.mxu2 %v2990_v6  ;;  %v1742_v19 = vadd.f32 %v4986_v12, %v1729_v57 }
  0xf7   :  { %2009 = vmatpush.bf16.msrb.mxu3 %v3054_v10  ;;  %v283_v10 = vperm.slane %v4797_v22, 1 }
  0xf8   :  { %1971 = vmatpush.bf16.msrb.mxu0 %v2854_v21  ;;  %v1755_v63 = vadd.f32 %v4997_v16, %v1742_v19 }
  0xf9   :  { %1984 = vmatpush.bf16.msrb.mxu1 %v2918_v25 }
  0xfa   :  { %1997 = vmatpush.bf16.msrb.mxu2 %v2982_v26 }
  0xfb   :  { %2010 = vmatpush.bf16.msrb.mxu3 %v3046_v32 }
  0xfc   :  { %1972 = vmatpush.bf16.msrb.mxu0 %v2846_v38 }
  0xfd   :  { %1985 = vmatpush.bf16.msrb.mxu1 %v2910_v40 }
  0xfe   :  { %1998 = vmatpush.bf16.msrb.mxu2 %v2974_v41 }
  0xff   :  { %2011 = vmatpush.bf16.msrb.mxu3 %v3038_v44 }
 0x100   :  { %1973 = vmatpush.bf16.msrb.mxu0 %v2838_v49  ;;  %v1767_v27 = vpop.f32.mrf.mxu0 }
 0x101   :  { %1986 = vmatpush.bf16.msrb.mxu1 %v2902_v50  ;;  %v1780_v1 = vpop.f32.mrf.mxu1  ;;  %v1768_v4 = vadd.f32 %v1767_v27, %v1755_v63  ;;  %v2020_v63 = vld [vmem:[%s5080_s3] sm:$0x3] }
 0x102   :  { %1999 = vmatpush.bf16.msrb.mxu2 %v2966_v52 }
 0x103   :  { %2012 = vmatpush.bf16.msrb.mxu3 %v3030_v54  ;;  %1974 = vmatmul.bf16.vlgmr.msrb.gmra.mxu0 %v3351_v58  ;;  %v1781_v5 = vadd.f32 %v1780_v1, %v1768_v4 }
 0x104   :  { %1987 = vmatmul.bf16.vlgmr.msrb.gmra.mxu1 %v3352_v61 }
 0x105   :  { %2000 = vmatmul.bf16.vlgmr.msrb.gmra.mxu2 %v3353_v62 }
 0x106   :  { %2013 = vmatmul.bf16.vlgmr.msrb.gmra.mxu3 %v3354_v14 }
 0x108   :  { %v1793_v28 = vpop.f32.mrf.mxu2  ;;  %v1769_v51 = vpop.f32.mrf.mxu0 }
 0x109   :  { %v1794_v29 = vadd.f32 %v1793_v28, %v1781_v5  ;;  %v1806_v34 = vpop.f32.mrf.mxu3  ;;  %v1782_v6 = vpop.f32.mrf.mxu1 }
 0x10b   :  { %v5060_v7 = vadd.f32 %v1806_v34, %v1794_v29 }
 0x10d   :  { %2018 = vst [vmem:[#allocation2] sm:$0x3] %v5060_v7 }
 0x10e   :  { %2037 = dma.vmem_to_hbm [thread:$0]  %s2033_s30, 32, %s2035_s8, [#allocation3]  }
 0x110   :  { %v1795_v8 = vpop.f32.mrf.mxu2 }
 0x111   :  { %v1808_v9 = vpop.f32.mrf.mxu3 }
 0x120   :  { %v1819_v12 = vpop.f32.mrf.mxu0 }
 0x121   :  { %v1820_v56 = vadd.f32 %v1819_v12, %v283_v10  ;;  %v1832_v53 = vpop.f32.mrf.mxu1 }
 0x123   :  { %v1833_v15 = vadd.f32 %v1832_v53, %v1820_v56 }
 0x128   :  { %v1845_v16 = vpop.f32.mrf.mxu2  ;;  %v1821_v21 = vpop.f32.mrf.mxu0 }
 0x129   :  { %v1846_v17 = vadd.f32 %v1845_v16, %v1833_v15  ;;  %v1858_v18 = vpop.f32.mrf.mxu3  ;;  %v1834_v23 = vpop.f32.mrf.mxu1 }
 0x12b   :  { %v1859_v20 = vadd.f32 %v1858_v18, %v1846_v17 }
 0x130   :  { %v1847_v24 = vpop.f32.mrf.mxu2 }
 0x131   :  { %v1860_v25 = vpop.f32.mrf.mxu3 }
 0x140   :  { %v1871_v26 = vpop.f32.mrf.mxu0 }
 0x141   :  { %v1884_v30 = vpop.f32.mrf.mxu1  ;;  %v1872_v37 = vadd.f32 %v1871_v26, %v1859_v20 }
 0x143   :  { %v1885_v41 = vadd.f32 %v1884_v30, %v1872_v37 }
 0x148   :  { %v1897_v31 = vpop.f32.mrf.mxu2  ;;  %v1873_v32 = vpop.f32.mrf.mxu0 }
 0x149   :  { %v1910_v59 = vpop.f32.mrf.mxu3  ;;  %v1886_v3 = vpop.f32.mrf.mxu1  ;;  %v1898_v60 = vadd.f32 %v1897_v31, %v1885_v41 }
 0x14b   :  { %v1911_v13 = vadd.f32 %v1910_v59, %v1898_v60 }
 0x150   :  { %v1899_v33 = vpop.f32.mrf.mxu2 }
 0x151   :  { %v1912_v22 = vpop.f32.mrf.mxu3 }
 0x160   :  { %v1923_v35 = vpop.f32.mrf.mxu0 }
 0x161   :  { %v1936_v36 = vpop.f32.mrf.mxu1  ;;  %v1924_v45 = vadd.f32 %v1923_v35, %v1911_v13 }
 0x163   :  { %v1937_v46 = vadd.f32 %v1936_v36, %v1924_v45 }
 0x168   :  { %v1949_v38 = vpop.f32.mrf.mxu2  ;;  %v1925_v40 = vpop.f32.mrf.mxu0 }
 0x169   :  { %v1962_v39 = vpop.f32.mrf.mxu3  ;;  %v1938_v42 = vpop.f32.mrf.mxu1  ;;  %v1950_v47 = vadd.f32 %v1949_v38, %v1937_v46 }
 0x16b   :  { %v1963_v11 = vadd.f32 %v1962_v39, %v1950_v47 }
 0x170   :  { %v1951_v43 = vpop.f32.mrf.mxu2 }
 0x171   :  { %v1964_v44 = vpop.f32.mrf.mxu3 }
 0x180   :  { %v1975_v48 = vpop.f32.mrf.mxu0 }
 0x181   :  { %v1988_v0 = vpop.f32.mrf.mxu1  ;;  %v1976_v49 = vadd.f32 %v1975_v48, %v1963_v11 }
 0x183   :  { %v1989_v2 = vadd.f32 %v1988_v0, %v1976_v49 }
 0x188   :  { %v2001_v50 = vpop.f32.mrf.mxu2  ;;  %v1977_v55 = vpop.f32.mrf.mxu0 }
 0x189   :  { %v2002_v52 = vadd.f32 %v2001_v50, %v1989_v2  ;;  %v2014_v54 = vpop.f32.mrf.mxu3  ;;  %v1990_v57 = vpop.f32.mrf.mxu1 }
 0x18b   :  { %v2015_v58 = vadd.f32 %v2014_v54, %v2002_v52 }
 0x18d   :  { %2019 = vst [vmem:[#allocation4] sm:$0x3] %v2015_v58  ;;  %v2021_v61 = vmul.f32 0.5, %v2015_v58 }
 0x18e   :  { %2048 = dma.vmem_to_hbm [thread:$0]  %s2044_s9, 32, %s2046_s12, [#allocation5]  }
 0x18f   :  { %v2022_v62 = vmul.f32 1.442695, %v2021_v61 }
 0x190   :  { %v2003_v19 = vpop.f32.mrf.mxu2 }
 0x191   :  { %3345 = vpow2.f32 %v2022_v62  ;;  %v2016_v14 = vpop.f32.mrf.mxu3 }
 0x197   :  { %v3346_v27 = vpop.eup %3345 }
 0x198   :  { %v2024_v1 = vmul.f32 %v3346_v27, %v2020_v63 }
 0x19a   :  { %v2025_v4 = vadd.f32 %v2024_v1, %v5060_v7 }
 0x19c   :  { %2026 = vst [vmem:[%s5083_s6] sm:$0x3] %v2025_v4 }
 0x19d   :  { %3403 = dma.done.wait [#allocation3], 32  }
 0x19e   :  { %3404 = vsyncadd [#allocation3], 4294967264 }
 0x19f   :  { %3405 = dma.done.wait [#allocation5], 32  }
 0x1a0   :  { %3406 = vsyncadd [#allocation5], 4294967264 }
 0x1a1   :  { %2061 = vsyncpa [#allocation3], 1 }
 0x1a2   :  { %2062 = vsyncpa [#allocation5], 1 }

// kernel: vae_forward.10
= control target key start
LH: loop header
LB: loop body
LE: loop exit
PB: predicated region body
PF: predicated region fallthrough
CT: control target
= control target key end

     0   :  { %s1523_s1 = inlined_call_operand.vmem [shape: bf16[1024,128], index: 1, kind: input, shape index: {}]   ;;  %s1524_s0 = inlined_call_operand.vmem [shape: bf16[32,1024], index: 0, kind: input, shape index: {}]   ;;  %s1525_s2 = inlined_call_operand.vmem [shape: f32[1,128], index: 2, kind: input, shape index: {}]   ;;  %s1526_s3 = inlined_call_operand.vmem [shape: bf16[32,128], index: 3, kind: output, shape index: {}]  }
   0x1   :  { %v1137_v0 = vld [vmem:[%s1523_s1 + $0x38] sm:$0xff]  ;;  %v1136_v4 = vld [vmem:[%s1523_s1 + $0x30] sm:$0xff]  ;;  %v1135_v8 = vld [vmem:[%s1523_s1 + $0x28] sm:$0xff] }
   0x2   :  { %v1145_v1 = vld [vmem:[%s1523_s1 + $0x78] sm:$0xff]  ;;  %626 = vmatpush.bf16.msra.mxu0 %v1137_v0  ;;  %v1144_v5 = vld [vmem:[%s1523_s1 + $0x70] sm:$0xff]  ;;  %v1143_v9 = vld [vmem:[%s1523_s1 + $0x68] sm:$0xff] }
   0x3   :  { %v1153_v2 = vld [vmem:[%s1523_s1 + $0xb8] sm:$0xff]  ;;  %645 = vmatpush.bf16.msra.mxu1 %v1145_v1  ;;  %v1152_v6 = vld [vmem:[%s1523_s1 + $0xb0] sm:$0xff]  ;;  %v1151_v10 = vld [vmem:[%s1523_s1 + $0xa8] sm:$0xff] }
   0x4   :  { %v1161_v3 = vld [vmem:[%s1523_s1 + $0xf8] sm:$0xff]  ;;  %664 = vmatpush.bf16.msra.mxu2 %v1153_v2  ;;  %v1160_v7 = vld [vmem:[%s1523_s1 + $0xf0] sm:$0xff]  ;;  %v1159_v11 = vld [vmem:[%s1523_s1 + $0xe8] sm:$0xff] }
   0x5   :  { %683 = vmatpush.bf16.msra.mxu3 %v1161_v3  ;;  %v1134_v12 = vld [vmem:[%s1523_s1 + $0x20] sm:$0xff]  ;;  %v1133_v16 = vld [vmem:[%s1523_s1 + $0x18] sm:$0xff]  ;;  %v1132_v20 = vld [vmem:[%s1523_s1 + $0x10] sm:$0xff] }
   0x6   :  { %627 = vmatpush.bf16.msra.mxu0 %v1136_v4  ;;  %v1142_v13 = vld [vmem:[%s1523_s1 + $0x60] sm:$0xff]  ;;  %v1141_v17 = vld [vmem:[%s1523_s1 + $0x58] sm:$0xff]  ;;  %v1140_v21 = vld [vmem:[%s1523_s1 + $0x50] sm:$0xff] }
   0x7   :  { %646 = vmatpush.bf16.msra.mxu1 %v1144_v5  ;;  %v1150_v14 = vld [vmem:[%s1523_s1 + $0xa0] sm:$0xff]  ;;  %v1149_v18 = vld [vmem:[%s1523_s1 + $0x98] sm:$0xff]  ;;  %v1148_v22 = vld [vmem:[%s1523_s1 + $0x90] sm:$0xff] }
   0x8   :  { %665 = vmatpush.bf16.msra.mxu2 %v1152_v6  ;;  %v1158_v15 = vld [vmem:[%s1523_s1 + $0xe0] sm:$0xff]  ;;  %v1157_v19 = vld [vmem:[%s1523_s1 + $0xd8] sm:$0xff]  ;;  %v1156_v23 = vld [vmem:[%s1523_s1 + $0xd0] sm:$0xff] }
   0x9   :  { %684 = vmatpush.bf16.msra.mxu3 %v1160_v7  ;;  %v1131_v24 = vld [vmem:[%s1523_s1 + $0x8] sm:$0xff]  ;;  %v1130_v28 = vld [vmem:[%s1523_s1] sm:$0xff]  ;;  %v1185_v40 = vld [vmem:[%s1523_s1 + $0x1b8] sm:$0xff] }
   0xa   :  { %628 = vmatpush.bf16.msra.mxu0 %v1135_v8  ;;  %v1139_v25 = vld [vmem:[%s1523_s1 + $0x48] sm:$0xff]  ;;  %v1138_v29 = vld [vmem:[%s1523_s1 + $0x40] sm:$0xff]  ;;  %v1169_v41 = vld [vmem:[%s1523_s1 + $0x138] sm:$0xff] }
   0xb   :  { %647 = vmatpush.bf16.msra.mxu1 %v1143_v9  ;;  %v1147_v26 = vld [vmem:[%s1523_s1 + $0x88] sm:$0xff]  ;;  %v1146_v30 = vld [vmem:[%s1523_s1 + $0x80] sm:$0xff]  ;;  %v1177_v46 = vld [vmem:[%s1523_s1 + $0x178] sm:$0xff] }
   0xc   :  { %666 = vmatpush.bf16.msra.mxu2 %v1151_v10  ;;  %v1155_v27 = vld [vmem:[%s1523_s1 + $0xc8] sm:$0xff]  ;;  %v1154_v31 = vld [vmem:[%s1523_s1 + $0xc0] sm:$0xff]  ;;  %v1193_v47 = vld [vmem:[%s1523_s1 + $0x1f8] sm:$0xff] }
   0xd   :  { %685 = vmatpush.bf16.msra.mxu3 %v1159_v11  ;;  %v796_v32 = vld [vmem:[%s1524_s0] sm:$0xf]  ;;  %v1114_v34 = vld [vmem:[%s1524_s0 + $0x4] sm:$0xf]  ;;  %v804_v36 = vld [vmem:[%s1524_s0 + $0x8] sm:$0xf] }
   0xe   :  { %629 = vmatpush.bf16.msra.mxu0 %v1134_v12  ;;  %v1118_v33 = vld [vmem:[%s1524_s0 + $0x1c] sm:$0xf0]  ;;  %v798_v35 = vld [vmem:[%s1524_s0 + $0x20] sm:$0xf0]  ;;  %v1119_v37 = vld [vmem:[%s1524_s0 + $0x24] sm:$0xf0] }
   0xf   :  { %648 = vmatpush.bf16.msra.mxu1 %v1142_v13  ;;  %v1115_v38 = vld [vmem:[%s1524_s0 + $0xc] sm:$0xf]  ;;  %v797_v42 = vor.u32 %v1118_v33, %v796_v32  ;;  %v801_v43 = vor.u32 %v1114_v34, %v798_v35  ;;  %v805_v44 = vor.u32 %v1119_v37, %v804_v36  ;;  %v1184_v48 = vld [vmem:[%s1523_s1 + $0x1b0] sm:$0xff]  ;;  %v1182_v56 = vld [vmem:[%s1523_s1 + $0x1a0] sm:$0xff] }
  0x10   :  { %667 = vmatpush.bf16.msra.mxu2 %v1150_v14  ;;  %v806_v39 = vld [vmem:[%s1524_s0 + $0x28] sm:$0xf0]  ;;  %v1168_v49 = vld [vmem:[%s1523_s1 + $0x130] sm:$0xff]  ;;  %v1166_v57 = vld [vmem:[%s1523_s1 + $0x120] sm:$0xff] }
  0x11   :  { %686 = vmatpush.bf16.msra.mxu3 %v1158_v15  ;;  %v809_v45 = vor.u32 %v1115_v38, %v806_v39  ;;  %v1176_v50 = vld [vmem:[%s1523_s1 + $0x170] sm:$0xff]  ;;  %v1183_v52 = vld [vmem:[%s1523_s1 + $0x1a8] sm:$0xff]  ;;  %v1174_v58 = vld [vmem:[%s1523_s1 + $0x160] sm:$0xff] }
  0x12   :  { %630 = vmatpush.bf16.msra.mxu0 %v1133_v16  ;;  %v1192_v51 = vld [vmem:[%s1523_s1 + $0x1f0] sm:$0xff]  ;;  %v1167_v53 = vld [vmem:[%s1523_s1 + $0x128] sm:$0xff]  ;;  %v1190_v59 = vld [vmem:[%s1523_s1 + $0x1e0] sm:$0xff] }
  0x13   :  { %649 = vmatpush.bf16.msra.mxu1 %v1141_v17  ;;  %v1175_v54 = vld [vmem:[%s1523_s1 + $0x168] sm:$0xff]  ;;  %v828_v60 = vld [vmem:[%s1524_s0 + $0x40] sm:$0xf]  ;;  %v1122_v62 = vld [vmem:[%s1524_s0 + $0x44] sm:$0xf] }
  0x14   :  { %668 = vmatpush.bf16.msra.mxu2 %v1149_v18  ;;  %v1191_v55 = vld [vmem:[%s1523_s1 + $0x1e8] sm:$0xff]  ;;  %v1126_v61 = vld [vmem:[%s1524_s0 + $0x5c] sm:$0xf0]  ;;  %v830_v63 = vld [vmem:[%s1524_s0 + $0x60] sm:$0xf0] }
  0x15   :  { %687 = vmatpush.bf16.msra.mxu3 %v1157_v19  ;;  %v836_v0 = vld [vmem:[%s1524_s0 + $0x48] sm:$0xf]  ;;  %v1123_v2 = vld [vmem:[%s1524_s0 + $0x4c] sm:$0xf]  ;;  %v1181_v4 = vld [vmem:[%s1523_s1 + $0x198] sm:$0xff]  ;;  %v829_v6 = vor.u32 %v1126_v61, %v828_v60  ;;  %v833_v7 = vor.u32 %v1122_v62, %v830_v63 }
  0x16   :  { %631 = vmatpush.bf16.msra.mxu0 %v1132_v20  ;;  %v1127_v1 = vld [vmem:[%s1524_s0 + $0x64] sm:$0xf0]  ;;  %v838_v3 = vld [vmem:[%s1524_s0 + $0x68] sm:$0xf0]  ;;  %v1165_v5 = vld [vmem:[%s1523_s1 + $0x118] sm:$0xff] }
  0x17   :  { %650 = vmatpush.bf16.msra.mxu1 %v1140_v21  ;;  %v837_v8 = vor.u32 %v1127_v1, %v836_v0  ;;  %v841_v9 = vor.u32 %v1123_v2, %v838_v3  ;;  %v1173_v10 = vld [vmem:[%s1523_s1 + $0x158] sm:$0xff]  ;;  %v1180_v12 = vld [vmem:[%s1523_s1 + $0x190] sm:$0xff]  ;;  %v1179_v16 = vld [vmem:[%s1523_s1 + $0x188] sm:$0xff] }
  0x18   :  { %669 = vmatpush.bf16.msra.mxu2 %v1148_v22  ;;  %v1189_v11 = vld [vmem:[%s1523_s1 + $0x1d8] sm:$0xff]  ;;  %v1164_v13 = vld [vmem:[%s1523_s1 + $0x110] sm:$0xff]  ;;  %v1163_v17 = vld [vmem:[%s1523_s1 + $0x108] sm:$0xff] }
  0x19   :  { %688 = vmatpush.bf16.msra.mxu3 %v1156_v23  ;;  %v1172_v14 = vld [vmem:[%s1523_s1 + $0x150] sm:$0xff]  ;;  %v1171_v18 = vld [vmem:[%s1523_s1 + $0x148] sm:$0xff]  ;;  %v1178_v20 = vld [vmem:[%s1523_s1 + $0x180] sm:$0xff] }
  0x1a   :  { %632 = vmatpush.bf16.msra.mxu0 %v1131_v24  ;;  %v1188_v15 = vld [vmem:[%s1523_s1 + $0x1d0] sm:$0xff]  ;;  %v1187_v19 = vld [vmem:[%s1523_s1 + $0x1c8] sm:$0xff]  ;;  %v1162_v21 = vld [vmem:[%s1523_s1 + $0x100] sm:$0xff] }
  0x1b   :  { %651 = vmatpush.bf16.msra.mxu1 %v1139_v25  ;;  %v1170_v22 = vld [vmem:[%s1523_s1 + $0x140] sm:$0xff]  ;;  %v812_v24 = vld [vmem:[%s1524_s0 + $0x10] sm:$0xf]  ;;  %v1124_v38 = vld [vmem:[%s1524_s0 + $0x54] sm:$0xf] }
  0x1c   :  { %670 = vmatpush.bf16.msra.mxu2 %v1147_v26  ;;  %v1186_v23 = vld [vmem:[%s1523_s1 + $0x1c0] sm:$0xff]  ;;  %v1120_v25 = vld [vmem:[%s1524_s0 + $0x2c] sm:$0xf0]  ;;  %v1116_v26 = vld [vmem:[%s1524_s0 + $0x14] sm:$0xf] }
  0x1d   :  { %689 = vmatpush.bf16.msra.mxu3 %v1155_v27  ;;  %v814_v27 = vld [vmem:[%s1524_s0 + $0x30] sm:$0xf0]  ;;  %v813_v32 = vor.u32 %v1120_v25, %v812_v24  ;;  %v844_v36 = vld [vmem:[%s1524_s0 + $0x50] sm:$0xf] }
  0x1e   :  { %633 = vmatpush.bf16.msra.mxu0 %v1130_v28  ;;  %v820_v28 = vld [vmem:[%s1524_s0 + $0x18] sm:$0xf]  ;;  %v817_v33 = vor.u32 %v1116_v26, %v814_v27  ;;  %v1128_v37 = vld [vmem:[%s1524_s0 + $0x6c] sm:$0xf0]  ;;  %v846_v39 = vld [vmem:[%s1524_s0 + $0x70] sm:$0xf0] }
  0x1f   :  { %652 = vmatpush.bf16.msra.mxu1 %v1138_v29  ;;  %v1121_v29 = vld [vmem:[%s1524_s0 + $0x34] sm:$0xf0] }
  0x20   :  { %671 = vmatpush.bf16.msra.mxu2 %v1146_v30  ;;  %v1117_v30 = vld [vmem:[%s1524_s0 + $0x1c] sm:$0xf]  ;;  %v821_v34 = vor.u32 %v1121_v29, %v820_v28 }
  0x21   :  { %690 = vmatpush.bf16.msra.mxu3 %v1154_v31  ;;  %634 = vmatmul.bf16.vlgmr.msra.gmra.mxu0 %v797_v42  ;;  %v822_v31 = vld [vmem:[%s1524_s0 + $0x38] sm:$0xf0] }
  0x22   :  { %702 = vmatpush.bf16.msrb.mxu0 %v1169_v41  ;;  %653 = vmatmul.bf16.vlgmr.msra.gmra.mxu1 %v801_v43  ;;  %v825_v35 = vor.u32 %v1117_v30, %v822_v31  ;;  %v1129_v41 = vld [vmem:[%s1524_s0 + $0x74] sm:$0xf0]  ;;  %v1125_v42 = vld [vmem:[%s1524_s0 + $0x5c] sm:$0xf] }
  0x23   :  { %672 = vmatmul.bf16.vlgmr.msra.gmra.mxu2 %v805_v44  ;;  %721 = vmatpush.bf16.msrb.mxu1 %v1177_v46  ;;  %v854_v43 = vld [vmem:[%s1524_s0 + $0x78] sm:$0xf0]  ;;  %v845_v44 = vor.u32 %v1128_v37, %v844_v36 }
  0x24   :  { %740 = vmatpush.bf16.msrb.mxu2 %v1185_v40  ;;  %691 = vmatmul.bf16.vlgmr.msra.gmra.mxu3 %v809_v45  ;;  %v852_v40 = vld [vmem:[%s1524_s0 + $0x58] sm:$0xf]  ;;  %v849_v45 = vor.u32 %v1124_v38, %v846_v39 }
  0x25   :  { %759 = vmatpush.bf16.msrb.mxu3 %v1193_v47  ;;  %v853_v46 = vor.u32 %v1129_v41, %v852_v40  ;;  %v857_v47 = vor.u32 %v1125_v42, %v854_v43 }
  0x26   :  { %703 = vmatpush.bf16.msrb.mxu0 %v1168_v49 }
  0x27   :  { %722 = vmatpush.bf16.msrb.mxu1 %v1176_v50 }
  0x28   :  { %741 = vmatpush.bf16.msrb.mxu2 %v1184_v48 }
  0x29   :  { %760 = vmatpush.bf16.msrb.mxu3 %v1192_v51 }
  0x2a   :  { %704 = vmatpush.bf16.msrb.mxu0 %v1167_v53 }
  0x2b   :  { %723 = vmatpush.bf16.msrb.mxu1 %v1175_v54 }
  0x2c   :  { %742 = vmatpush.bf16.msrb.mxu2 %v1183_v52 }
  0x2d   :  { %761 = vmatpush.bf16.msrb.mxu3 %v1191_v55 }
  0x2e   :  { %705 = vmatpush.bf16.msrb.mxu0 %v1166_v57 }
  0x2f   :  { %724 = vmatpush.bf16.msrb.mxu1 %v1174_v58  ;;  %v1205_v58 = vld [vmem:[%s1525_s2] ss:$0 sm:$0xff] }
  0x30   :  { %743 = vmatpush.bf16.msrb.mxu2 %v1182_v56 }
  0x31   :  { %762 = vmatpush.bf16.msrb.mxu3 %v1190_v59  ;;  %639 = vmatmul.bf16.gmra.mxu0 %v829_v6 }
  0x32   :  { %706 = vmatpush.bf16.msrb.mxu0 %v1165_v5  ;;  %658 = vmatmul.bf16.gmra.mxu1 %v833_v7 }
  0x33   :  { %677 = vmatmul.bf16.gmra.mxu2 %v837_v8  ;;  %725 = vmatpush.bf16.msrb.mxu1 %v1173_v10 }
  0x34   :  { %744 = vmatpush.bf16.msrb.mxu2 %v1181_v4  ;;  %696 = vmatmul.bf16.gmra.mxu3 %v841_v9 }
  0x35   :  { %763 = vmatpush.bf16.msrb.mxu3 %v1189_v11 }
  0x36   :  { %707 = vmatpush.bf16.msrb.mxu0 %v1164_v13 }
  0x37   :  { %726 = vmatpush.bf16.msrb.mxu1 %v1172_v14 }
  0x38   :  { %745 = vmatpush.bf16.msrb.mxu2 %v1180_v12 }
  0x39   :  { %764 = vmatpush.bf16.msrb.mxu3 %v1188_v15 }
  0x3a   :  { %708 = vmatpush.bf16.msrb.mxu0 %v1163_v17 }
  0x3b   :  { %727 = vmatpush.bf16.msrb.mxu1 %v1171_v18 }
  0x3c   :  { %746 = vmatpush.bf16.msrb.mxu2 %v1179_v16 }
  0x3d   :  { %765 = vmatpush.bf16.msrb.mxu3 %v1187_v19 }
  0x3e   :  { %709 = vmatpush.bf16.msrb.mxu0 %v1162_v21 }
  0x3f   :  { %728 = vmatpush.bf16.msrb.mxu1 %v1170_v22 }
  0x40   :  { %747 = vmatpush.bf16.msrb.mxu2 %v1178_v20 }
  0x41   :  { %766 = vmatpush.bf16.msrb.mxu3 %v1186_v23  ;;  %710 = vmatmul.bf16.vlgmr.msrb.gmra.mxu0 %v813_v32 }
  0x42   :  { %729 = vmatmul.bf16.vlgmr.msrb.gmra.mxu1 %v817_v33 }
  0x43   :  { %748 = vmatmul.bf16.vlgmr.msrb.gmra.mxu2 %v821_v34 }
  0x44   :  { %767 = vmatmul.bf16.vlgmr.msrb.gmra.mxu3 %v825_v35 }
  0x51   :  { %715 = vmatmul.bf16.gmra.mxu0 %v845_v44 }
  0x52   :  { %734 = vmatmul.bf16.gmra.mxu1 %v849_v45 }
  0x53   :  { %753 = vmatmul.bf16.gmra.mxu2 %v853_v46 }
  0x54   :  { %772 = vmatmul.bf16.gmra.mxu3 %v857_v47 }
  0x9e   :  { %v635_v48 = vpop.f32.mrf.mxu0 }
  0x9f   :  { %v654_v49 = vpop.f32.mrf.mxu1  ;;  %v636_v61 = vadd.f32 %v1205_v58, %v635_v48 }
  0xa1   :  { %v655_v0 = vadd.f32 %v654_v49, %v636_v61 }
  0xa6   :  { %v673_v50 = vpop.f32.mrf.mxu2  ;;  %v637_v52 = vpop.f32.mrf.mxu0 }
  0xa7   :  { %v692_v51 = vpop.f32.mrf.mxu3  ;;  %v656_v53 = vpop.f32.mrf.mxu1  ;;  %v638_v1 = vadd.f32 %v1205_v58, %v637_v52  ;;  %v674_v4 = vadd.f32 %v673_v50, %v655_v0 }
  0xa9   :  { %v657_v7 = vadd.f32 %v656_v53, %v638_v1  ;;  %v693_v8 = vadd.f32 %v692_v51, %v674_v4 }
  0xae   :  { %v675_v54 = vpop.f32.mrf.mxu2  ;;  %v640_v56 = vpop.f32.mrf.mxu0 }
  0xaf   :  { %v694_v55 = vpop.f32.mrf.mxu3  ;;  %v659_v57 = vpop.f32.mrf.mxu1  ;;  %v676_v9 = vadd.f32 %v675_v54, %v657_v7  ;;  %v641_v13 = vadd.f32 %v1205_v58, %v640_v56 }
  0xb1   :  { %v695_v12 = vadd.f32 %v694_v55, %v676_v9  ;;  %v660_v19 = vadd.f32 %v659_v57, %v641_v13 }
  0xb6   :  { %v678_v59 = vpop.f32.mrf.mxu2  ;;  %v642_v62 = vpop.f32.mrf.mxu0 }
  0xb7   :  { %v697_v60 = vpop.f32.mrf.mxu3  ;;  %v661_v63 = vpop.f32.mrf.mxu1  ;;  %v643_v21 = vadd.f32 %v1205_v58, %v642_v62  ;;  %v679_v24 = vadd.f32 %v678_v59, %v660_v19 }
  0xb9   :  { %v662_v29 = vadd.f32 %v661_v63, %v643_v21  ;;  %v698_v32 = vadd.f32 %v697_v60, %v679_v24 }
  0xbe   :  { %v680_v2 = vpop.f32.mrf.mxu2  ;;  %v711_v5 = vpop.f32.mrf.mxu0 }
  0xbf   :  { %v699_v3 = vpop.f32.mrf.mxu3  ;;  %v730_v6 = vpop.f32.mrf.mxu1  ;;  %v712_v10 = vadd.f32 %v711_v5, %v693_v8  ;;  %v681_v33 = vadd.f32 %v680_v2, %v662_v29 }
  0xc1   :  { %v731_v17 = vadd.f32 %v730_v6, %v712_v10  ;;  %v700_v39 = vadd.f32 %v699_v3, %v681_v33 }
  0xc6   :  { %v749_v11 = vpop.f32.mrf.mxu2  ;;  %v713_v15 = vpop.f32.mrf.mxu0 }
  0xc7   :  { %v768_v14 = vpop.f32.mrf.mxu3  ;;  %v732_v16 = vpop.f32.mrf.mxu1  ;;  %v714_v18 = vadd.f32 %v713_v15, %v695_v12  ;;  %v750_v20 = vadd.f32 %v749_v11, %v731_v17 }
  0xc9   :  { %v733_v22 = vadd.f32 %v732_v16, %v714_v18  ;;  %v769_v25 = vadd.f32 %v768_v14, %v750_v20 }
  0xcb   :  { %v778_v34 = vmax.f32 %v769_v25, 0.0 }
  0xce   :  { %v751_v23 = vpop.f32.mrf.mxu2  ;;  %v716_v28 = vpop.f32.mrf.mxu0 }
  0xcf   :  { %v752_v26 = vadd.f32 %v751_v23, %v733_v22  ;;  %v770_v27 = vpop.f32.mrf.mxu3  ;;  %v735_v31 = vpop.f32.mrf.mxu1  ;;  %v717_v37 = vadd.f32 %v716_v28, %v698_v32 }
  0xd1   :  { %v771_v30 = vadd.f32 %v770_v27, %v752_v26  ;;  %v736_v42 = vadd.f32 %v735_v31, %v717_v37 }
  0xd3   :  { %v779_v35 = vmax.f32 %v771_v30, 0.0 }
  0xd5   :  { %v1197_v36 = vpack.c.bf16 %v779_v35, %v778_v34 }
  0xd6   :  { %v754_v38 = vpop.f32.mrf.mxu2  ;;  %v718_v41 = vpop.f32.mrf.mxu0 }
  0xd7   :  { %1198 = vst [vmem:[%s1526_s3] sm:$0xff] %v1197_v36   ;;  %v773_v40 = vpop.f32.mrf.mxu3  ;;  %v719_v43 = vadd.f32 %v718_v41, %v700_v39  ;;  %v755_v44 = vadd.f32 %v754_v38, %v736_v42  ;;  %v737_v45 = vpop.f32.mrf.mxu1 }
  0xd9   :  { %v738_v46 = vadd.f32 %v737_v45, %v719_v43  ;;  %v774_v48 = vadd.f32 %v773_v40, %v755_v44 }
  0xdb   :  { %v780_v52 = vmax.f32 %v774_v48, 0.0 }
  0xde   :  { %v756_v47 = vpop.f32.mrf.mxu2 }
  0xdf   :  { %v757_v49 = vadd.f32 %v756_v47, %v738_v46  ;;  %v775_v50 = vpop.f32.mrf.mxu3 }
  0xe1   :  { %v776_v51 = vadd.f32 %v775_v50, %v757_v49 }
  0xe3   :  { %v781_v53 = vmax.f32 %v776_v51, 0.0 }
  0xe5   :  { %v1202_v54 = vpack.c.bf16 %v781_v53, %v780_v52 }
  0xe7   :  { %1204 = vst [vmem:[%s1526_s3 + $0x8] sm:$0xff] %v1202_v54  }

// kernel: vae_forward.12
= control target key start
LH: loop header
LB: loop body
LE: loop exit
PB: predicated region body
PF: predicated region fallthrough
CT: control target
= control target key end

     0   :  { %vm1058_vm0 = vcmask 1040384   ;;  %vm1062_vm1 = vcmask 1042434   ;;  %vm1068_vm2 = vcmask 1044484   ;;  %vm1066_vm3 = vcmask 1041408   ;;  %s2578_s1 = inlined_call_operand.vmem [shape: bf16[128,2048], index: 1, kind: input, shape index: {}]   ;;  %s2579_s0 = inlined_call_operand.vmem [shape: f32[2,128], index: 0, kind: input, shape index: {}]   ;;  %s2580_s2 = inlined_call_operand.vmem [shape: f32[1,2048], index: 2, kind: input, shape index: {}]   ;;  %s2581_s3 = inlined_call_operand.vmem [shape: bf16[2,2048], index: 3, kind: output, shape index: {}]  }
   0x1   :  { %v1553_v0 = vld [vmem:[%s2578_s1 + $0x380] sm:$0xf]  ;;  %v1727_v2 = vld [vmem:[%s2578_s1 + $0x384] sm:$0xf]  ;;  %v1561_v5 = vld [vmem:[%s2578_s1 + $0x388] sm:$0xf] }
   0x2   :  { %v1735_v1 = vld [vmem:[%s2578_s1 + $0x3bc] sm:$0xf0]  ;;  %v1555_v4 = vld [vmem:[%s2578_s1 + $0x3c0] sm:$0xf0]  ;;  %v1736_v6 = vld [vmem:[%s2578_s1 + $0x3c4] sm:$0xf0] }
   0x3   :  { %v1554_v3 = vor.u32 %v1735_v1, %v1553_v0  ;;  %v1558_v7 = vor.u32 %v1727_v2, %v1555_v4  ;;  %v1562_v8 = vor.u32 %v1736_v6, %v1561_v5  ;;  %v1728_v9 = vld [vmem:[%s2578_s1 + $0x38c] sm:$0xf]  ;;  %v1489_v11 = vld [vmem:[%s2578_s1 + $0x300] sm:$0xf]  ;;  %v1711_v14 = vld [vmem:[%s2578_s1 + $0x304] sm:$0xf] }
   0x4   :  { %v1563_v10 = vld [vmem:[%s2578_s1 + $0x3c8] sm:$0xf0]  ;;  %v1719_v13 = vld [vmem:[%s2578_s1 + $0x33c] sm:$0xf0]  ;;  %v1491_v15 = vld [vmem:[%s2578_s1 + $0x340] sm:$0xf0] }
   0x5   :  { %820 = vmatpush.bf16.msra.mxu0 %v1554_v3  ;;  %v1566_v12 = vor.u32 %v1728_v9, %v1563_v10  ;;  %833 = vmatpush.bf16.msra.mxu1 %v1558_v7  ;;  %v1490_v16 = vor.u32 %v1719_v13, %v1489_v11  ;;  %v1494_v17 = vor.u32 %v1711_v14, %v1491_v15  ;;  %v1497_v18 = vld [vmem:[%s2578_s1 + $0x308] sm:$0xf]  ;;  %v1712_v20 = vld [vmem:[%s2578_s1 + $0x30c] sm:$0xf]  ;;  %v1425_v23 = vld [vmem:[%s2578_s1 + $0x280] sm:$0xf] }
   0x6   :  { %846 = vmatpush.bf16.msra.mxu2 %v1562_v8  ;;  %v1720_v19 = vld [vmem:[%s2578_s1 + $0x344] sm:$0xf0]  ;;  %v1499_v22 = vld [vmem:[%s2578_s1 + $0x348] sm:$0xf0]  ;;  %v1703_v24 = vld [vmem:[%s2578_s1 + $0x2bc] sm:$0xf0] }
   0x7   :  { %859 = vmatpush.bf16.msra.mxu3 %v1566_v12  ;;  %v1498_v21 = vor.u32 %v1720_v19, %v1497_v18  ;;  %v1502_v25 = vor.u32 %v1712_v20, %v1499_v22  ;;  %v1695_v26 = vld [vmem:[%s2578_s1 + $0x284] sm:$0xf]  ;;  %v1433_v28 = vld [vmem:[%s2578_s1 + $0x288] sm:$0xf]  ;;  %v1426_v29 = vor.u32 %v1703_v24, %v1425_v23  ;;  %v1696_v31 = vld [vmem:[%s2578_s1 + $0x28c] sm:$0xf] }
   0x8   :  { %v1427_v27 = vld [vmem:[%s2578_s1 + $0x2c0] sm:$0xf0]  ;;  %v1704_v30 = vld [vmem:[%s2578_s1 + $0x2c4] sm:$0xf0]  ;;  %v1435_v32 = vld [vmem:[%s2578_s1 + $0x2c8] sm:$0xf0] }
   0x9   :  { %821 = vmatpush.bf16.msra.mxu0 %v1490_v16  ;;  %834 = vmatpush.bf16.msra.mxu1 %v1494_v17  ;;  %v1430_v33 = vor.u32 %v1695_v26, %v1427_v27  ;;  %v1434_v34 = vor.u32 %v1704_v30, %v1433_v28  ;;  %v1361_v35 = vld [vmem:[%s2578_s1 + $0x200] sm:$0xf]  ;;  %v1679_v37 = vld [vmem:[%s2578_s1 + $0x204] sm:$0xf]  ;;  %v1438_v38 = vor.u32 %v1696_v31, %v1435_v32  ;;  %v1369_v40 = vld [vmem:[%s2578_s1 + $0x208] sm:$0xf] }
   0xa   :  { %847 = vmatpush.bf16.msra.mxu2 %v1498_v21  ;;  %v1687_v36 = vld [vmem:[%s2578_s1 + $0x23c] sm:$0xf0]  ;;  %v1363_v39 = vld [vmem:[%s2578_s1 + $0x240] sm:$0xf0]  ;;  %v1688_v41 = vld [vmem:[%s2578_s1 + $0x244] sm:$0xf0] }
   0xb   :  { %860 = vmatpush.bf16.msra.mxu3 %v1502_v25  ;;  %v1680_v42 = vld [vmem:[%s2578_s1 + $0x20c] sm:$0xf]  ;;  %v1362_v44 = vor.u32 %v1687_v36, %v1361_v35  ;;  %v1366_v45 = vor.u32 %v1679_v37, %v1363_v39  ;;  %v1370_v46 = vor.u32 %v1688_v41, %v1369_v40  ;;  %v1297_v47 = vld [vmem:[%s2578_s1 + $0x180] sm:$0xf]  ;;  %v1663_v49 = vld [vmem:[%s2578_s1 + $0x184] sm:$0xf] }
   0xc   :  { %v1371_v43 = vld [vmem:[%s2578_s1 + $0x248] sm:$0xf0]  ;;  %v1671_v48 = vld [vmem:[%s2578_s1 + $0x1bc] sm:$0xf0]  ;;  %v1299_v51 = vld [vmem:[%s2578_s1 + $0x1c0] sm:$0xf0] }
   0xd   :  { %822 = vmatpush.bf16.msra.mxu0 %v1426_v29  ;;  %835 = vmatpush.bf16.msra.mxu1 %v1430_v33  ;;  %v1374_v50 = vor.u32 %v1680_v42, %v1371_v43  ;;  %v1305_v52 = vld [vmem:[%s2578_s1 + $0x188] sm:$0xf]  ;;  %v1664_v54 = vld [vmem:[%s2578_s1 + $0x18c] sm:$0xf]  ;;  %v1298_v56 = vor.u32 %v1671_v48, %v1297_v47  ;;  %v1302_v57 = vor.u32 %v1663_v49, %v1299_v51  ;;  %v1233_v59 = vld [vmem:[%s2578_s1 + $0x100] sm:$0xf] }
   0xe   :  { %848 = vmatpush.bf16.msra.mxu2 %v1434_v34  ;;  %v1672_v53 = vld [vmem:[%s2578_s1 + $0x1c4] sm:$0xf0]  ;;  %v1307_v55 = vld [vmem:[%s2578_s1 + $0x1c8] sm:$0xf0]  ;;  %v1655_v60 = vld [vmem:[%s2578_s1 + $0x13c] sm:$0xf0] }
   0xf   :  { %861 = vmatpush.bf16.msra.mxu3 %v1438_v38  ;;  %v1306_v58 = vor.u32 %v1672_v53, %v1305_v52  ;;  %v1647_v61 = vld [vmem:[%s2578_s1 + $0x104] sm:$0xf]  ;;  %v1310_v62 = vor.u32 %v1664_v54, %v1307_v55  ;;  %v1241_v0 = vld [vmem:[%s2578_s1 + $0x108] sm:$0xf]  ;;  %v1648_v2 = vld [vmem:[%s2578_s1 + $0x10c] sm:$0xf]  ;;  %v1234_v4 = vor.u32 %v1655_v60, %v1233_v59 }
  0x10   :  { %v1235_v63 = vld [vmem:[%s2578_s1 + $0x140] sm:$0xf0]  ;;  %v1656_v1 = vld [vmem:[%s2578_s1 + $0x144] sm:$0xf0]  ;;  %v1243_v3 = vld [vmem:[%s2578_s1 + $0x148] sm:$0xf0] }
  0x11   :  { %823 = vmatpush.bf16.msra.mxu0 %v1362_v44  ;;  %836 = vmatpush.bf16.msra.mxu1 %v1366_v45  ;;  %v1238_v5 = vor.u32 %v1647_v61, %v1235_v63  ;;  %v1242_v6 = vor.u32 %v1656_v1, %v1241_v0  ;;  %v1169_v7 = vld [vmem:[%s2578_s1 + $0x80] sm:$0xf]  ;;  %v1631_v9 = vld [vmem:[%s2578_s1 + $0x84] sm:$0xf]  ;;  %v1246_v10 = vor.u32 %v1648_v2, %v1243_v3  ;;  %v1177_v12 = vld [vmem:[%s2578_s1 + $0x88] sm:$0xf] }
  0x12   :  { %849 = vmatpush.bf16.msra.mxu2 %v1370_v46  ;;  %v1639_v8 = vld [vmem:[%s2578_s1 + $0xbc] sm:$0xf0]  ;;  %v1171_v11 = vld [vmem:[%s2578_s1 + $0xc0] sm:$0xf0]  ;;  %v1640_v13 = vld [vmem:[%s2578_s1 + $0xc4] sm:$0xf0] }
  0x13   :  { %862 = vmatpush.bf16.msra.mxu3 %v1374_v50  ;;  %v1632_v14 = vld [vmem:[%s2578_s1 + $0x8c] sm:$0xf]  ;;  %v1170_v16 = vor.u32 %v1639_v8, %v1169_v7  ;;  %v1105_v17 = vld [vmem:[%s2578_s1] sm:$0xf]  ;;  %v1174_v19 = vor.u32 %v1631_v9, %v1171_v11  ;;  %v1178_v20 = vor.u32 %v1640_v13, %v1177_v12  ;;  %v1615_v21 = vld [vmem:[%s2578_s1 + $0x4] sm:$0xf] }
  0x14   :  { %v1179_v15 = vld [vmem:[%s2578_s1 + $0xc8] sm:$0xf0]  ;;  %v1623_v18 = vld [vmem:[%s2578_s1 + $0x3c] sm:$0xf0]  ;;  %v1107_v22 = vld [vmem:[%s2578_s1 + $0x40] sm:$0xf0] }
  0x15   :  { %824 = vmatpush.bf16.msra.mxu0 %v1298_v56  ;;  %837 = vmatpush.bf16.msra.mxu1 %v1302_v57  ;;  %v1113_v23 = vld [vmem:[%s2578_s1 + $0x8] sm:$0xf]  ;;  %v1182_v24 = vor.u32 %v1632_v14, %v1179_v15  ;;  %v1616_v26 = vld [vmem:[%s2578_s1 + $0xc] sm:$0xf]  ;;  %v1569_v28 = vld [vmem:[%s2578_s1 + $0x390] sm:$0xf]  ;;  %v1106_v31 = vor.u32 %v1623_v18, %v1105_v17  ;;  %v1110_v35 = vor.u32 %v1615_v21, %v1107_v22 }
  0x16   :  { %850 = vmatpush.bf16.msra.mxu2 %v1306_v58  ;;  %v1624_v25 = vld [vmem:[%s2578_s1 + $0x44] sm:$0xf0]  ;;  %v1115_v27 = vld [vmem:[%s2578_s1 + $0x48] sm:$0xf0]  ;;  %v1737_v29 = vld [vmem:[%s2578_s1 + $0x3cc] sm:$0xf0] }
  0x17   :  { %863 = vmatpush.bf16.msra.mxu3 %v1310_v62  ;;  %v1729_v30 = vld [vmem:[%s2578_s1 + $0x394] sm:$0xf]  ;;  %v1577_v33 = vld [vmem:[%s2578_s1 + $0x398] sm:$0xf]  ;;  %v1114_v36 = vor.u32 %v1624_v25, %v1113_v23  ;;  %v1730_v37 = vld [vmem:[%s2578_s1 + $0x39c] sm:$0xf]  ;;  %v1118_v39 = vor.u32 %v1616_v26, %v1115_v27  ;;  %v1570_v40 = vor.u32 %v1737_v29, %v1569_v28 }
  0x18   :  { %v1571_v32 = vld [vmem:[%s2578_s1 + $0x3d0] sm:$0xf0]  ;;  %v1738_v34 = vld [vmem:[%s2578_s1 + $0x3d4] sm:$0xf0]  ;;  %v1579_v38 = vld [vmem:[%s2578_s1 + $0x3d8] sm:$0xf0] }
  0x19   :  { %825 = vmatpush.bf16.msra.mxu0 %v1234_v4  ;;  %838 = vmatpush.bf16.msra.mxu1 %v1238_v5  ;;  %v1574_v41 = vor.u32 %v1729_v30, %v1571_v32  ;;  %v1578_v42 = vor.u32 %v1738_v34, %v1577_v33  ;;  %v1505_v43 = vld [vmem:[%s2578_s1 + $0x310] sm:$0xf]  ;;  %v1713_v45 = vld [vmem:[%s2578_s1 + $0x314] sm:$0xf]  ;;  %v1582_v46 = vor.u32 %v1730_v37, %v1579_v38  ;;  %v1513_v48 = vld [vmem:[%s2578_s1 + $0x318] sm:$0xf] }
  0x1a   :  { %851 = vmatpush.bf16.msra.mxu2 %v1242_v6  ;;  %v1721_v44 = vld [vmem:[%s2578_s1 + $0x34c] sm:$0xf0]  ;;  %v1507_v47 = vld [vmem:[%s2578_s1 + $0x350] sm:$0xf0]  ;;  %v1722_v49 = vld [vmem:[%s2578_s1 + $0x354] sm:$0xf0] }
  0x1b   :  { %864 = vmatpush.bf16.msra.mxu3 %v1246_v10  ;;  %v1714_v50 = vld [vmem:[%s2578_s1 + $0x31c] sm:$0xf]  ;;  %v14_v52 = vld [vmem:[%s2579_s0] sm:$0x3]  ;;  %v1506_v53 = vor.u32 %v1721_v44, %v1505_v43  ;;  %v1510_v55 = vor.u32 %v1713_v45, %v1507_v47  ;;  %v1514_v56 = vor.u32 %v1722_v49, %v1513_v48  ;;  %v1441_v57 = vld [vmem:[%s2578_s1 + $0x290] sm:$0xf] }
  0x1c   :  { %v1515_v51 = vld [vmem:[%s2578_s1 + $0x358] sm:$0xf0]  ;;  %v2006_v54 = vpack.c.bf16 %v14_v52, %v14_v52  ;;  %v1705_v58 = vld [vmem:[%s2578_s1 + $0x2cc] sm:$0xf0]  ;;  %v1697_v59 = vld [vmem:[%s2578_s1 + $0x294] sm:$0xf] }
  0x1d   :  { %826 = vmatpush.bf16.msra.mxu0 %v1170_v16  ;;  %839 = vmatpush.bf16.msra.mxu1 %v1174_v19  ;;  %v1518_v60 = vor.u32 %v1714_v50, %v1515_v51  ;;  %v1443_v61 = vld [vmem:[%s2578_s1 + $0x2d0] sm:$0xf0]  ;;  %v1449_v62 = vld [vmem:[%s2578_s1 + $0x298] sm:$0xf]  ;;  %v1698_v0 = vld [vmem:[%s2578_s1 + $0x29c] sm:$0xf]  ;;  %v1442_v2 = vor.u32 %v1705_v58, %v1441_v57 }
  0x1e   :  { %852 = vmatpush.bf16.msra.mxu2 %v1178_v20  ;;  %v1706_v63 = vld [vmem:[%s2578_s1 + $0x2d4] sm:$0xf0]  ;;  %v1451_v1 = vld [vmem:[%s2578_s1 + $0x2d8] sm:$0xf0]  ;;  %v1446_v3 = vor.u32 %v1697_v59, %v1443_v61  ;;  %v1377_v5 = vld [vmem:[%s2578_s1 + $0x210] sm:$0xf] }
  0x1f   :  { %865 = vmatpush.bf16.msra.mxu3 %v1182_v24  ;;  %v1450_v4 = vor.u32 %v1706_v63, %v1449_v62  ;;  %v1689_v6 = vld [vmem:[%s2578_s1 + $0x24c] sm:$0xf0]  ;;  %v1681_v7 = vld [vmem:[%s2578_s1 + $0x214] sm:$0xf]  ;;  %v1454_v8 = vor.u32 %v1698_v0, %v1451_v1  ;;  %v1385_v10 = vld [vmem:[%s2578_s1 + $0x218] sm:$0xf] }
  0x20   :  { %v1379_v9 = vld [vmem:[%s2578_s1 + $0x250] sm:$0xf0]  ;;  %v1690_v11 = vld [vmem:[%s2578_s1 + $0x254] sm:$0xf0]  ;;  %v1682_v12 = vld [vmem:[%s2578_s1 + $0x21c] sm:$0xf]  ;;  %v1378_v14 = vor.u32 %v1689_v6, %v1377_v5 }
  0x21   :  { %827 = vmatpush.bf16.msra.mxu0 %v1106_v31  ;;  %840 = vmatpush.bf16.msra.mxu1 %v1110_v35  ;;  %v1387_v13 = vld [vmem:[%s2578_s1 + $0x258] sm:$0xf0]  ;;  %v1382_v15 = vor.u32 %v1681_v7, %v1379_v9  ;;  %v1386_v16 = vor.u32 %v1690_v11, %v1385_v10  ;;  %v1313_v17 = vld [vmem:[%s2578_s1 + $0x190] sm:$0xf]  ;;  %v1665_v19 = vld [vmem:[%s2578_s1 + $0x194] sm:$0xf] }
  0x22   :  { %853 = vmatpush.bf16.msra.mxu2 %v1114_v36  ;;  %v1673_v18 = vld [vmem:[%s2578_s1 + $0x1cc] sm:$0xf0]  ;;  %v1390_v20 = vor.u32 %v1682_v12, %v1387_v13  ;;  %v1315_v21 = vld [vmem:[%s2578_s1 + $0x1d0] sm:$0xf0]  ;;  %v1321_v22 = vld [vmem:[%s2578_s1 + $0x198] sm:$0xf] }
  0x23   :  { %866 = vmatpush.bf16.msra.mxu3 %v1118_v39  ;;  %v1674_v23 = vld [vmem:[%s2578_s1 + $0x1d4] sm:$0xf0]  ;;  %v1666_v24 = vld [vmem:[%s2578_s1 + $0x19c] sm:$0xf]  ;;  %v1314_v26 = vor.u32 %v1673_v18, %v1313_v17  ;;  %v1318_v27 = vor.u32 %v1665_v19, %v1315_v21  ;;  %v1249_v29 = vld [vmem:[%s2578_s1 + $0x110] sm:$0xf] }
  0x24   :  { %828 = vmatmul.bf16.vlgmr.msra.gmra.mxu0 %v2006_v54  ;;  %841 = vmatmul.bf16.vlgmr.msra.gmra.mxu1 %v2006_v54  ;;  %v1323_v25 = vld [vmem:[%s2578_s1 + $0x1d8] sm:$0xf0]  ;;  %v1322_v28 = vor.u32 %v1674_v23, %v1321_v22  ;;  %v1657_v30 = vld [vmem:[%s2578_s1 + $0x14c] sm:$0xf0]  ;;  %v1649_v31 = vld [vmem:[%s2578_s1 + $0x114] sm:$0xf] }
  0x25   :  { %872 = vmatpush.bf16.msrb.mxu0 %v1570_v40  ;;  %885 = vmatpush.bf16.msrb.mxu1 %v1574_v41  ;;  %v1326_v32 = vor.u32 %v1666_v24, %v1323_v25  ;;  %v1251_v33 = vld [vmem:[%s2578_s1 + $0x150] sm:$0xf0]  ;;  %v1257_v34 = vld [vmem:[%s2578_s1 + $0x118] sm:$0xf]  ;;  %v1650_v36 = vld [vmem:[%s2578_s1 + $0x11c] sm:$0xf]  ;;  %v1250_v38 = vor.u32 %v1657_v30, %v1249_v29 }
  0x26   :  { %898 = vmatpush.bf16.msrb.mxu2 %v1578_v42  ;;  %867 = vmatmul.bf16.vlgmr.msra.gmra.mxu3 %v2006_v54  ;;  %v1658_v35 = vld [vmem:[%s2578_s1 + $0x154] sm:$0xf0]  ;;  %v1259_v37 = vld [vmem:[%s2578_s1 + $0x158] sm:$0xf0]  ;;  %v1254_v39 = vor.u32 %v1649_v31, %v1251_v33  ;;  %v1185_v41 = vld [vmem:[%s2578_s1 + $0x90] sm:$0xf] }
  0x27   :  { %911 = vmatpush.bf16.msrb.mxu3 %v1582_v46  ;;  %854 = vmatmul.bf16.vlgmr.msra.gmra.mxu2 %v2006_v54  ;;  %v1258_v40 = vor.u32 %v1658_v35, %v1257_v34  ;;  %v1641_v42 = vld [vmem:[%s2578_s1 + $0xcc] sm:$0xf0]  ;;  %v1633_v43 = vld [vmem:[%s2578_s1 + $0x94] sm:$0xf]  ;;  %v1262_v44 = vor.u32 %v1650_v36, %v1259_v37  ;;  %v1193_v46 = vld [vmem:[%s2578_s1 + $0x98] sm:$0xf] }
  0x28   :  { %v1187_v45 = vld [vmem:[%s2578_s1 + $0xd0] sm:$0xf0]  ;;  %v1642_v47 = vld [vmem:[%s2578_s1 + $0xd4] sm:$0xf0]  ;;  %v1634_v48 = vld [vmem:[%s2578_s1 + $0x9c] sm:$0xf]  ;;  %v1186_v50 = vor.u32 %v1641_v42, %v1185_v41 }
  0x29   :  { %873 = vmatpush.bf16.msrb.mxu0 %v1506_v53  ;;  %886 = vmatpush.bf16.msrb.mxu1 %v1510_v55  ;;  %v1195_v49 = vld [vmem:[%s2578_s1 + $0xd8] sm:$0xf0]  ;;  %v1121_v51 = vld [vmem:[%s2578_s1 + $0x10] sm:$0xf]  ;;  %v1190_v53 = vor.u32 %v1633_v43, %v1187_v45  ;;  %v1194_v55 = vor.u32 %v1642_v47, %v1193_v46  ;;  %v1123_v57 = vld [vmem:[%s2578_s1 + $0x50] sm:$0xf0] }
  0x2a   :  { %899 = vmatpush.bf16.msrb.mxu2 %v1514_v56  ;;  %v1625_v52 = vld [vmem:[%s2578_s1 + $0x4c] sm:$0xf0]  ;;  %v1617_v56 = vld [vmem:[%s2578_s1 + $0x14] sm:$0xf]  ;;  %v1129_v58 = vld [vmem:[%s2578_s1 + $0x18] sm:$0xf]  ;;  %v1198_v59 = vor.u32 %v1634_v48, %v1195_v49 }
  0x2b   :  { %912 = vmatpush.bf16.msrb.mxu3 %v1518_v60  ;;  %v1626_v60 = vld [vmem:[%s2578_s1 + $0x54] sm:$0xf0]  ;;  %v1618_v61 = vld [vmem:[%s2578_s1 + $0x1c] sm:$0xf]  ;;  %v1585_v63 = vld [vmem:[%s2578_s1 + $0x3a0] sm:$0xf]  ;;  %v1126_v6 = vor.u32 %v1617_v56, %v1123_v57 }
  0x2c   :  { %v1131_v62 = vld [vmem:[%s2578_s1 + $0x58] sm:$0xf0]  ;;  %v1739_v0 = vld [vmem:[%s2578_s1 + $0x3dc] sm:$0xf0]  ;;  %v1731_v1 = vld [vmem:[%s2578_s1 + $0x3a4] sm:$0xf]  ;;  %v1130_v7 = vor.u32 %v1626_v60, %v1129_v58 }
  0x2d   :  { %874 = vmatpush.bf16.msrb.mxu0 %v1442_v2  ;;  %887 = vmatpush.bf16.msrb.mxu1 %v1446_v3  ;;  %v1122_v2 = vor.u32 %v1625_v52, %v1121_v51  ;;  %v1587_v3 = vld [vmem:[%s2578_s1 + $0x3e0] sm:$0xf0]  ;;  %v1740_v5 = vld [vmem:[%s2578_s1 + $0x3e4] sm:$0xf0]  ;;  %v1595_v9 = vld [vmem:[%s2578_s1 + $0x3e8] sm:$0xf0]  ;;  %v1134_v10 = vor.u32 %v1618_v61, %v1131_v62  ;;  %v1586_v11 = vor.u32 %v1739_v0, %v1585_v63 }
  0x2e   :  { %900 = vmatpush.bf16.msrb.mxu2 %v1450_v4  ;;  %v1593_v4 = vld [vmem:[%s2578_s1 + $0x3a8] sm:$0xf]  ;;  %v1590_v12 = vor.u32 %v1731_v1, %v1587_v3  ;;  %v1523_v18 = vld [vmem:[%s2578_s1 + $0x360] sm:$0xf0]  ;;  %v1716_v21 = vld [vmem:[%s2578_s1 + $0x32c] sm:$0xf] }
  0x2f   :  { %913 = vmatpush.bf16.msrb.mxu3 %v1454_v8  ;;  %v1732_v8 = vld [vmem:[%s2578_s1 + $0x3ac] sm:$0xf]  ;;  %v1594_v13 = vor.u32 %v1740_v5, %v1593_v4  ;;  %v1529_v19 = vld [vmem:[%s2578_s1 + $0x328] sm:$0xf]  ;;  %v1459_v30 = vld [vmem:[%s2578_s1 + $0x2e0] sm:$0xf0] }
  0x30   :  { %v1598_v17 = vor.u32 %v1732_v8, %v1595_v9  ;;  %v1531_v22 = vld [vmem:[%s2578_s1 + $0x368] sm:$0xf0]  ;;  %v1465_v31 = vld [vmem:[%s2578_s1 + $0x2a8] sm:$0xf]  ;;  %v1395_v42 = vld [vmem:[%s2578_s1 + $0x260] sm:$0xf0] }
  0x31   :  { %875 = vmatpush.bf16.msrb.mxu0 %v1378_v14  ;;  %888 = vmatpush.bf16.msrb.mxu1 %v1382_v15  ;;  %v1521_v14 = vld [vmem:[%s2578_s1 + $0x320] sm:$0xf]  ;;  %v1534_v29 = vor.u32 %v1716_v21, %v1531_v22  ;;  %v1700_v33 = vld [vmem:[%s2578_s1 + $0x2ac] sm:$0xf]  ;;  %v1401_v43 = vld [vmem:[%s2578_s1 + $0x228] sm:$0xf] }
  0x32   :  { %901 = vmatpush.bf16.msrb.mxu2 %v1386_v16  ;;  %v1723_v15 = vld [vmem:[%s2578_s1 + $0x35c] sm:$0xf0]  ;;  %v1715_v16 = vld [vmem:[%s2578_s1 + $0x324] sm:$0xf]  ;;  %v1467_v34 = vld [vmem:[%s2578_s1 + $0x2e8] sm:$0xf0] }
  0x33   :  { %914 = vmatpush.bf16.msrb.mxu3 %v1390_v20  ;;  %v1724_v20 = vld [vmem:[%s2578_s1 + $0x364] sm:$0xf0]  ;;  %v1522_v23 = vor.u32 %v1723_v15, %v1521_v14  ;;  %v1526_v24 = vor.u32 %v1715_v16, %v1523_v18  ;;  %v1470_v41 = vor.u32 %v1700_v33, %v1467_v34  ;;  %v1684_v45 = vld [vmem:[%s2578_s1 + $0x22c] sm:$0xf]  ;;  %v1675_v51 = vld [vmem:[%s2578_s1 + $0x1dc] sm:$0xf0] }
  0x34   :  { %v1530_v25 = vor.u32 %v1724_v20, %v1529_v19  ;;  %v1403_v46 = vld [vmem:[%s2578_s1 + $0x268] sm:$0xf0]  ;;  %v1667_v52 = vld [vmem:[%s2578_s1 + $0x1a4] sm:$0xf]  ;;  %v1337_v56 = vld [vmem:[%s2578_s1 + $0x1a8] sm:$0xf] }
  0x35   :  { %876 = vmatpush.bf16.msrb.mxu0 %v1314_v26  ;;  %889 = vmatpush.bf16.msrb.mxu1 %v1318_v27  ;;  %v1457_v26 = vld [vmem:[%s2578_s1 + $0x2a0] sm:$0xf]  ;;  %v1676_v57 = vld [vmem:[%s2578_s1 + $0x1e4] sm:$0xf0]  ;;  %v1668_v58 = vld [vmem:[%s2578_s1 + $0x1ac] sm:$0xf] }
  0x36   :  { %902 = vmatpush.bf16.msrb.mxu2 %v1322_v28  ;;  %v1707_v27 = vld [vmem:[%s2578_s1 + $0x2dc] sm:$0xf0]  ;;  %v1699_v28 = vld [vmem:[%s2578_s1 + $0x2a4] sm:$0xf]  ;;  %v1338_v62 = vor.u32 %v1676_v57, %v1337_v56  ;;  %v1273_v4 = vld [vmem:[%s2578_s1 + $0x128] sm:$0xf] }
  0x37   :  { %915 = vmatpush.bf16.msrb.mxu3 %v1326_v32  ;;  %v1708_v32 = vld [vmem:[%s2578_s1 + $0x2e4] sm:$0xf0]  ;;  %v1458_v35 = vor.u32 %v1707_v27, %v1457_v26  ;;  %v1462_v36 = vor.u32 %v1699_v28, %v1459_v30  ;;  %v1265_v63 = vld [vmem:[%s2578_s1 + $0x120] sm:$0xf]  ;;  %v1651_v1 = vld [vmem:[%s2578_s1 + $0x124] sm:$0xf] }
  0x38   :  { %v1466_v37 = vor.u32 %v1708_v32, %v1465_v31  ;;  %v1659_v0 = vld [vmem:[%s2578_s1 + $0x15c] sm:$0xf0]  ;;  %v1267_v3 = vld [vmem:[%s2578_s1 + $0x160] sm:$0xf0]  ;;  %v1660_v5 = vld [vmem:[%s2578_s1 + $0x164] sm:$0xf0] }
  0x39   :  { %877 = vmatpush.bf16.msrb.mxu0 %v1250_v38  ;;  %890 = vmatpush.bf16.msrb.mxu1 %v1254_v39  ;;  %v1393_v38 = vld [vmem:[%s2578_s1 + $0x220] sm:$0xf]  ;;  %v1266_v8 = vor.u32 %v1659_v0, %v1265_v63  ;;  %v1270_v9 = vor.u32 %v1651_v1, %v1267_v3  ;;  %v1203_v15 = vld [vmem:[%s2578_s1 + $0xe0] sm:$0xf0]  ;;  %v1209_v16 = vld [vmem:[%s2578_s1 + $0xa8] sm:$0xf] }
  0x3a   :  { %903 = vmatpush.bf16.msrb.mxu2 %v1258_v40  ;;  %v1691_v39 = vld [vmem:[%s2578_s1 + $0x25c] sm:$0xf0]  ;;  %v1683_v40 = vld [vmem:[%s2578_s1 + $0x224] sm:$0xf]  ;;  %v1636_v18 = vld [vmem:[%s2578_s1 + $0xac] sm:$0xf] }
  0x3b   :  { %916 = vmatpush.bf16.msrb.mxu3 %v1262_v44  ;;  %v1692_v44 = vld [vmem:[%s2578_s1 + $0x264] sm:$0xf0]  ;;  %v1394_v47 = vor.u32 %v1691_v39, %v1393_v38  ;;  %v1398_v48 = vor.u32 %v1683_v40, %v1395_v42  ;;  %v1211_v19 = vld [vmem:[%s2578_s1 + $0xe8] sm:$0xf0]  ;;  %v1137_v21 = vld [vmem:[%s2578_s1 + $0x20] sm:$0xf] }
  0x3c   :  { %v1402_v49 = vor.u32 %v1692_v44, %v1401_v43  ;;  %v1627_v22 = vld [vmem:[%s2578_s1 + $0x5c] sm:$0xf0]  ;;  %v1139_v26 = vld [vmem:[%s2578_s1 + $0x60] sm:$0xf0]  ;;  %v1145_v27 = vld [vmem:[%s2578_s1 + $0x28] sm:$0xf]  ;;  %v1214_v28 = vor.u32 %v1636_v18, %v1211_v19 }
  0x3d   :  { %878 = vmatpush.bf16.msrb.mxu0 %v1186_v50  ;;  %891 = vmatpush.bf16.msrb.mxu1 %v1190_v53  ;;  %v1329_v50 = vld [vmem:[%s2578_s1 + $0x1a0] sm:$0xf]  ;;  %v1406_v53 = vor.u32 %v1684_v45, %v1403_v46  ;;  %v1620_v30 = vld [vmem:[%s2578_s1 + $0x2c] sm:$0xf]  ;;  %v1601_v32 = vld [vmem:[%s2578_s1 + $0x3b0] sm:$0xf] }
  0x3e   :  { %904 = vmatpush.bf16.msrb.mxu2 %v1194_v55  ;;  %v1331_v55 = vld [vmem:[%s2578_s1 + $0x1e0] sm:$0xf0]  ;;  %v1330_v60 = vor.u32 %v1675_v51, %v1329_v50  ;;  %v1147_v31 = vld [vmem:[%s2578_s1 + $0x68] sm:$0xf0]  ;;  %v1741_v33 = vld [vmem:[%s2578_s1 + $0x3ec] sm:$0xf0] }
  0x3f   :  { %917 = vmatpush.bf16.msrb.mxu3 %v1198_v59  ;;  %v1339_v59 = vld [vmem:[%s2578_s1 + $0x1e8] sm:$0xf0]  ;;  %v1334_v61 = vor.u32 %v1667_v52, %v1331_v55  ;;  %v1733_v34 = vld [vmem:[%s2578_s1 + $0x3b4] sm:$0xf]  ;;  %v1742_v38 = vld [vmem:[%s2578_s1 + $0x3f4] sm:$0xf0]  ;;  %v1150_v43 = vor.u32 %v1620_v30, %v1147_v31  ;;  %v1602_v44 = vor.u32 %v1741_v33, %v1601_v32 }
  0x40   :  { %v1611_v42 = vld [vmem:[%s2578_s1 + $0x3f8] sm:$0xf0]  ;;  %v1539_v51 = vld [vmem:[%s2578_s1 + $0x370] sm:$0xf0]  ;;  %v1545_v52 = vld [vmem:[%s2578_s1 + $0x338] sm:$0xf] }
  0x41   :  { %879 = vmatpush.bf16.msrb.mxu0 %v1122_v2  ;;  %892 = vmatpush.bf16.msrb.mxu1 %v1126_v6  ;;  %v1342_v2 = vor.u32 %v1668_v58, %v1339_v59  ;;  %v1652_v6 = vld [vmem:[%s2578_s1 + $0x12c] sm:$0xf]  ;;  %v1718_v55 = vld [vmem:[%s2578_s1 + $0x33c] sm:$0xf]  ;;  %v1475_v0 = vld [vmem:[%s2578_s1 + $0x2f0] sm:$0xf0] }
  0x42   :  { %905 = vmatpush.bf16.msrb.mxu2 %v1130_v7  ;;  %v1275_v7 = vld [vmem:[%s2578_s1 + $0x168] sm:$0xf0]  ;;  %v1547_v56 = vld [vmem:[%s2578_s1 + $0x378] sm:$0xf0]  ;;  %v1481_v1 = vld [vmem:[%s2578_s1 + $0x2b8] sm:$0xf] }
  0x43   :  { %918 = vmatpush.bf16.msrb.mxu3 %v1134_v10  ;;  %v1274_v10 = vor.u32 %v1660_v5, %v1273_v4  ;;  %v1278_v14 = vor.u32 %v1652_v6, %v1275_v7  ;;  %v1550_v63 = vor.u32 %v1718_v55, %v1547_v56  ;;  %v1702_v3 = vld [vmem:[%s2578_s1 + $0x2bc] sm:$0xf]  ;;  %v1281_v32 = vld [vmem:[%s2578_s1 + $0x130] sm:$0xf]  ;;  %vm1072_vm4 = vcmask 1046534  }
  0x44   :  { %880 = vmatmul.bf16.vlgmr.msrb.gmra.mxu0 %v2006_v54  ;;  %893 = vmatmul.bf16.vlgmr.msrb.gmra.mxu1 %v2006_v54  ;;  %v1483_v4 = vld [vmem:[%s2578_s1 + $0x2f8] sm:$0xf0]  ;;  %v1661_v33 = vld [vmem:[%s2578_s1 + $0x16c] sm:$0xf0]  ;;  %vm1076_vm5 = vcmask 1045508   ;;  %vm1078_vm6 = vcmask 1043456  }
  0x45   :  { %924 = vmatpush.bf16.msra.mxu0 %v1586_v11  ;;  %937 = vmatpush.bf16.msra.mxu1 %v1590_v12  ;;  %v1201_v11 = vld [vmem:[%s2578_s1 + $0xa0] sm:$0xf] }
  0x46   :  { %950 = vmatpush.bf16.msra.mxu2 %v1594_v13  ;;  %919 = vmatmul.bf16.vlgmr.msrb.gmra.mxu3 %v2006_v54  ;;  %v1643_v12 = vld [vmem:[%s2578_s1 + $0xdc] sm:$0xf0]  ;;  %v1635_v13 = vld [vmem:[%s2578_s1 + $0xa4] sm:$0xf] }
  0x47   :  { %963 = vmatpush.bf16.msra.mxu3 %v1598_v17  ;;  %906 = vmatmul.bf16.vlgmr.msrb.gmra.mxu2 %v2006_v54  ;;  %v1644_v17 = vld [vmem:[%s2578_s1 + $0xe4] sm:$0xf0]  ;;  %v1202_v20 = vor.u32 %v1643_v12, %v1201_v11  ;;  %v1486_v11 = vor.u32 %v1702_v3, %v1483_v4  ;;  %v1411_v12 = vld [vmem:[%s2578_s1 + $0x270] sm:$0xf0] }
  0x49   :  { %925 = vmatpush.bf16.msra.mxu0 %v1522_v23  ;;  %938 = vmatpush.bf16.msra.mxu1 %v1526_v24  ;;  %v1206_v23 = vor.u32 %v1635_v13, %v1203_v15  ;;  %v1210_v24 = vor.u32 %v1644_v17, %v1209_v16  ;;  %v1417_v13 = vld [vmem:[%s2578_s1 + $0x238] sm:$0xf]  ;;  %v1686_v15 = vld [vmem:[%s2578_s1 + $0x23c] sm:$0xf] }
  0x4a   :  { %951 = vmatpush.bf16.msra.mxu2 %v1530_v25  ;;  %v1619_v25 = vld [vmem:[%s2578_s1 + $0x24] sm:$0xf]  ;;  %v1419_v16 = vld [vmem:[%s2578_s1 + $0x278] sm:$0xf0] }
  0x4b   :  { %964 = vmatpush.bf16.msra.mxu3 %v1534_v29  ;;  %v1628_v29 = vld [vmem:[%s2578_s1 + $0x64] sm:$0xf0]  ;;  %v1142_v39 = vor.u32 %v1619_v25, %v1139_v26  ;;  %v1353_v25 = vld [vmem:[%s2578_s1 + $0x1b8] sm:$0xf] }
  0x4c   :  { %v1146_v40 = vor.u32 %v1628_v29, %v1145_v27  ;;  %v1678_v26 = vld [vmem:[%s2578_s1 + $0x1f4] sm:$0xf0]  ;;  %v1670_v27 = vld [vmem:[%s2578_s1 + $0x1bc] sm:$0xf] }
  0x4d   :  { %926 = vmatpush.bf16.msra.mxu0 %v1458_v35  ;;  %939 = vmatpush.bf16.msra.mxu1 %v1462_v36  ;;  %v1138_v35 = vor.u32 %v1627_v22, %v1137_v21  ;;  %v1603_v36 = vld [vmem:[%s2578_s1 + $0x3f0] sm:$0xf0]  ;;  %v1677_v21 = vld [vmem:[%s2578_s1 + $0x1ec] sm:$0xf0]  ;;  %v1354_v31 = vor.u32 %v1678_v26, %v1353_v25 }
  0x4e   :  { %952 = vmatpush.bf16.msra.mxu2 %v1466_v37  ;;  %v1609_v37 = vld [vmem:[%s2578_s1 + $0x3b8] sm:$0xf]  ;;  %v1606_v45 = vor.u32 %v1733_v34, %v1603_v36  ;;  %v1669_v22 = vld [vmem:[%s2578_s1 + $0x1b4] sm:$0xf] }
  0x4f   :  { %965 = vmatpush.bf16.msra.mxu3 %v1470_v41  ;;  %v1734_v41 = vld [vmem:[%s2578_s1 + $0x3bc] sm:$0xf]  ;;  %v1610_v46 = vor.u32 %v1742_v38, %v1609_v37  ;;  %v1653_v34 = vld [vmem:[%s2578_s1 + $0x134] sm:$0xf]  ;;  %v1289_v37 = vld [vmem:[%s2578_s1 + $0x138] sm:$0xf] }
  0x50   :  { %v1614_v50 = vor.u32 %v1734_v41, %v1611_v42  ;;  %v1283_v36 = vld [vmem:[%s2578_s1 + $0x170] sm:$0xf0]  ;;  %v1662_v38 = vld [vmem:[%s2578_s1 + $0x174] sm:$0xf0]  ;;  %v1282_v41 = vor.u32 %v1661_v33, %v1281_v32 }
  0x51   :  { %927 = vmatpush.bf16.msra.mxu0 %v1394_v47  ;;  %940 = vmatpush.bf16.msra.mxu1 %v1398_v48  ;;  %v1537_v47 = vld [vmem:[%s2578_s1 + $0x330] sm:$0xf]  ;;  %v1286_v42 = vor.u32 %v1653_v34, %v1283_v36 }
  0x52   :  { %953 = vmatpush.bf16.msra.mxu2 %v1402_v49  ;;  %v1725_v48 = vld [vmem:[%s2578_s1 + $0x36c] sm:$0xf0]  ;;  %v1717_v49 = vld [vmem:[%s2578_s1 + $0x334] sm:$0xf] }
  0x53   :  { %966 = vmatpush.bf16.msra.mxu3 %v1406_v53  ;;  %v1726_v53 = vld [vmem:[%s2578_s1 + $0x374] sm:$0xf0]  ;;  %v1538_v57 = vor.u32 %v1725_v48, %v1537_v47  ;;  %v1542_v58 = vor.u32 %v1717_v49, %v1539_v51  ;;  %v1219_v48 = vld [vmem:[%s2578_s1 + $0xf0] sm:$0xf0]  ;;  %v1638_v51 = vld [vmem:[%s2578_s1 + $0xbc] sm:$0xf] }
  0x54   :  { %v1546_v59 = vor.u32 %v1726_v53, %v1545_v52  ;;  %v1225_v49 = vld [vmem:[%s2578_s1 + $0xb8] sm:$0xf]  ;;  %v1227_v52 = vld [vmem:[%s2578_s1 + $0xf8] sm:$0xf0] }
  0x55   :  { %928 = vmatpush.bf16.msra.mxu0 %v1330_v60  ;;  %941 = vmatpush.bf16.msra.mxu1 %v1334_v61  ;;  %v1473_v60 = vld [vmem:[%s2578_s1 + $0x2b0] sm:$0xf] }
  0x56   :  { %954 = vmatpush.bf16.msra.mxu2 %v1338_v62  ;;  %v1709_v61 = vld [vmem:[%s2578_s1 + $0x2ec] sm:$0xf0]  ;;  %v1701_v62 = vld [vmem:[%s2578_s1 + $0x2b4] sm:$0xf] }
  0x57   :  { %967 = vmatpush.bf16.msra.mxu3 %v1342_v2  ;;  %v1710_v2 = vld [vmem:[%s2578_s1 + $0x2f4] sm:$0xf0]  ;;  %v1474_v5 = vor.u32 %v1709_v61, %v1473_v60  ;;  %v1478_v6 = vor.u32 %v1701_v62, %v1475_v0  ;;  %v1230_v60 = vor.u32 %v1638_v51, %v1227_v52  ;;  %v1155_v61 = vld [vmem:[%s2578_s1 + $0x70] sm:$0xf0]  ;;  %v1622_v0 = vld [vmem:[%s2578_s1 + $0x3c] sm:$0xf] }
  0x58   :  { %v1482_v7 = vor.u32 %v1710_v2, %v1481_v1  ;;  %v1161_v62 = vld [vmem:[%s2578_s1 + $0x38] sm:$0xf]  ;;  %v1163_v1 = vld [vmem:[%s2578_s1 + $0x78] sm:$0xf0] }
  0x59   :  { %929 = vmatpush.bf16.msra.mxu0 %v1266_v8  ;;  %942 = vmatpush.bf16.msra.mxu1 %v1270_v9  ;;  %v1409_v8 = vld [vmem:[%s2578_s1 + $0x230] sm:$0xf] }
  0x5a   :  { %955 = vmatpush.bf16.msra.mxu2 %v1274_v10  ;;  %v1693_v9 = vld [vmem:[%s2578_s1 + $0x26c] sm:$0xf0]  ;;  %v1685_v10 = vld [vmem:[%s2578_s1 + $0x234] sm:$0xf] }
  0x5b   :  { %968 = vmatpush.bf16.msra.mxu3 %v1278_v14  ;;  %v1694_v14 = vld [vmem:[%s2578_s1 + $0x274] sm:$0xf0]  ;;  %v1410_v17 = vor.u32 %v1693_v9, %v1409_v8  ;;  %v1414_v18 = vor.u32 %v1685_v10, %v1411_v12 }
  0x5c   :  { %v1418_v19 = vor.u32 %v1694_v14, %v1417_v13  ;;  %v144_v14 = vld [vmem:[%s2580_s2] sm:$0xff] }
  0x5d   :  { %930 = vmatpush.bf16.msra.mxu0 %v1202_v20  ;;  %943 = vmatpush.bf16.msra.mxu1 %v1206_v23  ;;  %v1345_v20 = vld [vmem:[%s2578_s1 + $0x1b0] sm:$0xf]  ;;  %v1422_v23 = vor.u32 %v1686_v15, %v1419_v16  ;;  %v148_v15 = vperm.slane %v144_v14, 0  ;;  %v149_v16 = vperm.slane %v144_v14, 1 }
  0x5e   :  { %956 = vmatpush.bf16.msra.mxu2 %v1210_v24  ;;  %v1347_v24 = vld [vmem:[%s2578_s1 + $0x1f0] sm:$0xf0]  ;;  %v1346_v29 = vor.u32 %v1677_v21, %v1345_v20  ;;  %v153_v20 = vperm.slane %v144_v14, 5 }
  0x5f   :  { %969 = vmatpush.bf16.msra.mxu3 %v1214_v28  ;;  %v1355_v28 = vld [vmem:[%s2578_s1 + $0x1f8] sm:$0xf0]  ;;  %v1350_v30 = vor.u32 %v1669_v22, %v1347_v24 }
  0x61   :  { %931 = vmatpush.bf16.msra.mxu0 %v1138_v35  ;;  %944 = vmatpush.bf16.msra.mxu1 %v1142_v39  ;;  %v1358_v35 = vor.u32 %v1670_v27, %v1355_v28  ;;  %v1654_v39 = vld [vmem:[%s2578_s1 + $0x13c] sm:$0xf] }
  0x62   :  { %957 = vmatpush.bf16.msra.mxu2 %v1146_v40  ;;  %v1291_v40 = vld [vmem:[%s2578_s1 + $0x178] sm:$0xf0] }
  0x63   :  { %970 = vmatpush.bf16.msra.mxu3 %v1150_v43  ;;  %v1290_v43 = vor.u32 %v1662_v38, %v1289_v37  ;;  %v1294_v47 = vor.u32 %v1654_v39, %v1291_v40 }
  0x64   :  { %932 = vmatmul.bf16.vlgmr.msra.gmra.mxu0 %v2006_v54  ;;  %945 = vmatmul.bf16.vlgmr.msra.gmra.mxu1 %v2006_v54 }
  0x65   :  { %976 = vmatpush.bf16.msrb.mxu0 %v1602_v44  ;;  %989 = vmatpush.bf16.msrb.mxu1 %v1606_v45  ;;  %v1217_v44 = vld [vmem:[%s2578_s1 + $0xb0] sm:$0xf] }
  0x66   :  { %1002 = vmatpush.bf16.msrb.mxu2 %v1610_v46  ;;  %971 = vmatmul.bf16.vlgmr.msra.gmra.mxu3 %v2006_v54  ;;  %v1645_v45 = vld [vmem:[%s2578_s1 + $0xec] sm:$0xf0]  ;;  %v1637_v46 = vld [vmem:[%s2578_s1 + $0xb4] sm:$0xf] }
  0x67   :  { %1015 = vmatpush.bf16.msrb.mxu3 %v1614_v50  ;;  %958 = vmatmul.bf16.vlgmr.msra.gmra.mxu2 %v2006_v54  ;;  %v1646_v50 = vld [vmem:[%s2578_s1 + $0xf4] sm:$0xf0]  ;;  %v1218_v53 = vor.u32 %v1645_v45, %v1217_v44  ;;  %v1222_v55 = vor.u32 %v1637_v46, %v1219_v48 }
  0x68   :  { %v1226_v56 = vor.u32 %v1646_v50, %v1225_v49 }
  0x69   :  { %977 = vmatpush.bf16.msrb.mxu0 %v1538_v57  ;;  %990 = vmatpush.bf16.msrb.mxu1 %v1542_v58  ;;  %v1153_v57 = vld [vmem:[%s2578_s1 + $0x30] sm:$0xf] }
  0x6a   :  { %1003 = vmatpush.bf16.msrb.mxu2 %v1546_v59  ;;  %v1629_v58 = vld [vmem:[%s2578_s1 + $0x6c] sm:$0xf0]  ;;  %v1621_v59 = vld [vmem:[%s2578_s1 + $0x34] sm:$0xf] }
  0x6b   :  { %1016 = vmatpush.bf16.msrb.mxu3 %v1550_v63  ;;  %v1630_v63 = vld [vmem:[%s2578_s1 + $0x74] sm:$0xf0]  ;;  %v1154_v2 = vor.u32 %v1629_v58, %v1153_v57  ;;  %v1158_v3 = vor.u32 %v1621_v59, %v1155_v61 }
  0x6c   :  { %v1162_v4 = vor.u32 %v1630_v63, %v1161_v62 }
  0x6d   :  { %978 = vmatpush.bf16.msrb.mxu0 %v1474_v5  ;;  %991 = vmatpush.bf16.msrb.mxu1 %v1478_v6  ;;  %v1166_v5 = vor.u32 %v1622_v0, %v1163_v1  ;;  %v145_v1 = vld [vmem:[%s2580_s2 + $0x8] sm:$0xff] }
  0x6e   :  { %1004 = vmatpush.bf16.msrb.mxu2 %v1482_v7 }
  0x6f   :  { %1017 = vmatpush.bf16.msrb.mxu3 %v1486_v11 }
  0x71   :  { %979 = vmatpush.bf16.msrb.mxu0 %v1410_v17  ;;  %992 = vmatpush.bf16.msrb.mxu1 %v1414_v18  ;;  %v150_v17 = vperm.slane %v144_v14, 2  ;;  %v151_v18 = vperm.slane %v144_v14, 3 }
  0x72   :  { %1005 = vmatpush.bf16.msrb.mxu2 %v1418_v19  ;;  %v152_v19 = vperm.slane %v144_v14, 4 }
  0x73   :  { %1018 = vmatpush.bf16.msrb.mxu3 %v1422_v23 }
  0x75   :  { %980 = vmatpush.bf16.msrb.mxu0 %v1346_v29  ;;  %993 = vmatpush.bf16.msrb.mxu1 %v1350_v30  ;;  %v154_v30 = vperm.slane %v144_v14, 6 }
  0x76   :  { %1006 = vmatpush.bf16.msrb.mxu2 %v1354_v31  ;;  %v155_v31 = vperm.slane %v144_v14, 7 }
  0x77   :  { %1019 = vmatpush.bf16.msrb.mxu3 %v1358_v35 }
  0x79   :  { %981 = vmatpush.bf16.msrb.mxu0 %v1282_v41  ;;  %994 = vmatpush.bf16.msrb.mxu1 %v1286_v42 }
  0x7a   :  { %1007 = vmatpush.bf16.msrb.mxu2 %v1290_v43 }
  0x7b   :  { %1020 = vmatpush.bf16.msrb.mxu3 %v1294_v47 }
  0x7d   :  { %982 = vmatpush.bf16.msrb.mxu0 %v1218_v53  ;;  %995 = vmatpush.bf16.msrb.mxu1 %v1222_v55 }
  0x7e   :  { %1008 = vmatpush.bf16.msrb.mxu2 %v1226_v56 }
  0x7f   :  { %1021 = vmatpush.bf16.msrb.mxu3 %v1230_v60 }
  0x81   :  { %983 = vmatpush.bf16.msrb.mxu0 %v1154_v2  ;;  %996 = vmatpush.bf16.msrb.mxu1 %v1158_v3  ;;  %v156_v2 = vperm.slane %v145_v1, 0  ;;  %v157_v3 = vperm.slane %v145_v1, 1 }
  0x82   :  { %1009 = vmatpush.bf16.msrb.mxu2 %v1162_v4  ;;  %v158_v4 = vperm.slane %v145_v1, 2 }
  0x83   :  { %1022 = vmatpush.bf16.msrb.mxu3 %v1166_v5  ;;  %v159_v5 = vperm.slane %v145_v1, 3 }
  0x84   :  { %984 = vmatmul.bf16.vlgmr.msrb.gmra.mxu0 %v2006_v54  ;;  %997 = vmatmul.bf16.vlgmr.msrb.gmra.mxu1 %v2006_v54 }
  0x85   :  { %1010 = vmatmul.bf16.vlgmr.msrb.gmra.mxu2 %v2006_v54 }
  0x86   :  { %1023 = vmatmul.bf16.vlgmr.msrb.gmra.mxu3 %v2006_v54 }
  0xa1   :  { %v829_v6 = vpop.f32.mrf.mxu0  ;;  %v842_v7 = vpop.f32.mrf.mxu1 }
  0xa2   :  { %v830_v21 = vadd.f32 %v829_v6, %v148_v15  ;;  %v843_v54 = vadd.f32 %v842_v7, %v149_v16  ;;  %v160_v6 = vperm.slane %v145_v1, 4  ;;  %v161_v7 = vperm.slane %v145_v1, 5 }
  0xa4   :  { %v1028_v27 = vpack.c.bf16 %v843_v54, %v830_v21 }
  0xa6   :  { %v1044_v34 = vrot.slane %v1028_v27, 3 }
  0xa8   :  { %v1061_v45 = vsel %vm1058_vm0, %v1028_v27, %v1044_v34 }
  0xa9   :  { %v868_v9 = vpop.f32.mrf.mxu3  ;;  %v831_v10 = vpop.f32.mrf.mxu0 }
  0xaa   :  { %v855_v8 = vpop.f32.mrf.mxu2  ;;  %v844_v11 = vpop.f32.mrf.mxu1  ;;  %v869_v23 = vadd.f32 %v868_v9, %v151_v18  ;;  %v162_v18 = vperm.slane %v145_v1, 6 }
  0xab   :  { %v856_v22 = vadd.f32 %v855_v8, %v150_v17 }
  0xad   :  { %v1029_v28 = vpack.c.bf16 %v869_v23, %v856_v22 }
  0xaf   :  { %v1045_v35 = vrot.slane %v1029_v28, 6  ;;  %v1046_v38 = vrot.slane %v1029_v28, 1 }
  0xb1   :  { %v870_v13 = vpop.f32.mrf.mxu3  ;;  %v1065_v46 = vsel %vm1062_vm1, %v1045_v35, %v1046_v38 }
  0xb2   :  { %v857_v12 = vpop.f32.mrf.mxu2  ;;  %v1067_v52 = vsel %vm1066_vm3, %v1061_v45, %v1065_v46 }
  0xc1   :  { %v881_v24 = vpop.f32.mrf.mxu0  ;;  %v894_v26 = vpop.f32.mrf.mxu1 }
  0xc2   :  { %v882_v25 = vadd.f32 %v881_v24, %v152_v19  ;;  %v895_v29 = vadd.f32 %v894_v26, %v153_v20  ;;  %v163_v20 = vperm.slane %v145_v1, 7 }
  0xc4   :  { %v1030_v32 = vpack.c.bf16 %v895_v29, %v882_v25 }
  0xc6   :  { %v1047_v39 = vrot.slane %v1030_v32, 4  ;;  %v1048_v40 = vrot.slane %v1030_v32, 7 }
  0xc8   :  { %v1071_v47 = vsel %vm1068_vm2, %v1047_v39, %v1048_v40 }
  0xc9   :  { %v920_v37 = vpop.f32.mrf.mxu3  ;;  %v883_v42 = vpop.f32.mrf.mxu0 }
  0xca   :  { %v907_v33 = vpop.f32.mrf.mxu2  ;;  %v921_v41 = vadd.f32 %v920_v37, %v155_v31  ;;  %v896_v44 = vpop.f32.mrf.mxu1 }
  0xcb   :  { %v908_v36 = vadd.f32 %v907_v33, %v154_v30 }
  0xcd   :  { %v1031_v43 = vpack.c.bf16 %v921_v41, %v908_v36 }
  0xcf   :  { %v1049_v48 = vrot.slane %v1031_v43, 2  ;;  %v1050_v49 = vrot.slane %v1031_v43, 5 }
  0xd1   :  { %v1075_v50 = vsel %vm1072_vm4, %v1049_v48, %v1050_v49  ;;  %v922_v55 = vpop.f32.mrf.mxu3 }
  0xd2   :  { %v909_v51 = vpop.f32.mrf.mxu2  ;;  %v1077_v53 = vsel %vm1076_vm5, %v1071_v47, %v1075_v50 }
  0xd3   :  { %v1079_v56 = vsel %vm1078_vm6, %v1067_v52, %v1077_v53 }
  0xd4   :  { %1097 = vst [vmem:[%s2581_s3] sm:$0xff] %v1079_v56 }
  0xe1   :  { %v933_v57 = vpop.f32.mrf.mxu0  ;;  %v946_v58 = vpop.f32.mrf.mxu1 }
  0xe2   :  { %v934_v8 = vadd.f32 %v933_v57, %v156_v2  ;;  %v947_v9 = vadd.f32 %v946_v58, %v157_v3 }
  0xe4   :  { %v1032_v16 = vpack.c.bf16 %v947_v9, %v934_v8 }
  0xe6   :  { %v1051_v54 = vrot.slane %v1032_v16, 3 }
  0xe8   :  { %v1082_v32 = vsel %vm1058_vm0, %v1032_v16, %v1051_v54 }
  0xe9   :  { %v972_v60 = vpop.f32.mrf.mxu3  ;;  %v935_v61 = vpop.f32.mrf.mxu0 }
  0xea   :  { %v959_v59 = vpop.f32.mrf.mxu2  ;;  %v948_v62 = vpop.f32.mrf.mxu1  ;;  %v973_v11 = vadd.f32 %v972_v60, %v159_v5 }
  0xeb   :  { %v960_v10 = vadd.f32 %v959_v59, %v158_v4 }
  0xed   :  { %v1033_v17 = vpack.c.bf16 %v973_v11, %v960_v10 }
  0xef   :  { %v1052_v22 = vrot.slane %v1033_v17, 6  ;;  %v1053_v26 = vrot.slane %v1033_v17, 1 }
  0xf1   :  { %v974_v0 = vpop.f32.mrf.mxu3  ;;  %v1085_v33 = vsel %vm1062_vm1, %v1052_v22, %v1053_v26 }
  0xf2   :  { %v961_v63 = vpop.f32.mrf.mxu2  ;;  %v1086_v39 = vsel %vm1066_vm3, %v1082_v32, %v1085_v33 }
 0x101   :  { %v985_v12 = vpop.f32.mrf.mxu0  ;;  %v998_v14 = vpop.f32.mrf.mxu1 }
 0x102   :  { %v986_v13 = vadd.f32 %v985_v12, %v160_v6  ;;  %v999_v15 = vadd.f32 %v998_v14, %v161_v7 }
 0x104   :  { %v1034_v19 = vpack.c.bf16 %v999_v15, %v986_v13 }
 0x106   :  { %v1054_v27 = vrot.slane %v1034_v19, 4  ;;  %v1055_v28 = vrot.slane %v1034_v19, 7 }
 0x108   :  { %v1011_v21 = vpop.f32.mrf.mxu2  ;;  %v1089_v34 = vsel %vm1068_vm2, %v1054_v27, %v1055_v28 }
 0x109   :  { %v1012_v23 = vadd.f32 %v1011_v21, %v162_v18  ;;  %v1024_v24 = vpop.f32.mrf.mxu3  ;;  %v987_v25 = vpop.f32.mrf.mxu0 }
 0x10a   :  { %v1025_v29 = vadd.f32 %v1024_v24, %v163_v20  ;;  %v1000_v30 = vpop.f32.mrf.mxu1 }
 0x10c   :  { %v1035_v31 = vpack.c.bf16 %v1025_v29, %v1012_v23 }
 0x10e   :  { %v1056_v35 = vrot.slane %v1035_v31, 2  ;;  %v1057_v36 = vrot.slane %v1035_v31, 5 }
 0x110   :  { %v1092_v37 = vsel %vm1072_vm4, %v1056_v35, %v1057_v36  ;;  %v1013_v38 = vpop.f32.mrf.mxu2 }
 0x111   :  { %v1093_v40 = vsel %vm1076_vm5, %v1089_v34, %v1092_v37  ;;  %v1026_v41 = vpop.f32.mrf.mxu3 }
 0x112   :  { %v1094_v42 = vsel %vm1078_vm6, %v1086_v39, %v1093_v40 }
 0x113   :  { %1098 = vst [vmem:[%s2581_s3 + $0x8] sm:$0xff] %v1094_v42 }

// kernel: vae_forward.13
= control target key start
LH: loop header
LB: loop body
LE: loop exit
PB: predicated region body
PF: predicated region fallthrough
CT: control target
= control target key end

     0   :  { %s1696_s1 = inlined_call_operand.vmem [shape: bf16[512,256], index: 1, kind: input, shape index: {}]   ;;  %s1697_s0 = inlined_call_operand.vmem [shape: bf16[50,512], index: 0, kind: input, shape index: {}]   ;;  %s1698_s2 = inlined_call_operand.vmem [shape: f32[1,256], index: 2, kind: input, shape index: {}]   ;;  %s1699_s3 = inlined_call_operand.vmem [shape: bf16[50,256], index: 3, kind: output, shape index: {}]  }
   0x1   :  { %v854_v0 = vld [vmem:[%s1696_s1 + $0x70] sm:$0xf]  ;;  %v1079_v1 = vld [vmem:[%s1696_s1 + $0x74] sm:$0xf0]  ;;  %v846_v11 = vld [vmem:[%s1696_s1 + $0x60] sm:$0xf] }
   0x2   :  { %v918_v2 = vld [vmem:[%s1696_s1 + $0xf0] sm:$0xf]  ;;  %v855_v3 = vor.u32 %v1079_v1, %v854_v0  ;;  %v1095_v4 = vld [vmem:[%s1696_s1 + $0xf4] sm:$0xf0]  ;;  %v1077_v13 = vld [vmem:[%s1696_s1 + $0x64] sm:$0xf0] }
   0x3   :  { %v982_v5 = vld [vmem:[%s1696_s1 + $0x170] sm:$0xf]  ;;  %v1111_v6 = vld [vmem:[%s1696_s1 + $0x174] sm:$0xf0]  ;;  %v919_v7 = vor.u32 %v1095_v4, %v918_v2  ;;  %v910_v14 = vld [vmem:[%s1696_s1 + $0xe0] sm:$0xf]  ;;  %v847_v16 = vor.u32 %v1077_v13, %v846_v11 }
   0x4   :  { %v983_v8 = vor.u32 %v1111_v6, %v982_v5  ;;  %v1046_v9 = vld [vmem:[%s1696_s1 + $0x1f0] sm:$0xf]  ;;  %v1127_v10 = vld [vmem:[%s1696_s1 + $0x1f4] sm:$0xf0]  ;;  %492 = vmatpush.bf16.msra.mxu0 %v855_v3  ;;  %v1093_v15 = vld [vmem:[%s1696_s1 + $0xe4] sm:$0xf0] }
   0x5   :  { %v1047_v12 = vor.u32 %v1127_v10, %v1046_v9  ;;  %520 = vmatpush.bf16.msra.mxu1 %v919_v7  ;;  %v911_v17 = vor.u32 %v1093_v15, %v910_v14  ;;  %v974_v18 = vld [vmem:[%s1696_s1 + $0x160] sm:$0xf]  ;;  %v1109_v19 = vld [vmem:[%s1696_s1 + $0x164] sm:$0xf0]  ;;  %v838_v23 = vld [vmem:[%s1696_s1 + $0x50] sm:$0xf] }
   0x6   :  { %548 = vmatpush.bf16.msra.mxu2 %v983_v8  ;;  %v1038_v20 = vld [vmem:[%s1696_s1 + $0x1e0] sm:$0xf]  ;;  %v975_v21 = vor.u32 %v1109_v19, %v974_v18  ;;  %v1125_v22 = vld [vmem:[%s1696_s1 + $0x1e4] sm:$0xf0]  ;;  %v1075_v24 = vld [vmem:[%s1696_s1 + $0x54] sm:$0xf0] }
   0x7   :  { %576 = vmatpush.bf16.msra.mxu3 %v1047_v12  ;;  %v1039_v25 = vor.u32 %v1125_v22, %v1038_v20  ;;  %v902_v26 = vld [vmem:[%s1696_s1 + $0xd0] sm:$0xf]  ;;  %v1091_v27 = vld [vmem:[%s1696_s1 + $0xd4] sm:$0xf0]  ;;  %v839_v29 = vor.u32 %v1075_v24, %v838_v23  ;;  %v830_v35 = vld [vmem:[%s1696_s1 + $0x40] sm:$0xf] }
   0x8   :  { %v966_v28 = vld [vmem:[%s1696_s1 + $0x150] sm:$0xf]  ;;  %493 = vmatpush.bf16.msra.mxu0 %v847_v16  ;;  %v1107_v30 = vld [vmem:[%s1696_s1 + $0x154] sm:$0xf0]  ;;  %v903_v33 = vor.u32 %v1091_v27, %v902_v26  ;;  %v1073_v36 = vld [vmem:[%s1696_s1 + $0x44] sm:$0xf0] }
   0x9   :  { %v1030_v31 = vld [vmem:[%s1696_s1 + $0x1d0] sm:$0xf]  ;;  %v1123_v32 = vld [vmem:[%s1696_s1 + $0x1d4] sm:$0xf0]  ;;  %521 = vmatpush.bf16.msra.mxu1 %v911_v17  ;;  %v967_v34 = vor.u32 %v1107_v30, %v966_v28  ;;  %v894_v37 = vld [vmem:[%s1696_s1 + $0xc0] sm:$0xf]  ;;  %v831_v44 = vor.u32 %v1073_v36, %v830_v35 }
   0xa   :  { %549 = vmatpush.bf16.msra.mxu2 %v975_v21  ;;  %v1031_v38 = vor.u32 %v1123_v32, %v1030_v31  ;;  %v1089_v39 = vld [vmem:[%s1696_s1 + $0xc4] sm:$0xf0]  ;;  %v958_v40 = vld [vmem:[%s1696_s1 + $0x140] sm:$0xf]  ;;  %v822_v47 = vld [vmem:[%s1696_s1 + $0x30] sm:$0xf] }
   0xb   :  { %577 = vmatpush.bf16.msra.mxu3 %v1039_v25  ;;  %v1105_v41 = vld [vmem:[%s1696_s1 + $0x144] sm:$0xf0]  ;;  %v1022_v42 = vld [vmem:[%s1696_s1 + $0x1c0] sm:$0xf]  ;;  %v895_v45 = vor.u32 %v1089_v39, %v894_v37  ;;  %v1071_v48 = vld [vmem:[%s1696_s1 + $0x34] sm:$0xf0] }
   0xc   :  { %v1121_v43 = vld [vmem:[%s1696_s1 + $0x1c4] sm:$0xf0]  ;;  %494 = vmatpush.bf16.msra.mxu0 %v839_v29  ;;  %v959_v46 = vor.u32 %v1105_v41, %v958_v40  ;;  %v886_v49 = vld [vmem:[%s1696_s1 + $0xb0] sm:$0xf]  ;;  %v1087_v51 = vld [vmem:[%s1696_s1 + $0xb4] sm:$0xf0]  ;;  %v823_v56 = vor.u32 %v1071_v48, %v822_v47 }
   0xd   :  { %522 = vmatpush.bf16.msra.mxu1 %v903_v33  ;;  %v1023_v50 = vor.u32 %v1121_v43, %v1022_v42  ;;  %v950_v52 = vld [vmem:[%s1696_s1 + $0x130] sm:$0xf]  ;;  %v1103_v53 = vld [vmem:[%s1696_s1 + $0x134] sm:$0xf0]  ;;  %v887_v57 = vor.u32 %v1087_v51, %v886_v49  ;;  %v814_v59 = vld [vmem:[%s1696_s1 + $0x20] sm:$0xf] }
   0xe   :  { %550 = vmatpush.bf16.msra.mxu2 %v967_v34  ;;  %v1014_v54 = vld [vmem:[%s1696_s1 + $0x1b0] sm:$0xf]  ;;  %v1119_v55 = vld [vmem:[%s1696_s1 + $0x1b4] sm:$0xf0]  ;;  %v951_v58 = vor.u32 %v1103_v53, %v950_v52  ;;  %v1069_v60 = vld [vmem:[%s1696_s1 + $0x24] sm:$0xf0] }
   0xf   :  { %578 = vmatpush.bf16.msra.mxu3 %v1031_v38  ;;  %v878_v61 = vld [vmem:[%s1696_s1 + $0xa0] sm:$0xf]  ;;  %v1015_v62 = vor.u32 %v1119_v55, %v1014_v54  ;;  %v1085_v63 = vld [vmem:[%s1696_s1 + $0xa4] sm:$0xf0]  ;;  %v815_v4 = vor.u32 %v1069_v60, %v814_v59  ;;  %v806_v7 = vld [vmem:[%s1696_s1 + $0x10] sm:$0xf] }
  0x10   :  { %495 = vmatpush.bf16.msra.mxu0 %v831_v44  ;;  %v942_v0 = vld [vmem:[%s1696_s1 + $0x120] sm:$0xf]  ;;  %v1101_v1 = vld [vmem:[%s1696_s1 + $0x124] sm:$0xf0]  ;;  %v879_v5 = vor.u32 %v1085_v63, %v878_v61  ;;  %v1067_v8 = vld [vmem:[%s1696_s1 + $0x14] sm:$0xf0] }
  0x11   :  { %523 = vmatpush.bf16.msra.mxu1 %v895_v45  ;;  %v1006_v2 = vld [vmem:[%s1696_s1 + $0x1a0] sm:$0xf]  ;;  %v1117_v3 = vld [vmem:[%s1696_s1 + $0x1a4] sm:$0xf0]  ;;  %v943_v6 = vor.u32 %v1101_v1, %v942_v0  ;;  %v870_v9 = vld [vmem:[%s1696_s1 + $0x90] sm:$0xf]  ;;  %v807_v17 = vor.u32 %v1067_v8, %v806_v7 }
  0x12   :  { %551 = vmatpush.bf16.msra.mxu2 %v959_v46  ;;  %v1007_v10 = vor.u32 %v1117_v3, %v1006_v2  ;;  %v1083_v11 = vld [vmem:[%s1696_s1 + $0x94] sm:$0xf0]  ;;  %v934_v12 = vld [vmem:[%s1696_s1 + $0x110] sm:$0xf]  ;;  %v798_v16 = vld [vmem:[%s1696_s1] sm:$0xf] }
  0x13   :  { %579 = vmatpush.bf16.msra.mxu3 %v1023_v50  ;;  %v1099_v13 = vld [vmem:[%s1696_s1 + $0x114] sm:$0xf0]  ;;  %v998_v14 = vld [vmem:[%s1696_s1 + $0x190] sm:$0xf]  ;;  %v1065_v18 = vld [vmem:[%s1696_s1 + $0x4] sm:$0xf0]  ;;  %v871_v21 = vor.u32 %v1083_v11, %v870_v9 }
  0x14   :  { %496 = vmatpush.bf16.msra.mxu0 %v823_v56  ;;  %v1115_v15 = vld [vmem:[%s1696_s1 + $0x194] sm:$0xf0]  ;;  %v862_v19 = vld [vmem:[%s1696_s1 + $0x80] sm:$0xf]  ;;  %v1081_v20 = vld [vmem:[%s1696_s1 + $0x84] sm:$0xf0]  ;;  %v935_v22 = vor.u32 %v1099_v13, %v934_v12  ;;  %v799_v34 = vor.u32 %v1065_v18, %v798_v16 }
  0x15   :  { %524 = vmatpush.bf16.msra.mxu1 %v887_v57  ;;  %v926_v23 = vld [vmem:[%s1696_s1 + $0x100] sm:$0xf]  ;;  %v1097_v24 = vld [vmem:[%s1696_s1 + $0x104] sm:$0xf0]  ;;  %v999_v26 = vor.u32 %v1115_v15, %v998_v14  ;;  %v1054_v29 = vld [vmem:[%s1697_s0 + $0xc] sm:$0xf0]  ;;  %v863_v38 = vor.u32 %v1081_v20, %v862_v19 }
  0x16   :  { %552 = vmatpush.bf16.msra.mxu2 %v951_v58  ;;  %v990_v25 = vld [vmem:[%s1696_s1 + $0x180] sm:$0xf]  ;;  %v1113_v27 = vld [vmem:[%s1696_s1 + $0x184] sm:$0xf0]  ;;  %v1052_v30 = vld [vmem:[%s1697_s0 + $0x4] sm:$0xf]  ;;  %v927_v39 = vor.u32 %v1097_v24, %v926_v23 }
  0x17   :  { %580 = vmatpush.bf16.msra.mxu3 %v1015_v62  ;;  %v750_v28 = vld [vmem:[%s1697_s0] sm:$0xf]  ;;  %v752_v31 = vld [vmem:[%s1697_s0 + $0x10] sm:$0xf0]  ;;  %v984_v33 = vld [vmem:[%s1696_s1 + $0x178] sm:$0xf0]  ;;  %v991_v43 = vor.u32 %v1113_v27, %v990_v25 }
  0x18   :  { %497 = vmatpush.bf16.msra.mxu0 %v815_v4  ;;  %v1110_v32 = vld [vmem:[%s1696_s1 + $0x174] sm:$0xf]  ;;  %v758_v35 = vld [vmem:[%s1697_s0 + $0x8] sm:$0xf]  ;;  %v1048_v37 = vld [vmem:[%s1696_s1 + $0x1f8] sm:$0xf0]  ;;  %v1385_v48 = vor.u32 %v1054_v29, %v750_v28  ;;  %v1396_v53 = vor.u32 %v1052_v30, %v752_v31 }
  0x19   :  { %525 = vmatpush.bf16.msra.mxu1 %v879_v5  ;;  %v1126_v36 = vld [vmem:[%s1696_s1 + $0x1f4] sm:$0xf]  ;;  %v1055_v40 = vld [vmem:[%s1697_s0 + $0x14] sm:$0xf0]  ;;  %v1053_v41 = vld [vmem:[%s1697_s0 + $0xc] sm:$0xf]  ;;  %v987_v44 = vor.u32 %v1110_v32, %v984_v33 }
  0x1a   :  { %553 = vmatpush.bf16.msra.mxu2 %v943_v6  ;;  %v760_v42 = vld [vmem:[%s1697_s0 + $0x18] sm:$0xf0]  ;;  %v1078_v45 = vld [vmem:[%s1696_s1 + $0x74] sm:$0xf]  ;;  %v1051_v49 = vor.u32 %v1126_v36, %v1048_v37  ;;  %v1108_v51 = vld [vmem:[%s1696_s1 + $0x164] sm:$0xf]  ;;  %v1398_v54 = vor.u32 %v1055_v40, %v758_v35 }
  0x1b   :  { %581 = vmatpush.bf16.msra.mxu3 %v1007_v10  ;;  %v856_v46 = vld [vmem:[%s1696_s1 + $0x78] sm:$0xf0]  ;;  %v1094_v47 = vld [vmem:[%s1696_s1 + $0xf4] sm:$0xf]  ;;  %v976_v52 = vld [vmem:[%s1696_s1 + $0x168] sm:$0xf0]  ;;  %v1406_v57 = vor.u32 %v1053_v41, %v760_v42 }
  0x1c   :  { %498 = vmatpush.bf16.msra.mxu0 %v807_v17  ;;  %v920_v50 = vld [vmem:[%s1696_s1 + $0xf8] sm:$0xf0]  ;;  %v1124_v55 = vld [vmem:[%s1696_s1 + $0x1e4] sm:$0xf]  ;;  %v1040_v56 = vld [vmem:[%s1696_s1 + $0x1e8] sm:$0xf0]  ;;  %v859_v58 = vor.u32 %v1078_v45, %v856_v46  ;;  %v979_v60 = vor.u32 %v1108_v51, %v976_v52 }
  0x1d   :  { %526 = vmatpush.bf16.msra.mxu1 %v871_v21  ;;  %v923_v59 = vor.u32 %v1094_v47, %v920_v50  ;;  %v1076_v61 = vld [vmem:[%s1696_s1 + $0x64] sm:$0xf]  ;;  %v848_v62 = vld [vmem:[%s1696_s1 + $0x68] sm:$0xf0]  ;;  %v1043_v0 = vor.u32 %v1124_v55, %v1040_v56  ;;  %v1106_v2 = vld [vmem:[%s1696_s1 + $0x154] sm:$0xf] }
  0x1e   :  { %554 = vmatpush.bf16.msra.mxu2 %v935_v22  ;;  %v1092_v63 = vld [vmem:[%s1696_s1 + $0xe4] sm:$0xf]  ;;  %v912_v1 = vld [vmem:[%s1696_s1 + $0xe8] sm:$0xf0]  ;;  %v968_v3 = vld [vmem:[%s1696_s1 + $0x158] sm:$0xf0]  ;;  %v851_v6 = vor.u32 %v1076_v61, %v848_v62 }
  0x1f   :  { %582 = vmatpush.bf16.msra.mxu3 %v999_v26  ;;  %v1122_v4 = vld [vmem:[%s1696_s1 + $0x1d4] sm:$0xf]  ;;  %v1032_v5 = vld [vmem:[%s1696_s1 + $0x1d8] sm:$0xf0]  ;;  %v915_v7 = vor.u32 %v1092_v63, %v912_v1  ;;  %v971_v8 = vor.u32 %v1106_v2, %v968_v3  ;;  %v1104_v14 = vld [vmem:[%s1696_s1 + $0x144] sm:$0xf] }
  0x20   :  { %499 = vmatpush.bf16.msra.mxu0 %v799_v34  ;;  %v1074_v9 = vld [vmem:[%s1696_s1 + $0x54] sm:$0xf]  ;;  %v840_v10 = vld [vmem:[%s1696_s1 + $0x58] sm:$0xf0]  ;;  %v1035_v12 = vor.u32 %v1122_v4, %v1032_v5  ;;  %v960_v15 = vld [vmem:[%s1696_s1 + $0x148] sm:$0xf0] }
  0x21   :  { %527 = vmatpush.bf16.msra.mxu1 %v863_v38  ;;  %v1090_v11 = vld [vmem:[%s1696_s1 + $0xd4] sm:$0xf]  ;;  %v904_v13 = vld [vmem:[%s1696_s1 + $0xd8] sm:$0xf0]  ;;  %v1120_v16 = vld [vmem:[%s1696_s1 + $0x1c4] sm:$0xf]  ;;  %v843_v18 = vor.u32 %v1074_v9, %v840_v10  ;;  %v963_v22 = vor.u32 %v1104_v14, %v960_v15 }
  0x22   :  { %555 = vmatpush.bf16.msra.mxu2 %v927_v39  ;;  %v1024_v17 = vld [vmem:[%s1696_s1 + $0x1c8] sm:$0xf0]  ;;  %v766_v19 = vld [vmem:[%s1697_s0 + $0x20] sm:$0xf]  ;;  %v1058_v20 = vld [vmem:[%s1697_s0 + $0x2c] sm:$0xf0]  ;;  %v907_v21 = vor.u32 %v1090_v11, %v904_v13 }
  0x23   :  { %583 = vmatpush.bf16.msra.mxu3 %v991_v43  ;;  %500 = vmatmul.bf16.vlgmr.msra.gmra.mxu0 %v1385_v48  ;;  %v1072_v23 = vld [vmem:[%s1696_s1 + $0x44] sm:$0xf]  ;;  %v832_v24 = vld [vmem:[%s1696_s1 + $0x48] sm:$0xf0]  ;;  %v768_v27 = vld [vmem:[%s1697_s0 + $0x30] sm:$0xf0]  ;;  %v1027_v28 = vor.u32 %v1120_v16, %v1024_v17 }
  0x24   :  { %528 = vmatmul.bf16.vlgmr.msra.gmra.mxu1 %v1396_v53  ;;  %604 = vmatpush.bf16.msrb.mxu0 %v859_v58  ;;  %v1088_v25 = vld [vmem:[%s1696_s1 + $0xc4] sm:$0xf]  ;;  %v896_v29 = vld [vmem:[%s1696_s1 + $0xc8] sm:$0xf0]  ;;  %v1102_v30 = vld [vmem:[%s1696_s1 + $0x134] sm:$0xf]  ;;  %v835_v38 = vor.u32 %v1072_v23, %v832_v24 }
  0x25   :  { %556 = vmatmul.bf16.vlgmr.msra.gmra.mxu2 %v1398_v54  ;;  %632 = vmatpush.bf16.msrb.mxu1 %v923_v59  ;;  %v1056_v26 = vld [vmem:[%s1697_s0 + $0x24] sm:$0xf]  ;;  %v952_v31 = vld [vmem:[%s1696_s1 + $0x138] sm:$0xf0]  ;;  %v774_v32 = vld [vmem:[%s1697_s0 + $0x28] sm:$0xf]  ;;  %v899_v39 = vor.u32 %v1088_v25, %v896_v29 }
  0x26   :  { %660 = vmatpush.bf16.msrb.mxu2 %v987_v44  ;;  %584 = vmatmul.bf16.vlgmr.msra.gmra.mxu3 %v1406_v57  ;;  %v1118_v33 = vld [vmem:[%s1696_s1 + $0x1b4] sm:$0xf]  ;;  %v1016_v34 = vld [vmem:[%s1696_s1 + $0x1b8] sm:$0xf0]  ;;  %v1059_v35 = vld [vmem:[%s1697_s0 + $0x34] sm:$0xf0]  ;;  %v955_v40 = vor.u32 %v1102_v30, %v952_v31  ;;  %v1517_v44 = vor.u32 %v1058_v20, %v766_v19  ;;  %v1528_v50 = vor.u32 %v1056_v26, %v768_v27 }
  0x27   :  { %688 = vmatpush.bf16.msrb.mxu3 %v1051_v49  ;;  %v1057_v36 = vld [vmem:[%s1697_s0 + $0x2c] sm:$0xf]  ;;  %v776_v37 = vld [vmem:[%s1697_s0 + $0x38] sm:$0xf0]  ;;  %v1070_v41 = vld [vmem:[%s1696_s1 + $0x34] sm:$0xf]  ;;  %v1019_v45 = vor.u32 %v1118_v33, %v1016_v34  ;;  %v1530_v51 = vor.u32 %v1059_v35, %v774_v32 }
  0x28   :  { %605 = vmatpush.bf16.msrb.mxu0 %v851_v6  ;;  %v824_v42 = vld [vmem:[%s1696_s1 + $0x38] sm:$0xf0]  ;;  %v1086_v43 = vld [vmem:[%s1696_s1 + $0xb4] sm:$0xf]  ;;  %v1100_v47 = vld [vmem:[%s1696_s1 + $0x124] sm:$0xf]  ;;  %v1538_v56 = vor.u32 %v1057_v36, %v776_v37 }
  0x29   :  { %633 = vmatpush.bf16.msrb.mxu1 %v915_v7  ;;  %v888_v46 = vld [vmem:[%s1696_s1 + $0xb8] sm:$0xf0]  ;;  %v944_v49 = vld [vmem:[%s1696_s1 + $0x128] sm:$0xf0]  ;;  %v1116_v52 = vld [vmem:[%s1696_s1 + $0x1a4] sm:$0xf]  ;;  %v827_v58 = vor.u32 %v1070_v41, %v824_v42 }
  0x2a   :  { %661 = vmatpush.bf16.msrb.mxu2 %v979_v60  ;;  %v1008_v55 = vld [vmem:[%s1696_s1 + $0x1a8] sm:$0xf0]  ;;  %v891_v59 = vor.u32 %v1086_v43, %v888_v46  ;;  %v947_v60 = vor.u32 %v1100_v47, %v944_v49  ;;  %v1068_v61 = vld [vmem:[%s1696_s1 + $0x24] sm:$0xf]  ;;  %v1098_v3 = vld [vmem:[%s1696_s1 + $0x114] sm:$0xf] }
  0x2b   :  { %689 = vmatpush.bf16.msrb.mxu3 %v1043_v0  ;;  %v816_v62 = vld [vmem:[%s1696_s1 + $0x28] sm:$0xf0]  ;;  %v1011_v63 = vor.u32 %v1116_v52, %v1008_v55  ;;  %v1084_v0 = vld [vmem:[%s1696_s1 + $0xa4] sm:$0xf]  ;;  %v936_v4 = vld [vmem:[%s1696_s1 + $0x118] sm:$0xf0] }
  0x2c   :  { %606 = vmatpush.bf16.msrb.mxu0 %v843_v18  ;;  %v880_v1 = vld [vmem:[%s1696_s1 + $0xa8] sm:$0xf0]  ;;  %v819_v2 = vor.u32 %v1068_v61, %v816_v62  ;;  %v1114_v5 = vld [vmem:[%s1696_s1 + $0x194] sm:$0xf]  ;;  %v939_v7 = vor.u32 %v1098_v3, %v936_v4  ;;  %v808_v10 = vld [vmem:[%s1696_s1 + $0x18] sm:$0xf0] }
  0x2d   :  { %634 = vmatpush.bf16.msrb.mxu1 %v907_v21  ;;  %v883_v6 = vor.u32 %v1084_v0, %v880_v1  ;;  %v1066_v9 = vld [vmem:[%s1696_s1 + $0x14] sm:$0xf]  ;;  %v872_v13 = vld [vmem:[%s1696_s1 + $0x98] sm:$0xf0]  ;;  %v1096_v14 = vld [vmem:[%s1696_s1 + $0x104] sm:$0xf] }
  0x2e   :  { %662 = vmatpush.bf16.msrb.mxu2 %v971_v8  ;;  %v1000_v8 = vld [vmem:[%s1696_s1 + $0x198] sm:$0xf0]  ;;  %v928_v15 = vld [vmem:[%s1696_s1 + $0x108] sm:$0xf0]  ;;  %v1112_v16 = vld [vmem:[%s1696_s1 + $0x184] sm:$0xf]  ;;  %v811_v18 = vor.u32 %v1066_v9, %v808_v10 }
  0x2f   :  { %690 = vmatpush.bf16.msrb.mxu3 %v1035_v12  ;;  %v1003_v11 = vor.u32 %v1114_v5, %v1000_v8  ;;  %v1082_v12 = vld [vmem:[%s1696_s1 + $0x94] sm:$0xf]  ;;  %v992_v17 = vld [vmem:[%s1696_s1 + $0x188] sm:$0xf0]  ;;  %v931_v20 = vor.u32 %v1096_v14, %v928_v15  ;;  %v1064_v21 = vld [vmem:[%s1696_s1 + $0x4] sm:$0xf] }
  0x30   :  { %607 = vmatpush.bf16.msrb.mxu0 %v835_v38  ;;  %v875_v19 = vor.u32 %v1082_v12, %v872_v13  ;;  %v995_v23 = vor.u32 %v1112_v16, %v992_v17  ;;  %v1080_v24 = vld [vmem:[%s1696_s1 + $0x84] sm:$0xf]  ;;  %v864_v25 = vld [vmem:[%s1696_s1 + $0x88] sm:$0xf0]  ;;  %v782_v26 = vld [vmem:[%s1697_s0 + $0x40] sm:$0xf] }
  0x31   :  { %635 = vmatpush.bf16.msrb.mxu1 %v899_v39  ;;  %v1062_v27 = vld [vmem:[%s1697_s0 + $0x4c] sm:$0xf0]  ;;  %v784_v29 = vld [vmem:[%s1697_s0 + $0x50] sm:$0xf0]  ;;  %v790_v30 = vld [vmem:[%s1697_s0 + $0x48] sm:$0xf]  ;;  %v867_v35 = vor.u32 %v1080_v24, %v864_v25 }
  0x32   :  { %663 = vmatpush.bf16.msrb.mxu2 %v963_v22  ;;  %v800_v22 = vld [vmem:[%s1696_s1 + $0x8] sm:$0xf0]  ;;  %v1063_v31 = vld [vmem:[%s1697_s0 + $0x54] sm:$0xf0]  ;;  %v792_v34 = vld [vmem:[%s1697_s0 + $0x58] sm:$0xf0]  ;;  %v783_v36 = vor.u32 %v1062_v27, %v782_v26 }
  0x33   :  { %691 = vmatpush.bf16.msrb.mxu3 %v1027_v28  ;;  %505 = vmatmul.bf16.gmra.mxu0 %v1517_v44  ;;  %v1060_v28 = vld [vmem:[%s1697_s0 + $0x44] sm:$0xf]  ;;  %v803_v32 = vor.u32 %v1064_v21, %v800_v22  ;;  %v1061_v33 = vld [vmem:[%s1697_s0 + $0x4c] sm:$0xf]  ;;  %v791_v38 = vor.u32 %v1063_v31, %v790_v30 }
  0x34   :  { %533 = vmatmul.bf16.gmra.mxu1 %v1528_v50  ;;  %608 = vmatpush.bf16.msrb.mxu0 %v827_v58  ;;  %v787_v37 = vor.u32 %v1060_v28, %v784_v29  ;;  %v795_v39 = vor.u32 %v1061_v33, %v792_v34  ;;  %v27_v41 = vld [vmem:[%s1697_s0 + $0x68] sm:$0x11] }
  0x35   :  { %561 = vmatmul.bf16.gmra.mxu2 %v1530_v51  ;;  %636 = vmatpush.bf16.msrb.mxu1 %v891_v59  ;;  %v139_v46 = vunpack.c.h.b16 %v27_v41 }
  0x36   :  { %664 = vmatpush.bf16.msrb.mxu2 %v955_v40  ;;  %589 = vmatmul.bf16.gmra.mxu3 %v1538_v56  ;;  %v26_v40 = vld [vmem:[%s1697_s0 + $0x60] sm:$0x11] }
  0x37   :  { %692 = vmatpush.bf16.msrb.mxu3 %v1019_v45  ;;  %v136_v42 = vunpack.c.l.b16 %v26_v40  ;;  %v137_v43 = vunpack.c.h.b16 %v26_v40  ;;  %v138_v45 = vunpack.c.l.b16 %v27_v41  ;;  %v155_v55 = vpack.c.b16 %v139_v46, %v139_v46 }
  0x38   :  { %609 = vmatpush.bf16.msrb.mxu0 %v819_v2 }
  0x39   :  { %637 = vmatpush.bf16.msrb.mxu1 %v883_v6  ;;  %v152_v47 = vpack.c.b16 %v136_v42, %v136_v42  ;;  %v153_v49 = vpack.c.b16 %v137_v43, %v137_v43  ;;  %v154_v52 = vpack.c.b16 %v138_v45, %v138_v45 }
  0x3a   :  { %665 = vmatpush.bf16.msrb.mxu2 %v947_v60 }
  0x3b   :  { %693 = vmatpush.bf16.msrb.mxu3 %v1011_v63 }
  0x3c   :  { %610 = vmatpush.bf16.msrb.mxu0 %v811_v18 }
  0x3d   :  { %638 = vmatpush.bf16.msrb.mxu1 %v875_v19 }
  0x3e   :  { %666 = vmatpush.bf16.msrb.mxu2 %v939_v7 }
  0x3f   :  { %694 = vmatpush.bf16.msrb.mxu3 %v1003_v11 }
  0x40   :  { %611 = vmatpush.bf16.msrb.mxu0 %v803_v32 }
  0x41   :  { %639 = vmatpush.bf16.msrb.mxu1 %v867_v35 }
  0x42   :  { %667 = vmatpush.bf16.msrb.mxu2 %v931_v20 }
  0x43   :  { %695 = vmatpush.bf16.msrb.mxu3 %v995_v23  ;;  %510 = vmatmul.bf16.gmra.mxu0 %v783_v36 }
  0x44   :  { %538 = vmatmul.bf16.gmra.mxu1 %v787_v37 }
  0x45   :  { %566 = vmatmul.bf16.gmra.mxu2 %v791_v38 }
  0x46   :  { %594 = vmatmul.bf16.gmra.mxu3 %v795_v39 }
  0x53   :  { %515 = vmatmul.bf16.gmra.mxu0 %v152_v47 }
  0x54   :  { %543 = vmatmul.bf16.gmra.mxu1 %v153_v49 }
  0x55   :  { %571 = vmatmul.bf16.gmra.mxu2 %v154_v52 }
  0x56   :  { %599 = vmatmul.bf16.gmra.mxu3 %v155_v55 }
  0x63   :  { %612 = vmatmul.bf16.vlgmr.msrb.gmra.mxu0 %v1385_v48  ;;  %v92_v48 = vld [vmem:[%s1698_s2] sm:$0x3] }
  0x64   :  { %640 = vmatmul.bf16.vlgmr.msrb.gmra.mxu1 %v1396_v53  ;;  %v94_v53 = vperm.slane %v92_v48, 0 }
  0x65   :  { %668 = vmatmul.bf16.vlgmr.msrb.gmra.mxu2 %v1398_v54 }
  0x66   :  { %696 = vmatmul.bf16.vlgmr.msrb.gmra.mxu3 %v1406_v57 }
  0x73   :  { %617 = vmatmul.bf16.gmra.mxu0 %v1517_v44 }
  0x74   :  { %645 = vmatmul.bf16.gmra.mxu1 %v1528_v50 }
  0x75   :  { %673 = vmatmul.bf16.gmra.mxu2 %v1530_v51 }
  0x76   :  { %701 = vmatmul.bf16.gmra.mxu3 %v1538_v56 }
  0x83   :  { %622 = vmatmul.bf16.gmra.mxu0 %v783_v36 }
  0x84   :  { %650 = vmatmul.bf16.gmra.mxu1 %v787_v37 }
  0x85   :  { %678 = vmatmul.bf16.gmra.mxu2 %v791_v38 }
  0x86   :  { %706 = vmatmul.bf16.gmra.mxu3 %v795_v39 }
  0x93   :  { %627 = vmatmul.bf16.gmra.mxu0 %v152_v47  ;;  %v1659_v47 = vperm.slane %v92_v48, 1 }
  0x94   :  { %655 = vmatmul.bf16.gmra.mxu1 %v153_v49 }
  0x95   :  { %683 = vmatmul.bf16.gmra.mxu2 %v154_v52 }
  0x96   :  { %711 = vmatmul.bf16.gmra.mxu3 %v155_v55 }
  0xa0   :  { %v501_v54 = vpop.f32.mrf.mxu0 }
  0xa1   :  { %v502_v57 = vadd.f32 %v501_v54, %v94_v53  ;;  %v529_v44 = vpop.f32.mrf.mxu1 }
  0xa3   :  { %v530_v50 = vadd.f32 %v529_v44, %v502_v57 }
  0xa8   :  { %v557_v51 = vpop.f32.mrf.mxu2  ;;  %v503_v59 = vpop.f32.mrf.mxu0 }
  0xa9   :  { %v558_v58 = vadd.f32 %v557_v51, %v530_v50  ;;  %v585_v56 = vpop.f32.mrf.mxu3  ;;  %v504_v60 = vadd.f32 %v503_v59, %v94_v53  ;;  %v531_v61 = vpop.f32.mrf.mxu1 }
  0xab   :  { %v1645_v62 = vadd.f32 %v585_v56, %v558_v58  ;;  %v532_v63 = vadd.f32 %v531_v61, %v504_v60 }
  0xad   :  { %v716_v61 = vmax.f32 %v1645_v62, 0.0 }
  0xb0   :  { %v559_v0 = vpop.f32.mrf.mxu2  ;;  %v506_v3 = vpop.f32.mrf.mxu0 }
  0xb1   :  { %v560_v1 = vadd.f32 %v559_v0, %v532_v63  ;;  %v587_v2 = vpop.f32.mrf.mxu3  ;;  %v507_v4 = vadd.f32 %v506_v3, %v94_v53  ;;  %v534_v5 = vpop.f32.mrf.mxu1 }
  0xb3   :  { %v1647_v6 = vadd.f32 %v587_v2, %v560_v1  ;;  %v535_v7 = vadd.f32 %v534_v5, %v507_v4 }
  0xb8   :  { %v562_v8 = vpop.f32.mrf.mxu2  ;;  %v508_v11 = vpop.f32.mrf.mxu0 }
  0xb9   :  { %v563_v9 = vadd.f32 %v562_v8, %v535_v7  ;;  %v590_v10 = vpop.f32.mrf.mxu3  ;;  %v509_v12 = vadd.f32 %v508_v11, %v94_v53  ;;  %v536_v13 = vpop.f32.mrf.mxu1 }
  0xbb   :  { %v1649_v14 = vadd.f32 %v590_v10, %v563_v9  ;;  %v537_v15 = vadd.f32 %v536_v13, %v509_v12  ;;  %v718_v9 = vmax.f32 %v1647_v6, 0.0 }
  0xc0   :  { %v564_v16 = vpop.f32.mrf.mxu2  ;;  %v511_v19 = vpop.f32.mrf.mxu0 }
  0xc1   :  { %v565_v17 = vadd.f32 %v564_v16, %v537_v15  ;;  %v592_v18 = vpop.f32.mrf.mxu3  ;;  %v512_v20 = vadd.f32 %v511_v19, %v94_v53  ;;  %v539_v21 = vpop.f32.mrf.mxu1 }
  0xc3   :  { %v1651_v22 = vadd.f32 %v592_v18, %v565_v17  ;;  %v540_v23 = vadd.f32 %v539_v21, %v512_v20  ;;  %v720_v20 = vmax.f32 %v1649_v14, 0.0 }
  0xc8   :  { %v567_v24 = vpop.f32.mrf.mxu2  ;;  %v513_v27 = vpop.f32.mrf.mxu0 }
  0xc9   :  { %v568_v25 = vadd.f32 %v567_v24, %v540_v23  ;;  %v595_v26 = vpop.f32.mrf.mxu3  ;;  %v514_v28 = vadd.f32 %v513_v27, %v94_v53  ;;  %v541_v29 = vpop.f32.mrf.mxu1 }
  0xcb   :  { %v1653_v30 = vadd.f32 %v595_v26, %v568_v25  ;;  %v542_v31 = vadd.f32 %v541_v29, %v514_v28 }
  0xd0   :  { %v569_v32 = vpop.f32.mrf.mxu2  ;;  %v516_v35 = vpop.f32.mrf.mxu0 }
  0xd1   :  { %v570_v33 = vadd.f32 %v569_v32, %v542_v31  ;;  %v597_v34 = vpop.f32.mrf.mxu3  ;;  %v517_v36 = vadd.f32 %v516_v35, %v94_v53  ;;  %v544_v37 = vpop.f32.mrf.mxu1  ;;  %v722_v32 = vmax.f32 %v1651_v22, 0.0 }
  0xd3   :  { %v1655_v38 = vadd.f32 %v597_v34, %v570_v33  ;;  %v545_v39 = vadd.f32 %v544_v37, %v517_v36 }
  0xd8   :  { %v572_v40 = vpop.f32.mrf.mxu2  ;;  %v518_v43 = vpop.f32.mrf.mxu0 }
  0xd9   :  { %v573_v41 = vadd.f32 %v572_v40, %v545_v39  ;;  %v600_v42 = vpop.f32.mrf.mxu3  ;;  %v546_v45 = vpop.f32.mrf.mxu1  ;;  %v724_v43 = vmax.f32 %v1653_v30, 0.0 }
  0xdb   :  { %v1657_v46 = vadd.f32 %v600_v42, %v573_v41 }
  0xe0   :  { %v574_v49 = vpop.f32.mrf.mxu2  ;;  %v613_v55 = vpop.f32.mrf.mxu0 }
  0xe1   :  { %v602_v52 = vpop.f32.mrf.mxu3  ;;  %v614_v54 = vadd.f32 %v613_v55, %v1659_v47  ;;  %v641_v57 = vpop.f32.mrf.mxu1 }
  0xe3   :  { %v642_v53 = vadd.f32 %v641_v57, %v614_v54 }
  0xe8   :  { %v669_v44 = vpop.f32.mrf.mxu2  ;;  %v615_v58 = vpop.f32.mrf.mxu0 }
  0xe9   :  { %v670_v50 = vadd.f32 %v669_v44, %v642_v53  ;;  %v697_v51 = vpop.f32.mrf.mxu3  ;;  %v643_v56 = vpop.f32.mrf.mxu1  ;;  %v616_v60 = vadd.f32 %v615_v58, %v1659_v47 }
  0xeb   :  { %v698_v59 = vadd.f32 %v697_v51, %v670_v50  ;;  %v644_v0 = vadd.f32 %v643_v56, %v616_v60  ;;  %v726_v51 = vmax.f32 %v1655_v38, 0.0 }
  0xed   :  { %v717_v63 = vmax.f32 %v698_v59, 0.0 }
  0xef   :  { %v730_v48 = vpack.c.bf16 %v717_v63, %v716_v61 }
  0xf0   :  { %v671_v1 = vpop.f32.mrf.mxu2  ;;  %v618_v4 = vpop.f32.mrf.mxu0 }
  0xf1   :  { %737 = vst [vmem:[%s1699_s3] sm:$0xff] %v730_v48  ;;  %v672_v2 = vadd.f32 %v671_v1, %v644_v0  ;;  %v699_v3 = vpop.f32.mrf.mxu3  ;;  %v619_v5 = vadd.f32 %v618_v4, %v1659_v47  ;;  %v646_v7 = vpop.f32.mrf.mxu1  ;;  %v728_v1 = vmax.f32 %v1657_v46, 0.0 }
  0xf3   :  { %v700_v8 = vadd.f32 %v699_v3, %v672_v2  ;;  %v647_v11 = vadd.f32 %v646_v7, %v619_v5 }
  0xf5   :  { %v719_v10 = vmax.f32 %v700_v8, 0.0 }
  0xf7   :  { %v731_v62 = vpack.c.bf16 %v719_v10, %v718_v9 }
  0xf8   :  { %v674_v12 = vpop.f32.mrf.mxu2  ;;  %v620_v16 = vpop.f32.mrf.mxu0 }
  0xf9   :  { %738 = vst [vmem:[%s1699_s3 + $0x8] sm:$0xff] %v731_v62  ;;  %v675_v13 = vadd.f32 %v674_v12, %v647_v11  ;;  %v702_v15 = vpop.f32.mrf.mxu3  ;;  %v648_v17 = vpop.f32.mrf.mxu1  ;;  %v621_v19 = vadd.f32 %v620_v16, %v1659_v47 }
  0xfb   :  { %v703_v18 = vadd.f32 %v702_v15, %v675_v13  ;;  %v649_v6 = vadd.f32 %v648_v17, %v621_v19 }
  0xfd   :  { %v721_v21 = vmax.f32 %v703_v18, 0.0 }
  0xff   :  { %v732_v23 = vpack.c.bf16 %v721_v21, %v720_v20 }
 0x100   :  { %v676_v24 = vpop.f32.mrf.mxu2  ;;  %v623_v27 = vpop.f32.mrf.mxu0 }
 0x101   :  { %739 = vst [vmem:[%s1699_s3 + $0x10] sm:$0xff] %v732_v23  ;;  %v677_v25 = vadd.f32 %v676_v24, %v649_v6  ;;  %v704_v26 = vpop.f32.mrf.mxu3  ;;  %v624_v28 = vadd.f32 %v623_v27, %v1659_v47  ;;  %v651_v29 = vpop.f32.mrf.mxu1 }
 0x103   :  { %v705_v31 = vadd.f32 %v704_v26, %v677_v25  ;;  %v652_v34 = vadd.f32 %v651_v29, %v624_v28 }
 0x105   :  { %v723_v33 = vmax.f32 %v705_v31, 0.0 }
 0x107   :  { %v733_v14 = vpack.c.bf16 %v723_v33, %v722_v32 }
 0x108   :  { %v679_v35 = vpop.f32.mrf.mxu2  ;;  %v625_v39 = vpop.f32.mrf.mxu0 }
 0x109   :  { %740 = vst [vmem:[%s1699_s3 + $0x18] sm:$0xff] %v733_v14  ;;  %v680_v36 = vadd.f32 %v679_v35, %v652_v34  ;;  %v707_v37 = vpop.f32.mrf.mxu3  ;;  %v653_v40 = vpop.f32.mrf.mxu1  ;;  %v626_v42 = vadd.f32 %v625_v39, %v1659_v47 }
 0x10b   :  { %v708_v41 = vadd.f32 %v707_v37, %v680_v36  ;;  %v654_v22 = vadd.f32 %v653_v40, %v626_v42 }
 0x10d   :  { %v725_v45 = vmax.f32 %v708_v41, 0.0 }
 0x10f   :  { %v734_v49 = vpack.c.bf16 %v725_v45, %v724_v43 }
 0x110   :  { %v681_v52 = vpop.f32.mrf.mxu2  ;;  %v628_v57 = vpop.f32.mrf.mxu0 }
 0x111   :  { %741 = vst [vmem:[%s1699_s3 + $0x20] sm:$0xff] %v734_v49  ;;  %v682_v55 = vadd.f32 %v681_v52, %v654_v22  ;;  %v709_v54 = vpop.f32.mrf.mxu3  ;;  %v629_v53 = vadd.f32 %v628_v57, %v1659_v47  ;;  %v656_v44 = vpop.f32.mrf.mxu1 }
 0x113   :  { %v710_v50 = vadd.f32 %v709_v54, %v682_v55  ;;  %v657_v56 = vadd.f32 %v656_v44, %v629_v53 }
 0x115   :  { %v727_v58 = vmax.f32 %v710_v50, 0.0 }
 0x117   :  { %v735_v30 = vpack.c.bf16 %v727_v58, %v726_v51 }
 0x118   :  { %v684_v59 = vpop.f32.mrf.mxu2  ;;  %v630_v63 = vpop.f32.mrf.mxu0 }
 0x119   :  { %742 = vst [vmem:[%s1699_s3 + $0x28] sm:$0xff] %v735_v30  ;;  %v685_v60 = vadd.f32 %v684_v59, %v657_v56  ;;  %v712_v61 = vpop.f32.mrf.mxu3  ;;  %v658_v48 = vpop.f32.mrf.mxu1 }
 0x11b   :  { %v713_v0 = vadd.f32 %v712_v61, %v685_v60 }
 0x11d   :  { %v729_v47 = vmax.f32 %v713_v0, 0.0 }
 0x11f   :  { %v736_v2 = vpack.c.bf16 %v729_v47, %v728_v1 }
 0x120   :  { %v686_v3 = vpop.f32.mrf.mxu2 }
 0x121   :  { %743 = vst [vmem:[%s1699_s3 + $0x30] sm:$0x11] %v736_v2  ;;  %v714_v38 = vpop.f32.mrf.mxu3 }

// kernel: vae_forward.14
= control target key start
LH: loop header
LB: loop body
LE: loop exit
PB: predicated region body
PF: predicated region fallthrough
CT: control target
= control target key end

     0   :  { %s979_s1 = inlined_call_operand.vmem [shape: bf16[256,128], index: 1, kind: input, shape index: {}]   ;;  %s980_s2 = inlined_call_operand.vmem [shape: f32[1,128], index: 2, kind: input, shape index: {}]   ;;  %s981_s0 = inlined_call_operand.vmem [shape: bf16[162,256], index: 0, kind: input, shape index: {}]   ;;  %s982_s3 = inlined_call_operand.vmem [shape: bf16[162,128], index: 3, kind: output, shape index: {}]  }
   0x1   :  { %v638_v0 = vld [vmem:[%s979_s1 + $0x38] sm:$0xff]  ;;  %v637_v2 = vld [vmem:[%s979_s1 + $0x30] sm:$0xff]  ;;  %v636_v4 = vld [vmem:[%s979_s1 + $0x28] sm:$0xff] }
   0x2   :  { %v646_v1 = vld [vmem:[%s979_s1 + $0x78] sm:$0xff]  ;;  %274 = vmatpush.bf16.msra.mxu0 %v638_v0  ;;  %706 = vmatpush.bf16.msra.mxu2 %v638_v0  ;;  %v645_v3 = vld [vmem:[%s979_s1 + $0x70] sm:$0xff]  ;;  %v644_v5 = vld [vmem:[%s979_s1 + $0x68] sm:$0xff] }
   0x3   :  { %337 = vmatpush.bf16.msra.mxu1 %v646_v1  ;;  %714 = vmatpush.bf16.msra.mxu3 %v646_v1  ;;  %v635_v6 = vld [vmem:[%s979_s1 + $0x20] sm:$0xff]  ;;  %v634_v8 = vld [vmem:[%s979_s1 + $0x18] sm:$0xff]  ;;  %v633_v10 = vld [vmem:[%s979_s1 + $0x10] sm:$0xff] }
   0x4   :  { %v643_v7 = vld [vmem:[%s979_s1 + $0x60] sm:$0xff]  ;;  %v642_v9 = vld [vmem:[%s979_s1 + $0x58] sm:$0xff]  ;;  %v641_v11 = vld [vmem:[%s979_s1 + $0x50] sm:$0xff] }
   0x5   :  { %v632_v12 = vld [vmem:[%s979_s1 + $0x8] sm:$0xff]  ;;  %v631_v14 = vld [vmem:[%s979_s1] sm:$0xff]  ;;  %v509_v18 = vld [vmem:[%s981_s0 + $0x50] sm:$0xf] }
   0x6   :  { %275 = vmatpush.bf16.msra.mxu0 %v637_v2  ;;  %707 = vmatpush.bf16.msra.mxu2 %v637_v2  ;;  %v640_v13 = vld [vmem:[%s979_s1 + $0x48] sm:$0xff]  ;;  %v639_v15 = vld [vmem:[%s979_s1 + $0x40] sm:$0xff]  ;;  %v622_v19 = vld [vmem:[%s981_s0 + $0x54] sm:$0xf0] }
   0x7   :  { %338 = vmatpush.bf16.msra.mxu1 %v645_v3  ;;  %715 = vmatpush.bf16.msra.mxu3 %v645_v3  ;;  %v469_v16 = vld [vmem:[%s981_s0] sm:$0xf]  ;;  %v612_v17 = vld [vmem:[%s981_s0 + $0x4] sm:$0xf0]  ;;  %v611_v20 = vld [vmem:[%s981_s0 + $0x4] sm:$0xf]  ;;  %v510_v25 = vor.u32 %v622_v19, %v509_v18 }
   0x8   :  { %v471_v21 = vld [vmem:[%s981_s0 + $0x8] sm:$0xf0]  ;;  %v623_v22 = vld [vmem:[%s981_s0 + $0x64] sm:$0xf]  ;;  %v470_v24 = vor.u32 %v612_v17, %v469_v16  ;;  %v477_v28 = vld [vmem:[%s981_s0 + $0x10] sm:$0xf] }
   0x9   :  { %v519_v23 = vld [vmem:[%s981_s0 + $0x68] sm:$0xf0]  ;;  %v474_v26 = vor.u32 %v611_v20, %v471_v21  ;;  %v614_v29 = vld [vmem:[%s981_s0 + $0x14] sm:$0xf0]  ;;  %v517_v30 = vld [vmem:[%s981_s0 + $0x60] sm:$0xf] }
   0xa   :  { %276 = vmatpush.bf16.msra.mxu0 %v636_v4  ;;  %708 = vmatpush.bf16.msra.mxu2 %v636_v4  ;;  %v522_v27 = vor.u32 %v623_v22, %v519_v23  ;;  %v624_v31 = vld [vmem:[%s981_s0 + $0x64] sm:$0xf0]  ;;  %v613_v32 = vld [vmem:[%s981_s0 + $0x14] sm:$0xf]  ;;  %v479_v33 = vld [vmem:[%s981_s0 + $0x18] sm:$0xf0]  ;;  %v478_v36 = vor.u32 %v614_v29, %v477_v28 }
   0xb   :  { %339 = vmatpush.bf16.msra.mxu1 %v644_v5  ;;  %716 = vmatpush.bf16.msra.mxu3 %v644_v5  ;;  %v625_v34 = vld [vmem:[%s981_s0 + $0x74] sm:$0xf]  ;;  %v527_v35 = vld [vmem:[%s981_s0 + $0x78] sm:$0xf0]  ;;  %v518_v37 = vor.u32 %v624_v31, %v517_v30  ;;  %v482_v38 = vor.u32 %v613_v32, %v479_v33  ;;  %v485_v40 = vld [vmem:[%s981_s0 + $0x20] sm:$0xf] }
   0xc   :  { %v530_v39 = vor.u32 %v625_v34, %v527_v35  ;;  %v616_v41 = vld [vmem:[%s981_s0 + $0x24] sm:$0xf0]  ;;  %v525_v42 = vld [vmem:[%s981_s0 + $0x70] sm:$0xf]  ;;  %v626_v43 = vld [vmem:[%s981_s0 + $0x74] sm:$0xf0] }
   0xd   :  { %v615_v44 = vld [vmem:[%s981_s0 + $0x24] sm:$0xf]  ;;  %v487_v45 = vld [vmem:[%s981_s0 + $0x28] sm:$0xf0]  ;;  %v486_v48 = vor.u32 %v616_v41, %v485_v40  ;;  %v526_v49 = vor.u32 %v626_v43, %v525_v42  ;;  %v493_v52 = vld [vmem:[%s981_s0 + $0x30] sm:$0xf] }
   0xe   :  { %277 = vmatpush.bf16.msra.mxu0 %v635_v6  ;;  %709 = vmatpush.bf16.msra.mxu2 %v635_v6  ;;  %v627_v46 = vld [vmem:[%s981_s0 + $0x84] sm:$0xf]  ;;  %v535_v47 = vld [vmem:[%s981_s0 + $0x88] sm:$0xf0]  ;;  %v490_v50 = vor.u32 %v615_v44, %v487_v45  ;;  %v618_v53 = vld [vmem:[%s981_s0 + $0x34] sm:$0xf0] }
   0xf   :  { %340 = vmatpush.bf16.msra.mxu1 %v643_v7  ;;  %717 = vmatpush.bf16.msra.mxu3 %v643_v7  ;;  %v538_v51 = vor.u32 %v627_v46, %v535_v47  ;;  %v533_v54 = vld [vmem:[%s981_s0 + $0x80] sm:$0xf]  ;;  %v628_v55 = vld [vmem:[%s981_s0 + $0x84] sm:$0xf0]  ;;  %v617_v56 = vld [vmem:[%s981_s0 + $0x34] sm:$0xf]  ;;  %v494_v60 = vor.u32 %v618_v53, %v493_v52 }
  0x10   :  { %v495_v57 = vld [vmem:[%s981_s0 + $0x38] sm:$0xf0]  ;;  %v629_v58 = vld [vmem:[%s981_s0 + $0x94] sm:$0xf]  ;;  %v534_v61 = vor.u32 %v628_v55, %v533_v54  ;;  %v34_v0 = vld [vmem:[%s981_s0 + $0xa0] sm:$0x11] }
  0x11   :  { %v543_v59 = vld [vmem:[%s981_s0 + $0x98] sm:$0xf0]  ;;  %v498_v62 = vor.u32 %v617_v56, %v495_v57  ;;  %v501_v1 = vld [vmem:[%s981_s0 + $0x40] sm:$0xf]  ;;  %v620_v2 = vld [vmem:[%s981_s0 + $0x44] sm:$0xf0]  ;;  %v133_v5 = vunpack.c.h.b16 %v34_v0 }
  0x12   :  { %278 = vmatpush.bf16.msra.mxu0 %v634_v8  ;;  %710 = vmatpush.bf16.msra.mxu2 %v634_v8  ;;  %v546_v63 = vor.u32 %v629_v58, %v543_v59  ;;  %v541_v3 = vld [vmem:[%s981_s0 + $0x90] sm:$0xf]  ;;  %v630_v4 = vld [vmem:[%s981_s0 + $0x94] sm:$0xf0]  ;;  %v619_v6 = vld [vmem:[%s981_s0 + $0x44] sm:$0xf]  ;;  %v502_v8 = vor.u32 %v620_v2, %v501_v1 }
  0x13   :  { %341 = vmatpush.bf16.msra.mxu1 %v642_v9  ;;  %718 = vmatpush.bf16.msra.mxu3 %v642_v9  ;;  %v503_v7 = vld [vmem:[%s981_s0 + $0x48] sm:$0xf0]  ;;  %v542_v9 = vor.u32 %v630_v4, %v541_v3  ;;  %v917_v18 = vld [vmem:[%s980_s2] ss:$0 sm:$0xff] }
  0x16   :  { %279 = vmatpush.bf16.msra.mxu0 %v633_v10  ;;  %711 = vmatpush.bf16.msra.mxu2 %v633_v10  ;;  %v506_v10 = vor.u32 %v619_v6, %v503_v7 }
  0x17   :  { %342 = vmatpush.bf16.msra.mxu1 %v641_v11  ;;  %719 = vmatpush.bf16.msra.mxu3 %v641_v11  ;;  %v155_v11 = vpack.c.b16 %v133_v5, %v133_v5 }
  0x1a   :  { %280 = vmatpush.bf16.msra.mxu0 %v632_v12  ;;  %712 = vmatpush.bf16.msra.mxu2 %v632_v12  ;;  %v132_v12 = vunpack.c.l.b16 %v34_v0 }
  0x1b   :  { %343 = vmatpush.bf16.msra.mxu1 %v640_v13  ;;  %720 = vmatpush.bf16.msra.mxu3 %v640_v13  ;;  %v621_v13 = vld [vmem:[%s981_s0 + $0x54] sm:$0xf] }
  0x1e   :  { %281 = vmatpush.bf16.msra.mxu0 %v631_v14  ;;  %713 = vmatpush.bf16.msra.mxu2 %v631_v14  ;;  %v511_v14 = vld [vmem:[%s981_s0 + $0x58] sm:$0xf0] }
  0x1f   :  { %344 = vmatpush.bf16.msra.mxu1 %v639_v15  ;;  %721 = vmatpush.bf16.msra.mxu3 %v639_v15  ;;  %v154_v15 = vpack.c.b16 %v132_v12, %v132_v12  ;;  %v514_v16 = vor.u32 %v621_v13, %v511_v14 }
  0x21   :  { %282 = vmatmul.bf16.vlgmr.msra.gmra.mxu0 %v470_v24  ;;  %307 = vmatmul.bf16.vlgmr.msra.gmra.mxu2 %v510_v25 }
  0x22   :  { %345 = vmatmul.bf16.vlgmr.msra.gmra.mxu1 %v474_v26  ;;  %375 = vmatmul.bf16.vlgmr.msra.gmra.mxu3 %v522_v27 }
  0x31   :  { %287 = vmatmul.bf16.gmra.mxu0 %v478_v36  ;;  %312 = vmatmul.bf16.gmra.mxu2 %v518_v37 }
  0x32   :  { %350 = vmatmul.bf16.gmra.mxu1 %v482_v38  ;;  %380 = vmatmul.bf16.gmra.mxu3 %v530_v39 }
  0x41   :  { %292 = vmatmul.bf16.gmra.mxu0 %v486_v48  ;;  %317 = vmatmul.bf16.gmra.mxu2 %v526_v49 }
  0x42   :  { %355 = vmatmul.bf16.gmra.mxu1 %v490_v50  ;;  %385 = vmatmul.bf16.gmra.mxu3 %v538_v51 }
  0x51   :  { %297 = vmatmul.bf16.gmra.mxu0 %v494_v60  ;;  %322 = vmatmul.bf16.gmra.mxu2 %v534_v61 }
  0x52   :  { %360 = vmatmul.bf16.gmra.mxu1 %v498_v62  ;;  %390 = vmatmul.bf16.gmra.mxu3 %v546_v63 }
  0x61   :  { %302 = vmatmul.bf16.gmra.mxu0 %v502_v8  ;;  %327 = vmatmul.bf16.gmra.mxu2 %v542_v9 }
  0x62   :  { %365 = vmatmul.bf16.gmra.mxu1 %v506_v10  ;;  %395 = vmatmul.bf16.gmra.mxu3 %v155_v11 }
  0x71   :  { %332 = vmatmul.bf16.gmra.mxu2 %v154_v15 }
  0x72   :  { %370 = vmatmul.bf16.gmra.mxu1 %v514_v16 }
  0x9e   :  { %v283_v17 = vpop.f32.mrf.mxu0 }
  0x9f   :  { %v346_v19 = vpop.f32.mrf.mxu1  ;;  %v284_v20 = vadd.f32 %v917_v18, %v283_v17 }
  0xa1   :  { %v347_v24 = vadd.f32 %v346_v19, %v284_v20 }
  0xa3   :  { %v400_v28 = vmax.f32 %v347_v24, 0.0 }
  0xa4   :  { %v920_v21 = vpop.f32.mrf.mxu2 }
  0xa5   :  { %v376_v22 = vpop.f32.mrf.mxu3 }
  0xa6   :  { %v285_v23 = vpop.f32.mrf.mxu0 }
  0xa7   :  { %v286_v25 = vadd.f32 %v917_v18, %v285_v23  ;;  %v348_v26 = vpop.f32.mrf.mxu1 }
  0xa9   :  { %v349_v27 = vadd.f32 %v348_v26, %v286_v25 }
  0xab   :  { %v401_v29 = vmax.f32 %v349_v27, 0.0 }
  0xac   :  { %v923_v30 = vpop.f32.mrf.mxu2 }
  0xad   :  { %v650_v31 = vpack.c.bf16 %v401_v29, %v400_v28  ;;  %v378_v32 = vpop.f32.mrf.mxu3 }
  0xae   :  { %v288_v33 = vpop.f32.mrf.mxu0 }
  0xaf   :  { %651 = vst [vmem:[%s982_s3] sm:$0xff] %v650_v31   ;;  %v351_v34 = vpop.f32.mrf.mxu1  ;;  %v289_v35 = vadd.f32 %v917_v18, %v288_v33 }
  0xb1   :  { %v352_v39 = vadd.f32 %v351_v34, %v289_v35 }
  0xb3   :  { %v402_v44 = vmax.f32 %v352_v39, 0.0 }
  0xb4   :  { %v313_v36 = vpop.f32.mrf.mxu2 }
  0xb5   :  { %v381_v37 = vpop.f32.mrf.mxu3  ;;  %v314_v42 = vadd.f32 %v917_v18, %v313_v36 }
  0xb6   :  { %v290_v38 = vpop.f32.mrf.mxu0 }
  0xb7   :  { %v291_v40 = vadd.f32 %v917_v18, %v290_v38  ;;  %v353_v41 = vpop.f32.mrf.mxu1  ;;  %v377_v47 = vadd.f32 %v376_v22, %v314_v42 }
  0xb9   :  { %v354_v43 = vadd.f32 %v353_v41, %v291_v40  ;;  %v412_v54 = vmax.f32 %v377_v47, 0.0 }
  0xbb   :  { %v403_v45 = vmax.f32 %v354_v43, 0.0 }
  0xbc   :  { %v315_v46 = vpop.f32.mrf.mxu2 }
  0xbd   :  { %v655_v48 = vpack.c.bf16 %v403_v45, %v402_v44  ;;  %v316_v49 = vadd.f32 %v917_v18, %v315_v46  ;;  %v383_v50 = vpop.f32.mrf.mxu3 }
  0xbe   :  { %v293_v51 = vpop.f32.mrf.mxu0 }
  0xbf   :  { %697 = vst [vmem:[%s982_s3 + $0x8] sm:$0xff] %v655_v48   ;;  %v379_v52 = vadd.f32 %v378_v32, %v316_v49  ;;  %v356_v53 = vpop.f32.mrf.mxu1  ;;  %v294_v57 = vadd.f32 %v917_v18, %v293_v51 }
  0xc1   :  { %v413_v55 = vmax.f32 %v379_v52, 0.0  ;;  %v357_v61 = vadd.f32 %v356_v53, %v294_v57 }
  0xc3   :  { %v680_v56 = vpack.c.bf16 %v413_v55, %v412_v54  ;;  %v404_v2 = vmax.f32 %v357_v61, 0.0  ;;  %v309_v61 = vadd.f32 %v917_v18, %v920_v21 }
  0xc4   :  { %v318_v58 = vpop.f32.mrf.mxu2 }
  0xc5   :  { %702 = vst [vmem:[%s982_s3 + $0x30] sm:$0xff] %v680_v56   ;;  %v386_v59 = vpop.f32.mrf.mxu3  ;;  %v319_v0 = vadd.f32 %v917_v18, %v318_v58 }
  0xc6   :  { %v295_v60 = vpop.f32.mrf.mxu0 }
  0xc7   :  { %v296_v62 = vadd.f32 %v917_v18, %v295_v60  ;;  %v358_v63 = vpop.f32.mrf.mxu1  ;;  %v382_v5 = vadd.f32 %v381_v37, %v319_v0  ;;  %v311_v0 = vadd.f32 %v917_v18, %v923_v30 }
  0xc9   :  { %v359_v1 = vadd.f32 %v358_v63, %v296_v62  ;;  %v414_v12 = vmax.f32 %v382_v5, 0.0 }
  0xcb   :  { %v405_v3 = vmax.f32 %v359_v1, 0.0 }
  0xcc   :  { %v320_v4 = vpop.f32.mrf.mxu2 }
  0xcd   :  { %v660_v6 = vpack.c.bf16 %v405_v3, %v404_v2  ;;  %v321_v7 = vadd.f32 %v917_v18, %v320_v4  ;;  %v388_v8 = vpop.f32.mrf.mxu3 }
  0xce   :  { %v298_v9 = vpop.f32.mrf.mxu0 }
  0xcf   :  { %698 = vst [vmem:[%s982_s3 + $0x10] sm:$0xff] %v660_v6   ;;  %v384_v10 = vadd.f32 %v383_v50, %v321_v7  ;;  %v361_v11 = vpop.f32.mrf.mxu1  ;;  %v299_v15 = vadd.f32 %v917_v18, %v298_v9 }
  0xd1   :  { %v415_v13 = vmax.f32 %v384_v10, 0.0  ;;  %v362_v20 = vadd.f32 %v361_v11, %v299_v15 }
  0xd3   :  { %v685_v14 = vpack.c.bf16 %v415_v13, %v414_v12  ;;  %v406_v26 = vmax.f32 %v362_v20, 0.0 }
  0xd4   :  { %v323_v16 = vpop.f32.mrf.mxu2 }
  0xd5   :  { %703 = vst [vmem:[%s982_s3 + $0x38] sm:$0xff] %v685_v14   ;;  %v391_v17 = vpop.f32.mrf.mxu3  ;;  %v324_v24 = vadd.f32 %v917_v18, %v323_v16 }
  0xd6   :  { %v300_v19 = vpop.f32.mrf.mxu0 }
  0xd7   :  { %v301_v22 = vadd.f32 %v917_v18, %v300_v19  ;;  %v363_v23 = vpop.f32.mrf.mxu1  ;;  %v387_v29 = vadd.f32 %v386_v59, %v324_v24 }
  0xd9   :  { %v364_v25 = vadd.f32 %v363_v23, %v301_v22  ;;  %v416_v37 = vmax.f32 %v387_v29, 0.0 }
  0xdb   :  { %v407_v27 = vmax.f32 %v364_v25, 0.0 }
  0xdc   :  { %v325_v28 = vpop.f32.mrf.mxu2 }
  0xdd   :  { %v665_v31 = vpack.c.bf16 %v407_v27, %v406_v26  ;;  %v326_v32 = vadd.f32 %v917_v18, %v325_v28  ;;  %v393_v33 = vpop.f32.mrf.mxu3 }
  0xde   :  { %v303_v34 = vpop.f32.mrf.mxu0 }
  0xdf   :  { %699 = vst [vmem:[%s982_s3 + $0x18] sm:$0xff] %v665_v31   ;;  %v389_v35 = vadd.f32 %v388_v8, %v326_v32  ;;  %v366_v36 = vpop.f32.mrf.mxu1  ;;  %v304_v40 = vadd.f32 %v917_v18, %v303_v34 }
  0xe1   :  { %v417_v38 = vmax.f32 %v389_v35, 0.0  ;;  %v367_v44 = vadd.f32 %v366_v36, %v304_v40 }
  0xe3   :  { %v690_v39 = vpack.c.bf16 %v417_v38, %v416_v37  ;;  %v408_v49 = vmax.f32 %v367_v44, 0.0 }
  0xe4   :  { %v328_v41 = vpop.f32.mrf.mxu2 }
  0xe5   :  { %704 = vst [vmem:[%s982_s3 + $0x40] sm:$0xff] %v690_v39   ;;  %v396_v42 = vpop.f32.mrf.mxu3  ;;  %v329_v47 = vadd.f32 %v917_v18, %v328_v41 }
  0xe6   :  { %v305_v43 = vpop.f32.mrf.mxu0 }
  0xe7   :  { %v306_v45 = vadd.f32 %v917_v18, %v305_v43  ;;  %v368_v46 = vpop.f32.mrf.mxu1  ;;  %v392_v52 = vadd.f32 %v391_v17, %v329_v47 }
  0xe9   :  { %v369_v48 = vadd.f32 %v368_v46, %v306_v45  ;;  %v418_v58 = vmax.f32 %v392_v52, 0.0 }
  0xeb   :  { %v409_v50 = vmax.f32 %v369_v48, 0.0 }
  0xec   :  { %v330_v51 = vpop.f32.mrf.mxu2 }
  0xed   :  { %v670_v53 = vpack.c.bf16 %v409_v50, %v408_v49  ;;  %v331_v54 = vadd.f32 %v917_v18, %v330_v51  ;;  %v398_v55 = vpop.f32.mrf.mxu3 }
  0xef   :  { %700 = vst [vmem:[%s982_s3 + $0x20] sm:$0xff] %v670_v53   ;;  %v394_v56 = vadd.f32 %v393_v33, %v331_v54  ;;  %v371_v57 = vpop.f32.mrf.mxu1 }
  0xf0   :  { %v372_v1 = vadd.f32 %v371_v57, %v309_v61 }
  0xf1   :  { %v419_v59 = vmax.f32 %v394_v56, 0.0 }
  0xf2   :  { %v410_v6 = vmax.f32 %v372_v1, 0.0 }
  0xf3   :  { %v695_v60 = vpack.c.bf16 %v419_v59, %v418_v58 }
  0xf4   :  { %v333_v62 = vpop.f32.mrf.mxu2 }
  0xf5   :  { %705 = vst [vmem:[%s982_s3 + $0x48] sm:$0xff] %v695_v60   ;;  %v334_v63 = vadd.f32 %v917_v18, %v333_v62 }
  0xf7   :  { %v397_v2 = vadd.f32 %v396_v42, %v334_v63  ;;  %v373_v3 = vpop.f32.mrf.mxu1 }
  0xf8   :  { %v374_v4 = vadd.f32 %v373_v3, %v311_v0 }
  0xf9   :  { %v420_v5 = vmax.f32 %v397_v2, 0.0 }
  0xfa   :  { %v411_v7 = vmax.f32 %v374_v4, 0.0 }
  0xfb   :  { %v441_v8 = vpack.c.bf16 %v420_v5, %v420_v5 }
  0xfc   :  { %v675_v9 = vpack.c.bf16 %v411_v7, %v410_v6  ;;  %v335_v21 = vpop.f32.mrf.mxu2 }
  0xfd   :  { %462 = vst [vmem:[%s982_s3 + $0x50] sm:$0x1] %v441_v8 }
  0xfe   :  { %701 = vst [vmem:[%s982_s3 + $0x28] sm:$0xff] %v675_v9  }

// kernel: vae_forward.15
= control target key start
LH: loop header
LB: loop body
LE: loop exit
PB: predicated region body
PF: predicated region fallthrough
CT: control target
= control target key end

     0   :  { %s1313_s12 = smov 0   ;;  %s1315_s13 = smov 0   ;;  %s1606_s0 = inlined_call_operand.vmem [shape: bf16[578,128], index: 0, kind: input, shape index: {}]   ;;  %s1607_s1 = inlined_call_operand.vmem [shape: bf16[128,128], index: 1, kind: input, shape index: {}]   ;;  %s1608_s2 = inlined_call_operand.vmem [shape: f32[1,128], index: 2, kind: input, shape index: {}]   ;;  %s1609_s3 = inlined_call_operand.vmem [shape: f32[578,128], index: 3, kind: output, shape index: {}]  }
   0x1   :  { %s1317_s14 = smov 0  }
   0x2 LB: > { %s1326_s15 = sadd.s32 4294967295, %s1259_s14   ;;  %s1328_s16 = sadd.s32 1, %s1259_s14   ;;  %s1259_s14 = sphi %s1317_s14, %s1618_s14   ;;  %s1255_s13 = sphi %s1315_s13, %s1617_s13   ;;  %s1251_s12 = sphi %s1313_s12, %s1616_s12  }
   0x3   : > { %s85_s17 = ssub.s32 %s1259_s14, %s1328_s16  ;;  %s88_s18 = sadd.s32 1, %s1255_s13 }
   0x4   : > { %p86_p0 = scmp.eq.s32.totalorder %s85_s17, 0  ;;  %p98_p1 = scmp.ne.s32.totalorder %s1255_s13, %s1251_s12 }
   0x5   : > { %p99_p2 = scmp.eq.s32.totalorder %s1326_s15, 2  ;;  %p884_p3 = scmp.ge.s32.totalorder %s1259_s14, 1 }
   0x6   : > { %s1336_s19 = scalar_select %p86_p0, %s1255_s13, %s88_s18  }
   0x7   : > { %p1338_p4 = por %p99_p2, %p98_p1  ;;  %p146_p5 = scmp.lt.s32.totalorder %s1259_s14, 4 }
   0x9   : > { %p147_p6 = pnand %p884_p3, %p146_p5 }
   0xa   : > { %s1355_s29 = sshll.u32 (!%p147_p6), %s1326_s15, 5  ;;  %s170_s24 = sand.u32 (!%p147_p6), 1, %s1251_s12  }
   0xb   : > { %150 = sbr.rel (%p147_p6) target bundleno = 312 (0x138), region = 32  ;;  %p178_p7 = scmp.lt.s32.totalorder (!%p147_p6), %s1355_s29, 72 }
   0xc   : > { %s885_s25 = sshll.u32 (!%p147_p6), %s170_s24, 8 }
   0xd   : > { %s1404_s12 = scalar_lea.vmem (!%p147_p6), [#allocation2], %s885_s25  }
  0x10   : > { %v1024_v0 = vld [vmem:[%s1607_s1 + $0x38] sm:$0xff]  ;;  %v1023_v1 = vld [vmem:[%s1607_s1 + $0x30] sm:$0xff]  ;;  %v1022_v2 = vld [vmem:[%s1607_s1 + $0x28] sm:$0xff]  ;;  %s179_s7 = scalar_select %p178_p7, %s1355_s29, 72 }
  0x11   : > { %388 = vmatpush.bf16.msra.mxu0 %v1024_v0  ;;  %1028 = vmatpush.bf16.msra.mxu1 %v1024_v0  ;;  %v1021_v3 = vld [vmem:[%s1607_s1 + $0x20] sm:$0xff]  ;;  %v1020_v4 = vld [vmem:[%s1607_s1 + $0x18] sm:$0xff]  ;;  %v1019_v5 = vld [vmem:[%s1607_s1 + $0x10] sm:$0xff]  ;;  %s549_s26 = ssub.s32 (%p1338_p4), 73, %s1355_s29  ;;  %s1025_s27 = sshll.u32 (%p1338_p4), %s1326_s15, 8 }
  0x12   : > { %1029 = vmatpush.bf16.msra.mxu2 %v1024_v0  ;;  %1030 = vmatpush.bf16.msra.mxu3 %v1024_v0  ;;  %v1018_v6 = vld [vmem:[%s1607_s1 + $0x8] sm:$0xff]  ;;  %s887_s10 = sshll.u32 %s179_s7, 2  ;;  %v1017_v7 = vld [vmem:[%s1607_s1] sm:$0xff]  ;;  %p550_p8 = scmp.lt.s32.totalorder (%p1338_p4), %s549_s26, 32 }
  0x13   : > { %s1374_s21 = scalar_lea.vmem %s1606_s0, %s887_s10  ;;  %v1395_v24 = vld [vmem:[%s1608_s2] ss:$0 sm:$0xff]  ;;  %s1471_s4 = scalar_lea.vmem (%p1338_p4), %s1609_s3, %s1025_s27  }
  0x14   : > { %v1001_v8 = vld [vmem:[%s1374_s21] sm:$0xff]  ;;  %v1002_v12 = vld [vmem:[%s1374_s21 + $0x8] sm:$0xff]  ;;  %v1003_v16 = vld [vmem:[%s1374_s21 + $0x10] sm:$0xff] }
  0x15   : > { %389 = vmatpush.bf16.msra.mxu0 %v1023_v1  ;;  %1031 = vmatpush.bf16.msra.mxu1 %v1023_v1  ;;  %v1005_v9 = vld [vmem:[%s1374_s21 + $0x20] sm:$0xff]  ;;  %v1006_v13 = vld [vmem:[%s1374_s21 + $0x28] sm:$0xff]  ;;  %v1007_v17 = vld [vmem:[%s1374_s21 + $0x30] sm:$0xff] }
  0x16   : > { %1032 = vmatpush.bf16.msra.mxu2 %v1023_v1  ;;  %1033 = vmatpush.bf16.msra.mxu3 %v1023_v1  ;;  %v1009_v10 = vld [vmem:[%s1374_s21 + $0x40] sm:$0xff]  ;;  %v1010_v14 = vld [vmem:[%s1374_s21 + $0x48] sm:$0xff]  ;;  %v1011_v18 = vld [vmem:[%s1374_s21 + $0x50] sm:$0xff] }
  0x17   : > { %v1013_v11 = vld [vmem:[%s1374_s21 + $0x60] sm:$0xff]  ;;  %v1014_v15 = vld [vmem:[%s1374_s21 + $0x68] sm:$0xff]  ;;  %v1015_v19 = vld [vmem:[%s1374_s21 + $0x70] sm:$0xff] }
  0x18   : > { %v1004_v20 = vld [vmem:[%s1374_s21 + $0x18] sm:$0xff] }
  0x19   : > { %390 = vmatpush.bf16.msra.mxu0 %v1022_v2  ;;  %1034 = vmatpush.bf16.msra.mxu1 %v1022_v2  ;;  %v1008_v21 = vld [vmem:[%s1374_s21 + $0x38] sm:$0xff] }
  0x1a   : > { %1035 = vmatpush.bf16.msra.mxu2 %v1022_v2  ;;  %1036 = vmatpush.bf16.msra.mxu3 %v1022_v2  ;;  %v1012_v22 = vld [vmem:[%s1374_s21 + $0x58] sm:$0xff] }
  0x1b   : > { %v1016_v23 = vld [vmem:[%s1374_s21 + $0x78] sm:$0xff] }
  0x1d   : > { %391 = vmatpush.bf16.msra.mxu0 %v1021_v3  ;;  %1037 = vmatpush.bf16.msra.mxu1 %v1021_v3 }
  0x1e   : > { %1038 = vmatpush.bf16.msra.mxu2 %v1021_v3  ;;  %1039 = vmatpush.bf16.msra.mxu3 %v1021_v3 }
  0x21   : > { %392 = vmatpush.bf16.msra.mxu0 %v1020_v4  ;;  %1040 = vmatpush.bf16.msra.mxu1 %v1020_v4 }
  0x22   : > { %1041 = vmatpush.bf16.msra.mxu2 %v1020_v4  ;;  %1042 = vmatpush.bf16.msra.mxu3 %v1020_v4 }
  0x25   : > { %393 = vmatpush.bf16.msra.mxu0 %v1019_v5  ;;  %1043 = vmatpush.bf16.msra.mxu1 %v1019_v5 }
  0x26   : > { %1044 = vmatpush.bf16.msra.mxu2 %v1019_v5  ;;  %1045 = vmatpush.bf16.msra.mxu3 %v1019_v5 }
  0x29   : > { %394 = vmatpush.bf16.msra.mxu0 %v1018_v6  ;;  %1046 = vmatpush.bf16.msra.mxu1 %v1018_v6 }
  0x2a   : > { %1047 = vmatpush.bf16.msra.mxu2 %v1018_v6  ;;  %1048 = vmatpush.bf16.msra.mxu3 %v1018_v6 }
  0x2d   : > { %395 = vmatpush.bf16.msra.mxu0 %v1017_v7  ;;  %1049 = vmatpush.bf16.msra.mxu1 %v1017_v7 }
  0x2e   : > { %1050 = vmatpush.bf16.msra.mxu2 %v1017_v7  ;;  %1051 = vmatpush.bf16.msra.mxu3 %v1017_v7 }
  0x30   : > { %396 = vmatmul.bf16.vlgmr.msra.gmra.mxu0 %v1001_v8  ;;  %416 = vmatmul.bf16.vlgmr.msra.gmra.mxu1 %v1005_v9 }
  0x31   : > { %436 = vmatmul.bf16.vlgmr.msra.gmra.mxu2 %v1009_v10  ;;  %456 = vmatmul.bf16.vlgmr.msra.gmra.mxu3 %v1013_v11 }
  0x40   : > { %401 = vmatmul.bf16.gmra.mxu0 %v1002_v12  ;;  %421 = vmatmul.bf16.gmra.mxu1 %v1006_v13 }
  0x41   : > { %441 = vmatmul.bf16.gmra.mxu2 %v1010_v14  ;;  %461 = vmatmul.bf16.gmra.mxu3 %v1014_v15 }
  0x50   : > { %406 = vmatmul.bf16.gmra.mxu0 %v1003_v16  ;;  %426 = vmatmul.bf16.gmra.mxu1 %v1007_v17 }
  0x51   : > { %446 = vmatmul.bf16.gmra.mxu2 %v1011_v18  ;;  %466 = vmatmul.bf16.gmra.mxu3 %v1015_v19 }
  0x60   : > { %411 = vmatmul.bf16.gmra.mxu0 %v1004_v20  ;;  %431 = vmatmul.bf16.gmra.mxu1 %v1008_v21 }
  0x61   : > { %451 = vmatmul.bf16.gmra.mxu2 %v1012_v22  ;;  %471 = vmatmul.bf16.gmra.mxu3 %v1016_v23 }
  0xad   : > { %v397_v25 = vpop.f32.mrf.mxu0  ;;  %v417_v26 = vpop.f32.mrf.mxu1 }
  0xae   : > { %v398_v27 = vadd.f32 %v1395_v24, %v397_v25  ;;  %v418_v28 = vadd.f32 %v1395_v24, %v417_v26 }
  0xb0   : > { %1141 = vtanh.f32 %v398_v27 }
  0xb1   : > { %1143 = vtanh.f32 %v418_v28 }
  0xb4   : > { %v437_v29 = vpop.f32.mrf.mxu2  ;;  %v457_v30 = vpop.f32.mrf.mxu3 }
  0xb5   : > { %v438_v31 = vadd.f32 %v1395_v24, %v437_v29  ;;  %v458_v32 = vadd.f32 %v1395_v24, %v457_v30  ;;  %v399_v33 = vpop.f32.mrf.mxu0  ;;  %v419_v34 = vpop.f32.mrf.mxu1 }
  0xb6   : > { %v1142_v35 = vpop.eup %1141  ;;  %v400_v36 = vadd.f32 %v1395_v24, %v399_v33  ;;  %v420_v37 = vadd.f32 %v1395_v24, %v419_v34 }
  0xb7   : > { %v1144_v38 = vpop.eup %1143  ;;  %509 = vst [vmem:[%s1404_s12] sm:$0xff] %v1142_v35  ;;  %1145 = vtanh.f32 %v438_v31 }
  0xb8   : > { %517 = vst [vmem:[%s1404_s12 + $0x40] sm:$0xff] %v1144_v38  ;;  %1147 = vtanh.f32 %v458_v32 }
  0xb9   : > { %1149 = vtanh.f32 %v400_v36 }
  0xba   : > { %1151 = vtanh.f32 %v420_v37 }
  0xbc   : > { %v439_v39 = vpop.f32.mrf.mxu2  ;;  %v459_v40 = vpop.f32.mrf.mxu3 }
  0xbd   : > { %v1146_v41 = vpop.eup %1145  ;;  %v440_v42 = vadd.f32 %v1395_v24, %v439_v39  ;;  %v460_v43 = vadd.f32 %v1395_v24, %v459_v40  ;;  %v402_v44 = vpop.f32.mrf.mxu0 }
  0xbe   : > { %v422_v45 = vpop.f32.mrf.mxu1  ;;  %v1148_v46 = vpop.eup %1147  ;;  %525 = vst [vmem:[%s1404_s12 + $0x80] sm:$0xff] %v1146_v41  ;;  %v403_v47 = vadd.f32 %v1395_v24, %v402_v44 }
  0xbf   : > { %v423_v48 = vadd.f32 %v1395_v24, %v422_v45  ;;  %v1150_v49 = vpop.eup %1149  ;;  %533 = vst [vmem:[%s1404_s12 + $0xc0] sm:$0xff] %v1148_v46  ;;  %1153 = vtanh.f32 %v440_v42 }
  0xc0   : > { %v1152_v50 = vpop.eup %1151  ;;  %510 = vst [vmem:[%s1404_s12 + $0x8] sm:$0xff] %v1150_v49  ;;  %1155 = vtanh.f32 %v460_v43 }
  0xc1   : > { %518 = vst [vmem:[%s1404_s12 + $0x48] sm:$0xff] %v1152_v50  ;;  %1157 = vtanh.f32 %v403_v47 }
  0xc2   : > { %1159 = vtanh.f32 %v423_v48 }
  0xc4   : > { %v442_v51 = vpop.f32.mrf.mxu2  ;;  %v462_v52 = vpop.f32.mrf.mxu3 }
  0xc5   : > { %v1154_v53 = vpop.eup %1153  ;;  %v443_v54 = vadd.f32 %v1395_v24, %v442_v51  ;;  %v463_v55 = vadd.f32 %v1395_v24, %v462_v52  ;;  %v404_v56 = vpop.f32.mrf.mxu0 }
  0xc6   : > { %v424_v57 = vpop.f32.mrf.mxu1  ;;  %v1156_v58 = vpop.eup %1155  ;;  %526 = vst [vmem:[%s1404_s12 + $0x88] sm:$0xff] %v1154_v53  ;;  %v405_v59 = vadd.f32 %v1395_v24, %v404_v56 }
  0xc7   : > { %v425_v60 = vadd.f32 %v1395_v24, %v424_v57  ;;  %v1158_v61 = vpop.eup %1157  ;;  %534 = vst [vmem:[%s1404_s12 + $0xc8] sm:$0xff] %v1156_v58  ;;  %1161 = vtanh.f32 %v443_v54 }
  0xc8   : > { %v1160_v62 = vpop.eup %1159  ;;  %511 = vst [vmem:[%s1404_s12 + $0x10] sm:$0xff] %v1158_v61  ;;  %1163 = vtanh.f32 %v463_v55 }
  0xc9   : > { %519 = vst [vmem:[%s1404_s12 + $0x50] sm:$0xff] %v1160_v62  ;;  %1165 = vtanh.f32 %v405_v59 }
  0xca   : > { %1167 = vtanh.f32 %v425_v60 }
  0xcc   : > { %v444_v63 = vpop.f32.mrf.mxu2  ;;  %v464_v0 = vpop.f32.mrf.mxu3 }
  0xcd   : > { %v1162_v1 = vpop.eup %1161  ;;  %v445_v2 = vadd.f32 %v1395_v24, %v444_v63  ;;  %v465_v3 = vadd.f32 %v1395_v24, %v464_v0  ;;  %v407_v4 = vpop.f32.mrf.mxu0 }
  0xce   : > { %v427_v5 = vpop.f32.mrf.mxu1  ;;  %v1164_v6 = vpop.eup %1163  ;;  %527 = vst [vmem:[%s1404_s12 + $0x90] sm:$0xff] %v1162_v1  ;;  %v408_v7 = vadd.f32 %v1395_v24, %v407_v4 }
  0xcf   : > { %v428_v8 = vadd.f32 %v1395_v24, %v427_v5  ;;  %v1166_v9 = vpop.eup %1165  ;;  %535 = vst [vmem:[%s1404_s12 + $0xd0] sm:$0xff] %v1164_v6  ;;  %1169 = vtanh.f32 %v445_v2 }
  0xd0   : > { %v1168_v10 = vpop.eup %1167  ;;  %512 = vst [vmem:[%s1404_s12 + $0x18] sm:$0xff] %v1166_v9  ;;  %1171 = vtanh.f32 %v465_v3 }
  0xd1   : > { %520 = vst [vmem:[%s1404_s12 + $0x58] sm:$0xff] %v1168_v10  ;;  %1173 = vtanh.f32 %v408_v7 }
  0xd2   : > { %1175 = vtanh.f32 %v428_v8 }
  0xd4   : > { %v447_v11 = vpop.f32.mrf.mxu2  ;;  %v467_v12 = vpop.f32.mrf.mxu3 }
  0xd5   : > { %v1170_v13 = vpop.eup %1169  ;;  %v448_v14 = vadd.f32 %v1395_v24, %v447_v11  ;;  %v468_v15 = vadd.f32 %v1395_v24, %v467_v12  ;;  %v409_v16 = vpop.f32.mrf.mxu0 }
  0xd6   : > { %v429_v17 = vpop.f32.mrf.mxu1  ;;  %v1172_v18 = vpop.eup %1171  ;;  %528 = vst [vmem:[%s1404_s12 + $0x98] sm:$0xff] %v1170_v13  ;;  %v410_v19 = vadd.f32 %v1395_v24, %v409_v16 }
  0xd7   : > { %v430_v20 = vadd.f32 %v1395_v24, %v429_v17  ;;  %v1174_v21 = vpop.eup %1173  ;;  %536 = vst [vmem:[%s1404_s12 + $0xd8] sm:$0xff] %v1172_v18  ;;  %1177 = vtanh.f32 %v448_v14 }
  0xd8   : > { %v1176_v22 = vpop.eup %1175  ;;  %513 = vst [vmem:[%s1404_s12 + $0x20] sm:$0xff] %v1174_v21  ;;  %1179 = vtanh.f32 %v468_v15 }
  0xd9   : > { %521 = vst [vmem:[%s1404_s12 + $0x60] sm:$0xff] %v1176_v22  ;;  %1181 = vtanh.f32 %v410_v19 }
  0xda   : > { %1183 = vtanh.f32 %v430_v20 }
  0xdc   : > { %v449_v23 = vpop.f32.mrf.mxu2  ;;  %v469_v25 = vpop.f32.mrf.mxu3 }
  0xdd   : > { %v1178_v26 = vpop.eup %1177  ;;  %v450_v27 = vadd.f32 %v1395_v24, %v449_v23  ;;  %v470_v28 = vadd.f32 %v1395_v24, %v469_v25  ;;  %v412_v29 = vpop.f32.mrf.mxu0 }
  0xde   : > { %v432_v30 = vpop.f32.mrf.mxu1  ;;  %v1180_v31 = vpop.eup %1179  ;;  %529 = vst [vmem:[%s1404_s12 + $0xa0] sm:$0xff] %v1178_v26  ;;  %v413_v32 = vadd.f32 %v1395_v24, %v412_v29 }
  0xdf   : > { %v433_v33 = vadd.f32 %v1395_v24, %v432_v30  ;;  %v1182_v34 = vpop.eup %1181  ;;  %537 = vst [vmem:[%s1404_s12 + $0xe0] sm:$0xff] %v1180_v31  ;;  %1185 = vtanh.f32 %v450_v27 }
  0xe0   : > { %v1184_v35 = vpop.eup %1183  ;;  %514 = vst [vmem:[%s1404_s12 + $0x28] sm:$0xff] %v1182_v34  ;;  %1187 = vtanh.f32 %v470_v28 }
  0xe1   : > { %522 = vst [vmem:[%s1404_s12 + $0x68] sm:$0xff] %v1184_v35  ;;  %1189 = vtanh.f32 %v413_v32 }
  0xe2   : > { %1191 = vtanh.f32 %v433_v33 }
  0xe4   : > { %v452_v36 = vpop.f32.mrf.mxu2  ;;  %v472_v37 = vpop.f32.mrf.mxu3 }
  0xe5   : > { %v1186_v38 = vpop.eup %1185  ;;  %v453_v39 = vadd.f32 %v1395_v24, %v452_v36  ;;  %v473_v40 = vadd.f32 %v1395_v24, %v472_v37  ;;  %v414_v41 = vpop.f32.mrf.mxu0 }
  0xe6   : > { %v434_v42 = vpop.f32.mrf.mxu1  ;;  %v1188_v43 = vpop.eup %1187  ;;  %530 = vst [vmem:[%s1404_s12 + $0xa8] sm:$0xff] %v1186_v38  ;;  %v415_v44 = vadd.f32 %v1395_v24, %v414_v41 }
  0xe7   : > { %v435_v45 = vadd.f32 %v1395_v24, %v434_v42  ;;  %v1190_v46 = vpop.eup %1189  ;;  %538 = vst [vmem:[%s1404_s12 + $0xe8] sm:$0xff] %v1188_v43  ;;  %1193 = vtanh.f32 %v453_v39 }
  0xe8   : > { %v1192_v47 = vpop.eup %1191  ;;  %515 = vst [vmem:[%s1404_s12 + $0x30] sm:$0xff] %v1190_v46  ;;  %1195 = vtanh.f32 %v473_v40 }
  0xe9   : > { %523 = vst [vmem:[%s1404_s12 + $0x70] sm:$0xff] %v1192_v47  ;;  %1197 = vtanh.f32 %v415_v44 }
  0xea   : > { %1199 = vtanh.f32 %v435_v45 }
  0xec   : > { %v454_v48 = vpop.f32.mrf.mxu2  ;;  %v474_v49 = vpop.f32.mrf.mxu3 }
  0xed   : > { %v1194_v50 = vpop.eup %1193  ;;  %v455_v51 = vadd.f32 %v1395_v24, %v454_v48  ;;  %v475_v52 = vadd.f32 %v1395_v24, %v474_v49 }
  0xee   : > { %v1196_v53 = vpop.eup %1195  ;;  %531 = vst [vmem:[%s1404_s12 + $0xb0] sm:$0xff] %v1194_v50 }
  0xef   : > { %v1198_v54 = vpop.eup %1197  ;;  %539 = vst [vmem:[%s1404_s12 + $0xf0] sm:$0xff] %v1196_v53  ;;  %1201 = vtanh.f32 %v455_v51 }
  0xf0   : > { %v1200_v55 = vpop.eup %1199  ;;  %516 = vst [vmem:[%s1404_s12 + $0x38] sm:$0xff] %v1198_v54  ;;  %1203 = vtanh.f32 %v475_v52 }
  0xf1   : > { %524 = vst [vmem:[%s1404_s12 + $0x78] sm:$0xff] %v1200_v55 }
  0xf3   : > { %547 = sbr.rel (!%p1338_p4) target bundleno = 312 (0x138), region = 36 }
  0xf5   : > { %v1202_v56 = vpop.eup %1201 }
  0xf6   : > { %v1204_v57 = vpop.eup %1203  ;;  %532 = vst [vmem:[%s1404_s12 + $0xb8] sm:$0xff] %v1202_v56 }
  0xf7   : > { %540 = vst [vmem:[%s1404_s12 + $0xf8] sm:$0xff] %v1204_v57 }
  0xf8   : > { %s1620_s26 = smov (!%p550_p8, %s549_s26), 32 }
  0xf9   : > { %s986_s5 = sshll.u32 %s1620_s26, 3 }
  0xfa   : > { %p989_p9 = scmp.eq.s32.totalorder %s986_s5, 0 }
  0xfb   : > { %s1477_s6 = sshrl.u32 (!%p989_p9), %s1620_s26, 5 }
  0xfc   : > { %558 = sbr.rel (%p989_p9) target bundleno = 312 (0x138), region = 40  ;;  %p990_p10 = scmp.le.s32.totalorder (!%p989_p9), %s1477_s6, 0 }
 0x101   : > { %837 = sbr.rel (%p990_p10) target bundleno = 295 (0x127), region = 116  ;;  %s1611_s15 = smov (!%p990_p10), %s1471_s4 }
 0x102   : > { %s1612_s20 = smov (!%p990_p10), %s1404_s12  ;;  %s1486_s29 = smov (!%p990_p10), 0  }
 0x103   : > { %s1488_s7 = smov (!%p990_p10), 0  }
 0x106 LB: >> { %v683_v24 = vld [vmem:[%s1267_s20] sm:$0xff]  ;;  %v685_v58 = vld [vmem:[%s1267_s20 + $0x8] sm:$0xff]  ;;  %v687_v59 = vld [vmem:[%s1267_s20 + $0x10] sm:$0xff]  ;;  %s747_s8 = sadd.s32 1, %s1271_s29  ;;  %s677_s7 = sadd.s32 1, %s1275_s7   ;;  %s1275_s7 = sphi %s1488_s7, %s677_s7   ;;  %s1271_s29 = sphi %s1486_s29, %s1615_s29   ;;  %s1267_s20 = sphi %s1612_s20, %s1614_s20   ;;  %s1263_s15 = sphi %s1611_s15, %s1613_s15  }
 0x107   : >> { %684 = vst [vmem:[%s1263_s15] sm:$0xff] %v683_v24  ;;  %v689_v60 = vld [vmem:[%s1267_s20 + $0x18] sm:$0xff]  ;;  %p748_p11 = scmp.ge.s32.totalorder %s747_s8, %s1477_s6  ;;  %v691_v61 = vld [vmem:[%s1267_s20 + $0x20] sm:$0xff]  ;;  %v693_v62 = vld [vmem:[%s1267_s20 + $0x28] sm:$0xff]  ;;  %p676_p12 = scmp.ge.s32.totalorder %s677_s7, %s1477_s6 }
 0x108   : >> { %686 = vst [vmem:[%s1263_s15 + $0x8] sm:$0xff] %v685_v58  ;;  %v695_v63 = vld [vmem:[%s1267_s20 + $0x30] sm:$0xff]  ;;  %v697_v0 = vld [vmem:[%s1267_s20 + $0x38] sm:$0xff]  ;;  %v699_v1 = vld [vmem:[%s1267_s20 + $0x40] sm:$0xff] }
 0x109   : >> { %688 = vst [vmem:[%s1263_s15 + $0x10] sm:$0xff] %v687_v59  ;;  %s1622_s8 = smov (%p748_p11, %s747_s8), 0  ;;  %v701_v2 = vld [vmem:[%s1267_s20 + $0x48] sm:$0xff]  ;;  %v703_v3 = vld [vmem:[%s1267_s20 + $0x50] sm:$0xff]  ;;  %v705_v4 = vld [vmem:[%s1267_s20 + $0x58] sm:$0xff] }
 0x10a   : >> { %690 = vst [vmem:[%s1263_s15 + $0x18] sm:$0xff] %v689_v60  ;;  %s991_s9 = sshll.u32 %s1622_s8, 8  ;;  %v707_v5 = vld [vmem:[%s1267_s20 + $0x60] sm:$0xff]  ;;  %v709_v6 = vld [vmem:[%s1267_s20 + $0x68] sm:$0xff]  ;;  %v711_v7 = vld [vmem:[%s1267_s20 + $0x70] sm:$0xff]  ;;  %s1615_s29 = smov %s1622_s8 }
 0x10b   : >> { %692 = vst [vmem:[%s1263_s15 + $0x20] sm:$0xff] %v691_v61  ;;  %s1520_s10 = scalar_lea.vmem %s1404_s12, %s991_s9 [#allocation2]   ;;  %s1523_s11 = scalar_lea.vmem %s1471_s4, %s991_s9   ;;  %v713_v8 = vld [vmem:[%s1267_s20 + $0x78] sm:$0xff]  ;;  %v715_v9 = vld [vmem:[%s1267_s20 + $0x80] sm:$0xff]  ;;  %v717_v10 = vld [vmem:[%s1267_s20 + $0x88] sm:$0xff] }
 0x10c   : >> { %694 = vst [vmem:[%s1263_s15 + $0x28] sm:$0xff] %v693_v62  ;;  %v719_v11 = vld [vmem:[%s1267_s20 + $0x90] sm:$0xff]  ;;  %v721_v12 = vld [vmem:[%s1267_s20 + $0x98] sm:$0xff]  ;;  %v723_v13 = vld [vmem:[%s1267_s20 + $0xa0] sm:$0xff] }
 0x10d   : >> { %696 = vst [vmem:[%s1263_s15 + $0x30] sm:$0xff] %v695_v63  ;;  %v725_v14 = vld [vmem:[%s1267_s20 + $0xa8] sm:$0xff]  ;;  %v727_v15 = vld [vmem:[%s1267_s20 + $0xb0] sm:$0xff]  ;;  %v729_v16 = vld [vmem:[%s1267_s20 + $0xb8] sm:$0xff] }
 0x10e   : >> { %698 = vst [vmem:[%s1263_s15 + $0x38] sm:$0xff] %v697_v0  ;;  %v731_v17 = vld [vmem:[%s1267_s20 + $0xc0] sm:$0xff]  ;;  %v733_v18 = vld [vmem:[%s1267_s20 + $0xc8] sm:$0xff]  ;;  %v735_v19 = vld [vmem:[%s1267_s20 + $0xd0] sm:$0xff] }
 0x10f   : >> { %700 = vst [vmem:[%s1263_s15 + $0x40] sm:$0xff] %v699_v1  ;;  %v737_v20 = vld [vmem:[%s1267_s20 + $0xd8] sm:$0xff]  ;;  %v739_v21 = vld [vmem:[%s1267_s20 + $0xe0] sm:$0xff]  ;;  %v741_v22 = vld [vmem:[%s1267_s20 + $0xe8] sm:$0xff] }
 0x110   : >> { %702 = vst [vmem:[%s1263_s15 + $0x48] sm:$0xff] %v701_v2  ;;  %v743_v23 = vld [vmem:[%s1267_s20 + $0xf0] sm:$0xff]  ;;  %v745_v25 = vld [vmem:[%s1267_s20 + $0xf8] sm:$0xff]  ;;  %s1614_s20 = smov %s1520_s10 }
 0x111   : >> { %704 = vst [vmem:[%s1263_s15 + $0x50] sm:$0xff] %v703_v3 }
 0x112   : >> { %706 = vst [vmem:[%s1263_s15 + $0x58] sm:$0xff] %v705_v4 }
 0x113   : >> { %708 = vst [vmem:[%s1263_s15 + $0x60] sm:$0xff] %v707_v5 }
 0x114   : >> { %710 = vst [vmem:[%s1263_s15 + $0x68] sm:$0xff] %v709_v6 }
 0x115   : >> { %712 = vst [vmem:[%s1263_s15 + $0x70] sm:$0xff] %v711_v7 }
 0x116   : >> { %714 = vst [vmem:[%s1263_s15 + $0x78] sm:$0xff] %v713_v8 }
 0x117   : >> { %716 = vst [vmem:[%s1263_s15 + $0x80] sm:$0xff] %v715_v9 }
 0x118   : >> { %718 = vst [vmem:[%s1263_s15 + $0x88] sm:$0xff] %v717_v10 }
 0x119   : >> { %720 = vst [vmem:[%s1263_s15 + $0x90] sm:$0xff] %v719_v11 }
 0x11a   : >> { %722 = vst [vmem:[%s1263_s15 + $0x98] sm:$0xff] %v721_v12 }
 0x11b   : >> { %724 = vst [vmem:[%s1263_s15 + $0xa0] sm:$0xff] %v723_v13 }
 0x11c   : >> { %726 = vst [vmem:[%s1263_s15 + $0xa8] sm:$0xff] %v725_v14 }
 0x11d   : >> { %728 = vst [vmem:[%s1263_s15 + $0xb0] sm:$0xff] %v727_v15 }
 0x11e   : >> { %730 = vst [vmem:[%s1263_s15 + $0xb8] sm:$0xff] %v729_v16 }
 0x11f   : >> { %732 = vst [vmem:[%s1263_s15 + $0xc0] sm:$0xff] %v731_v17 }
 0x120   : >> { %734 = vst [vmem:[%s1263_s15 + $0xc8] sm:$0xff] %v733_v18 }
 0x121   : >> { %736 = vst [vmem:[%s1263_s15 + $0xd0] sm:$0xff] %v735_v19 }
 0x122   : >> { %738 = vst [vmem:[%s1263_s15 + $0xd8] sm:$0xff] %v737_v20  ;;  %679 = sbr.rel (!%p676_p12) target bundleno = 262 (0x106), region = 122 }
 0x123   : >> { %740 = vst [vmem:[%s1263_s15 + $0xe0] sm:$0xff] %v739_v21 }
 0x124   : >> { %742 = vst [vmem:[%s1263_s15 + $0xe8] sm:$0xff] %v741_v22 }
 0x125   : >> { %744 = vst [vmem:[%s1263_s15 + $0xf0] sm:$0xff] %v743_v23 }
 0x126   : >> { %746 = vst [vmem:[%s1263_s15 + $0xf8] sm:$0xff] %v745_v25  ;;  %s1613_s15 = smov %s1523_s11 }
 0x127 PF: > { %s1588_s14 = sand.u32 31, %s1620_s26   ;;  %s1026_s17 = sshll.u32 %s1477_s6, 8 }
 0x128   : > { %s758_s18 = scalar_lea.vmem %s1404_s12, %s1026_s17 [#allocation2]   ;;  %s760_s21 = scalar_lea.vmem %s1471_s4, %s1026_s17  }
 0x129   : > { %p996_p13 = scmp.le.s32.totalorder %s1588_s14, 0 }
 0x12a   : > { %s1277_s22 = smov (!%p996_p13), %s760_s21   ;;  %s1281_s23 = smov (!%p996_p13), %s758_s18  }
 0x12b   : > { %851 = sbr.rel (%p996_p13) target bundleno = 312 (0x138), region = 127  ;;  %s1285_s24 = smov (!%p996_p13), 0  }
 0x12c   : > { %s1289_s25 = smov (!%p996_p13), 0  }
 0x130 LB: >> { %v770_v26 = vld [vmem:[%s1283_s23] sm:$0xff]  ;;  %s772_s26 = sadd.s32 1, %s1287_s24  ;;  %s764_s25 = sadd.s32 1, %s1291_s25   ;;  %s1291_s25 = sphi %s1289_s25, %s764_s25   ;;  %s1287_s24 = sphi %s1285_s24, %s1286_s24   ;;  %s1283_s23 = sphi %s1281_s23, %s777_s23   ;;  %s1279_s22 = sphi %s1277_s22, %s778_s22  }
 0x131   : >> { %771 = vst [vmem:[%s1279_s22] sm:$0xff] %v770_v26  ;;  %p773_p0 = scmp.ge.s32.totalorder %s772_s26, %s1588_s14  ;;  %p763_p1 = scmp.ge.s32.totalorder %s764_s25, %s1588_s14 }
 0x133   : >> { %s1624_s26 = smov (%p773_p0, %s772_s26), 0  ;;  %766 = sbr.rel (!%p763_p1) target bundleno = 304 (0x130), region = 133 }
 0x134   : >> { %s997_s12 = sshll.u32 %s1624_s26, 3  ;;  %s1286_s24 = smov %s1624_s26  }
 0x135   : >> { %s777_s23 = scalar_lea.vmem %s758_s18, %s997_s12 [#allocation2]   ;;  %s778_s22 = scalar_lea.vmem %s760_s21, %s997_s12  }
 0x138 PF: > { %p10_p2 = scmp.ge.s32.totalorder %s1328_s16, 5   ;;  %s1616_s12 = smov %s1255_s13 }
 0x139   : > { %s1617_s13 = smov %s1336_s19  ;;  %s1618_s14 = smov %s1328_s16 }
 0x13a   :  { %12 = sbr.rel (!%p10_p2) target bundleno = 2 (0x2), region = 144 }

</bundles_post_ra>
